<compile_context>
chip_gen: v7x
topology: tpu7x:2x2x1
jax: 0.10.0
libtpu: 0.0.40
codegen_flags: <defaults>
</compile_context>

<pallas_src>
import functools

import jax
import jax.numpy as jnp
from jax.experimental import pallas as pl
from jax.experimental.pallas import tpu as pltpu


# ----------------------------------------------------------------------------
# Fused kernel: one grid step = one batch element; everything stays in VMEM.
# ----------------------------------------------------------------------------
def _upsample_block_kernel(x_ref, x0_ref, w1_ref, b1_ref, wc_ref, bc_ref,
                           w2_ref, b2_ref, o_ref,
                           xpad, uppad, x0pad, zpad, *, H, W, Cin, C):
    H2, W2 = 2 * H, 2 * W

    # Zero the padded scratches (only the 1-pixel halo really needs it; interiors
    # are overwritten below).  Done every step -> no cross-iteration state, so the
    # batch grid axis can safely be "parallel" (megacore).
    xpad[...] = jnp.zeros_like(xpad)
    uppad[...] = jnp.zeros_like(uppad)
    x0pad[...] = jnp.zeros_like(x0pad)
    zpad[...] = jnp.zeros_like(zpad)

    def conv3x3(pad_refs, h, w, w_ref, b_ref, relu):
        # im2col: build (h*w, 9*K) patch rows, then a single MXU matmul.
        # Channel order per tap = order of pad_refs (matches the weight reshape).
        pieces = []
        for dy in range(3):
            for dx in range(3):
                for r in pad_refs:
                    pieces.append(r[dy:dy + h, dx:dx + w, :])
        patches = jnp.concatenate(pieces, axis=-1).reshape(h * w, -1)
        acc = jnp.dot(patches, w_ref[...], preferred_element_type=jnp.float32)
        acc = acc + b_ref[...]                       # (h*w, C) + (1, C)
        if relu:
            acc = jnp.maximum(acc, 0.0)
        return acc                                   # (h*w, C) f32

    # ---- conv1: (H, W, Cin) -> (H, W, C) ------------------------------------
    xpad[1:H + 1, 1:W + 1, :] = x_ref[0].astype(jnp.float32)
    y1 = conv3x3([xpad], H, W, w1_ref, b1_ref, relu=False)        # (H*W, C)

    # ---- nearest x2 upsample (VMEM only) + concat + combine + relu ----------
    up = jnp.repeat(jnp.repeat(y1.reshape(H, W, C), 2, axis=0), 2, axis=1)
    uppad[1:H2 + 1, 1:W2 + 1, :] = up
    x0pad[1:H2 + 1, 1:W2 + 1, :] = x0_ref[0].astype(jnp.float32)
    # per-tap channel order [upsampled, x0]  ==  torch.cat((x, x0), 1)
    z = conv3x3([uppad, x0pad], H2, W2, wc_ref, bc_ref, relu=True)  # (H2*W2, C)

    # ---- conv2 = [Conv3x3, ReLU] --------------------------------------------
    zpad[1:H2 + 1, 1:W2 + 1, :] = z.reshape(H2, W2, C)
    out = conv3x3([zpad], H2, W2, w2_ref, b2_ref, relu=True)        # (H2*W2, C)

    o_ref[0] = out.astype(o_ref.dtype)


# ----------------------------------------------------------------------------
# Wrapper: PyTorch-style NCHW in/out, NHWC (channels -> lanes) inside.
# ----------------------------------------------------------------------------
def upsample_block_forward(params, x_nchw, x0_nchw):
    # Single NCHW -> NHWC transpose at the block boundary (a full-network port
    # would stay NHWC end-to-end and drop these).
    x = jnp.transpose(x_nchw, (0, 2, 3, 1)).astype(jnp.float32)
    x0 = jnp.transpose(x0_nchw, (0, 2, 3, 1)).astype(jnp.float32)

    N, H, W, Cin = x.shape
    C = params["b1"].shape[0]
    H2, W2 = 2 * H, 2 * W
    assert x0.shape == (N, H2, W2, C), x0.shape

    # im2col weight layout: HWIO (3,3,K,C) -> (9*K, C); biases as (1, C).
    w1 = params["w1"].reshape(9 * Cin, C).astype(jnp.float32)
    wc = params["wc"].reshape(9 * 2 * C, C).astype(jnp.float32)
    w2 = params["w2"].reshape(9 * C, C).astype(jnp.float32)
    b1 = params["b1"].reshape(1, C).astype(jnp.float32)
    bc = params["bc"].reshape(1, C).astype(jnp.float32)
    b2 = params["b2"].reshape(1, C).astype(jnp.float32)

    kernel = functools.partial(_upsample_block_kernel, H=H, W=W, Cin=Cin, C=C)

    out = pl.pallas_call(
        kernel,
        out_shape=jax.ShapeDtypeStruct((N, H2 * W2, C), jnp.float32),
        grid_spec=pltpu.PrefetchScalarGridSpec(
            num_scalar_prefetch=0,
            grid=(N,),
            in_specs=[
                pl.BlockSpec((1, H, W, Cin), lambda n: (n, 0, 0, 0)),
                pl.BlockSpec((1, H2, W2, C), lambda n: (n, 0, 0, 0)),
                pl.BlockSpec((9 * Cin, C), lambda n: (0, 0)),      # w1 (resident)
                pl.BlockSpec((1, C), lambda n: (0, 0)),            # b1
                pl.BlockSpec((9 * 2 * C, C), lambda n: (0, 0)),    # wc
                pl.BlockSpec((1, C), lambda n: (0, 0)),            # bc
                pl.BlockSpec((9 * C, C), lambda n: (0, 0)),        # w2
                pl.BlockSpec((1, C), lambda n: (0, 0)),            # b2
            ],
            out_specs=pl.BlockSpec((1, H2 * W2, C), lambda n: (n, 0, 0)),
            scratch_shapes=[
                pltpu.VMEM((H + 2, W + 2, Cin), jnp.float32),      # padded x
                pltpu.VMEM((H2 + 2, W2 + 2, C), jnp.float32),      # padded upsample
                pltpu.VMEM((H2 + 2, W2 + 2, C), jnp.float32),      # padded x0
                pltpu.VMEM((H2 + 2, W2 + 2, C), jnp.float32),      # padded combine out
            ],
        ),
        compiler_params=pltpu.CompilerParams(
            dimension_semantics=("parallel",),
            vmem_limit_bytes=64 * 1024 * 1024,
        ),
    )(x, x0, w1, b1, wc, bc, w2, b2)

    # (N, H2*W2, C) and (N, H2, W2, C) share the same HBM byte layout: free reshape.
    out = out.reshape(N, H2, W2, C)
    return jnp.transpose(out, (0, 3, 1, 2))  # back to NCHW


# ----------------------------------------------------------------------------
# Deterministic parameter init (PyTorch OIHW shapes -> HWIO).
# ----------------------------------------------------------------------------
def make_params(key, in_channels, out_channels):
    ks = jax.random.split(key, 6)

    def conv_init(kw, kb, cout, cin):
        fan_in = cin * 9
        bound = 1.0 / jnp.sqrt(fan_in)
        w_oihw = jax.random.uniform(kw, (cout, cin, 3, 3), jnp.float32, -bound, bound)
        b = jax.random.uniform(kb, (cout,), jnp.float32, -bound, bound)
        return jnp.transpose(w_oihw, (2, 3, 1, 0)), b   # OIHW -> HWIO

    w1, b1 = conv_init(ks[0], ks[1], out_channels, in_channels)
    wc, bc = conv_init(ks[2], ks[3], out_channels, 2 * out_channels)
    w2, b2 = conv_init(ks[4], ks[5], out_channels, out_channels)
    return {"w1": w1, "b1": b1, "wc": wc, "bc": bc, "w2": w2, "b2": b2}


# ----------------------------------------------------------------------------
# Pure-JAX reference (lax conv) for a correctness check.
# ----------------------------------------------------------------------------
def _ref_conv3x3_nchw(x, w_hwio, b, relu):
    w_oihw = jnp.transpose(w_hwio, (3, 2, 0, 1))
    y = jax.lax.conv_general_dilated(
        x, w_oihw, window_strides=(1, 1), padding=((1, 1), (1, 1)),
        dimension_numbers=("NCHW", "OIHW", "NCHW"))
    y = y + b.reshape(1, -1, 1, 1)
    return jnp.maximum(y, 0.0) if relu else y


def _ref_forward(params, x, x0):
    y = _ref_conv3x3_nchw(x, params["w1"], params["b1"], False)
    y = jnp.repeat(jnp.repeat(y, 2, axis=2), 2, axis=3)
    y = _ref_conv3x3_nchw(jnp.concatenate([y, x0], axis=1),
                          params["wc"], params["bc"], True)
    return _ref_conv3x3_nchw(y, params["w2"], params["b2"], True)


if __name__ == "__main__":
    key = jax.random.PRNGKey(0)
    k_p, k_x, k_x0 = jax.random.split(key, 3)

    N, IN_C, OUT_C, H, W = 2, 4, 8, 8, 8
    params = make_params(k_p, IN_C, OUT_C)

    x = jax.random.normal(k_x, (N, IN_C, H, W), jnp.float32)              # NCHW
    x0 = jax.random.normal(k_x0, (N, OUT_C, 2 * H, 2 * W), jnp.float32)

    out = upsample_block_forward(params, x, x0)
    out = jax.block_until_ready(out)

    assert out.shape == (N, OUT_C, 2 * H, 2 * W), out.shape

    ref = jax.block_until_ready(_ref_forward(params, x, x0))
    assert jnp.allclose(out, ref, atol=1e-4, rtol=1e-4), float(jnp.max(jnp.abs(out - ref)))

    print("KERNEL_OK")
</pallas_src>

<mosaic_0001>
module attributes {stable_mosaic.version = 11 : i64} {
  func.func @_upsample_block_kernel(%arg0: i32, %arg1: memref<1x8x8x4xf32, #tpu.memory_space<vmem>>, %arg2: memref<1x16x16x8xf32, #tpu.memory_space<vmem>>, %arg3: memref<36x8xf32, #tpu.memory_space<vmem>>, %arg4: memref<1x8xf32, #tpu.memory_space<vmem>>, %arg5: memref<144x8xf32, #tpu.memory_space<vmem>>, %arg6: memref<1x8xf32, #tpu.memory_space<vmem>>, %arg7: memref<72x8xf32, #tpu.memory_space<vmem>>, %arg8: memref<1x8xf32, #tpu.memory_space<vmem>>, %arg9: memref<1x256x8xf32, #tpu.memory_space<vmem>>, %arg10: memref<10x10x4xf32, #tpu.memory_space<vmem>>, %arg11: memref<18x18x8xf32, #tpu.memory_space<vmem>>, %arg12: memref<18x18x8xf32, #tpu.memory_space<vmem>>, %arg13: memref<18x18x8xf32, #tpu.memory_space<vmem>>) attributes {dimension_semantics = [#tpu.dimension_semantics<parallel>], iteration_bounds = array<i64: 2>, scalar_prefetch = 0 : i64, scratch_operands = 4 : i64, tpu.core_type = #tpu.core_type<tc>, window_params = [{transform_indices = @transform_0, window_bounds = array<i64: 1, 8, 8, 4>}, {transform_indices = @transform_1, window_bounds = array<i64: 1, 16, 16, 8>}, {pipeline_mode = #tpu.pipeline_mode<synchronous>, transform_indices = @transform_2, window_bounds = array<i64: 36, 8>}, {pipeline_mode = #tpu.pipeline_mode<synchronous>, transform_indices = @transform_3, window_bounds = array<i64: 1, 8>}, {pipeline_mode = #tpu.pipeline_mode<synchronous>, transform_indices = @transform_4, window_bounds = array<i64: 144, 8>}, {pipeline_mode = #tpu.pipeline_mode<synchronous>, transform_indices = @transform_5, window_bounds = array<i64: 1, 8>}, {pipeline_mode = #tpu.pipeline_mode<synchronous>, transform_indices = @transform_6, window_bounds = array<i64: 72, 8>}, {pipeline_mode = #tpu.pipeline_mode<synchronous>, transform_indices = @transform_7, window_bounds = array<i64: 1, 8>}, {transform_indices = @transform_8, window_bounds = array<i64: 1, 256, 8>}]} {
    %cst = arith.constant 0.000000e+00 : f32
    %0 = vector.broadcast %cst : f32 to vector<10x10x4xf32>
    %c0 = arith.constant 0 : index
    %c0_0 = arith.constant 0 : index
    %c0_1 = arith.constant 0 : index
    %1 = vector.load %arg10[%c0, %c0_0, %c0_1] : memref<10x10x4xf32, #tpu.memory_space<vmem>>, vector<10x10x4xf32>
    tpu.vector_store %arg10[%c0, %c0_0, %c0_1], %0 {strides = array<i32>} : memref<10x10x4xf32, #tpu.memory_space<vmem>>, vector<10x10x4xf32>,
    %cst_2 = arith.constant 0.000000e+00 : f32
    %2 = vector.broadcast %cst_2 : f32 to vector<18x18x8xf32>
    %c0_3 = arith.constant 0 : index
    %c0_4 = arith.constant 0 : index
    %c0_5 = arith.constant 0 : index
    %3 = vector.load %arg11[%c0_3, %c0_4, %c0_5] : memref<18x18x8xf32, #tpu.memory_space<vmem>>, vector<18x18x8xf32>
    tpu.vector_store %arg11[%c0_3, %c0_4, %c0_5], %2 {strides = array<i32>} : memref<18x18x8xf32, #tpu.memory_space<vmem>>, vector<18x18x8xf32>,
    %cst_6 = arith.constant 0.000000e+00 : f32
    %4 = vector.broadcast %cst_6 : f32 to vector<18x18x8xf32>
    %c0_7 = arith.constant 0 : index
    %c0_8 = arith.constant 0 : index
    %c0_9 = arith.constant 0 : index
    %5 = vector.load %arg12[%c0_7, %c0_8, %c0_9] : memref<18x18x8xf32, #tpu.memory_space<vmem>>, vector<18x18x8xf32>
    tpu.vector_store %arg12[%c0_7, %c0_8, %c0_9], %4 {strides = array<i32>} : memref<18x18x8xf32, #tpu.memory_space<vmem>>, vector<18x18x8xf32>,
    %cst_10 = arith.constant 0.000000e+00 : f32
    %6 = vector.broadcast %cst_10 : f32 to vector<18x18x8xf32>
    %c0_11 = arith.constant 0 : index
    %c0_12 = arith.constant 0 : index
    %c0_13 = arith.constant 0 : index
    %7 = vector.load %arg13[%c0_11, %c0_12, %c0_13] : memref<18x18x8xf32, #tpu.memory_space<vmem>>, vector<18x18x8xf32>
    tpu.vector_store %arg13[%c0_11, %c0_12, %c0_13], %6 {strides = array<i32>} : memref<18x18x8xf32, #tpu.memory_space<vmem>>, vector<18x18x8xf32>,
    %c0_14 = arith.constant 0 : index
    %c0_15 = arith.constant 0 : index
    %c0_16 = arith.constant 0 : index
    %c0_17 = arith.constant 0 : index
    %8 = vector.load %arg1[%c0_14, %c0_15, %c0_16, %c0_17] : memref<1x8x8x4xf32, #tpu.memory_space<vmem>>, vector<1x8x8x4xf32>
    %9 = vector.shape_cast %8 : vector<1x8x8x4xf32> to vector<8x8x4xf32>
    %c1 = arith.constant 1 : index
    %c1_18 = arith.constant 1 : index
    %c0_19 = arith.constant 0 : index
    %10 = vector.load %arg10[%c1, %c1_18, %c0_19] : memref<10x10x4xf32, #tpu.memory_space<vmem>>, vector<8x8x4xf32>
    tpu.vector_store %arg10[%c1, %c1_18, %c0_19], %9 {strides = array<i32>} : memref<10x10x4xf32, #tpu.memory_space<vmem>>, vector<8x8x4xf32>,
    %c0_20 = arith.constant 0 : index
    %c0_21 = arith.constant 0 : index
    %c0_22 = arith.constant 0 : index
    %11 = vector.load %arg10[%c0_20, %c0_21, %c0_22] : memref<10x10x4xf32, #tpu.memory_space<vmem>>, vector<8x8x4xf32>
    %c0_23 = arith.constant 0 : index
    %c1_24 = arith.constant 1 : index
    %c0_25 = arith.constant 0 : index
    %12 = vector.load %arg10[%c0_23, %c1_24, %c0_25] : memref<10x10x4xf32, #tpu.memory_space<vmem>>, vector<8x8x4xf32>
    %c0_26 = arith.constant 0 : index
    %c2 = arith.constant 2 : index
    %c0_27 = arith.constant 0 : index
    %13 = vector.load %arg10[%c0_26, %c2, %c0_27] : memref<10x10x4xf32, #tpu.memory_space<vmem>>, vector<8x8x4xf32>
    %c1_28 = arith.constant 1 : index
    %c0_29 = arith.constant 0 : index
    %c0_30 = arith.constant 0 : index
    %14 = vector.load %arg10[%c1_28, %c0_29, %c0_30] : memref<10x10x4xf32, #tpu.memory_space<vmem>>, vector<8x8x4xf32>
    %c1_31 = arith.constant 1 : index
    %c1_32 = arith.constant 1 : index
    %c0_33 = arith.constant 0 : index
    %15 = vector.load %arg10[%c1_31, %c1_32, %c0_33] : memref<10x10x4xf32, #tpu.memory_space<vmem>>, vector<8x8x4xf32>
    %c1_34 = arith.constant 1 : index
    %c2_35 = arith.constant 2 : index
    %c0_36 = arith.constant 0 : index
    %16 = vector.load %arg10[%c1_34, %c2_35, %c0_36] : memref<10x10x4xf32, #tpu.memory_space<vmem>>, vector<8x8x4xf32>
    %c2_37 = arith.constant 2 : index
    %c0_38 = arith.constant 0 : index
    %c0_39 = arith.constant 0 : index
    %17 = vector.load %arg10[%c2_37, %c0_38, %c0_39] : memref<10x10x4xf32, #tpu.memory_space<vmem>>, vector<8x8x4xf32>
    %c2_40 = arith.constant 2 : index
    %c1_41 = arith.constant 1 : index
    %c0_42 = arith.constant 0 : index
    %18 = vector.load %arg10[%c2_40, %c1_41, %c0_42] : memref<10x10x4xf32, #tpu.memory_space<vmem>>, vector<8x8x4xf32>
    %c2_43 = arith.constant 2 : index
    %c2_44 = arith.constant 2 : index
    %c0_45 = arith.constant 0 : index
    %19 = vector.load %arg10[%c2_43, %c2_44, %c0_45] : memref<10x10x4xf32, #tpu.memory_space<vmem>>, vector<8x8x4xf32>
    %20 = tpu.concatenate %11, %12, %13, %14, %15, %16, %17, %18, %19 in 2 : vector<8x8x4xf32>, vector<8x8x4xf32>, vector<8x8x4xf32>, vector<8x8x4xf32>, vector<8x8x4xf32>, vector<8x8x4xf32>, vector<8x8x4xf32>, vector<8x8x4xf32>, vector<8x8x4xf32> -> vector<8x8x36xf32>
    %21 = vector.shape_cast %20 : vector<8x8x36xf32> to vector<64x36xf32>
    %c0_46 = arith.constant 0 : index
    %c0_47 = arith.constant 0 : index
    %22 = vector.load %arg3[%c0_46, %c0_47] : memref<36x8xf32, #tpu.memory_space<vmem>>, vector<36x8xf32>
    %cst_48 = arith.constant dense<0.000000e+00> : vector<64x8xf32>
    %23 = tpu.matmul %21, %22, %cst_48 {dimension_numbers = #tpu.dot_dimension_numbers<[1], [0], [0], [1], [0, 0, 1, 1], [], []>} : vector<64x36xf32>, vector<36x8xf32>, vector<64x8xf32> -> vector<64x8xf32>
    %c0_49 = arith.constant 0 : index
    %c0_50 = arith.constant 0 : index
    %24 = vector.load %arg4[%c0_49, %c0_50] : memref<1x8xf32, #tpu.memory_space<vmem>>, vector<1x8xf32>
    %25 = vector.broadcast %24 : vector<1x8xf32> to vector<64x8xf32>
    %26 = arith.addf %23, %25 : vector<64x8xf32>
    %27 = vector.shape_cast %26 : vector<64x8xf32> to vector<8x8x8xf32>
    %28 = vector.shape_cast %27 : vector<8x8x8xf32> to vector<8x1x8x8xf32>
    %29 = vector.broadcast %28 : vector<8x1x8x8xf32> to vector<8x2x8x8xf32>
    %30 = vector.shape_cast %29 : vector<8x2x8x8xf32> to vector<16x8x8xf32>
    %31 = vector.shape_cast %30 : vector<16x8x8xf32> to vector<16x8x1x8xf32>
    %32 = vector.broadcast %31 : vector<16x8x1x8xf32> to vector<16x8x2x8xf32>
    %33 = vector.shape_cast %32 : vector<16x8x2x8xf32> to vector<16x16x8xf32>
    %c1_51 = arith.constant 1 : index
    %c1_52 = arith.constant 1 : index
    %c0_53 = arith.constant 0 : index
    %34 = vector.load %arg11[%c1_51, %c1_52, %c0_53] : memref<18x18x8xf32, #tpu.memory_space<vmem>>, vector<16x16x8xf32>
    tpu.vector_store %arg11[%c1_51, %c1_52, %c0_53], %33 {strides = array<i32>} : memref<18x18x8xf32, #tpu.memory_space<vmem>>, vector<16x16x8xf32>,
    %c0_54 = arith.constant 0 : index
    %c0_55 = arith.constant 0 : index
    %c0_56 = arith.constant 0 : index
    %c0_57 = arith.constant 0 : index
    %35 = vector.load %arg2[%c0_54, %c0_55, %c0_56, %c0_57] : memref<1x16x16x8xf32, #tpu.memory_space<vmem>>, vector<1x16x16x8xf32>
    %36 = vector.shape_cast %35 : vector<1x16x16x8xf32> to vector<16x16x8xf32>
    %c1_58 = arith.constant 1 : index
    %c1_59 = arith.constant 1 : index
    %c0_60 = arith.constant 0 : index
    %37 = vector.load %arg12[%c1_58, %c1_59, %c0_60] : memref<18x18x8xf32, #tpu.memory_space<vmem>>, vector<16x16x8xf32>
    tpu.vector_store %arg12[%c1_58, %c1_59, %c0_60], %36 {strides = array<i32>} : memref<18x18x8xf32, #tpu.memory_space<vmem>>, vector<16x16x8xf32>,
    %c0_61 = arith.constant 0 : index
    %c0_62 = arith.constant 0 : index
    %c0_63 = arith.constant 0 : index
    %38 = vector.load %arg11[%c0_61, %c0_62, %c0_63] : memref<18x18x8xf32, #tpu.memory_space<vmem>>, vector<16x16x8xf32>
    %c0_64 = arith.constant 0 : index
    %c0_65 = arith.constant 0 : index
    %c0_66 = arith.constant 0 : index
    %39 = vector.load %arg12[%c0_64, %c0_65, %c0_66] : memref<18x18x8xf32, #tpu.memory_space<vmem>>, vector<16x16x8xf32>
    %c0_67 = arith.constant 0 : index
    %c1_68 = arith.constant 1 : index
    %c0_69 = arith.constant 0 : index
    %40 = vector.load %arg11[%c0_67, %c1_68, %c0_69] : memref<18x18x8xf32, #tpu.memory_space<vmem>>, vector<16x16x8xf32>
    %c0_70 = arith.constant 0 : index
    %c1_71 = arith.constant 1 : index
    %c0_72 = arith.constant 0 : index
    %41 = vector.load %arg12[%c0_70, %c1_71, %c0_72] : memref<18x18x8xf32, #tpu.memory_space<vmem>>, vector<16x16x8xf32>
    %c0_73 = arith.constant 0 : index
    %c2_74 = arith.constant 2 : index
    %c0_75 = arith.constant 0 : index
    %42 = vector.load %arg11[%c0_73, %c2_74, %c0_75] : memref<18x18x8xf32, #tpu.memory_space<vmem>>, vector<16x16x8xf32>
    %c0_76 = arith.constant 0 : index
    %c2_77 = arith.constant 2 : index
    %c0_78 = arith.constant 0 : index
    %43 = vector.load %arg12[%c0_76, %c2_77, %c0_78] : memref<18x18x8xf32, #tpu.memory_space<vmem>>, vector<16x16x8xf32>
    %c1_79 = arith.constant 1 : index
    %c0_80 = arith.constant 0 : index
    %c0_81 = arith.constant 0 : index
    %44 = vector.load %arg11[%c1_79, %c0_80, %c0_81] : memref<18x18x8xf32, #tpu.memory_space<vmem>>, vector<16x16x8xf32>
    %c1_82 = arith.constant 1 : index
    %c0_83 = arith.constant 0 : index
    %c0_84 = arith.constant 0 : index
    %45 = vector.load %arg12[%c1_82, %c0_83, %c0_84] : memref<18x18x8xf32, #tpu.memory_space<vmem>>, vector<16x16x8xf32>
    %c1_85 = arith.constant 1 : index
    %c1_86 = arith.constant 1 : index
    %c0_87 = arith.constant 0 : index
    %46 = vector.load %arg11[%c1_85, %c1_86, %c0_87] : memref<18x18x8xf32, #tpu.memory_space<vmem>>, vector<16x16x8xf32>
    %c1_88 = arith.constant 1 : index
    %c1_89 = arith.constant 1 : index
    %c0_90 = arith.constant 0 : index
    %47 = vector.load %arg12[%c1_88, %c1_89, %c0_90] : memref<18x18x8xf32, #tpu.memory_space<vmem>>, vector<16x16x8xf32>
    %c1_91 = arith.constant 1 : index
    %c2_92 = arith.constant 2 : index
    %c0_93 = arith.constant 0 : index
    %48 = vector.load %arg11[%c1_91, %c2_92, %c0_93] : memref<18x18x8xf32, #tpu.memory_space<vmem>>, vector<16x16x8xf32>
    %c1_94 = arith.constant 1 : index
    %c2_95 = arith.constant 2 : index
    %c0_96 = arith.constant 0 : index
    %49 = vector.load %arg12[%c1_94, %c2_95, %c0_96] : memref<18x18x8xf32, #tpu.memory_space<vmem>>, vector<16x16x8xf32>
    %c2_97 = arith.constant 2 : index
    %c0_98 = arith.constant 0 : index
    %c0_99 = arith.constant 0 : index
    %50 = vector.load %arg11[%c2_97, %c0_98, %c0_99] : memref<18x18x8xf32, #tpu.memory_space<vmem>>, vector<16x16x8xf32>
    %c2_100 = arith.constant 2 : index
    %c0_101 = arith.constant 0 : index
    %c0_102 = arith.constant 0 : index
    %51 = vector.load %arg12[%c2_100, %c0_101, %c0_102] : memref<18x18x8xf32, #tpu.memory_space<vmem>>, vector<16x16x8xf32>
    %c2_103 = arith.constant 2 : index
    %c1_104 = arith.constant 1 : index
    %c0_105 = arith.constant 0 : index
    %52 = vector.load %arg11[%c2_103, %c1_104, %c0_105] : memref<18x18x8xf32, #tpu.memory_space<vmem>>, vector<16x16x8xf32>
    %c2_106 = arith.constant 2 : index
    %c1_107 = arith.constant 1 : index
    %c0_108 = arith.constant 0 : index
    %53 = vector.load %arg12[%c2_106, %c1_107, %c0_108] : memref<18x18x8xf32, #tpu.memory_space<vmem>>, vector<16x16x8xf32>
    %c2_109 = arith.constant 2 : index
    %c2_110 = arith.constant 2 : index
    %c0_111 = arith.constant 0 : index
    %54 = vector.load %arg11[%c2_109, %c2_110, %c0_111] : memref<18x18x8xf32, #tpu.memory_space<vmem>>, vector<16x16x8xf32>
    %c2_112 = arith.constant 2 : index
    %c2_113 = arith.constant 2 : index
    %c0_114 = arith.constant 0 : index
    %55 = vector.load %arg12[%c2_112, %c2_113, %c0_114] : memref<18x18x8xf32, #tpu.memory_space<vmem>>, vector<16x16x8xf32>
    %56 = tpu.concatenate %38, %39, %40, %41, %42, %43, %44, %45, %46, %47, %48, %49, %50, %51, %52, %53 in 2 : vector<16x16x8xf32>, vector<16x16x8xf32>, vector<16x16x8xf32>, vector<16x16x8xf32>, vector<16x16x8xf32>, vector<16x16x8xf32>, vector<16x16x8xf32>, vector<16x16x8xf32>, vector<16x16x8xf32>, vector<16x16x8xf32>, vector<16x16x8xf32>, vector<16x16x8xf32>, vector<16x16x8xf32>, vector<16x16x8xf32>, vector<16x16x8xf32>, vector<16x16x8xf32> -> vector<16x16x128xf32>
    %57 = tpu.concatenate %54, %55 in 2 : vector<16x16x8xf32>, vector<16x16x8xf32> -> vector<16x16x16xf32>
    %58 = tpu.concatenate %56, %57 in 2 : vector<16x16x128xf32>, vector<16x16x16xf32> -> vector<16x16x144xf32>
    %59 = vector.shape_cast %58 : vector<16x16x144xf32> to vector<256x144xf32>
    %c0_115 = arith.constant 0 : index
    %c0_116 = arith.constant 0 : index
    %60 = vector.load %arg5[%c0_115, %c0_116] : memref<144x8xf32, #tpu.memory_space<vmem>>, vector<144x8xf32>
    %cst_117 = arith.constant dense<0.000000e+00> : vector<256x8xf32>
    %61 = tpu.matmul %59, %60, %cst_117 {dimension_numbers = #tpu.dot_dimension_numbers<[1], [0], [0], [1], [0, 0, 1, 1], [], []>} : vector<256x144xf32>, vector<144x8xf32>, vector<256x8xf32> -> vector<256x8xf32>
    %c0_118 = arith.constant 0 : index
    %c0_119 = arith.constant 0 : index
    %62 = vector.load %arg6[%c0_118, %c0_119] : memref<1x8xf32, #tpu.memory_space<vmem>>, vector<1x8xf32>
    %63 = vector.broadcast %62 : vector<1x8xf32> to vector<256x8xf32>
    %64 = arith.addf %61, %63 : vector<256x8xf32>
    %cst_120 = arith.constant 0.000000e+00 : f32
    %65 = vector.broadcast %cst_120 : f32 to vector<256x8xf32>
    %66 = arith.maximumf %64, %65 : vector<256x8xf32>
    %67 = vector.shape_cast %66 : vector<256x8xf32> to vector<16x16x8xf32>
    %c1_121 = arith.constant 1 : index
    %c1_122 = arith.constant 1 : index
    %c0_123 = arith.constant 0 : index
    %68 = vector.load %arg13[%c1_121, %c1_122, %c0_123] : memref<18x18x8xf32, #tpu.memory_space<vmem>>, vector<16x16x8xf32>
    tpu.vector_store %arg13[%c1_121, %c1_122, %c0_123], %67 {strides = array<i32>} : memref<18x18x8xf32, #tpu.memory_space<vmem>>, vector<16x16x8xf32>,
    %c0_124 = arith.constant 0 : index
    %c0_125 = arith.constant 0 : index
    %c0_126 = arith.constant 0 : index
    %69 = vector.load %arg13[%c0_124, %c0_125, %c0_126] : memref<18x18x8xf32, #tpu.memory_space<vmem>>, vector<16x16x8xf32>
    %c0_127 = arith.constant 0 : index
    %c1_128 = arith.constant 1 : index
    %c0_129 = arith.constant 0 : index
    %70 = vector.load %arg13[%c0_127, %c1_128, %c0_129] : memref<18x18x8xf32, #tpu.memory_space<vmem>>, vector<16x16x8xf32>
    %c0_130 = arith.constant 0 : index
    %c2_131 = arith.constant 2 : index
    %c0_132 = arith.constant 0 : index
    %71 = vector.load %arg13[%c0_130, %c2_131, %c0_132] : memref<18x18x8xf32, #tpu.memory_space<vmem>>, vector<16x16x8xf32>
    %c1_133 = arith.constant 1 : index
    %c0_134 = arith.constant 0 : index
    %c0_135 = arith.constant 0 : index
    %72 = vector.load %arg13[%c1_133, %c0_134, %c0_135] : memref<18x18x8xf32, #tpu.memory_space<vmem>>, vector<16x16x8xf32>
    %c1_136 = arith.constant 1 : index
    %c1_137 = arith.constant 1 : index
    %c0_138 = arith.constant 0 : index
    %73 = vector.load %arg13[%c1_136, %c1_137, %c0_138] : memref<18x18x8xf32, #tpu.memory_space<vmem>>, vector<16x16x8xf32>
    %c1_139 = arith.constant 1 : index
    %c2_140 = arith.constant 2 : index
    %c0_141 = arith.constant 0 : index
    %74 = vector.load %arg13[%c1_139, %c2_140, %c0_141] : memref<18x18x8xf32, #tpu.memory_space<vmem>>, vector<16x16x8xf32>
    %c2_142 = arith.constant 2 : index
    %c0_143 = arith.constant 0 : index
    %c0_144 = arith.constant 0 : index
    %75 = vector.load %arg13[%c2_142, %c0_143, %c0_144] : memref<18x18x8xf32, #tpu.memory_space<vmem>>, vector<16x16x8xf32>
    %c2_145 = arith.constant 2 : index
    %c1_146 = arith.constant 1 : index
    %c0_147 = arith.constant 0 : index
    %76 = vector.load %arg13[%c2_145, %c1_146, %c0_147] : memref<18x18x8xf32, #tpu.memory_space<vmem>>, vector<16x16x8xf32>
    %c2_148 = arith.constant 2 : index
    %c2_149 = arith.constant 2 : index
    %c0_150 = arith.constant 0 : index
    %77 = vector.load %arg13[%c2_148, %c2_149, %c0_150] : memref<18x18x8xf32, #tpu.memory_space<vmem>>, vector<16x16x8xf32>
    %78 = tpu.concatenate %69, %70, %71, %72, %73, %74, %75, %76, %77 in 2 : vector<16x16x8xf32>, vector<16x16x8xf32>, vector<16x16x8xf32>, vector<16x16x8xf32>, vector<16x16x8xf32>, vector<16x16x8xf32>, vector<16x16x8xf32>, vector<16x16x8xf32>, vector<16x16x8xf32> -> vector<16x16x72xf32>
    %79 = vector.shape_cast %78 : vector<16x16x72xf32> to vector<256x72xf32>
    %c0_151 = arith.constant 0 : index
    %c0_152 = arith.constant 0 : index
    %80 = vector.load %arg7[%c0_151, %c0_152] : memref<72x8xf32, #tpu.memory_space<vmem>>, vector<72x8xf32>
    %cst_153 = arith.constant dense<0.000000e+00> : vector<256x8xf32>
    %81 = tpu.matmul %79, %80, %cst_153 {dimension_numbers = #tpu.dot_dimension_numbers<[1], [0], [0], [1], [0, 0, 1, 1], [], []>} : vector<256x72xf32>, vector<72x8xf32>, vector<256x8xf32> -> vector<256x8xf32>
    %c0_154 = arith.constant 0 : index
    %c0_155 = arith.constant 0 : index
    %82 = vector.load %arg8[%c0_154, %c0_155] : memref<1x8xf32, #tpu.memory_space<vmem>>, vector<1x8xf32>
    %83 = vector.broadcast %82 : vector<1x8xf32> to vector<256x8xf32>
    %84 = arith.addf %81, %83 : vector<256x8xf32>
    %cst_156 = arith.constant 0.000000e+00 : f32
    %85 = vector.broadcast %cst_156 : f32 to vector<256x8xf32>
    %86 = arith.maximumf %84, %85 : vector<256x8xf32>
    %c0_157 = arith.constant 0 : index
    %c0_158 = arith.constant 0 : index
    %c0_159 = arith.constant 0 : index
    %87 = vector.load %arg9[%c0_157, %c0_158, %c0_159] : memref<1x256x8xf32, #tpu.memory_space<vmem>>, vector<1x256x8xf32>
    %88 = vector.shape_cast %87 : vector<1x256x8xf32> to vector<256x8xf32>
    %89 = vector.shape_cast %86 : vector<256x8xf32> to vector<1x256x8xf32>
    tpu.vector_store %arg9[%c0_157, %c0_158, %c0_159], %89 {strides = array<i32>} : memref<1x256x8xf32, #tpu.memory_space<vmem>>, vector<1x256x8xf32>,
    return
  }
  func.func @transform_0(%arg0: i32) -> (i32, i32, i32, i32) {
    %c0_i32 = arith.constant 0 : i32
    %c0_i32_0 = arith.constant 0 : i32
    %c0_i32_1 = arith.constant 0 : i32
    %c0_i32_2 = arith.constant 0 : i32
    return %arg0, %c0_i32, %c0_i32_0, %c0_i32_1 : i32, i32, i32, i32
  }
  func.func @transform_1(%arg0: i32) -> (i32, i32, i32, i32) {
    %c0_i32 = arith.constant 0 : i32
    %c0_i32_0 = arith.constant 0 : i32
    %c0_i32_1 = arith.constant 0 : i32
    %c0_i32_2 = arith.constant 0 : i32
    return %arg0, %c0_i32, %c0_i32_0, %c0_i32_1 : i32, i32, i32, i32
  }
  func.func @transform_2(%arg0: i32) -> (i32, i32) {
    %c0_i32 = arith.constant 0 : i32
    %c0_i32_0 = arith.constant 0 : i32
    %c0_i32_1 = arith.constant 0 : i32
    return %c0_i32, %c0_i32_0 : i32, i32
  }
  func.func @transform_3(%arg0: i32) -> (i32, i32) {
    %c0_i32 = arith.constant 0 : i32
    %c0_i32_0 = arith.constant 0 : i32
    %c0_i32_1 = arith.constant 0 : i32
    return %c0_i32, %c0_i32_0 : i32, i32
  }
  func.func @transform_4(%arg0: i32) -> (i32, i32) {
    %c0_i32 = arith.constant 0 : i32
    %c0_i32_0 = arith.constant 0 : i32
    %c0_i32_1 = arith.constant 0 : i32
    return %c0_i32, %c0_i32_0 : i32, i32
  }
  func.func @transform_5(%arg0: i32) -> (i32, i32) {
    %c0_i32 = arith.constant 0 : i32
    %c0_i32_0 = arith.constant 0 : i32
    %c0_i32_1 = arith.constant 0 : i32
    return %c0_i32, %c0_i32_0 : i32, i32
  }
  func.func @transform_6(%arg0: i32) -> (i32, i32) {
    %c0_i32 = arith.constant 0 : i32
    %c0_i32_0 = arith.constant 0 : i32
    %c0_i32_1 = arith.constant 0 : i32
    return %c0_i32, %c0_i32_0 : i32, i32
  }
  func.func @transform_7(%arg0: i32) -> (i32, i32) {
    %c0_i32 = arith.constant 0 : i32
    %c0_i32_0 = arith.constant 0 : i32
    %c0_i32_1 = arith.constant 0 : i32
    return %c0_i32, %c0_i32_0 : i32, i32
  }
  func.func @transform_8(%arg0: i32) -> (i32, i32, i32) {
    %c0_i32 = arith.constant 0 : i32
    %c0_i32_0 = arith.constant 0 : i32
    %c0_i32_1 = arith.constant 0 : i32
    return %arg0, %c0_i32, %c0_i32_0 : i32, i32, i32
  }
}

</mosaic_0001>

<bundles_post_ra>
// kernel: tpu_custom_call.1
= control target key start
LH: loop header
LB: loop body
LE: loop exit
PB: predicated region body
PF: predicated region fallthrough
CT: control target
= control target key end

     0   :  { %s15425_s0 = inlined_call_operand.hbm [shape: f32[2,8,8,4], index: 0, kind: input, shape index: {}]   ;;  %s15426_s1 = inlined_call_operand.hbm [shape: f32[2,16,16,8], index: 1, kind: input, shape index: {}]   ;;  %s15427_s2 = inlined_call_operand.hbm [shape: f32[36,8], index: 2, kind: input, shape index: {}]   ;;  %s15428_s3 = inlined_call_operand.hbm [shape: f32[1,8], index: 3, kind: input, shape index: {}]   ;;  %s15429_s4 = inlined_call_operand.hbm [shape: f32[144,8], index: 4, kind: input, shape index: {}]   ;;  %s15430_s5 = inlined_call_operand.hbm [shape: f32[1,8], index: 5, kind: input, shape index: {}]   ;;  %s15431_s6 = inlined_call_operand.hbm [shape: f32[72,8], index: 6, kind: input, shape index: {}]   ;;  %s15432_s7 = inlined_call_operand.hbm [shape: f32[1,8], index: 7, kind: input, shape index: {}]   ;;  %s15433_s8 = inlined_call_operand.hbm [shape: f32[2,256,8], index: 8, kind: output, shape index: {}]  }
   0x1   :  { %15676 = sst [smem:[#allocation164_spill]] %s15425_s0 }
   0x2   :  { %15677 = sst [smem:[#allocation165_spill]] %s15427_s2 }
   0x3   :  { %15678 = sst [smem:[#allocation166_spill]] %s15428_s3 }
   0x4   :  { %15679 = sst [smem:[#allocation167_spill]] %s15429_s4 }
   0x5   :  { %15680 = sst [smem:[#allocation168_spill]] %s15430_s5 }
   0x6   :  { %15681 = sst [smem:[#allocation169_spill]] %s15431_s6 }
   0x7   :  { %13 = vsyncpa [#allocation7], 0 }
   0x8   :  { %15 = vsyncpa [#allocation7 + $0x1], 0 }
   0x9   :  { %16 = vsyncpa [#allocation10], 0 }
   0xa   :  { %18 = vsyncpa [#allocation10 + $0x1], 0 }
   0xb   :  { %19 = vsyncpa [#allocation13], 0 }
   0xc   :  { %20 = vsyncpa [#allocation16], 0 }
   0xd   :  { %21 = vsyncpa [#allocation19], 0 }
   0xe   :  { %22 = vsyncpa [#allocation8], 0 }
   0xf   :  { %24 = vsyncpa [#allocation8 + $0x1], 0  ;;  %s10017_s27 = smov 0   ;;  %s10019_s28 = smov 0  }
  0x10   :  { %s10021_s29 = smov 0   ;;  %s10023_s30 = smov 0  }
  0x11 LB: > { %s9937_s9 = smov [#allocation11]   ;;  %s10038_s11 = sadd.s32 4294967295, %s9935_s30   ;;  %s9935_s30 = sphi %s10023_s30, %s16462_s30   ;;  %s9931_s29 = sphi %s10021_s29, %s16461_s29   ;;  %s9927_s28 = sphi %s10019_s28, %s16460_s28   ;;  %s9923_s27 = sphi %s10017_s27, %s16459_s27  }
  0x12   : > { %s251_s10 = sshll.u32 %s9937_s9, 4  ;;  %p7933_p0 = scmp.ge.s32.totalorder %s9935_s30, 1  ;;  %s10043_s10 = int_to_ptr.vmem [resolvable:$true] %s251_s10 }
  0x13   : > { %p15436_p1 = scmp.eq.s32.totalorder %s10038_s11, 0  ;;  %p239_p2 = scmp.lt.s32.totalorder %s9935_s30, 3 }
  0x14   : > { %s9938_s13 = smov [#allocation12]   ;;  %s9939_s16 = smov [#allocation15]  }
  0x15   : > { %p10045_p3 = pnand %p7933_p0, %p239_p2  ;;  %s265_s14 = sshll.u32 %s9938_s13, 4  ;;  %s10058_s14 = int_to_ptr.vmem [resolvable:$true] %s265_s14 }
  0x16   : > { %s289_s17 = sshll.u32 %s9939_s16, 4  ;;  %s15684_s2 = sld [smem:[#allocation165_spill]]  ;;  %s10060_s17 = int_to_ptr.vmem [resolvable:$true] %s289_s17 }
  0x17   : > { %s15682_s12 = scalar_select %p10045_p3, 1, 0 }
  0x18   : > { %p8282_p5 = pneg %p10045_p3 }
  0x1a   : > { %p10054_p6 = pnand %p8282_p5, %p15436_p1 }
  0x1c   : > { %s9621_s20 = scalar_lea.hbm %s15684_s2, 640  ;;  %p10070_p8 = pneg %p10054_p6 }
  0x1d   : > { %p9622_p7 = scmp.ne.s32.totalorder %s15684_s2, %s9621_s20  ;;  %p9628_p11 = scmp.lt.u32.totalorder %s9621_s20, %s15684_s2 }
  0x1f   : > { %p9624_p9 = pnand %p10070_p8, %p9622_p7 }
  0x21   : > { %p9625_p10 = pneg %p9624_p9 }
  0x23   : > { %p9630_p12 = pnand %p9628_p11, %p9625_p10 }
  0x25   : > { %9633 = shalt.err (!%p9630_p12)
}
  0x26   : > { %s9634_s26 = scalar_lea.vmem %s10043_s10, 640  ;;  %p9642_p5 = scmp.lt.s32.totalorder %s10043_s10, %s10043_s10 }
  0x27   : > { %p9635_p13 = scmp.ne.s32.totalorder %s10043_s10, %s9634_s26  ;;  %p9643_p4 = scmp.lt.s32.totalorder %s9634_s26, %s9634_s26 }
  0x29   : > { %p9637_p0 = pnand %p9635_p13, %p10070_p8  ;;  %p9644_p7 = por %p9643_p4, %p9642_p5 }
  0x2b   : > { %p9638_p2 = pneg %p9637_p0 }
  0x2d   : > { %p9645_p9 = pnand %p9644_p7, %p9638_p2 }
  0x2f   : > { %9648 = shalt.err (!%p9645_p9)
}
  0x30   : > { %s15434_s9 = smov 128   ;;  %s15438_s13 = smov 8  }
  0x31   : > { %8285 = dma.hbm_to_vmem [thread:$0]  (!%p10054_p6), %s15684_s2, 640, %s10043_s10, [#allocation10], %s15434_s9, %s15434_s9, %s15438_s13  }
  0x32   : > { %s15686_s3 = sld [smem:[#allocation166_spill]] }
  0x38   : > { %s9649_s21 = scalar_lea.hbm %s15686_s3, 16 }
  0x39   : > { %p9650_p4 = scmp.ne.s32.totalorder %s15686_s3, %s9649_s21  ;;  %p9656_p12 = scmp.lt.u32.totalorder %s9649_s21, %s15686_s3 }
  0x3b   : > { %p9652_p10 = pnand %p9650_p4, %p10070_p8 }
  0x3d   : > { %p9653_p11 = pneg %p9652_p10 }
  0x3f   : > { %p9658_p13 = pnand %p9656_p12, %p9653_p11 }
  0x41   : > { %9661 = shalt.err (!%p9658_p13)
}
  0x42   : > { %s9662_s10 = scalar_lea.vmem %s10058_s14, 16  ;;  %s9669_s16 = scalar_lea.vmem %s10058_s14, 32 }
  0x43   : > { %p9663_p0 = scmp.ne.s32.totalorder %s10058_s14, %s9662_s10  ;;  %p9670_p7 = scmp.lt.s32.totalorder %s10058_s14, %s10058_s14 }
  0x44   : > { %p9671_p9 = scmp.lt.s32.totalorder %s9669_s16, %s9662_s10 }
  0x45   : > { %p9665_p2 = pnand %p9663_p0, %p10070_p8 }
  0x46   : > { %p9672_p4 = por %p9671_p9, %p9670_p7 }
  0x47   : > { %p9666_p5 = pneg %p9665_p2 }
  0x49   : > { %p9673_p10 = pnand %p9672_p4, %p9666_p5 }
  0x4b   : > { %9676 = shalt.err (!%p9673_p10)
}
  0x4c   : > { %8288 = dma.hbm_to_vmem [thread:$0]  (!%p10054_p6), %s15686_s3, 16, %s10058_s14, [#allocation13]  }
  0x4d   : > { %s15687_s5 = sld [smem:[#allocation168_spill]] }
  0x53   : > { %s9677_s22 = scalar_lea.hbm %s15687_s5, 16 }
  0x54   : > { %p9678_p11 = scmp.ne.s32.totalorder %s15687_s5, %s9677_s22  ;;  %p9684_p0 = scmp.lt.u32.totalorder %s9677_s22, %s15687_s5 }
  0x56   : > { %p9680_p12 = pnand %p9678_p11, %p10070_p8 }
  0x58   : > { %p9681_p13 = pneg %p9680_p12 }
  0x5a   : > { %p9686_p2 = pnand %p9684_p0, %p9681_p13 }
  0x5c   : > { %9689 = shalt.err (!%p9686_p2)
}
  0x5d   : > { %s9690_s14 = scalar_lea.vmem %s10060_s17, 16  ;;  %s9697_s16 = scalar_lea.vmem %s10060_s17, 32 }
  0x5e   : > { %p9691_p5 = scmp.ne.s32.totalorder %s10060_s17, %s9690_s14  ;;  %p9698_p4 = scmp.lt.s32.totalorder %s10060_s17, %s10060_s17 }
  0x5f   : > { %p9699_p10 = scmp.lt.s32.totalorder %s9697_s16, %s9690_s14 }
  0x60   : > { %p9693_p7 = pnand %p9691_p5, %p10070_p8 }
  0x61   : > { %p9700_p11 = por %p9699_p10, %p9698_p4 }
  0x62   : > { %p9694_p9 = pneg %p9693_p7 }
  0x64   : > { %p9701_p12 = pnand %p9700_p11, %p9694_p9 }
  0x66   : > { %9704 = shalt.err (!%p9701_p12)
}
  0x67   : > { %8294 = dma.hbm_to_vmem [thread:$0]  (!%p10054_p6), %s15687_s5, 16, %s10060_s17, [#allocation16]  }
  0x68   : > { %s9942_s20 = smov [#allocation14]   ;;  %s9943_s22 = smov [#allocation17]  }
  0x69   : > { %s275_s21 = sshll.u32 %s9942_s20, 4  ;;  %s299_s24 = sshll.u32 %s9943_s22, 4  ;;  %s276_s21 = int_to_ptr.vmem [resolvable:$true] %s275_s21  ;;  %s300_s24 = int_to_ptr.vmem [resolvable:$true] %s299_s24 }
  0x6a   : > { %s15688_s4 = sld [smem:[#allocation167_spill]] }
  0x70   : > { %s9705_s10 = scalar_lea.hbm %s15688_s4, 2304 }
  0x71   : > { %p9706_p13 = scmp.ne.s32.totalorder %s15688_s4, %s9705_s10  ;;  %p9712_p5 = scmp.lt.u32.totalorder %s9705_s10, %s15688_s4 }
  0x73   : > { %p9708_p0 = pnand %p9706_p13, %p10070_p8 }
  0x75   : > { %p9709_p2 = pneg %p9708_p0 }
  0x77   : > { %p9714_p7 = pnand %p9712_p5, %p9709_p2 }
  0x79   : > { %9717 = shalt.err (!%p9714_p7)
}
  0x7a   : > { %s9718_s17 = scalar_lea.vmem %s276_s21, 2304  ;;  %p9726_p11 = scmp.lt.s32.totalorder %s276_s21, %s276_s21 }
  0x7b   : > { %p9719_p9 = scmp.ne.s32.totalorder %s276_s21, %s9718_s17  ;;  %p9727_p12 = scmp.lt.s32.totalorder %s9718_s17, %s9718_s17 }
  0x7d   : > { %p9721_p4 = pnand %p9719_p9, %p10070_p8  ;;  %p9728_p1 = por %p9727_p12, %p9726_p11 }
  0x7f   : > { %p9722_p10 = pneg %p9721_p4 }
  0x81   : > { %p9729_p3 = pnand %p9728_p1, %p9722_p10 }
  0x83   : > { %9732 = shalt.err (!%p9729_p3)
}
  0x84   : > { %s15689_s19 = smov 128   ;;  %s15690_s6 = sld [smem:[#allocation169_spill]] }
  0x85   : > { %8291 = dma.hbm_to_vmem [thread:$0]  (!%p10054_p6), %s15688_s4, 2304, %s276_s21, [#allocation13], %s15689_s19, %s15689_s19, %s15438_s13  }
  0x8a   : > { %s9733_s26 = scalar_lea.hbm %s15690_s6, 1152 }
  0x8b   : > { %p9734_p1 = scmp.ne.s32.totalorder %s15690_s6, %s9733_s26  ;;  %p9740_p0 = scmp.lt.u32.totalorder %s9733_s26, %s15690_s6 }
  0x8d   : > { %p9736_p3 = pnand %p9734_p1, %p10070_p8 }
  0x8f   : > { %p9737_p13 = pneg %p9736_p3 }
  0x91   : > { %p9742_p2 = pnand %p9740_p0, %p9737_p13 }
  0x93   : > { %9745 = shalt.err (!%p9742_p2)
}
  0x94   : > { %s9746_s17 = scalar_lea.vmem %s300_s24, 1152  ;;  %p9754_p4 = scmp.lt.s32.totalorder %s300_s24, %s300_s24 }
  0x95   : > { %p9747_p5 = scmp.ne.s32.totalorder %s300_s24, %s9746_s17  ;;  %p9755_p10 = scmp.lt.s32.totalorder %s9746_s17, %s9746_s17 }
  0x97   : > { %p9749_p7 = pnand %p9747_p5, %p10070_p8  ;;  %p9756_p11 = por %p9755_p10, %p9754_p4 }
  0x99   : > { %p9750_p9 = pneg %p9749_p7 }
  0x9b   : > { %p9757_p12 = pnand %p9756_p11, %p9750_p9 }
  0x9d   : > { %9760 = shalt.err (!%p9757_p12)
}
  0x9e   : > { %8297 = dma.hbm_to_vmem [thread:$0]  (!%p10054_p6), %s15690_s6, 1152, %s300_s24, [#allocation16], %s15689_s19, %s15689_s19, %s15438_s13  }
  0x9f   : > { %s9944_s20 = smov [#allocation18]   ;;  %s9761_s10 = scalar_lea.hbm %s15432_s7, 16 }
  0xa0   : > { %s313_s22 = sshll.u32 %s9944_s20, 4  ;;  %p9762_p1 = scmp.ne.s32.totalorder %s15432_s7, %s9761_s10  ;;  %s314_s22 = int_to_ptr.vmem [resolvable:$true] %s313_s22 }
  0xa1   : > { %p9768_p0 = scmp.lt.u32.totalorder %s9761_s10, %s15432_s7 }
  0xa2   : > { %p9764_p3 = pnand %p9762_p1, %p10070_p8 }
  0xa4   : > { %p9765_p13 = pneg %p9764_p3 }
  0xa6   : > { %p9770_p2 = pnand %p9768_p0, %p9765_p13 }
  0xa8   : > { %9773 = shalt.err (!%p9770_p2)
}
  0xa9   : > { %s9774_s24 = scalar_lea.vmem %s314_s22, 16  ;;  %s9781_s21 = scalar_lea.vmem %s314_s22, 32 }
  0xaa   : > { %p9775_p5 = scmp.ne.s32.totalorder %s314_s22, %s9774_s24  ;;  %p9782_p4 = scmp.lt.s32.totalorder %s314_s22, %s314_s22 }
  0xab   : > { %p9783_p10 = scmp.lt.s32.totalorder %s9781_s21, %s9774_s24 }
  0xac   : > { %p9777_p7 = pnand %p9775_p5, %p10070_p8 }
  0xad   : > { %p9784_p11 = por %p9783_p10, %p9782_p4 }
  0xae   : > { %p9778_p9 = pneg %p9777_p7 }
  0xb0   : > { %p9785_p12 = pnand %p9784_p11, %p9778_p9 }
  0xb2   : > { %9788 = shalt.err (!%p9785_p12)
}
  0xb3   : > { %8300 = dma.hbm_to_vmem [thread:$0]  (!%p10054_p6), %s15432_s7, 16, %s314_s22, [#allocation19]  }
  0xb4   : > { %s7932_s23 = sadd.s32 4294967294, %s9935_s30   ;;  %s10204_s15 = sadd.s32 1, %s9935_s30  }
  0xb5   : > { %s34_s25 = ssub.s32 %s9935_s30, %s10204_s15  ;;  %s37_s26 = sadd.s32 1, %s9931_s29 }
  0xb6   : > { %p35_p8 = scmp.eq.s32.totalorder %s34_s25, 0  ;;  %p44_p1 = scmp.ne.s32.totalorder %s9931_s29, %s9927_s28 }
  0xb7   : > { %p45_p3 = scmp.eq.s32.totalorder %s9935_s30, 0  ;;  %p50_p13 = scmp.ne.s32.totalorder %s9927_s28, %s9923_s27 }
  0xb8   : > { %s10215_s10 = scalar_select %p35_p8, %s9931_s29, %s37_s26  }
  0xb9   : > { %p10217_p0 = por %p45_p3, %p44_p1  ;;  %p15692_p2 = scmp.eq.s32.totalorder %s10038_s11, 0 }
  0xba   : > { %p226_p5 = scmp.eq.s32.totalorder %s10038_s11, 1  ;;  %p232_p7 = scmp.eq.s32.totalorder %s7932_s23, 1 }
  0xbb   : > { %p10223_p6 = por %p15692_p2, %p50_p13  ;;  %p8318_p9 = scmp.lt.s32.totalorder %s9935_s30, 2 }
  0xbc   : > { %s10230_s16 = sand.u32 1, %s9931_s29   ;;  %p10232_p4 = por %p226_p5, %p44_p1 }
  0xbd   : > { %p10236_p10 = por %p232_p7, %p50_p13  ;;  %s7941_s24 = sshll.u32 %s10230_s16, 6 }
  0xbe   : > { %s15694_s18 = scalar_select %p10232_p4, 1, 0 }
  0xbf   : > { %s15695_s17 = scalar_select %p10236_p10, 1, 0 }
  0xc0   : > { %s8038_s21 = sshll.u32 %s9935_s30, 10  ;;  %s15696_s0 = sld [smem:[#allocation164_spill]] }
  0xc1   : > { %s328_s25 = scalar_lea.vmem [#allocation6], %s7941_s24  ;;  %p10251_p11 = pnand %p8318_p9, %p10217_p0 }
  0xc2   : > { %s335_s26 = sshll.u32 %s328_s25, 4  ;;  %s7944_s3 = sshll.u32 %s10230_s16, 8  ;;  %s10247_s26 = int_to_ptr.vmem [resolvable:$true] %s335_s26 }
  0xc3   : > { %s325_s9 = scalar_lea.sflag [#allocation7], %s10230_s16  ;;  %p9791_p8 = pneg %p10251_p11 }
  0xc6   : > { %s10245_s23 = scalar_lea.hbm %s15696_s0, %s8038_s21  ;;  %s9794_s14 = scalar_lea.hbm %s15696_s0, 2048 }
  0xc7   : > { %s9789_s21 = scalar_lea.hbm %s10245_s23, 1024  ;;  %p9795_p13 = scmp.lt.u32.totalorder %s10245_s23, %s15696_s0 }
  0xc8   : > { %p9790_p12 = scmp.ne.s32.totalorder %s10245_s23, %s9789_s21  ;;  %p9796_p0 = scmp.lt.u32.totalorder %s9794_s14, %s9789_s21 }
  0xc9   : > { %p9798_p5 = scmp.lt.u32.totalorder %s9789_s21, %s10245_s23 }
  0xca   : > { %p9792_p1 = pnand %p9791_p8, %p9790_p12  ;;  %p9797_p2 = por %p9796_p0, %p9795_p13 }
  0xcc   : > { %p9793_p3 = pneg %p9792_p1  ;;  %p9799_p7 = por %p9798_p5, %p9797_p2 }
  0xce   : > { %p9800_p9 = pnand %p9799_p7, %p9793_p3 }
  0xd0   : > { %9803 = shalt.err (!%p9800_p9)
}
  0xd1   : > { %s9804_s2 = scalar_lea.vmem %s10247_s26, 1024  ;;  %s9945_s24 = smov [#allocation6]  }
  0xd2   : > { %p9805_p12 = scmp.ne.s32.totalorder %s10247_s26, %s9804_s2  ;;  %s9809_s20 = sshll.u32 %s9945_s24, 4  ;;  %s9810_s20 = int_to_ptr.vmem [resolvable:$false] %s9809_s20 }
  0xd3   : > { %s9811_s4 = scalar_lea.vmem %s9810_s20, 2048  ;;  %p9812_p4 = scmp.lt.s32.totalorder %s10247_s26, %s9810_s20 }
  0xd4   : > { %p9807_p1 = pnand %p9805_p12, %p9791_p8  ;;  %p9813_p13 = scmp.lt.s32.totalorder %s9811_s4, %s9804_s2 }
  0xd6   : > { %p9808_p10 = pneg %p9807_p1  ;;  %p9814_p0 = por %p9813_p13, %p9812_p4 }
  0xd8   : > { %p9815_p2 = pnand %p9814_p0, %p9808_p10 }
  0xda   : > { %9818 = shalt.err (!%p9815_p2)
}
  0xdb   : > { %s15698_s21 = smov 8   ;;  %s8039_s14 = sshll.u32 %s9935_s30, 12 }
  0xdc   : > { %8304 = dma.hbm_to_vmem [thread:$0]  (!%p10251_p11), %s10245_s23, 1024, %s10247_s26, %s325_s9, %s15689_s19, %s15689_s19, %s15698_s21  }
  0xdd   : > { %s10292_s24 = scalar_lea.hbm %s15426_s1, %s8039_s14  ;;  %s349_s20 = scalar_lea.vmem [#allocation9], %s7944_s3 }
  0xde   : > { %s356_s4 = sshll.u32 %s349_s20, 4  ;;  %s15699_s0 = sand.u32 1, %s9935_s30   ;;  %s10296_s4 = int_to_ptr.vmem [resolvable:$true] %s356_s4 }
  0xdf   : > { %s10300_s5 = scalar_lea.sflag [#allocation10], %s15699_s0  ;;  %s9819_s6 = scalar_lea.hbm %s10292_s24, 4096 }
  0xe0   : > { %p9820_p4 = scmp.ne.s32.totalorder %s10292_s24, %s9819_s6  ;;  %s9824_s16 = scalar_lea.hbm %s15426_s1, 8192 }
  0xe1   : > { %p9825_p5 = scmp.lt.u32.totalorder %s10292_s24, %s15426_s1  ;;  %p9826_p7 = scmp.lt.u32.totalorder %s9824_s16, %s9819_s6 }
  0xe2   : > { %p9822_p10 = pnand %p9820_p4, %p9791_p8  ;;  %p9828_p12 = scmp.lt.u32.totalorder %s9819_s6, %s10292_s24 }
  0xe3   : > { %p9827_p9 = por %p9826_p7, %p9825_p5 }
  0xe4   : > { %p9823_p3 = pneg %p9822_p10 }
  0xe5   : > { %p9829_p1 = por %p9828_p12, %p9827_p9 }
  0xe7   : > { %p9830_p13 = pnand %p9829_p1, %p9823_p3 }
  0xe9   : > { %9833 = shalt.err (!%p9830_p13)
}
  0xea   : > { %s9834_s0 = scalar_lea.vmem %s10296_s4, 4096  ;;  %s9946_s3 = smov [#allocation9]  }
  0xeb   : > { %p9835_p0 = scmp.ne.s32.totalorder %s10296_s4, %s9834_s0  ;;  %s9839_s25 = sshll.u32 %s9946_s3, 4  ;;  %s9840_s25 = int_to_ptr.vmem [resolvable:$false] %s9839_s25 }
  0xec   : > { %s9841_s2 = scalar_lea.vmem %s9840_s25, 8192  ;;  %p9842_p10 = scmp.lt.s32.totalorder %s10296_s4, %s9840_s25 }
  0xed   : > { %p9837_p2 = pnand %p9835_p0, %p9791_p8  ;;  %p9843_p5 = scmp.lt.s32.totalorder %s9841_s2, %s9834_s0 }
  0xef   : > { %p9838_p4 = pneg %p9837_p2  ;;  %p9844_p7 = por %p9843_p5, %p9842_p10 }
  0xf1   : > { %p9845_p9 = pnand %p9844_p7, %p9838_p4 }
  0xf3   : > { %9848 = shalt.err (!%p9845_p9)
}
  0xf4   : > { %8307 = dma.hbm_to_vmem [thread:$0]  (!%p10251_p11), %s10292_s24, 4096, %s10296_s4, %s10300_s5, %s15689_s19, %s15689_s19, %s15698_s21  }
  0xf5   : > { %p15700_p8 = scmp.ne.s32.totalorder %s15682_s12, 0 }
  0xf7   : > { %368 = sbr.rel (%p15700_p8) target bundleno = 2386 (0x952), region = 52 }
  0xfe   : > { %s10332_s6 = sand.u32 1, %s9927_s28  }
  0xff   : > { %s7948_s20 = sshll.u32 %s10332_s6, 6  ;;  %s371_s23 = scalar_lea.sflag [#allocation7], %s10332_s6 }
 0x100   : > { %s10336_s26 = scalar_lea.vmem [#allocation6], %s7948_s20 }
 0x101   : > { %9894 = dma.done.wait (%p10223_p6), %s371_s23, 1024  }
 0x102   : > { %9896 = vsyncadd (%p10223_p6), %s371_s23, 4294966272  ;;  %s379_s5 = sand.u32 1, %s10038_s11   ;;  %s7949_s12 = sshll.u32 %s10332_s6, 8 }
 0x103   : > { %s380_s13 = scalar_lea.sflag [#allocation10], %s379_s5  ;;  %s10346_s19 = scalar_lea.vmem [#allocation9], %s7949_s12 }
 0x104   : > { %9898 = dma.done.wait (%p10223_p6), %s380_s13, 4096  }
 0x105   : > { %9900 = vsyncadd (%p10223_p6), %s380_s13, 4294963200  ;;  %p15701_p11 = scmp.eq.s32.totalorder %s10038_s11, 0 }
 0x107   : > { %9902 = dma.done.wait (%p15701_p11), [#allocation10], 640   ;;  %p15702_p3 = pmov %p15701_p11 }
 0x109   : > { %9904 = vsyncadd (%p15702_p3), [#allocation10], 4294966656  ;;  %p15703_p12 = pmov %p15702_p3 }
 0x10a   : > { %p15704_p1 = pmov %p15702_p3 }
 0x10b   : > { %9906 = dma.done.wait (%p15703_p12), [#allocation13], 2320  }
 0x10c   : > { %9908 = vsyncadd (%p15704_p1), [#allocation13], 4294964976  ;;  %p15705_p13 = pmov %p15704_p1 }
 0x10d   : > { %p15706_p0 = pmov %p15704_p1 }
 0x10e   : > { %9910 = dma.done.wait (%p15705_p13), [#allocation16], 1168  }
 0x10f   : > { %9912 = vsyncadd (%p15706_p0), [#allocation16], 4294966128  ;;  %p15707_p6 = pmov %p15706_p0 }
 0x110   : > { %p15708_p2 = pmov %p15706_p0 }
 0x111   : > { %9914 = dma.done.wait (%p15707_p6), [#allocation19], 16  }
 0x112   : > { %9916 = vsyncadd (%p15708_p2), [#allocation19], 4294967280  ;;  %vm445_vm0 = vcmask 31744   ;;  %vm447_vm1 = vcmask 25600   ;;  %v9947_v0 = vmov 0.0   ;;  %vm467_vm2 = vcmask 64512  }
 0x113   : > { %446 = vst.msk [vmem:[#allocation2] sm:$0xff] %vm445_vm0, %v9947_v0  ;;  %449 = vst.msk [vmem:[#allocation2 + $0x10] sm:$0xff] %vm445_vm0, %v9947_v0  ;;  %v632_v1 = vld [vmem:[%s10336_s26 + $0x8] sm:$0xff]  ;;  %v631_v2 = vld [vmem:[%s10336_s26] sm:$0xff]  ;;  %s9948_s22 = smov 4   ;;  %s9949_s21 = smov 8  }
 0x114   : > { %448 = vst.msk [vmem:[#allocation2 + $0x8] sm:$0x3] %vm447_vm1, %v9947_v0  ;;  %450 = vst.msk [vmem:[#allocation2 + $0x18] sm:$0x3] %vm447_vm1, %v9947_v0  ;;  %v633_v3 = vld [vmem:[%s10336_s26 + $0x10] sm:$0xff]  ;;  %v634_v5 = vld [vmem:[%s10336_s26 + $0x18] sm:$0xff] }
 0x115   : > { %451 = vst.msk [vmem:[#allocation2 + $0x20] sm:$0xff] %vm445_vm0, %v9947_v0  ;;  %453 = vst.msk [vmem:[#allocation2 + $0x30] sm:$0xff] %vm445_vm0, %v9947_v0  ;;  %v635_v6 = vld [vmem:[%s10336_s26 + $0x20] sm:$0xff]  ;;  %v636_v7 = vld [vmem:[%s10336_s26 + $0x28] sm:$0xff]  ;;  %s9950_s24 = smov 12   ;;  %s9951_s4 = smov 16  }
 0x116   : > { %452 = vst.msk [vmem:[#allocation2 + $0x28] sm:$0x3] %vm447_vm1, %v9947_v0  ;;  %454 = vst.msk [vmem:[#allocation2 + $0x38] sm:$0x3] %vm447_vm1, %v9947_v0  ;;  %v637_v8 = vld [vmem:[%s10336_s26 + $0x30] sm:$0xff]  ;;  %v638_v10 = vld [vmem:[%s10336_s26 + $0x38] sm:$0xff] }
 0x117   : > { %455 = vst.msk [vmem:[#allocation2 + $0x40] sm:$0xff] %vm445_vm0, %v9947_v0  ;;  %457 = vst.msk [vmem:[#allocation2 + $0x50] sm:$0xff] %vm445_vm0, %v9947_v0  ;;  %s9952_s16 = smov 20   ;;  %s9953_s9 = smov 24   ;;  %v1047_v35 = vld [vmem:[#allocation11] sm:$0xff]  ;;  %v1048_v36 = vld [vmem:[#allocation11 + $0x8] sm:$0xff] }
 0x118   : > { %456 = vst.msk [vmem:[#allocation2 + $0x48] sm:$0x3] %vm447_vm1, %v9947_v0  ;;  %458 = vst.msk [vmem:[#allocation2 + $0x58] sm:$0x3] %vm447_vm1, %v9947_v0  ;;  %v8183_v37 = vpack.c.bf16 %v1048_v36, %v1047_v35  ;;  %s9954_s14 = smov 28   ;;  %v1049_v39 = vld [vmem:[#allocation11 + $0x10] sm:$0xff] }
 0x119   : > { %459 = vst.msk [vmem:[#allocation2 + $0x60] sm:$0xff] %vm445_vm0, %v9947_v0  ;;  %461 = vst.msk [vmem:[#allocation2 + $0x70] sm:$0xff] %vm445_vm0, %v9947_v0  ;;  %v1050_v40 = vld [vmem:[#allocation11 + $0x18] sm:$0xff]  ;;  %v1051_v42 = vld [vmem:[#allocation11 + $0x20] sm:$0xf]  ;;  %vm1084_vm3 = vcmask 1043456  }
 0x11a   : > { %460 = vst.msk [vmem:[#allocation2 + $0x68] sm:$0x3] %vm447_vm1, %v9947_v0  ;;  %462 = vst.msk [vmem:[#allocation2 + $0x78] sm:$0x3] %vm447_vm1, %v9947_v0  ;;  %8184 = vmatprep.subr.bf16.mxu0 %v8183_v37  ;;  %v8187_v41 = vpack.c.bf16 %v1050_v40, %v1049_v39  ;;  %s9955_s0 = smov 32   ;;  %vm470_vm4 = vcmask 58368  }
 0x11b   : > { %463 = vst.msk [vmem:[#allocation2 + $0x80] sm:$0xff] %vm445_vm0, %v9947_v0  ;;  %465 = vst.msk [vmem:[#allocation2 + $0x90] sm:$0xff] %vm445_vm0, %v9947_v0  ;;  %v656_v4 = vld [vmem:[#allocation2 + $0x1] sm:$0xff]  ;;  %8186 = vmatpush3.bf16.msra.mxu0 %v8183_v37  ;;  %v2179_v39 = vld [vmem:[%s10346_s19 + $0x48] sm:$0xff]  ;;  %s9956_s3 = smov 40   ;;  %vm993_vm5 = vcmask 97280  }
 0x11c   : > { %464 = vst.msk [vmem:[#allocation2 + $0x88] sm:$0x3] %vm447_vm1, %v9947_v0  ;;  %466 = vst.msk [vmem:[#allocation2 + $0x98] sm:$0x3] %vm447_vm1, %v9947_v0  ;;  %729 = vrot.lane.b32.xlu0 %v656_v4, %s9948_s22  ;;  %v664_v9 = vld [vmem:[#allocation2 + $0x2] sm:$0xff]  ;;  %8188 = vmatprep.subr.bf16.mxu0 %v8187_v41  ;;  %v2182_v40 = vld [vmem:[%s10346_s19 + $0x60] sm:$0xff] }
 0x11d   : > { %468 = vst.msk [vmem:[#allocation3] sm:$0xff] %vm467_vm2, %v9947_v0  ;;  %469 = vst.msk [vmem:[#allocation3 + $0x8] sm:$0xff] %vm467_vm2, %v9947_v0  ;;  %v2172_v48 = vld [vmem:[%s10346_s19 + $0x10] sm:$0xff]  ;;  %v2173_v49 = vld [vmem:[%s10346_s19 + $0x18] sm:$0xff]  ;;  %vm1002_vm6 = vcmask 130048   ;;  %vm1011_vm7 = vcmask 162816  }
 0x11e   : > { %472 = vst.msk [vmem:[#allocation3 + $0x18] sm:$0xff] %vm467_vm2, %v9947_v0  ;;  %473 = vst.msk [vmem:[#allocation3 + $0x20] sm:$0xff] %vm467_vm2, %v9947_v0  ;;  %v2176_v50 = vld [vmem:[%s10346_s19 + $0x30] sm:$0xff]  ;;  %v2177_v51 = vld [vmem:[%s10346_s19 + $0x38] sm:$0xff]  ;;  %vm1020_vm8 = vcmask 195584   ;;  %vm1029_vm9 = vcmask 228352  }
 0x11f   : > { %475 = vst.msk [vmem:[#allocation3 + $0x30] sm:$0xff] %vm467_vm2, %v9947_v0  ;;  %476 = vst.msk [vmem:[#allocation3 + $0x38] sm:$0xff] %vm467_vm2, %v9947_v0  ;;  %8190 = vmatpush3.bf16.msra.mxu0 %v8187_v41  ;;  %v2180_v53 = vld [vmem:[%s10346_s19 + $0x50] sm:$0xff]  ;;  %v2181_v54 = vld [vmem:[%s10346_s19 + $0x58] sm:$0xff]  ;;  %vm1038_vm10 = vcmask 261120   ;;  %vm1059_vm11 = vcmask 293888  }
 0x120   : > { %478 = vst.msk [vmem:[#allocation3 + $0x48] sm:$0xff] %vm467_vm2, %v9947_v0  ;;  %479 = vst.msk [vmem:[#allocation3 + $0x50] sm:$0xff] %vm467_vm2, %v9947_v0  ;;  %761 = vrot.lane.b32.xlu0 %v664_v9, %s9949_s21  ;;  %8103 = vmatprep.subr.msk.mxu0 %vm1084_vm3, %v1051_v42  ;;  %v2184_v55 = vld [vmem:[%s10346_s19 + $0x70] sm:$0xff]  ;;  %v2185_v57 = vld [vmem:[%s10346_s19 + $0x78] sm:$0xff]  ;;  %s9957_s25 = smov 56   ;;  %s9958_s2 = smov 72  }
 0x121   : > { %481 = vst.msk [vmem:[#allocation3 + $0x60] sm:$0xff] %vm467_vm2, %v9947_v0  ;;  %482 = vst.msk [vmem:[#allocation3 + $0x68] sm:$0xff] %vm467_vm2, %v9947_v0  ;;  %v2188_v58 = vld [vmem:[%s10346_s19 + $0x90] sm:$0xff]  ;;  %v2189_v59 = vld [vmem:[%s10346_s19 + $0x98] sm:$0xff]  ;;  %s9961_s20 = smov 48   ;;  %s9962_s23 = smov 64  }
 0x122   : > { %484 = vst.msk [vmem:[#allocation3 + $0x78] sm:$0xff] %vm467_vm2, %v9947_v0  ;;  %485 = vst.msk [vmem:[#allocation3 + $0x80] sm:$0xff] %vm467_vm2, %v9947_v0  ;;  %v704_v38 = vld [vmem:[#allocation2 + $0x90] sm:$0xff]  ;;  %v2192_v60 = vld [vmem:[%s10346_s19 + $0xb0] sm:$0xff]  ;;  %s9963_s26 = smov 80   ;;  %s9964_s5 = smov 88  }
 0x123   : > { %487 = vst.msk [vmem:[#allocation3 + $0x90] sm:$0xff] %vm467_vm2, %v9947_v0  ;;  %488 = vst.msk [vmem:[#allocation3 + $0x98] sm:$0xff] %vm467_vm2, %v9947_v0  ;;  %8104 = vmatpush3.msk.msra.mxu0 %vm1084_vm3, %v1051_v42  ;;  %v712_v43 = vld [vmem:[#allocation2 + $0x91] sm:$0xff]  ;;  %v2193_v61 = vld [vmem:[%s10346_s19 + $0xb8] sm:$0xff]  ;;  %s9965_s13 = smov 96   ;;  %vm4861_vm12 = vcmask 326656  }
 0x124   : > { %490 = vst.msk [vmem:[#allocation3 + $0xa8] sm:$0xff] %vm467_vm2, %v9947_v0  ;;  %491 = vst.msk [vmem:[#allocation3 + $0xb0] sm:$0xff] %vm467_vm2, %v9947_v0  ;;  %v2196_v62 = vld [vmem:[%s10346_s19 + $0xd0] sm:$0xff]  ;;  %vm4894_vm13 = vcmask 392192   ;;  %vm4927_vm14 = vcmask 457728   ;;  %vm4960_vm15 = vcmask 523264  }
 0x125   : > { %493 = vst.msk [vmem:[#allocation3 + $0xc0] sm:$0xff] %vm467_vm2, %v9947_v0  ;;  %494 = vst.msk [vmem:[#allocation3 + $0xc8] sm:$0xff] %vm467_vm2, %v9947_v0  ;;  %vm5026_vm1 = vcmask 654336   ;;  %vm5059_vm3 = vcmask 719872   ;;  %p16456_p10 = scmp.ne.s32.totalorder %s15694_s18, 0 }
 0x126   : > { %496 = vst.msk [vmem:[#allocation3 + $0xd8] sm:$0xff] %vm467_vm2, %v9947_v0  ;;  %497 = vst.msk [vmem:[#allocation3 + $0xe0] sm:$0xff] %vm467_vm2, %v9947_v0 }
 0x127   : > { %499 = vst.msk [vmem:[#allocation3 + $0xf0] sm:$0xff] %vm467_vm2, %v9947_v0  ;;  %500 = vst.msk [vmem:[#allocation3 + $0xf8] sm:$0xff] %vm467_vm2, %v9947_v0 }
 0x128   : > { %502 = vst.msk [vmem:[#allocation3 + $0x108] sm:$0xff] %vm467_vm2, %v9947_v0  ;;  %503 = vst.msk [vmem:[#allocation3 + $0x110] sm:$0xff] %vm467_vm2, %v9947_v0 }
 0x129   : > { %505 = vst.msk [vmem:[#allocation3 + $0x120] sm:$0xff] %vm467_vm2, %v9947_v0  ;;  %506 = vst.msk [vmem:[#allocation3 + $0x128] sm:$0xff] %vm467_vm2, %v9947_v0 }
 0x12a   : > { %508 = vst.msk [vmem:[#allocation3 + $0x138] sm:$0xff] %vm467_vm2, %v9947_v0  ;;  %509 = vst.msk [vmem:[#allocation3 + $0x140] sm:$0xff] %vm467_vm2, %v9947_v0 }
 0x12b   : > { %511 = vst.msk [vmem:[#allocation3 + $0x150] sm:$0xff] %vm467_vm2, %v9947_v0  ;;  %512 = vst.msk [vmem:[#allocation3 + $0x158] sm:$0xff] %vm467_vm2, %v9947_v0 }
 0x12c   : > { %514 = vst.msk [vmem:[#allocation3 + $0x168] sm:$0xff] %vm467_vm2, %v9947_v0  ;;  %515 = vst.msk [vmem:[#allocation3 + $0x170] sm:$0xff] %vm467_vm2, %v9947_v0 }
 0x12d   : > { %517 = vst.msk [vmem:[#allocation3 + $0x180] sm:$0xff] %vm467_vm2, %v9947_v0  ;;  %518 = vst.msk [vmem:[#allocation3 + $0x188] sm:$0xff] %vm467_vm2, %v9947_v0 }
 0x12e   : > { %520 = vst.msk [vmem:[#allocation3 + $0x198] sm:$0xff] %vm467_vm2, %v9947_v0  ;;  %521 = vst.msk [vmem:[#allocation3 + $0x1a0] sm:$0xff] %vm467_vm2, %v9947_v0 }
 0x12f   : > { %523 = vst.msk [vmem:[#allocation4] sm:$0xff] %vm467_vm2, %v9947_v0  ;;  %524 = vst.msk [vmem:[#allocation4 + $0x8] sm:$0xff] %vm467_vm2, %v9947_v0 }
 0x130   : > { %526 = vst.msk [vmem:[#allocation4 + $0x18] sm:$0xff] %vm467_vm2, %v9947_v0  ;;  %527 = vst.msk [vmem:[#allocation4 + $0x20] sm:$0xff] %vm467_vm2, %v9947_v0 }
 0x131   : > { %529 = vst.msk [vmem:[#allocation4 + $0x30] sm:$0xff] %vm467_vm2, %v9947_v0  ;;  %530 = vst.msk [vmem:[#allocation4 + $0x38] sm:$0xff] %vm467_vm2, %v9947_v0 }
 0x132   : > { %532 = vst.msk [vmem:[#allocation4 + $0x48] sm:$0xff] %vm467_vm2, %v9947_v0  ;;  %533 = vst.msk [vmem:[#allocation4 + $0x50] sm:$0xff] %vm467_vm2, %v9947_v0 }
 0x133   : > { %535 = vst.msk [vmem:[#allocation4 + $0x60] sm:$0xff] %vm467_vm2, %v9947_v0  ;;  %536 = vst.msk [vmem:[#allocation4 + $0x68] sm:$0xff] %vm467_vm2, %v9947_v0 }
 0x134   : > { %538 = vst.msk [vmem:[#allocation4 + $0x78] sm:$0xff] %vm467_vm2, %v9947_v0  ;;  %539 = vst.msk [vmem:[#allocation4 + $0x80] sm:$0xff] %vm467_vm2, %v9947_v0 }
 0x135   : > { %541 = vst.msk [vmem:[#allocation4 + $0x90] sm:$0xff] %vm467_vm2, %v9947_v0  ;;  %542 = vst.msk [vmem:[#allocation4 + $0x98] sm:$0xff] %vm467_vm2, %v9947_v0 }
 0x136   : > { %544 = vst.msk [vmem:[#allocation4 + $0xa8] sm:$0xff] %vm467_vm2, %v9947_v0  ;;  %545 = vst.msk [vmem:[#allocation4 + $0xb0] sm:$0xff] %vm467_vm2, %v9947_v0  ;;  %v10758_v46 = vld [vmem:[#allocation4] sm:$0xff]  ;;  %v10760_v47 = vld [vmem:[#allocation4 + $0x8] sm:$0xff] }
 0x137   : > { %547 = vst.msk [vmem:[#allocation4 + $0xc0] sm:$0xff] %vm467_vm2, %v9947_v0  ;;  %548 = vst.msk [vmem:[#allocation4 + $0xc8] sm:$0xff] %vm467_vm2, %v9947_v0  ;;  %v8390_v63 = vpack.i.bf16 %v10760_v47, %v10758_v46  ;;  %v2183_v46 = vld [vmem:[%s10346_s19 + $0x68] sm:$0xff]  ;;  %v2186_v47 = vld [vmem:[%s10346_s19 + $0x80] sm:$0xff] }
 0x138   : > { %550 = vst.msk [vmem:[#allocation4 + $0xd8] sm:$0xff] %vm467_vm2, %v9947_v0  ;;  %551 = vst.msk [vmem:[#allocation4 + $0xe0] sm:$0xff] %vm467_vm2, %v9947_v0 }
 0x139   : > { %553 = vst.msk [vmem:[#allocation4 + $0xf0] sm:$0xff] %vm467_vm2, %v9947_v0  ;;  %554 = vst.msk [vmem:[#allocation4 + $0xf8] sm:$0xff] %vm467_vm2, %v9947_v0 }
 0x13a   : > { %556 = vst.msk [vmem:[#allocation4 + $0x108] sm:$0xff] %vm467_vm2, %v9947_v0  ;;  %557 = vst.msk [vmem:[#allocation4 + $0x110] sm:$0xff] %vm467_vm2, %v9947_v0 }
 0x13b   : > { %559 = vst.msk [vmem:[#allocation4 + $0x120] sm:$0xff] %vm467_vm2, %v9947_v0  ;;  %560 = vst.msk [vmem:[#allocation4 + $0x128] sm:$0xff] %vm467_vm2, %v9947_v0 }
 0x13c   : > { %562 = vst.msk [vmem:[#allocation4 + $0x138] sm:$0xff] %vm467_vm2, %v9947_v0  ;;  %563 = vst.msk [vmem:[#allocation4 + $0x140] sm:$0xff] %vm467_vm2, %v9947_v0 }
 0x13d   : > { %565 = vst.msk [vmem:[#allocation4 + $0x150] sm:$0xff] %vm467_vm2, %v9947_v0  ;;  %566 = vst.msk [vmem:[#allocation4 + $0x158] sm:$0xff] %vm467_vm2, %v9947_v0 }
 0x13e   : > { %568 = vst.msk [vmem:[#allocation4 + $0x168] sm:$0xff] %vm467_vm2, %v9947_v0  ;;  %569 = vst.msk [vmem:[#allocation4 + $0x170] sm:$0xff] %vm467_vm2, %v9947_v0 }
 0x13f   : > { %571 = vst.msk [vmem:[#allocation4 + $0x180] sm:$0xff] %vm467_vm2, %v9947_v0  ;;  %572 = vst.msk [vmem:[#allocation4 + $0x188] sm:$0xff] %vm467_vm2, %v9947_v0 }
 0x140   : > { %574 = vst.msk [vmem:[#allocation4 + $0x198] sm:$0xff] %vm467_vm2, %v9947_v0  ;;  %575 = vst.msk [vmem:[#allocation4 + $0x1a0] sm:$0xff] %vm467_vm2, %v9947_v0 }
 0x141   : > { %577 = vst.msk [vmem:[#allocation5] sm:$0xff] %vm467_vm2, %v9947_v0  ;;  %578 = vst.msk [vmem:[#allocation5 + $0x8] sm:$0xff] %vm467_vm2, %v9947_v0 }
 0x142   : > { %580 = vst.msk [vmem:[#allocation5 + $0x18] sm:$0xff] %vm467_vm2, %v9947_v0  ;;  %581 = vst.msk [vmem:[#allocation5 + $0x20] sm:$0xff] %vm467_vm2, %v9947_v0 }
 0x143   : > { %583 = vst.msk [vmem:[#allocation5 + $0x30] sm:$0xff] %vm467_vm2, %v9947_v0  ;;  %584 = vst.msk [vmem:[#allocation5 + $0x38] sm:$0xff] %vm467_vm2, %v9947_v0 }
 0x144   : > { %586 = vst.msk [vmem:[#allocation5 + $0x48] sm:$0xff] %vm467_vm2, %v9947_v0  ;;  %587 = vst.msk [vmem:[#allocation5 + $0x50] sm:$0xff] %vm467_vm2, %v9947_v0 }
 0x145   : > { %589 = vst.msk [vmem:[#allocation5 + $0x60] sm:$0xff] %vm467_vm2, %v9947_v0  ;;  %590 = vst.msk [vmem:[#allocation5 + $0x68] sm:$0xff] %vm467_vm2, %v9947_v0 }
 0x146   : > { %592 = vst.msk [vmem:[#allocation5 + $0x78] sm:$0xff] %vm467_vm2, %v9947_v0  ;;  %593 = vst.msk [vmem:[#allocation5 + $0x80] sm:$0xff] %vm467_vm2, %v9947_v0 }
 0x147   : > { %595 = vst.msk [vmem:[#allocation5 + $0x90] sm:$0xff] %vm467_vm2, %v9947_v0  ;;  %596 = vst.msk [vmem:[#allocation5 + $0x98] sm:$0xff] %vm467_vm2, %v9947_v0 }
 0x148   : > { %598 = vst.msk [vmem:[#allocation5 + $0xa8] sm:$0xff] %vm467_vm2, %v9947_v0  ;;  %599 = vst.msk [vmem:[#allocation5 + $0xb0] sm:$0xff] %vm467_vm2, %v9947_v0 }
 0x149   : > { %601 = vst.msk [vmem:[#allocation5 + $0xc0] sm:$0xff] %vm467_vm2, %v9947_v0  ;;  %602 = vst.msk [vmem:[#allocation5 + $0xc8] sm:$0xff] %vm467_vm2, %v9947_v0 }
 0x14a   : > { %604 = vst.msk [vmem:[#allocation5 + $0xd8] sm:$0xff] %vm467_vm2, %v9947_v0  ;;  %605 = vst.msk [vmem:[#allocation5 + $0xe0] sm:$0xff] %vm467_vm2, %v9947_v0 }
 0x14b   : > { %607 = vst.msk [vmem:[#allocation5 + $0xf0] sm:$0xff] %vm467_vm2, %v9947_v0  ;;  %608 = vst.msk [vmem:[#allocation5 + $0xf8] sm:$0xff] %vm467_vm2, %v9947_v0 }
 0x14c   : > { %610 = vst.msk [vmem:[#allocation5 + $0x108] sm:$0xff] %vm467_vm2, %v9947_v0  ;;  %611 = vst.msk [vmem:[#allocation5 + $0x110] sm:$0xff] %vm467_vm2, %v9947_v0 }
 0x14d   : > { %613 = vst.msk [vmem:[#allocation5 + $0x120] sm:$0xff] %vm467_vm2, %v9947_v0  ;;  %614 = vst.msk [vmem:[#allocation5 + $0x128] sm:$0xff] %vm467_vm2, %v9947_v0 }
 0x14e   : > { %616 = vst.msk [vmem:[#allocation5 + $0x138] sm:$0xff] %vm467_vm2, %v9947_v0  ;;  %617 = vst.msk [vmem:[#allocation5 + $0x140] sm:$0xff] %vm467_vm2, %v9947_v0 }
 0x14f   : > { %619 = vst.msk [vmem:[#allocation5 + $0x150] sm:$0xff] %vm467_vm2, %v9947_v0  ;;  %620 = vst.msk [vmem:[#allocation5 + $0x158] sm:$0xff] %vm467_vm2, %v9947_v0 }
 0x150   : > { %622 = vst.msk [vmem:[#allocation5 + $0x168] sm:$0xff] %vm467_vm2, %v9947_v0  ;;  %623 = vst.msk [vmem:[#allocation5 + $0x170] sm:$0xff] %vm467_vm2, %v9947_v0 }
 0x151   : > { %625 = vst.msk [vmem:[#allocation5 + $0x180] sm:$0xff] %vm467_vm2, %v9947_v0  ;;  %626 = vst.msk [vmem:[#allocation5 + $0x188] sm:$0xff] %vm467_vm2, %v9947_v0 }
 0x152   : > { %628 = vst.msk [vmem:[#allocation5 + $0x198] sm:$0xff] %vm467_vm2, %v9947_v0  ;;  %629 = vst.msk [vmem:[#allocation5 + $0x1a0] sm:$0xff] %vm467_vm2, %v9947_v0 }
 0x153   : > { %641 = vst.msk [vmem:[#allocation2 + $0x21] sm:$0xff] %vm445_vm0, %v632_v1  ;;  %640 = vst.msk [vmem:[#allocation2 + $0x11] sm:$0xff] %vm445_vm0, %v631_v2  ;;  %v2170_v2 = vld [vmem:[%s10346_s19] sm:$0xff] }
 0x154   : > { %642 = vst.msk [vmem:[#allocation2 + $0x31] sm:$0xff] %vm445_vm0, %v633_v3  ;;  %643 = vst.msk [vmem:[#allocation2 + $0x41] sm:$0xff] %vm445_vm0, %v634_v5  ;;  %v2171_v3 = vld [vmem:[%s10346_s19 + $0x8] sm:$0xff]  ;;  %v2174_v5 = vld [vmem:[%s10346_s19 + $0x20] sm:$0xff] }
 0x155   : > { %644 = vst.msk [vmem:[#allocation2 + $0x51] sm:$0xff] %vm445_vm0, %v635_v6  ;;  %645 = vst.msk [vmem:[#allocation2 + $0x61] sm:$0xff] %vm445_vm0, %v636_v7  ;;  %v2175_v6 = vld [vmem:[%s10346_s19 + $0x28] sm:$0xff] }
 0x156   : > { %646 = vst.msk [vmem:[#allocation2 + $0x71] sm:$0xff] %vm445_vm0, %v637_v8  ;;  %647 = vst.msk [vmem:[#allocation2 + $0x81] sm:$0xff] %vm445_vm0, %v638_v10  ;;  %v720_v8 = vld [vmem:[#allocation2 + $0x92] sm:$0xff] }
 0x157   : > { %531 = vst.msk [vmem:[#allocation4 + $0x40] sm:$0x3] %vm470_vm4, %v9947_v0  ;;  %471 = vst.msk [vmem:[#allocation3 + $0x10] sm:$0x3] %vm470_vm4, %v9947_v0 }
 0x158   : > { %2205 = vst.msk [vmem:[#allocation4 + $0x31] sm:$0xff] %vm467_vm2, %v2172_v48  ;;  %2206 = vst.msk [vmem:[#allocation4 + $0x39] sm:$0xff] %vm467_vm2, %v2173_v49  ;;  %v2187_v49 = vld [vmem:[%s10346_s19 + $0x88] sm:$0xff] }
 0x159   : > { %474 = vst.msk [vmem:[#allocation3 + $0x28] sm:$0x3] %vm470_vm4, %v9947_v0  ;;  %477 = vst.msk [vmem:[#allocation3 + $0x40] sm:$0x3] %vm470_vm4, %v9947_v0 }
 0x15a   : > { %v10641_v11 = vld [vmem:[#allocation2 + $0x21] sm:$0xff]  ;;  %v657_v12 = vld [vmem:[#allocation2 + $0x11] sm:$0xff]  ;;  %480 = vst.msk [vmem:[#allocation3 + $0x58] sm:$0x3] %vm470_vm4, %v9947_v0  ;;  %483 = vst.msk [vmem:[#allocation3 + $0x70] sm:$0x3] %vm470_vm4, %v9947_v0 }
 0x15b   : > { %733 = vrot.lane.b32.xlu1 %v10641_v11, %s9948_s22  ;;  %731 = vrot.lane.b32.xlu0 %v657_v12, %s9948_s22  ;;  %v10644_v13 = vld [vmem:[#allocation2 + $0x31] sm:$0xff]  ;;  %v10646_v14 = vld [vmem:[#allocation2 + $0x41] sm:$0xff]  ;;  %486 = vst.msk [vmem:[#allocation3 + $0x88] sm:$0x3] %vm470_vm4, %v9947_v0  ;;  %489 = vst.msk [vmem:[#allocation3 + $0xa0] sm:$0x3] %vm470_vm4, %v9947_v0 }
 0x15c   : > { %v10650_v15 = vld [vmem:[#allocation2 + $0x51] sm:$0xff]  ;;  %v10652_v16 = vld [vmem:[#allocation2 + $0x61] sm:$0xff]  ;;  %492 = vst.msk [vmem:[#allocation3 + $0xb8] sm:$0x3] %vm470_vm4, %v9947_v0  ;;  %495 = vst.msk [vmem:[#allocation3 + $0xd0] sm:$0x3] %vm470_vm4, %v9947_v0 }
 0x15d   : > { %v10656_v17 = vld [vmem:[#allocation2 + $0x71] sm:$0xff]  ;;  %v10658_v18 = vld [vmem:[#allocation2 + $0x22] sm:$0xff]  ;;  %498 = vst.msk [vmem:[#allocation3 + $0xe8] sm:$0x3] %vm470_vm4, %v9947_v0  ;;  %501 = vst.msk [vmem:[#allocation3 + $0x100] sm:$0x3] %vm470_vm4, %v9947_v0 }
 0x15e   : > { %v665_v19 = vld [vmem:[#allocation2 + $0x12] sm:$0xff]  ;;  %v10663_v20 = vld [vmem:[#allocation2 + $0x42] sm:$0xff]  ;;  %504 = vst.msk [vmem:[#allocation3 + $0x118] sm:$0x3] %vm470_vm4, %v9947_v0  ;;  %507 = vst.msk [vmem:[#allocation3 + $0x130] sm:$0x3] %vm470_vm4, %v9947_v0 }
 0x15f   : > { %735 = vrot.lane.b32.xlu1 %v10644_v13, %s9948_s22  ;;  %737 = vrot.lane.b32.xlu0 %v10646_v14, %s9948_s22  ;;  %v10668_v21 = vld [vmem:[#allocation2 + $0x32] sm:$0xff]  ;;  %v10670_v22 = vld [vmem:[#allocation2 + $0x62] sm:$0xff]  ;;  %510 = vst.msk [vmem:[#allocation3 + $0x148] sm:$0x3] %vm470_vm4, %v9947_v0  ;;  %513 = vst.msk [vmem:[#allocation3 + $0x160] sm:$0x3] %vm470_vm4, %v9947_v0 }
 0x160   : > { %v10676_v23 = vld [vmem:[#allocation2 + $0x52] sm:$0xff]  ;;  %v10690_v27 = vld [vmem:[#allocation2 + $0x20] sm:$0xff]  ;;  %516 = vst.msk [vmem:[#allocation3 + $0x178] sm:$0x3] %vm470_vm4, %v9947_v0  ;;  %519 = vst.msk [vmem:[#allocation3 + $0x190] sm:$0x3] %vm470_vm4, %v9947_v0 }
 0x161   : > { %v10678_v24 = vld [vmem:[#allocation2 + $0x10] sm:$0xff]  ;;  %v10696_v29 = vld [vmem:[#allocation2 + $0x40] sm:$0xff]  ;;  %522 = vst.msk [vmem:[#allocation3 + $0x1a8] sm:$0x3] %vm470_vm4, %v9947_v0  ;;  %525 = vst.msk [vmem:[#allocation4 + $0x10] sm:$0x3] %vm470_vm4, %v9947_v0 }
 0x162   : > { %v10683_v25 = vld [vmem:[#allocation2 + $0x72] sm:$0xff]  ;;  %v10702_v31 = vld [vmem:[#allocation2 + $0x60] sm:$0xff]  ;;  %528 = vst.msk [vmem:[#allocation4 + $0x28] sm:$0x3] %vm470_vm4, %v9947_v0  ;;  %534 = vst.msk [vmem:[#allocation4 + $0x58] sm:$0x3] %vm470_vm4, %v9947_v0 }
 0x163   : > { %739 = vrot.lane.b32.xlu1 %v10650_v15, %s9948_s22  ;;  %741 = vrot.lane.b32.xlu0 %v10652_v16, %s9948_s22  ;;  %v10685_v26 = vld [vmem:[#allocation2 + $0x30] sm:$0xff]  ;;  %v679_v32 = vld [vmem:[#allocation2 + $0x80] sm:$0xff]  ;;  %537 = vst.msk [vmem:[#allocation4 + $0x70] sm:$0x3] %vm470_vm4, %v9947_v0  ;;  %540 = vst.msk [vmem:[#allocation4 + $0x88] sm:$0x3] %vm470_vm4, %v9947_v0 }
 0x164   : > { %v10692_v28 = vld [vmem:[#allocation2 + $0x50] sm:$0xff]  ;;  %v687_v33 = vld [vmem:[#allocation2 + $0x81] sm:$0xff]  ;;  %543 = vst.msk [vmem:[#allocation4 + $0xa0] sm:$0x3] %vm470_vm4, %v9947_v0  ;;  %546 = vst.msk [vmem:[#allocation4 + $0xb8] sm:$0x3] %vm470_vm4, %v9947_v0 }
 0x165   : > { %v10698_v30 = vld [vmem:[#allocation2 + $0x70] sm:$0xff]  ;;  %v10727_v34 = vld [vmem:[#allocation2 + $0x82] sm:$0xff]  ;;  %549 = vst.msk [vmem:[#allocation4 + $0xd0] sm:$0x3] %vm470_vm4, %v9947_v0  ;;  %552 = vst.msk [vmem:[#allocation4 + $0xe8] sm:$0x3] %vm470_vm4, %v9947_v0 }
 0x166   : > { %15709 = vst [vmem:[#allocation28_spill] sm:$0xff] %v10698_v30  ;;  %555 = vst.msk [vmem:[#allocation4 + $0x100] sm:$0x3] %vm470_vm4, %v9947_v0  ;;  %v2271_v7 = vld [vmem:[#allocation4 + $0x30] sm:$0xff]  ;;  %v2272_v9 = vld [vmem:[#allocation4 + $0x38] sm:$0xff] }
 0x167   : > { %743 = vrot.lane.b32.xlu1 %v10656_v17, %s9948_s22  ;;  %765 = vrot.lane.b32.xlu0 %v10658_v18, %s9949_s21  ;;  %558 = vst.msk [vmem:[#allocation4 + $0x118] sm:$0x3] %vm470_vm4, %v9947_v0  ;;  %561 = vst.msk [vmem:[#allocation4 + $0x130] sm:$0x3] %vm470_vm4, %v9947_v0  ;;  %s9968_s22 = smov 112  }
 0x168   : > { %564 = vst.msk [vmem:[#allocation4 + $0x148] sm:$0x3] %vm470_vm4, %v9947_v0  ;;  %567 = vst.msk [vmem:[#allocation4 + $0x160] sm:$0x3] %vm470_vm4, %v9947_v0 }
 0x169   : > { %570 = vst.msk [vmem:[#allocation4 + $0x178] sm:$0x3] %vm470_vm4, %v9947_v0  ;;  %573 = vst.msk [vmem:[#allocation4 + $0x190] sm:$0x3] %vm470_vm4, %v9947_v0 }
 0x16a   : > { %576 = vst.msk [vmem:[#allocation4 + $0x1a8] sm:$0x3] %vm470_vm4, %v9947_v0  ;;  %579 = vst.msk [vmem:[#allocation5 + $0x10] sm:$0x3] %vm470_vm4, %v9947_v0 }
 0x16b   : > { %763 = vrot.lane.b32.xlu1 %v665_v19, %s9949_s21  ;;  %769 = vrot.lane.b32.xlu0 %v10663_v20, %s9949_s21  ;;  %582 = vst.msk [vmem:[#allocation5 + $0x28] sm:$0x3] %vm470_vm4, %v9947_v0  ;;  %585 = vst.msk [vmem:[#allocation5 + $0x40] sm:$0x3] %vm470_vm4, %v9947_v0 }
 0x16c   : > { %588 = vst.msk [vmem:[#allocation5 + $0x58] sm:$0x3] %vm470_vm4, %v9947_v0  ;;  %591 = vst.msk [vmem:[#allocation5 + $0x70] sm:$0x3] %vm470_vm4, %v9947_v0 }
 0x16d   : > { %594 = vst.msk [vmem:[#allocation5 + $0x88] sm:$0x3] %vm470_vm4, %v9947_v0  ;;  %597 = vst.msk [vmem:[#allocation5 + $0xa0] sm:$0x3] %vm470_vm4, %v9947_v0 }
 0x16e   : > { %600 = vst.msk [vmem:[#allocation5 + $0xb8] sm:$0x3] %vm470_vm4, %v9947_v0  ;;  %603 = vst.msk [vmem:[#allocation5 + $0xd0] sm:$0x3] %vm470_vm4, %v9947_v0 }
 0x16f   : > { %767 = vrot.lane.b32.xlu1 %v10668_v21, %s9949_s21  ;;  %773 = vrot.lane.b32.xlu0 %v10670_v22, %s9949_s21  ;;  %606 = vst.msk [vmem:[#allocation5 + $0xe8] sm:$0x3] %vm470_vm4, %v9947_v0  ;;  %609 = vst.msk [vmem:[#allocation5 + $0x100] sm:$0x3] %vm470_vm4, %v9947_v0 }
 0x170   : > { %612 = vst.msk [vmem:[#allocation5 + $0x118] sm:$0x3] %vm470_vm4, %v9947_v0  ;;  %615 = vst.msk [vmem:[#allocation5 + $0x130] sm:$0x3] %vm470_vm4, %v9947_v0 }
 0x171   : > { %618 = vst.msk [vmem:[#allocation5 + $0x148] sm:$0x3] %vm470_vm4, %v9947_v0  ;;  %621 = vst.msk [vmem:[#allocation5 + $0x160] sm:$0x3] %vm470_vm4, %v9947_v0 }
 0x172   : > { %624 = vst.msk [vmem:[#allocation5 + $0x178] sm:$0x3] %vm470_vm4, %v9947_v0  ;;  %627 = vst.msk [vmem:[#allocation5 + $0x190] sm:$0x3] %vm470_vm4, %v9947_v0 }
 0x173   : > { %771 = vrot.lane.b32.xlu1 %v10676_v23, %s9949_s21  ;;  %793 = vrot.lane.b32.xlu0 %v10678_v24, %s9950_s24  ;;  %630 = vst.msk [vmem:[#allocation5 + $0x1a8] sm:$0x3] %vm470_vm4, %v9947_v0  ;;  %v2197_v0 = vld [vmem:[%s10346_s19 + $0xd8] sm:$0xff]  ;;  %vm5092_vm4 = vcmask 785408  }
 0x174   : > { %2209 = vst.msk [vmem:[#allocation4 + $0x61] sm:$0xff] %vm467_vm2, %v2176_v50  ;;  %2210 = vst.msk [vmem:[#allocation4 + $0x69] sm:$0xff] %vm467_vm2, %v2177_v51  ;;  %v2190_v50 = vld [vmem:[%s10346_s19 + $0xa0] sm:$0xff]  ;;  %v2191_v51 = vld [vmem:[%s10346_s19 + $0xa8] sm:$0xff] }
 0x175   : > { %2213 = vst.msk [vmem:[#allocation4 + $0x91] sm:$0xff] %vm467_vm2, %v2180_v53  ;;  %2214 = vst.msk [vmem:[#allocation4 + $0x99] sm:$0xff] %vm467_vm2, %v2181_v54  ;;  %v2194_v54 = vld [vmem:[%s10346_s19 + $0xc0] sm:$0xff] }
 0x176   : > { %2217 = vst.msk [vmem:[#allocation4 + $0xc1] sm:$0xff] %vm467_vm2, %v2184_v55  ;;  %2218 = vst.msk [vmem:[#allocation4 + $0xc9] sm:$0xff] %vm467_vm2, %v2185_v57  ;;  %v2195_v55 = vld [vmem:[%s10346_s19 + $0xc8] sm:$0xff]  ;;  %v2198_v57 = vld [vmem:[%s10346_s19 + $0xe0] sm:$0xff] }
 0x177   : > { %775 = vrot.lane.b32.xlu1 %v10683_v25, %s9949_s21  ;;  %797 = vrot.lane.b32.xlu0 %v10685_v26, %s9950_s24  ;;  %2221 = vst.msk [vmem:[#allocation4 + $0xf1] sm:$0xff] %vm467_vm2, %v2188_v58  ;;  %2222 = vst.msk [vmem:[#allocation4 + $0xf9] sm:$0xff] %vm467_vm2, %v2189_v59  ;;  %v2199_v58 = vld [vmem:[%s10346_s19 + $0xe8] sm:$0xff] }
 0x178   : > { %2225 = vst.msk [vmem:[#allocation4 + $0x121] sm:$0xff] %vm467_vm2, %v2192_v60  ;;  %2226 = vst.msk [vmem:[#allocation4 + $0x129] sm:$0xff] %vm467_vm2, %v2193_v61 }
 0x179   : > { %2229 = vst.msk [vmem:[#allocation4 + $0x151] sm:$0xff] %vm467_vm2, %v2196_v62  ;;  %2230 = vst.msk [vmem:[#allocation4 + $0x159] sm:$0xff] %vm467_vm2, %v2197_v0 }
 0x17a   : > { %2203 = vst.msk [vmem:[#allocation4 + $0x19] sm:$0xff] %vm467_vm2, %v2170_v2  ;;  %2204 = vst.msk [vmem:[#allocation4 + $0x21] sm:$0xff] %vm467_vm2, %v2171_v3 }
 0x17b   : > { %795 = vrot.lane.b32.xlu1 %v10690_v27, %s9950_s24  ;;  %801 = vrot.lane.b32.xlu0 %v10692_v28, %s9950_s24  ;;  %2207 = vst.msk [vmem:[#allocation4 + $0x49] sm:$0xff] %vm467_vm2, %v2174_v5  ;;  %2208 = vst.msk [vmem:[#allocation4 + $0x51] sm:$0xff] %vm467_vm2, %v2175_v6 }
 0x17c   : > { %2212 = vst.msk [vmem:[#allocation4 + $0x81] sm:$0xff] %vm467_vm2, %v2179_v39  ;;  %2215 = vst.msk [vmem:[#allocation4 + $0xa9] sm:$0xff] %vm467_vm2, %v2182_v40 }
 0x17d   : > { %2216 = vst.msk [vmem:[#allocation4 + $0xb1] sm:$0xff] %vm467_vm2, %v2183_v46  ;;  %2219 = vst.msk [vmem:[#allocation4 + $0xd9] sm:$0xff] %vm467_vm2, %v2186_v47  ;;  %v2331_v46 = vld [vmem:[#allocation4 + $0x1] sm:$0xff]  ;;  %v2332_v47 = vld [vmem:[#allocation4 + $0x9] sm:$0xff] }
 0x17e   : > { %v2287_v37 = vld [vmem:[#allocation4 + $0xf0] sm:$0xff]  ;;  %v2288_v42 = vld [vmem:[#allocation4 + $0xf8] sm:$0xff]  ;;  %2220 = vst.msk [vmem:[#allocation4 + $0xe1] sm:$0xff] %vm467_vm2, %v2187_v49  ;;  %2223 = vst.msk [vmem:[#allocation4 + $0x109] sm:$0xff] %vm467_vm2, %v2190_v50 }
 0x17f   : > { %799 = vrot.lane.b32.xlu1 %v10696_v29, %s9950_s24  ;;  %805 = vrot.lane.b32.xlu0 %v10698_v30, %s9950_s24  ;;  %2224 = vst.msk [vmem:[#allocation4 + $0x111] sm:$0xff] %vm467_vm2, %v2191_v51  ;;  %2227 = vst.msk [vmem:[#allocation4 + $0x139] sm:$0xff] %vm467_vm2, %v2194_v54  ;;  %v10987_v59 = vpack.i.bf16 %v2288_v42, %v2287_v37  ;;  %v2291_v61 = vld [vmem:[#allocation4 + $0x120] sm:$0xff]  ;;  %v2292_v62 = vld [vmem:[#allocation4 + $0x128] sm:$0xff] }
 0x180   : > { %2228 = vst.msk [vmem:[#allocation4 + $0x141] sm:$0xff] %vm467_vm2, %v2195_v55  ;;  %2231 = vst.msk [vmem:[#allocation4 + $0x169] sm:$0xff] %vm467_vm2, %v2198_v57  ;;  %v10998_v5 = vpack.i.bf16 %v2292_v62, %v2291_v61  ;;  %v8475_v55 = vpack.i.bf16 %v2332_v47, %v2331_v46  ;;  %v2336_v61 = vld [vmem:[#allocation4 + $0x39] sm:$0xff] }
 0x181   : > { %15715 = vst [vmem:[#allocation34_spill] sm:$0xff] %v10987_v59  ;;  %2232 = vst.msk [vmem:[#allocation4 + $0x171] sm:$0xff] %vm467_vm2, %v2199_v58  ;;  %v2335_v58 = vld [vmem:[#allocation4 + $0x31] sm:$0xff]  ;;  %v2344_v46 = vld [vmem:[#allocation4 + $0x99] sm:$0xff] }
 0x182   : > { %v2273_v35 = vld [vmem:[#allocation4 + $0x48] sm:$0xff]  ;;  %v2274_v36 = vld [vmem:[#allocation4 + $0x50] sm:$0xff]  ;;  %15716 = vst [vmem:[#allocation35_spill] sm:$0xff] %v10998_v5 }
 0x183   : > { %803 = vrot.lane.b32.xlu1 %v10702_v31, %s9950_s24  ;;  %825 = vrot.lane.b32.xlu0 %v657_v12, %s9951_s4  ;;  %v2275_v12 = vld [vmem:[#allocation4 + $0x60] sm:$0xff]  ;;  %v2281_v3 = vld [vmem:[#allocation4 + $0xa8] sm:$0xff] }
 0x186   : > { %v2290_v39 = vld [vmem:[#allocation4 + $0x110] sm:$0xff]  ;;  %v2293_v51 = vld [vmem:[#allocation4 + $0x138] sm:$0xff] }
 0x187   : > { %807 = vrot.lane.b32.xlu1 %v679_v32, %s9950_s24  ;;  %829 = vrot.lane.b32.xlu0 %v10644_v13, %s9951_s4  ;;  %v2294_v54 = vld [vmem:[#allocation4 + $0x140] sm:$0xff]  ;;  %s9969_s24 = smov 120  }
 0x18b   : > { %827 = vrot.lane.b32.xlu1 %v10641_v11, %s9951_s4  ;;  %833 = vrot.lane.b32.xlu0 %v10650_v15, %s9951_s4 }
 0x18e   : > { %v10750_v44 = vpop.permute.xlu0 %729 }
 0x18f   : > { %831 = vrot.lane.b32.xlu1 %v10646_v14, %s9951_s4  ;;  %837 = vrot.lane.b32.xlu0 %v10656_v17, %s9951_s4 }
 0x192   : > { %v10754_v45 = vpop.permute.xlu0 %761 }
 0x193   : > { %835 = vrot.lane.b32.xlu1 %v10652_v16, %s9951_s4  ;;  %857 = vrot.lane.b32.xlu0 %v665_v19, %s9952_s16 }
 0x197   : > { %839 = vrot.lane.b32.xlu1 %v687_v33, %s9951_s4  ;;  %861 = vrot.lane.b32.xlu0 %v10668_v21, %s9952_s16 }
 0x19b   : > { %859 = vrot.lane.b32.xlu1 %v10658_v18, %s9952_s16  ;;  %865 = vrot.lane.b32.xlu0 %v10676_v23, %s9952_s16 }
 0x19f   : > { %863 = vrot.lane.b32.xlu1 %v10663_v20, %s9952_s16  ;;  %869 = vrot.lane.b32.xlu0 %v10683_v25, %s9952_s16 }
 0x1a3   : > { %867 = vrot.lane.b32.xlu1 %v10670_v22, %s9952_s16  ;;  %889 = vrot.lane.b32.xlu0 %v10690_v27, %s9953_s9 }
 0x1a7   : > { %871 = vrot.lane.b32.xlu1 %v10727_v34, %s9952_s16  ;;  %893 = vrot.lane.b32.xlu0 %v10696_v29, %s9953_s9 }
 0x1ab   : > { %891 = vrot.lane.b32.xlu1 %v10685_v26, %s9953_s9  ;;  %897 = vrot.lane.b32.xlu0 %v10702_v31, %s9953_s9 }
 0x1af   : > { %895 = vrot.lane.b32.xlu1 %v10692_v28, %s9953_s9  ;;  %901 = vrot.lane.b32.xlu0 %v679_v32, %s9953_s9  ;;  %v2270_v32 = vld [vmem:[#allocation4 + $0x20] sm:$0xff] }
 0x1b3   : > { %899 = vrot.lane.b32.xlu1 %v10698_v30, %s9953_s9  ;;  %921 = vrot.lane.b32.xlu0 %v10641_v11, %s9954_s14  ;;  %v10927_v11 = vpack.i.bf16 %v2272_v9, %v2271_v7  ;;  %v2282_v7 = vld [vmem:[#allocation4 + $0xb0] sm:$0xff] }
 0x1b4   : > { %v2295_v9 = vld [vmem:[#allocation4 + $0x150] sm:$0xff] }
 0x1b5   : > { %15710 = vst [vmem:[#allocation29_spill] sm:$0xff] %v10927_v11  ;;  %v2412_v30 = vld [vmem:[#allocation4 + $0xca] sm:$0xff] }
 0x1b7   : > { %903 = vrot.lane.b32.xlu1 %v704_v38, %s9953_s9  ;;  %925 = vrot.lane.b32.xlu0 %v10646_v14, %s9954_s14  ;;  %v2178_v38 = vld [vmem:[%s10346_s19 + $0x40] sm:$0xff] }
 0x1b8   : > { %2211 = vst.msk [vmem:[#allocation4 + $0x79] sm:$0xff] %vm467_vm2, %v2178_v38  ;;  %v2289_v38 = vld [vmem:[#allocation4 + $0x108] sm:$0xff] }
 0x1b9   : > { %v11027_v50 = vpack.i.bf16 %v2290_v39, %v2289_v38 }
 0x1bb   : > { %923 = vrot.lane.b32.xlu1 %v10644_v13, %s9954_s14  ;;  %929 = vrot.lane.b32.xlu0 %v10652_v16, %s9954_s14  ;;  %v2276_v13 = vld [vmem:[#allocation4 + $0x68] sm:$0xff]  ;;  %15721 = vst [vmem:[#allocation40_spill] sm:$0xff] %v11027_v50 }
 0x1bf   : > { %927 = vrot.lane.b32.xlu1 %v10650_v15, %s9954_s14  ;;  %933 = vrot.lane.b32.xlu0 %v687_v33, %s9954_s14  ;;  %v10934_v15 = vpack.i.bf16 %v2276_v13, %v2275_v12  ;;  %v2277_v0 = vld [vmem:[#allocation4 + $0x78] sm:$0xff]  ;;  %v2278_v2 = vld [vmem:[#allocation4 + $0x80] sm:$0xff] }
 0x1c0   : > { %v11000_v6 = vpack.i.bf16 %v2278_v2, %v2277_v0  ;;  %v2296_v12 = vld [vmem:[#allocation4 + $0x158] sm:$0xff]  ;;  %v11036_v0 = vpack.i.bf16 %v2294_v54, %v2293_v51  ;;  %v2297_v2 = vld [vmem:[#allocation4 + $0x168] sm:$0xff] }
 0x1c1   : > { %15711 = vst [vmem:[#allocation30_spill] sm:$0xff] %v10934_v15  ;;  %v2337_v54 = vld [vmem:[#allocation4 + $0x49] sm:$0xff] }
 0x1c2   : > { %15717 = vst [vmem:[#allocation36_spill] sm:$0xff] %v11000_v6  ;;  %15722 = vst [vmem:[#allocation41_spill] sm:$0xff] %v11036_v0 }
 0x1c3   : > { %931 = vrot.lane.b32.xlu1 %v10656_v17, %s9954_s14  ;;  %953 = vrot.lane.b32.xlu0 %v10658_v18, %s9955_s0  ;;  %v2279_v17 = vld [vmem:[#allocation4 + $0x90] sm:$0xff]  ;;  %v2280_v18 = vld [vmem:[#allocation4 + $0x98] sm:$0xff] }
 0x1c7   : > { %935 = vrot.lane.b32.xlu1 %v712_v43, %s9954_s14  ;;  %957 = vrot.lane.b32.xlu0 %v10663_v20, %s9955_s0  ;;  %v10942_v20 = vpack.i.bf16 %v2280_v18, %v2279_v17  ;;  %v10959_v43 = vpack.i.bf16 %v2274_v36, %v2273_v35  ;;  %v11008_v17 = vpack.i.bf16 %v2282_v7, %v2281_v3  ;;  %v2285_v18 = vld [vmem:[#allocation4 + $0xd8] sm:$0xff]  ;;  %v2298_v3 = vld [vmem:[#allocation4 + $0x170] sm:$0xff] }
 0x1c8   : > { %v2300_v35 = vld [vmem:[#allocation3 + $0x9] sm:$0xff]  ;;  %v8485_v7 = vpack.i.bf16 %v2336_v61, %v2335_v58 }
 0x1c9   : > { %15713 = vst [vmem:[#allocation32_spill] sm:$0xff] %v10942_v20  ;;  %15719 = vst [vmem:[#allocation38_spill] sm:$0xff] %v11008_v17 }
 0x1cb   : > { %955 = vrot.lane.b32.xlu1 %v10668_v21, %s9955_s0  ;;  %961 = vrot.lane.b32.xlu0 %v10670_v22, %s9955_s0  ;;  %v2283_v21 = vld [vmem:[#allocation4 + $0xc0] sm:$0xff] }
 0x1cd   : > { %v10877_v52 = vpop.permute.xlu1 %733  ;;  %v10885_v56 = vpop.permute.xlu0 %731 }
 0x1cf   : > { %959 = vrot.lane.b32.xlu1 %v10676_v23, %s9955_s0  ;;  %965 = vrot.lane.b32.xlu0 %v10727_v34, %s9955_s0  ;;  %v2284_v23 = vld [vmem:[#allocation4 + $0xc8] sm:$0xff] }
 0x1d0   : > { %v10955_v41 = vpack.i.bf16 %v2284_v23, %v2283_v21  ;;  %v2286_v21 = vld [vmem:[#allocation4 + $0xe0] sm:$0xff]  ;;  %v8460_v23 = vpack.i.bf16 %v2296_v12, %v2295_v9 }
 0x1d1   : > { %v10909_v1 = vpop.permute.xlu1 %735  ;;  %v10914_v4 = vpop.permute.xlu0 %737  ;;  %v11018_v37 = vpack.i.bf16 %v2286_v21, %v2285_v18  ;;  %v2339_v12 = vld [vmem:[#allocation4 + $0x61] sm:$0xff]  ;;  %v2340_v18 = vld [vmem:[#allocation4 + $0x69] sm:$0xff] }
 0x1d2   : > { %15714 = vst [vmem:[#allocation33_spill] sm:$0xff] %v10955_v41  ;;  %v8495_v38 = vpack.i.bf16 %v2340_v18, %v2339_v12  ;;  %v2341_v18 = vld [vmem:[#allocation4 + $0x79] sm:$0xff] }
 0x1d3   : > { %963 = vrot.lane.b32.xlu1 %v10683_v25, %s9955_s0  ;;  %8391 = vrot.lane.b32.xlu0 %v8390_v63, %s9949_s21  ;;  %v2269_v25 = vld [vmem:[#allocation4 + $0x18] sm:$0xff]  ;;  %15720 = vst [vmem:[#allocation39_spill] sm:$0xff] %v11018_v37 }
 0x1d4   : > { %v10948_v34 = vpack.i.bf16 %v2270_v32, %v2269_v25  ;;  %v2299_v32 = vld [vmem:[#allocation3 + $0x1] sm:$0xff] }
 0x1d5   : > { %v10925_v10 = vpop.permute.xlu1 %739  ;;  %v10929_v14 = vpop.permute.xlu0 %741  ;;  %v8470_v40 = vpack.i.bf16 %v2300_v35, %v2299_v32  ;;  %v2333_v32 = vld [vmem:[#allocation4 + $0x19] sm:$0xff]  ;;  %v2334_v35 = vld [vmem:[#allocation4 + $0x21] sm:$0xff] }
 0x1d6   : > { %v8480_v51 = vpack.i.bf16 %v2334_v35, %v2333_v32  ;;  %v2351_v35 = vld [vmem:[#allocation4 + $0xf1] sm:$0xff] }
 0x1d7   : > { %967 = vrot.lane.b32.xlu1 %v720_v8, %s9955_s0  ;;  %8401 = vrot.lane.b32.xlu0 %v10927_v11, %s9949_s21 }
 0x1d9   : > { %v10936_v16 = vpop.permute.xlu1 %743  ;;  %v10938_v19 = vpop.permute.xlu0 %765 }
 0x1da   : > { %15712 = vst [vmem:[#allocation31_spill] sm:$0xff] %v10936_v16  ;;  %v2410_v16 = vld [vmem:[#allocation4 + $0xb2] sm:$0xff] }
 0x1db   : > { %8411 = vrot.lane.b32.xlu0 %v10934_v15, %s9949_s21  ;;  %8396 = vrot.lane.b32.xlu1 %v10948_v34, %s9949_s21  ;;  %v2358_v15 = vld [vmem:[#allocation4 + $0x141] sm:$0xff] }
 0x1dd   : > { %v10944_v22 = vpop.permute.xlu1 %763  ;;  %v10946_v33 = vpop.permute.xlu0 %769 }
 0x1df   : > { %8421 = vrot.lane.b32.xlu0 %v10942_v20, %s9949_s21  ;;  %8406 = vrot.lane.b32.xlu1 %v10959_v43, %s9949_s21  ;;  %v2354_v20 = vld [vmem:[#allocation4 + $0x111] sm:$0xff] }
 0x1e1   : > { %v10966_v48 = vpop.permute.xlu1 %767  ;;  %v10973_v53 = vpop.permute.xlu0 %773 }
 0x1e3   : > { %8431 = vrot.lane.b32.xlu0 %v10955_v41, %s9949_s21  ;;  %8416 = vrot.lane.b32.xlu1 %v11000_v6, %s9949_s21  ;;  %v2350_v41 = vld [vmem:[#allocation4 + $0xe1] sm:$0xff] }
 0x1e4   : > { %v2400_v6 = vld [vmem:[#allocation4 + $0x3a] sm:$0xff] }
 0x1e5   : > { %v10992_v60 = vpop.permute.xlu1 %771  ;;  %v10994_v63 = vpop.permute.xlu0 %793 }
 0x1e7   : > { %8441 = vrot.lane.b32.xlu0 %v10987_v59, %s9949_s21  ;;  %8426 = vrot.lane.b32.xlu1 %v11008_v17, %s9949_s21  ;;  %v2346_v59 = vld [vmem:[#allocation4 + $0xb1] sm:$0xff]  ;;  %v2364_v17 = vld [vmem:[#allocation3 + $0xa] sm:$0xff] }
 0x1e9   : > { %v11002_v8 = vpop.permute.xlu1 %775  ;;  %v11004_v13 = vpop.permute.xlu0 %797 }
 0x1ea   : > { %15718 = vst [vmem:[#allocation37_spill] sm:$0xff] %v11002_v8  ;;  %v2402_v8 = vld [vmem:[#allocation4 + $0x52] sm:$0xff] }
 0x1eb   : > { %8451 = vrot.lane.b32.xlu0 %v10998_v5, %s9949_s21  ;;  %8436 = vrot.lane.b32.xlu1 %v11018_v37, %s9949_s21  ;;  %v2342_v5 = vld [vmem:[#allocation4 + $0x81] sm:$0xff]  ;;  %v2360_v37 = vld [vmem:[#allocation4 + $0x159] sm:$0xff] }
 0x1ed   : > { %v11012_v25 = vpop.permute.xlu1 %795  ;;  %v11014_v36 = vpop.permute.xlu0 %801 }
 0x1ef   : > { %8461 = vrot.lane.b32.xlu0 %v8460_v23, %s9949_s21  ;;  %8446 = vrot.lane.b32.xlu1 %v11027_v50, %s9949_s21  ;;  %v8465_v23 = vpack.i.bf16 %v2298_v3, %v2297_v2  ;;  %v2347_v2 = vld [vmem:[#allocation4 + $0xc1] sm:$0xff]  ;;  %v2348_v3 = vld [vmem:[#allocation4 + $0xc9] sm:$0xff] }
 0x1f0   : > { %v2356_v50 = vld [vmem:[#allocation4 + $0x129] sm:$0xff] }
 0x1f1   : > { %v11021_v42 = vpop.permute.xlu1 %799  ;;  %v11023_v49 = vpop.permute.xlu0 %805 }
 0x1f3   : > { %8471 = vrot.lane.b32.xlu0 %v8470_v40, %s9951_s4  ;;  %8456 = vrot.lane.b32.xlu1 %v11036_v0, %s9949_s21  ;;  %v2343_v40 = vld [vmem:[#allocation4 + $0x91] sm:$0xff]  ;;  %v2352_v0 = vld [vmem:[#allocation4 + $0xf9] sm:$0xff] }
 0x1f4   : > { %v8505_v58 = vpack.i.bf16 %v2344_v46, %v2343_v40  ;;  %v8500_v40 = vpack.i.bf16 %v2342_v5, %v2341_v18  ;;  %v2345_v46 = vld [vmem:[#allocation4 + $0xa9] sm:$0xff]  ;;  %v2359_v18 = vld [vmem:[#allocation4 + $0x151] sm:$0xff] }
 0x1f5   : > { %v11030_v57 = vpop.permute.xlu1 %803  ;;  %v11032_v62 = vpop.permute.xlu0 %825 }
 0x1f7   : > { %8476 = vrot.lane.b32.xlu0 %v8475_v55, %s9953_s9  ;;  %8466 = vrot.lane.b32.xlu1 %v8465_v23, %s9949_s21  ;;  %v2338_v55 = vld [vmem:[#allocation4 + $0x51] sm:$0xff]  ;;  %v8515_v23 = vpack.i.bf16 %v2348_v3, %v2347_v2  ;;  %v8510_v2 = vpack.i.bf16 %v2346_v59, %v2345_v46  ;;  %v2349_v3 = vld [vmem:[#allocation4 + $0xd9] sm:$0xff] }
 0x1f8   : > { %v8490_v12 = vpack.i.bf16 %v2338_v55, %v2337_v54  ;;  %v2355_v55 = vld [vmem:[#allocation4 + $0x121] sm:$0xff]  ;;  %v2363_v46 = vld [vmem:[#allocation3 + $0x2] sm:$0xff] }
 0x1f9   : > { %v11039_v9 = vpop.permute.xlu1 %807  ;;  %v11041_v21 = vpop.permute.xlu0 %829 }
 0x1fa   : > { %15723 = vst [vmem:[#allocation42_spill] sm:$0xff] %v11039_v9  ;;  %v2362_v9 = vld [vmem:[#allocation4 + $0x171] sm:$0xff] }
 0x1fb   : > { %8486 = vrot.lane.b32.xlu0 %v8485_v7, %s9953_s9  ;;  %8481 = vrot.lane.b32.xlu1 %v8480_v51, %s9953_s9  ;;  %v8525_v51 = vpack.i.bf16 %v2352_v0, %v2351_v35  ;;  %v8520_v0 = vpack.i.bf16 %v2350_v41, %v2349_v3  ;;  %v2353_v35 = vld [vmem:[#allocation4 + $0x109] sm:$0xff] }
 0x1fc   : > { %v2395_v3 = vld [vmem:[#allocation4 + $0x2] sm:$0xff] }
 0x1fd   : > { %v11046_v39 = vpop.permute.xlu1 %827  ;;  %v11048_v47 = vpop.permute.xlu0 %833 }
 0x1ff   : > { %8496 = vrot.lane.b32.xlu0 %v8495_v38, %s9953_s9  ;;  %8491 = vrot.lane.b32.xlu1 %v8490_v12, %s9953_s9  ;;  %v8535_v12 = vpack.i.bf16 %v2356_v50, %v2355_v55  ;;  %v8530_v50 = vpack.i.bf16 %v2354_v20, %v2353_v35  ;;  %v2357_v55 = vld [vmem:[#allocation4 + $0x139] sm:$0xff] }
 0x200   : > { %v2399_v35 = vld [vmem:[#allocation4 + $0x32] sm:$0xff] }
 0x201   : > { %v11052_v61 = vpop.permute.xlu1 %831  ;;  %v11054_v7 = vpop.permute.xlu0 %837 }
 0x202   : > { %15724 = vst [vmem:[#allocation43_spill] sm:$0xff] %v11054_v7  ;;  %v2406_v7 = vld [vmem:[#allocation4 + $0x82] sm:$0xff] }
 0x203   : > { %8506 = vrot.lane.b32.xlu0 %v8505_v58, %s9953_s9  ;;  %8501 = vrot.lane.b32.xlu1 %v8500_v40, %s9953_s9  ;;  %v8545_v40 = vpack.i.bf16 %v2360_v37, %v2359_v18  ;;  %v8540_v37 = vpack.i.bf16 %v2358_v15, %v2357_v55  ;;  %v2361_v18 = vld [vmem:[#allocation4 + $0x169] sm:$0xff]  ;;  %v8570_v15 = vpack.i.bf16 %v2400_v6, %v2399_v35  ;;  %v2405_v35 = vld [vmem:[#allocation4 + $0x7a] sm:$0xff] }
 0x204   : > { %v2403_v55 = vld [vmem:[#allocation4 + $0x62] sm:$0xff] }
 0x205   : > { %v11058_v32 = vpop.permute.xlu1 %835  ;;  %v11060_v38 = vpop.permute.xlu0 %857 }
 0x207   : > { %8516 = vrot.lane.b32.xlu0 %v8515_v23, %s9953_s9  ;;  %8511 = vrot.lane.b32.xlu1 %v8510_v2, %s9953_s9  ;;  %v8555_v2 = vpack.i.bf16 %v2364_v17, %v2363_v46  ;;  %v8550_v17 = vpack.i.bf16 %v2362_v9, %v2361_v18  ;;  %v2397_v46 = vld [vmem:[#allocation4 + $0x1a] sm:$0xff]  ;;  %v2407_v18 = vld [vmem:[#allocation4 + $0x92] sm:$0xff] }
 0x209   : > { %v11064_v54 = vpop.permute.xlu1 %839  ;;  %v11066_v58 = vpop.permute.xlu0 %861 }
 0x20a   : > { %15725 = vst [vmem:[#allocation44_spill] sm:$0xff] %v11064_v54  ;;  %v2396_v54 = vld [vmem:[#allocation4 + $0xa] sm:$0xff] }
 0x20b   : > { %8526 = vrot.lane.b32.xlu0 %v8525_v51, %s9953_s9  ;;  %8521 = vrot.lane.b32.xlu1 %v8520_v0, %s9953_s9  ;;  %v8560_v0 = vpack.i.bf16 %v2396_v54, %v2395_v3 }
 0x20d   : > { %v11070_v5 = vpop.permute.xlu1 %859  ;;  %v11072_v23 = vpop.permute.xlu0 %865 }
 0x20f   : > { %8536 = vrot.lane.b32.xlu0 %v8535_v12, %s9953_s9  ;;  %8531 = vrot.lane.b32.xlu1 %v8530_v50, %s9953_s9 }
 0x211   : > { %v11076_v59 = vpop.permute.xlu1 %863  ;;  %v11078_v51 = vpop.permute.xlu0 %869 }
 0x212   : > { %15726 = vst [vmem:[#allocation45_spill] sm:$0xff] %v11078_v51  ;;  %v2398_v51 = vld [vmem:[#allocation4 + $0x22] sm:$0xff] }
 0x213   : > { %8546 = vrot.lane.b32.xlu0 %v8545_v40, %s9953_s9  ;;  %8541 = vrot.lane.b32.xlu1 %v8540_v37, %s9953_s9  ;;  %v8565_v3 = vpack.i.bf16 %v2398_v51, %v2397_v46  ;;  %v2411_v46 = vld [vmem:[#allocation4 + $0xc2] sm:$0xff] }
 0x215   : > { %v11082_v41 = vpop.permute.xlu1 %867  ;;  %v11084_v12 = vpop.permute.xlu0 %889 }
 0x216   : > { %15727 = vst [vmem:[#allocation46_spill] sm:$0xff] %v11082_v41  ;;  %v2408_v41 = vld [vmem:[#allocation4 + $0x9a] sm:$0xff] }
 0x217   : > { %8556 = vrot.lane.b32.xlu0 %v8555_v2, %s9955_s0  ;;  %v2404_v2 = vld [vmem:[#allocation4 + $0x6a] sm:$0xff]  ;;  %8551 = vrot.lane.b32.xlu1 %v8550_v17, %s9953_s9  ;;  %v8590_v17 = vpack.i.bf16 %v2408_v41, %v2407_v18  ;;  %v2413_v18 = vld [vmem:[#allocation4 + $0xda] sm:$0xff] }
 0x218   : > { %v8580_v9 = vpack.i.bf16 %v2404_v2, %v2403_v55  ;;  %v8585_v55 = vpack.i.bf16 %v2406_v7, %v2405_v35  ;;  %v2409_v2 = vld [vmem:[#allocation4 + $0xaa] sm:$0xff]  ;;  %v2419_v35 = vld [vmem:[#allocation4 + $0x122] sm:$0xff] }
 0x219   : > { %v11088_v20 = vpop.permute.xlu1 %871  ;;  %v11090_v40 = vpop.permute.xlu0 %893  ;;  %v8595_v41 = vpack.i.bf16 %v2410_v16, %v2409_v2  ;;  %v2417_v16 = vld [vmem:[#allocation4 + $0x10a] sm:$0xff] }
 0x21a   : > { %15728 = vst [vmem:[#allocation47_spill] sm:$0xff] %v11088_v20  ;;  %v2401_v20 = vld [vmem:[#allocation4 + $0x4a] sm:$0xff] }
 0x21b   : > { %8561 = vrot.lane.b32.xlu0 %v8560_v0, %s9956_s3  ;;  %8566 = vrot.lane.b32.xlu1 %v8565_v3, %s9956_s3  ;;  %v8575_v6 = vpack.i.bf16 %v2402_v8, %v2401_v20  ;;  %v2415_v8 = vld [vmem:[#allocation4 + $0xf2] sm:$0xff]  ;;  %v2416_v20 = vld [vmem:[#allocation4 + $0xfa] sm:$0xff] }
 0x21c   : > { %v8610_v7 = vpack.i.bf16 %v2416_v20, %v2415_v8  ;;  %v2423_v20 = vld [vmem:[#allocation4 + $0x152] sm:$0xff] }
 0x21d   : > { %v11094_v50 = vpop.permute.xlu1 %891  ;;  %v11096_v54 = vpop.permute.xlu0 %897 }
 0x21f   : > { %8571 = vrot.lane.b32.xlu0 %v8570_v15, %s9956_s3  ;;  %8576 = vrot.lane.b32.xlu1 %v8575_v6, %s9956_s3 }
 0x221   : > { %v11100_v37 = vpop.permute.xlu1 %895  ;;  %v11102_v0 = vpop.permute.xlu0 %901 }
 0x222   : > { %15729 = vst [vmem:[#allocation48_spill] sm:$0xff] %v11102_v0  ;;  %v8600_v0 = vpack.i.bf16 %v2412_v30, %v2411_v46 }
 0x223   : > { %8581 = vrot.lane.b32.xlu0 %v8580_v9, %s9956_s3  ;;  %8586 = vrot.lane.b32.xlu1 %v8585_v55, %s9956_s3  ;;  %v648_v9 = vld [vmem:[#allocation2] sm:$0xff] }
 0x224   : > { %v977_v30 = vsel %vm445_vm0, %v648_v9, %v10750_v44  ;;  %v2418_v55 = vld [vmem:[#allocation4 + $0x112] sm:$0xff]  ;;  %v2424_v44 = vld [vmem:[#allocation4 + $0x15a] sm:$0xff] }
 0x225   : > { %v11106_v51 = vpop.permute.xlu1 %899  ;;  %v922_v15 = vpop.permute.xlu0 %921  ;;  %v985_v2 = vsel %vm467_vm2, %v977_v30, %v10754_v45  ;;  %v2422_v45 = vld [vmem:[#allocation4 + $0x142] sm:$0xff] }
 0x226   : > { %15730 = vst [vmem:[#allocation49_spill] sm:$0xff] %v11106_v51  ;;  %v2414_v51 = vld [vmem:[#allocation4 + $0xe2] sm:$0xff]  ;;  %v994_v9 = vsel %vm993_vm5, %v985_v2, %v10994_v63  ;;  %v2426_v2 = vld [vmem:[#allocation4 + $0x172] sm:$0xff] }
 0x227   : > { %8591 = vrot.lane.b32.xlu0 %v8590_v17, %s9956_s3  ;;  %v2420_v17 = vld [vmem:[#allocation4 + $0x12a] sm:$0xff]  ;;  %8596 = vrot.lane.b32.xlu1 %v8595_v41, %s9956_s3  ;;  %v8615_v41 = vpack.i.bf16 %v2418_v55, %v2417_v16 }
 0x229   : > { %v11110_v3 = vpop.permute.xlu1 %903  ;;  %v11112_v11 = vpop.permute.xlu0 %925 }
 0x22a   : > { %15731 = vst [vmem:[#allocation50_spill] sm:$0xff] %v11110_v3  ;;  %v8605_v3 = vpack.i.bf16 %v2414_v51, %v2413_v18  ;;  %v1003_v18 = vsel %vm1002_vm6, %v994_v9, %v11032_v62  ;;  %v980_v9 = vsel %vm445_vm0, %v10685_v26, %v10909_v1 }
 0x22b   : > { %8601 = vrot.lane.b32.xlu0 %v8600_v0, %s9956_s3  ;;  %v8620_v0 = vpack.i.bf16 %v2420_v17, %v2419_v35  ;;  %v1012_v35 = vsel %vm1011_vm7, %v1003_v18, %v11060_v38  ;;  %v8630_v17 = vpack.i.bf16 %v2424_v44, %v2423_v20  ;;  %v978_v38 = vsel %vm445_vm0, %v10678_v24, %v10885_v56  ;;  %v15733_v18 = vld [vmem:[#allocation31_spill] sm:$0xff] }
 0x22c   : > { %8606 = vrot.lane.b32.xlu1 %v8605_v3, %s9956_s3  ;;  %v1021_v63 = vsel %vm1020_vm8, %v1012_v35, %v11084_v12  ;;  %v979_v12 = vsel %vm445_vm0, %v10690_v27, %v10877_v52  ;;  %v986_v20 = vsel %vm467_vm2, %v978_v38, %v10944_v22  ;;  %v15736_v35 = vld [vmem:[#allocation46_spill] sm:$0xff] }
 0x22d   : > { %v11116_v6 = vpop.permute.xlu1 %923  ;;  %v11120_v46 = vpop.permute.xlu0 %929  ;;  %v1030_v3 = vsel %vm1029_vm9, %v1021_v63, %v922_v15  ;;  %v987_v15 = vsel %vm467_vm2, %v979_v12, %v10938_v19  ;;  %v995_v24 = vsel %vm993_vm5, %v986_v20, %v11012_v25  ;;  %v981_v19 = vsel %vm445_vm0, %v10696_v29, %v10914_v4  ;;  %v15738_v63 = vld [vmem:[#allocation45_spill] sm:$0xff]  ;;  %v15742_v12 = vld [vmem:[#allocation48_spill] sm:$0xff] }
 0x22e   : > { %v996_v44 = vsel %vm993_vm5, %v987_v15, %v11004_v13  ;;  %v1004_v27 = vsel %vm1002_vm6, %v995_v24, %v11046_v39  ;;  %v982_v39 = vsel %vm445_vm0, %v10692_v28, %v10925_v10  ;;  %v989_v29 = vsel %vm467_vm2, %v981_v19, %v10946_v33  ;;  %v15745_v19 = vld [vmem:[#allocation47_spill] sm:$0xff] }
 0x22f   : > { %8611 = vrot.lane.b32.xlu0 %v8610_v7, %s9956_s3  ;;  %v2421_v7 = vld [vmem:[#allocation4 + $0x13a] sm:$0xff]  ;;  %v1005_v25 = vsel %vm1002_vm6, %v996_v44, %v11041_v21  ;;  %v1013_v13 = vsel %vm1011_vm7, %v1004_v27, %v11070_v5  ;;  %v998_v21 = vsel %vm993_vm5, %v989_v29, %v11014_v36  ;;  %v15743_v44 = vld [vmem:[#allocation44_spill] sm:$0xff] }
 0x230   : > { %8616 = vrot.lane.b32.xlu1 %v8615_v41, %s9956_s3  ;;  %v8625_v62 = vpack.i.bf16 %v2422_v45, %v2421_v7  ;;  %v988_v41 = vsel %vm467_vm2, %v980_v9, %v10966_v48  ;;  %v1014_v26 = vsel %vm1011_vm7, %v1005_v25, %v11066_v58  ;;  %v1022_v1 = vsel %vm1020_vm8, %v1013_v13, %v11094_v50  ;;  %v15744_v9 = vld [vmem:[#allocation30_spill] sm:$0xff]  ;;  %v15748_v29 = vld [vmem:[#allocation32_spill] sm:$0xff] }
 0x231   : > { %v11126_v8 = vpop.permute.xlu1 %927  ;;  %v11130_v51 = vpop.permute.xlu0 %933  ;;  %v997_v4 = vsel %vm993_vm5, %v988_v41, %v11021_v42  ;;  %v1023_v28 = vsel %vm1020_vm8, %v1014_v26, %v11090_v40  ;;  %v1031_v10 = vsel %vm1029_vm9, %v1022_v1, %v11116_v6  ;;  %v983_v42 = vsel %vm445_vm0, %v10702_v31, %v10929_v14  ;;  %v15747_v41 = vld [vmem:[#allocation38_spill] sm:$0xff] }
 0x232   : > { %v1006_v58 = vsel %vm1002_vm6, %v997_v4, %v11052_v61  ;;  %v1007_v40 = vsel %vm1002_vm6, %v998_v21, %v11048_v47  ;;  %v991_v31 = vsel %vm467_vm2, %v983_v42, %v10973_v53  ;;  %v15749_v4 = vld [vmem:[#allocation39_spill] sm:$0xff] }
 0x233   : > { %8621 = vrot.lane.b32.xlu0 %v8620_v0, %s9956_s3  ;;  %v2425_v0 = vld [vmem:[#allocation4 + $0x16a] sm:$0xff]  ;;  %v1015_v36 = vsel %vm1011_vm7, %v1006_v58, %v11076_v59  ;;  %v1016_v50 = vsel %vm1011_vm7, %v1007_v40, %v11072_v23  ;;  %v1000_v59 = vsel %vm993_vm5, %v991_v31, %v11023_v49  ;;  %v15754_v21 = vld [vmem:[#allocation35_spill] sm:$0xff] }
 0x234   : > { %8626 = vrot.lane.b32.xlu1 %v8625_v62, %s9956_s3  ;;  %v8635_v22 = vpack.i.bf16 %v2426_v2, %v2425_v0  ;;  %v1024_v6 = vsel %vm1020_vm8, %v1015_v36, %v11100_v37  ;;  %v15741_v0 = vld [vmem:[#allocation42_spill] sm:$0xff] }
 0x235   : > { %v11140_v30 = vpop.permute.xlu1 %931  ;;  %v954_v16 = vpop.permute.xlu0 %953  ;;  %v1033_v47 = vsel %vm1029_vm9, %v1024_v6, %v11126_v8  ;;  %v15735_v8 = vld [vmem:[#allocation43_spill] sm:$0xff]  ;;  %v2485_v58 = vld [vmem:[#allocation4 + $0x150] sm:$0xff] }
 0x236   : > { %v1039_v55 = vsel %vm1038_vm10, %v1030_v3, %v954_v16  ;;  %v1009_v45 = vsel %vm1002_vm6, %v1000_v59, %v15735_v8  ;;  %v15739_v16 = vld [vmem:[#allocation49_spill] sm:$0xff]  ;;  %v2201_v42 = vld [vmem:[%s10346_s19 + $0xf8] sm:$0xff] }
 0x237   : > { %8105 = vmatprep.mubr.msk.f32.mxu0 %vm1059_vm11, %v1039_v55  ;;  %8631 = vrot.lane.b32.xlu0 %v8630_v17, %s9956_s3  ;;  %v1018_v3 = vsel %vm1011_vm7, %v1009_v45, %v15738_v63  ;;  %v15740_v55 = vld [vmem:[#allocation36_spill] sm:$0xff]  ;;  %2234 = vst.msk [vmem:[#allocation4 + $0x189] sm:$0xff] %vm467_vm2, %v2201_v42  ;;  %v2525_v31 = vld [vmem:[#allocation4 + $0x31] sm:$0xff]  ;;  %v2534_v8 = vld [vmem:[#allocation4 + $0x99] sm:$0xff] }
 0x238   : > { %8636 = vrot.lane.b32.xlu1 %v8635_v22, %s9956_s3  ;;  %v1027_v20 = vsel %vm1020_vm8, %v1018_v3, %v15742_v12  ;;  %v2531_v45 = vld [vmem:[#allocation4 + $0x79] sm:$0xff] }
 0x239   : > { %v11159_v56 = vpop.permute.xlu1 %935  ;;  %v958_v52 = vpop.permute.xlu0 %957 }
 0x23b   : > { %8641 = vrot.lane.b32.xlu0 %v10948_v34, %s9957_s25  ;;  %v1032_v34 = vsel %vm1029_vm9, %v1023_v28, %v11112_v11  ;;  %v990_v11 = vsel %vm467_vm2, %v982_v39, %v10992_v60  ;;  %v1025_v60 = vsel %vm1020_vm8, %v1016_v50, %v11096_v54  ;;  %v15734_v54 = vld [vmem:[#allocation28_spill] sm:$0xff]  ;;  %v15750_v28 = vld [vmem:[#allocation33_spill] sm:$0xff] }
 0x23c   : > { %v1041_v61 = vsel %vm1038_vm10, %v1032_v34, %v958_v52  ;;  %v999_v14 = vsel %vm993_vm5, %v990_v11, %v11030_v57  ;;  %v15732_v57 = vld [vmem:[#allocation29_spill] sm:$0xff]  ;;  %v984_v7 = vsel %vm445_vm0, %v15734_v54, %v15733_v18  ;;  %v1036_v52 = vsel %vm1029_vm9, %v1027_v20, %v11130_v51  ;;  %v2486_v34 = vld [vmem:[#allocation4 + $0x158] sm:$0xff] }
 0x23d   : > { %v956_v48 = vpop.permute.xlu1 %955  ;;  %v962_v5 = vpop.permute.xlu0 %961  ;;  %v1008_v37 = vsel %vm1002_vm6, %v999_v14, %v11058_v32  ;;  %8646 = vrot.lane.b32.xlu1 %v15732_v57, %s9957_s25  ;;  %v2488_v50 = vld [vmem:[#allocation4 + $0x170] sm:$0xff]  ;;  %v2526_v14 = vld [vmem:[#allocation4 + $0x39] sm:$0xff]  ;;  %v9959_v20 = vmov 1966171168   ;;  %vm4993_vm0 = vcmask 588800  }
 0x23e   : > { %v1040_v33 = vsel %vm1038_vm10, %v1031_v10, %v956_v48  ;;  %v1017_v49 = vsel %vm1011_vm7, %v1008_v37, %v15736_v35  ;;  %v15751_v10 = vld [vmem:[#allocation40_spill] sm:$0xff]  ;;  %v15753_v48 = vld [vmem:[#allocation41_spill] sm:$0xff] }
 0x23f   : > { %8106 = vmatmul.mubr.msk.f32.vlgmr.msra.gmra.mrb[0].mxu0 %vm1059_vm11, %v1040_v33  ;;  %8651 = vrot.lane.b32.xlu0 %v10959_v43, %s9957_s25  ;;  %v1034_v43 = vsel %vm1029_vm9, %v1025_v60, %v11120_v46  ;;  %v15737_v46 = vld [vmem:[#allocation37_spill] sm:$0xff]  ;;  %v1026_v62 = vsel %vm1020_vm8, %v1017_v49, %v15739_v16  ;;  %v8705_v33 = vpack.i.bf16 %v2486_v34, %v2485_v58  ;;  %v2523_v60 = vld [vmem:[#allocation4 + $0x19] sm:$0xff]  ;;  %v2529_v37 = vld [vmem:[#allocation4 + $0x61] sm:$0xff] }
 0x240   : > { %8108 = vmatprep.mubr.msk.f32.mxu0 %vm1059_vm11, %v1041_v61  ;;  %v1043_v32 = vsel %vm1038_vm10, %v1034_v43, %v962_v5  ;;  %v992_v17 = vsel %vm467_vm2, %v984_v7, %v15737_v46  ;;  %v1035_v15 = vsel %vm1029_vm9, %v1026_v62, %v11140_v30  ;;  %v15746_v30 = vld [vmem:[#allocation50_spill] sm:$0xff]  ;;  %v2487_v61 = vld [vmem:[#allocation4 + $0x168] sm:$0xff] }
 0x241   : > { %v960_v23 = vpop.permute.xlu1 %959  ;;  %v966_v38 = vpop.permute.xlu0 %965  ;;  %v1001_v2 = vsel %vm993_vm5, %v992_v17, %v15741_v0  ;;  %8656 = vrot.lane.b32.xlu1 %v15744_v9, %s9957_s25  ;;  %v2200_v5 = vld [vmem:[%s10346_s19 + $0xf0] sm:$0xff]  ;;  %v8710_v6 = vpack.i.bf16 %v2488_v50, %v2487_v61  ;;  %v2532_v49 = vld [vmem:[#allocation4 + $0x81] sm:$0xff]  ;;  %v9960_v9 = vmov 1983009808   ;;  %s9966_s19 = smov 104   ;;  %vm5125_vm5 = vcmask 850944  }
 0x242   : > { %v1042_v53 = vsel %vm1038_vm10, %v1033_v47, %v960_v23  ;;  %v1010_v27 = vsel %vm1002_vm6, %v1001_v2, %v15743_v44  ;;  %v1045_v13 = vsel %vm1038_vm10, %v1036_v52, %v966_v38  ;;  %2233 = vst.msk [vmem:[#allocation4 + $0x181] sm:$0xff] %vm467_vm2, %v2200_v5  ;;  %v8725_v47 = vpack.i.bf16 %v2526_v14, %v2525_v31  ;;  %v2524_v23 = vld [vmem:[#allocation4 + $0x21] sm:$0xff]  ;;  %v2530_v43 = vld [vmem:[#allocation4 + $0x69] sm:$0xff]  ;;  %v2528_v18 = vld [vmem:[#allocation4 + $0x51] sm:$0xff] }
 0x243   : > { %8109 = vmatmul.mubr.msk.f32.gmra.mrb[2].mxu0 %vm1059_vm11, %v1042_v53  ;;  %8661 = vrot.lane.b32.xlu0 %v15740_v55, %s9957_s25  ;;  %v1019_v25 = vsel %vm1011_vm7, %v1010_v27, %v15745_v19  ;;  %v8720_v59 = vpack.i.bf16 %v2524_v23, %v2523_v60  ;;  %v2527_v53 = vld [vmem:[#allocation4 + $0x49] sm:$0xff]  ;;  %v8735_v57 = vpack.i.bf16 %v2530_v43, %v2529_v37  ;;  %v2533_v7 = vld [vmem:[#allocation4 + $0x91] sm:$0xff]  ;;  %v1852_v19 = vunpack.c.l.s4 %v9960_v9 }
 0x244   : > { %8111 = vmatprep.mubr.msk.f32.mxu0 %vm1059_vm11, %v1043_v32  ;;  %v1028_v39 = vsel %vm1020_vm8, %v1019_v25, %v15746_v30  ;;  %v8730_v54 = vpack.i.bf16 %v2528_v18, %v2527_v53  ;;  %v8745_v35 = vpack.i.bf16 %v2534_v8, %v2533_v7  ;;  %v8740_v32 = vpack.i.bf16 %v2532_v49, %v2531_v45 }
 0x245   : > { %v964_v24 = vpop.permute.xlu1 %963  ;;  %v1037_v51 = vsel %vm1029_vm9, %v1028_v39, %v11159_v56  ;;  %8666 = vrot.lane.b32.xlu1 %v15748_v29, %s9957_s25  ;;  %v15752_v56 = vld [vmem:[#allocation34_spill] sm:$0xff]  ;;  %v11309_v46 = vpop.permute.xlu0 %8391  ;;  %vm5191_vm7 = vcmask 982016   ;;  %vm5158_vm9 = vcmask 916480  }
 0x246   : > { %v1044_v22 = vsel %vm1038_vm10, %v1035_v15, %v964_v24  ;;  %v1203_v15 = vunpack.c.l.s4 %v9959_v20  ;;  %v1205_v24 = vlaneseq }
 0x247   : > { %8112 = vmatmul.mubr.msk.f32.gmra.mrb[4].mxu0 %vm1059_vm11, %v1044_v22  ;;  %8671 = vrot.lane.b32.xlu0 %v15747_v41, %s9957_s25  ;;  %v1853_v41 = vunpack.c.0.s8 %v1852_v19 }
 0x248   : > { %8114 = vmatprep.mubr.msk.f32.mxu0 %vm1059_vm11, %v1045_v13  ;;  %v1204_v27 = vunpack.c.0.s8 %v1203_v15  ;;  %v1206_v52 = vshrl.u32 %v1205_v24, 7  ;;  %v11337_v13 = vld [vmem:[#allocation12] ss:$0 sm:$0xff] }
 0x249   : > { %v968_v26 = vpop.permute.xlu1 %967  ;;  %8676 = vrot.lane.b32.xlu1 %v15750_v28, %s9957_s25  ;;  %v2489_v40 = vld [vmem:[#allocation4 + $0x180] sm:$0xff]  ;;  %v2490_v36 = vld [vmem:[#allocation4 + $0x188] sm:$0xff]  ;;  %v11311_v17 = vpop.permute.xlu0 %8401 }
 0x24a   : > { %v1046_v1 = vsel %vm1038_vm10, %v1037_v51, %v968_v26  ;;  %v8715_v11 = vpack.i.bf16 %v2490_v36, %v2489_v40  ;;  %15755 = vst [vmem:[#allocation29_spill] sm:$0xff] %v11311_v17  ;;  %v11339_v30 = vsub.s32 %v1204_v27, %v1206_v52  ;;  %v2654_v17 = vld [vmem:[#allocation4 + $0x38] sm:$0xff] }
 0x24b   : > { %8115 = vmatmul.mubr.msk.f32.gmra.mrb[6].mxu0 %vm1059_vm11, %v1046_v1  ;;  %8681 = vrot.lane.b32.xlu0 %v15749_v4, %s9957_s25 }
 0x24d   : > { %8686 = vrot.lane.b32.xlu1 %v15752_v56, %s9957_s25  ;;  %v11313_v63 = vpop.permute.xlu0 %8411  ;;  %v11315_v3 = vpop.permute.xlu1 %8396  ;;  %v11348_v56 = vsub.s32 0, %v1206_v52 }
 0x24e   : > { %15756 = vst [vmem:[#allocation31_spill] sm:$0xff] %v11313_v63  ;;  %15757 = vst [vmem:[#allocation28_spill] sm:$0xff] %v11315_v3 }
 0x24f   : > { %8691 = vrot.lane.b32.xlu0 %v15751_v10, %s9957_s25 }
 0x251   : > { %8696 = vrot.lane.b32.xlu1 %v15754_v21, %s9957_s25  ;;  %v11317_v16 = vpop.permute.xlu0 %8421  ;;  %v11319_v62 = vpop.permute.xlu1 %8406 }
 0x252   : > { %15758 = vst [vmem:[#allocation43_spill] sm:$0xff] %v11317_v16  ;;  %15759 = vst [vmem:[#allocation46_spill] sm:$0xff] %v11319_v62 }
 0x253   : > { %8701 = vrot.lane.b32.xlu0 %v15753_v48, %s9957_s25  ;;  %v11350_v48 = vsub.s32 %v1853_v41, %v1206_v52 }
 0x255   : > { %8706 = vrot.lane.b32.xlu1 %v8705_v33, %s9957_s25  ;;  %v11321_v38 = vpop.permute.xlu0 %8431  ;;  %v11323_v55 = vpop.permute.xlu1 %8416 }
 0x256   : > { %15760 = vst [vmem:[#allocation37_spill] sm:$0xff] %v11321_v38  ;;  %15761 = vst [vmem:[#allocation45_spill] sm:$0xff] %v11323_v55 }
 0x257   : > { %8711 = vrot.lane.b32.xlu0 %v8710_v6, %s9957_s25 }
 0x259   : > { %8716 = vrot.lane.b32.xlu1 %v8715_v11, %s9957_s25  ;;  %v11325_v0 = vpop.permute.xlu0 %8441  ;;  %v11327_v2 = vpop.permute.xlu1 %8426 }
 0x25a   : > { %15762 = vst [vmem:[#allocation49_spill] sm:$0xff] %v11325_v0  ;;  %15763 = vst [vmem:[#allocation36_spill] sm:$0xff] %v11327_v2 }
 0x25b   : > { %8721 = vrot.lane.b32.xlu0 %v8720_v59, %s9958_s2 }
 0x25d   : > { %8726 = vrot.lane.b32.xlu1 %v8725_v47, %s9958_s2  ;;  %v11329_v12 = vpop.permute.xlu0 %8451  ;;  %v11331_v44 = vpop.permute.xlu1 %8436 }
 0x25e   : > { %15764 = vst [vmem:[#allocation42_spill] sm:$0xff] %v11331_v44 }
 0x25f   : > { %8731 = vrot.lane.b32.xlu0 %v8730_v54, %s9958_s2 }
 0x261   : > { %8736 = vrot.lane.b32.xlu1 %v8735_v57, %s9958_s2  ;;  %v11333_v22 = vpop.permute.xlu0 %8461  ;;  %v11335_v25 = vpop.permute.xlu1 %8446 }
 0x263   : > { %8741 = vrot.lane.b32.xlu0 %v8740_v32, %s9958_s2 }
 0x265   : > { %8746 = vrot.lane.b32.xlu1 %v8745_v35, %s9958_s2  ;;  %v11342_v1 = vpop.permute.xlu0 %8471  ;;  %v11346_v10 = vpop.permute.xlu1 %8456 }
 0x269   : > { %v11365_v23 = vpop.permute.xlu0 %8476  ;;  %v11376_v35 = vpop.permute.xlu1 %8466 }
 0x312   : > { %v8107_v39 = vpop.f32.mrb[0].mxu0 }
 0x313   : > { %v1160_v51 = vadd.f32 %v8107_v39, %v11337_v13  ;;  %v1154_v26 = vpop.f32.mrb[1].mxu0 }
 0x314   : > { %v1155_v29 = vadd.f32 %v11337_v13, %v1154_v26 }
 0x315   : > { %v1250_v4 = vcombine.high %v1160_v51, %v1160_v51  ;;  %v1257_v28 = vrot.slane %v1160_v51, %v11339_v30 }
 0x316   : > { %v1201_v21 = vcombine.high %v1155_v29, %v1155_v29  ;;  %v1208_v58 = vrot.slane %v1155_v29, %v11339_v30  ;;  %v8110_v34 = vpop.f32.mrb[2].mxu0 }
 0x317   : > { %v1264_v33 = vrot.slane %v1250_v4, %v11339_v30  ;;  %v1265_v5 = vcombine.high %v1257_v28, %v1257_v28  ;;  %v1273_v42 = vrot.slane %v1257_v28, %v11339_v30  ;;  %v11356_v40 = vadd.f32 %v8110_v34, %v11337_v13  ;;  %v1164_v36 = vpop.f32.mrb[3].mxu0 }
 0x318   : > { %v1215_v61 = vrot.slane %v1201_v21, %v11339_v30  ;;  %v1216_v11 = vcombine.high %v1208_v58, %v1208_v58  ;;  %v1224_v50 = vrot.slane %v1208_v58, %v11339_v30  ;;  %v11361_v6 = vadd.f32 %v11337_v13, %v1164_v36  ;;  %v11394_v36 = vpop.permute.xlu0 %8486 }
 0x319   : > { %v1266_v31 = vcombine.high %v1264_v33, %v1264_v33  ;;  %v1280_v14 = vrot.slane %v1264_v33, %v11339_v30  ;;  %v1287_v60 = vrot.slane %v1265_v5, %v11339_v30  ;;  %v1295_v47 = vcombine.high %v1273_v42, %v1273_v42  ;;  %15765 = vst [vmem:[#allocation48_spill] sm:$0xff] %v11394_v36 }
 0x31a   : > { %v1628_v59 = vrot.slane %v1273_v42, %v11348_v56  ;;  %v1217_v37 = vcombine.high %v1215_v61, %v1215_v61  ;;  %v1231_v43 = vrot.slane %v1215_v61, %v11339_v30  ;;  %v1238_v53 = vrot.slane %v1216_v11, %v11339_v30  ;;  %v11370_v57 = vpop.f32.mrb[4].mxu0 }
 0x31b   : > { %v1294_v18 = vrot.slane %v1266_v31, %v11339_v30  ;;  %v1296_v54 = vcombine.high %v1280_v14, %v1280_v14  ;;  %v1297_v7 = vcombine.high %v1287_v60, %v1287_v60  ;;  %v1632_v8 = vrot.slane %v1287_v60, %v11348_v56  ;;  %v11374_v45 = vpop.f32.mrb[5].mxu0 }
 0x31c   : > { %v1636_v49 = vrot.slane %v1295_v47, %v11348_v56  ;;  %v1644_v32 = vrot.slane %v1280_v14, %v11348_v56  ;;  %v1245_v20 = vrot.slane %v1217_v37, %v11339_v30  ;;  %v1246_v15 = vcombine.high %v1224_v50, %v1224_v50 }
 0x31d   : > { %v1298_v24 = vcombine.high %v1294_v18, %v1294_v18  ;;  %v1640_v27 = vrot.slane %v1297_v7, %v11348_v56  ;;  %v1648_v52 = vrot.slane %v1294_v18, %v11348_v56  ;;  %v1652_v9 = vrot.slane %v1296_v54, %v11348_v56 }
 0x31e   : > { %v1883_v19 = vcombine.low %v1628_v59, %v1632_v8  ;;  %v1247_v39 = vcombine.high %v1231_v43, %v1231_v43  ;;  %v1248_v41 = vcombine.high %v1238_v53, %v1238_v53  ;;  %v1249_v51 = vcombine.high %v1245_v20, %v1245_v20  ;;  %v11384_v26 = vpop.f32.mrb[6].mxu0 }
 0x31f   : > { %v1656_v29 = vrot.slane %v1298_v24, %v11348_v56  ;;  %v1884_v4 = vcombine.low %v1636_v49, %v1640_v27  ;;  %v1900_v28 = vcombine.low %v1644_v32, %v1648_v52  ;;  %v1596_v21 = vrot.slane %v1224_v50, %v11348_v56  ;;  %v11388_v58 = vpop.f32.mrb[7].mxu0  ;;  %v11399_v50 = vpop.permute.xlu1 %8481 }
 0x320   : > { %v1891_v34 = vrot.slane %v1883_v19, %v11350_v48  ;;  %v1600_v33 = vrot.slane %v1238_v53, %v11348_v56  ;;  %v1604_v5 = vrot.slane %v1246_v15, %v11348_v56  ;;  %v1608_v42 = vrot.slane %v1248_v41, %v11348_v56  ;;  %15766 = vst [vmem:[#allocation44_spill] sm:$0xff] %v11399_v50 }
 0x321   : > { %v1898_v61 = vrot.slane %v1884_v4, %v11350_v48  ;;  %v1901_v11 = vcombine.low %v1652_v9, %v1656_v29  ;;  %v1908_v31 = vrot.slane %v1900_v28, %v11350_v48  ;;  %v1612_v14 = vrot.slane %v1231_v43, %v11348_v56 }
 0x322   : > { %v1616_v60 = vrot.slane %v1245_v20, %v11348_v56  ;;  %v1620_v47 = vrot.slane %v1247_v39, %v11348_v56  ;;  %v1624_v59 = vrot.slane %v1249_v51, %v11348_v56  ;;  %v1849_v37 = vcombine.low %v1596_v21, %v1600_v33 }
 0x323   : > { %v1899_v53 = vcombine.low %v1891_v34, %v1898_v61  ;;  %v1915_v18 = vrot.slane %v1901_v11, %v11350_v48  ;;  %v1850_v54 = vcombine.low %v1604_v5, %v1608_v42  ;;  %v1348_v7 = vcombine.high %v11356_v40, %v11356_v40  ;;  %v11426_v28 = vpop.permute.xlu1 %8491 }
 0x324   : > { %v1857_v8 = vrot.slane %v1849_v37, %v11350_v48  ;;  %v1866_v49 = vcombine.low %v1612_v14, %v1616_v60  ;;  %v1867_v43 = vcombine.low %v1620_v47, %v1624_v59  ;;  %v1355_v32 = vrot.slane %v11356_v40, %v11339_v30  ;;  %v11419_v40 = vpop.permute.xlu0 %8496  ;;  %15768 = vst [vmem:[#allocation47_spill] sm:$0xff] %v11426_v28 }
 0x325   : > { %v1916_v20 = vcombine.low %v1908_v31, %v1915_v18  ;;  %2142 = vst.msk [vmem:[#allocation3 + $0x49] sm:$0xff] %vm467_vm2, %v1899_v53  ;;  %2144 = vst.msk [vmem:[#allocation3 + $0x61] sm:$0xff] %vm467_vm2, %v1899_v53  ;;  %v1864_v15 = vrot.slane %v1850_v54, %v11350_v48  ;;  %v1362_v24 = vrot.slane %v1348_v7, %v11339_v30  ;;  %v8459_v36 = vunpack.i.h.bf16 %v11346_v10 }
 0x326   : > { %v1299_v27 = vcombine.high %v11361_v6, %v11361_v6  ;;  %v1874_v52 = vrot.slane %v1866_v49, %v11350_v48  ;;  %v1881_v9 = vrot.slane %v1867_v43, %v11350_v48  ;;  %v1363_v19 = vcombine.high %v1355_v32, %v1355_v32  ;;  %15767 = vst [vmem:[#allocation30_spill] sm:$0xff] %v11419_v40 }
 0x327   : > { %v1371_v39 = vrot.slane %v1355_v32, %v11339_v30  ;;  %2143 = vst.msk [vmem:[#allocation3 + $0x51] sm:$0xff] %vm467_vm2, %v1916_v20  ;;  %2145 = vst.msk [vmem:[#allocation3 + $0x69] sm:$0xff] %vm467_vm2, %v1916_v20  ;;  %v1865_v41 = vcombine.low %v1857_v8, %v1864_v15  ;;  %v1364_v51 = vcombine.high %v1362_v24, %v1362_v24 }
 0x328   : > { %v1378_v29 = vrot.slane %v1362_v24, %v11339_v30  ;;  %v1306_v4 = vrot.slane %v11361_v6, %v11339_v30  ;;  %v1882_v21 = vcombine.low %v1874_v52, %v1881_v9  ;;  %v1385_v34 = vrot.slane %v1363_v19, %v11339_v30  ;;  %v11444_v43 = vpop.permute.xlu0 %8506 }
 0x329   : > { %v1393_v33 = vcombine.high %v1371_v39, %v1371_v39  ;;  %v1692_v5 = vrot.slane %v1371_v39, %v11348_v56  ;;  %2138 = vst.msk [vmem:[#allocation3 + $0x19] sm:$0xff] %vm467_vm2, %v1865_v41  ;;  %2140 = vst.msk [vmem:[#allocation3 + $0x31] sm:$0xff] %vm467_vm2, %v1865_v41  ;;  %v1392_v42 = vrot.slane %v1364_v51, %v11339_v30 }
 0x32a   : > { %v1394_v61 = vcombine.high %v1378_v29, %v1378_v29  ;;  %v1708_v11 = vrot.slane %v1378_v29, %v11348_v56  ;;  %v1313_v31 = vrot.slane %v1299_v27, %v11339_v30  ;;  %2139 = vst.msk [vmem:[#allocation3 + $0x21] sm:$0xff] %vm467_vm2, %v1882_v21  ;;  %2141 = vst.msk [vmem:[#allocation3 + $0x39] sm:$0xff] %vm467_vm2, %v1882_v21  ;;  %v11449_v27 = vpop.permute.xlu1 %8501 }
 0x32b   : > { %v1395_v6 = vcombine.high %v1385_v34, %v1385_v34  ;;  %v1696_v14 = vrot.slane %v1385_v34, %v11348_v56  ;;  %v1700_v60 = vrot.slane %v1393_v33, %v11348_v56  ;;  %v1314_v47 = vcombine.high %v1306_v4, %v1306_v4  ;;  %15769 = vst [vmem:[#allocation50_spill] sm:$0xff] %v11444_v43  ;;  %v2658_v43 = vld [vmem:[#allocation4 + $0x68] sm:$0xff] }
 0x32c   : > { %v1396_v59 = vcombine.high %v1392_v42, %v1392_v42  ;;  %v1712_v37 = vrot.slane %v1392_v42, %v11348_v56  ;;  %v1716_v53 = vrot.slane %v1394_v61, %v11348_v56  ;;  %v1315_v18 = vcombine.high %v1313_v31, %v1313_v31  ;;  %15770 = vst [vmem:[#allocation38_spill] sm:$0xff] %v11449_v27 }
 0x32d   : > { %v1704_v54 = vrot.slane %v1395_v6, %v11348_v56  ;;  %v1951_v7 = vcombine.low %v1692_v5, %v1696_v14  ;;  %v1322_v8 = vrot.slane %v1306_v4, %v11339_v30  ;;  %v1329_v49 = vrot.slane %v1313_v31, %v11339_v30 }
 0x32e   : > { %v1720_v32 = vrot.slane %v1396_v59, %v11348_v56  ;;  %v1968_v20 = vcombine.low %v1708_v11, %v1712_v37  ;;  %v1336_v15 = vrot.slane %v1314_v47, %v11339_v30  ;;  %v1343_v24 = vrot.slane %v1315_v18, %v11339_v30  ;;  %v11465_v18 = vpop.permute.xlu1 %8511 }
 0x32f   : > { %v1952_v52 = vcombine.low %v1700_v60, %v1704_v54  ;;  %v1344_v9 = vcombine.high %v1322_v8, %v1322_v8  ;;  %v1345_v19 = vcombine.high %v1329_v49, %v1329_v49  ;;  %v1959_v29 = vrot.slane %v1951_v7, %v11350_v48  ;;  %v11462_v60 = vpop.permute.xlu0 %8516  ;;  %15772 = vst [vmem:[#allocation39_spill] sm:$0xff] %v11465_v18 }
 0x330   : > { %v1969_v39 = vcombine.low %v1716_v53, %v1720_v32  ;;  %v1346_v41 = vcombine.high %v1336_v15, %v1336_v15  ;;  %v1347_v51 = vcombine.high %v1343_v24, %v1343_v24  ;;  %v1976_v21 = vrot.slane %v1968_v20, %v11350_v48  ;;  %15771 = vst [vmem:[#allocation32_spill] sm:$0xff] %v11462_v60 }
 0x331   : > { %v1966_v4 = vrot.slane %v1952_v52, %v11350_v48  ;;  %v1664_v34 = vrot.slane %v1336_v15, %v11348_v56  ;;  %v1660_v5 = vrot.slane %v1322_v8, %v11348_v56  ;;  %v1668_v42 = vrot.slane %v1344_v9, %v11348_v56 }
 0x332   : > { %v1983_v33 = vrot.slane %v1969_v39, %v11350_v48  ;;  %v1672_v61 = vrot.slane %v1346_v41, %v11348_v56  ;;  %v1676_v31 = vrot.slane %v1329_v49, %v11348_v56  ;;  %v1680_v6 = vrot.slane %v1343_v24, %v11348_v56 }
 0x333   : > { %v1967_v11 = vcombine.low %v1959_v29, %v1966_v4  ;;  %v1684_v14 = vrot.slane %v1345_v19, %v11348_v56  ;;  %v1688_v59 = vrot.slane %v1347_v51, %v11348_v56  ;;  %v1917_v37 = vcombine.low %v1660_v5, %v1664_v34 }
 0x334   : > { %v1984_v47 = vcombine.low %v1976_v21, %v1983_v33  ;;  %v1918_v53 = vcombine.low %v1668_v42, %v1672_v61  ;;  %v1934_v54 = vcombine.low %v1676_v31, %v1680_v6  ;;  %v1180_v7 = vadd.f32 %v11370_v57, %v11337_v13  ;;  %v11489_v21 = vpop.permute.xlu0 %8526  ;;  %v11495_v42 = vpop.permute.xlu1 %8521 }
 0x335   : > { %2150 = vst.msk [vmem:[#allocation3 + $0xa9] sm:$0xff] %vm467_vm2, %v1967_v11  ;;  %2152 = vst.msk [vmem:[#allocation3 + $0xc1] sm:$0xff] %vm467_vm2, %v1967_v11  ;;  %v1925_v8 = vrot.slane %v1917_v37, %v11350_v48  ;;  %v1935_v32 = vcombine.low %v1684_v14, %v1688_v59  ;;  %v1175_v20 = vadd.f32 %v11337_v13, %v11374_v45 }
 0x336   : > { %2151 = vst.msk [vmem:[#allocation3 + $0xb1] sm:$0xff] %vm467_vm2, %v1984_v47  ;;  %2153 = vst.msk [vmem:[#allocation3 + $0xc9] sm:$0xff] %vm467_vm2, %v1984_v47  ;;  %v1932_v49 = vrot.slane %v1918_v53, %v11350_v48  ;;  %v1942_v15 = vrot.slane %v1934_v54, %v11350_v48  ;;  %v1446_v24 = vcombine.high %v1180_v7, %v1180_v7 }
 0x337   : > { %v1453_v52 = vrot.slane %v1180_v7, %v11339_v30  ;;  %v11481_v57 = vadd.f32 %v11384_v26, %v11337_v13  ;;  %v1949_v19 = vrot.slane %v1935_v32, %v11350_v48  ;;  %v1397_v39 = vcombine.high %v1175_v20, %v1175_v20  ;;  %15773 = vst [vmem:[#allocation33_spill] sm:$0xff] %v11489_v21 }
 0x338   : > { %v1933_v9 = vcombine.low %v1925_v8, %v1932_v49  ;;  %v1404_v41 = vrot.slane %v1175_v20, %v11339_v30  ;;  %v1460_v51 = vrot.slane %v1446_v24, %v11339_v30  ;;  %15774 = vst [vmem:[#allocation40_spill] sm:$0xff] %v11495_v42 }
 0x339   : > { %v1461_v29 = vcombine.high %v1453_v52, %v1453_v52  ;;  %v1469_v45 = vrot.slane %v1453_v52, %v11339_v30  ;;  %v1544_v4 = vcombine.high %v11481_v57, %v11481_v57  ;;  %v1950_v34 = vcombine.low %v1942_v15, %v1949_v19 }
 0x33a   : > { %2146 = vst.msk [vmem:[#allocation3 + $0x79] sm:$0xff] %vm467_vm2, %v1933_v9  ;;  %2148 = vst.msk [vmem:[#allocation3 + $0x91] sm:$0xff] %vm467_vm2, %v1933_v9  ;;  %v1411_v26 = vrot.slane %v1397_v39, %v11339_v30  ;;  %v1412_v33 = vcombine.high %v1404_v41, %v1404_v41  ;;  %v1420_v5 = vrot.slane %v1404_v41, %v11339_v30  ;;  %v11512_v39 = vpop.permute.xlu0 %8536 }
 0x33b   : > { %v1462_v61 = vcombine.high %v1460_v51, %v1460_v51  ;;  %v1476_v11 = vrot.slane %v1460_v51, %v11339_v30  ;;  %v1483_v31 = vrot.slane %v1461_v29, %v11339_v30  ;;  %v1491_v6 = vcombine.high %v1469_v45, %v1469_v45  ;;  %2147 = vst.msk [vmem:[#allocation3 + $0x81] sm:$0xff] %vm467_vm2, %v1950_v34 }
 0x33c   : > { %2149 = vst.msk [vmem:[#allocation3 + $0x99] sm:$0xff] %vm467_vm2, %v1950_v34  ;;  %v1756_v14 = vrot.slane %v1469_v45, %v11348_v56  ;;  %v1413_v47 = vcombine.high %v1411_v26, %v1411_v26  ;;  %v1427_v59 = vrot.slane %v1411_v26, %v11339_v30  ;;  %v1434_v37 = vrot.slane %v1412_v33, %v11339_v30  ;;  %v11514_v34 = vpop.permute.xlu1 %8531 }
 0x33d   : > { %v1490_v53 = vrot.slane %v1462_v61, %v11339_v30  ;;  %v1492_v54 = vcombine.high %v1476_v11, %v1476_v11  ;;  %v1493_v7 = vcombine.high %v1483_v31, %v1483_v31  ;;  %v1760_v8 = vrot.slane %v1483_v31, %v11348_v56 }
 0x33e   : > { %v1764_v49 = vrot.slane %v1491_v6, %v11348_v56  ;;  %v1772_v32 = vrot.slane %v1476_v11, %v11348_v56  ;;  %v1441_v20 = vrot.slane %v1413_v47, %v11339_v30  ;;  %v1442_v15 = vcombine.high %v1420_v5, %v1420_v5 }
 0x33f   : > { %v1494_v24 = vcombine.high %v1490_v53, %v1490_v53  ;;  %v1768_v52 = vrot.slane %v1493_v7, %v11348_v56  ;;  %v1776_v9 = vrot.slane %v1490_v53, %v11348_v56  ;;  %v1780_v19 = vrot.slane %v1492_v54, %v11348_v56 }
 0x340   : > { %v2019_v41 = vcombine.low %v1756_v14, %v1760_v8  ;;  %v1443_v51 = vcombine.high %v1427_v59, %v1427_v59  ;;  %v1444_v29 = vcombine.high %v1434_v37, %v1434_v37  ;;  %v1445_v45 = vcombine.high %v1441_v20, %v1441_v20 }
 0x341   : > { %v1784_v26 = vrot.slane %v1494_v24, %v11348_v56  ;;  %v2020_v33 = vcombine.low %v1764_v49, %v1768_v52  ;;  %v2036_v61 = vcombine.low %v1772_v32, %v1776_v9  ;;  %v1724_v11 = vrot.slane %v1420_v5, %v11348_v56 }
 0x342   : > { %v2027_v31 = vrot.slane %v2019_v41, %v11350_v48  ;;  %v1728_v6 = vrot.slane %v1434_v37, %v11348_v56  ;;  %v1732_v47 = vrot.slane %v1442_v15, %v11348_v56  ;;  %v1736_v53 = vrot.slane %v1444_v29, %v11348_v56  ;;  %v11531_v41 = vpop.permute.xlu0 %8546 }
 0x343   : > { %v2034_v14 = vrot.slane %v2020_v33, %v11350_v48  ;;  %v2037_v54 = vcombine.low %v1780_v19, %v1784_v26  ;;  %v2044_v7 = vrot.slane %v2036_v61, %v11350_v48  ;;  %v1740_v8 = vrot.slane %v1427_v59, %v11348_v56  ;;  %v11535_v26 = vpop.permute.xlu1 %8541 }
 0x344   : > { %v1744_v49 = vrot.slane %v1441_v20, %v11348_v56  ;;  %v1748_v32 = vrot.slane %v1443_v51, %v11348_v56  ;;  %v1752_v5 = vrot.slane %v1445_v45, %v11348_v56  ;;  %v1985_v24 = vcombine.low %v1724_v11, %v1728_v6  ;;  %15775 = vst [vmem:[#allocation34_spill] sm:$0xff] %v11535_v26 }
 0x345   : > { %v2035_v52 = vcombine.low %v2027_v31, %v2034_v14  ;;  %v2051_v37 = vrot.slane %v2037_v54, %v11350_v48  ;;  %v1986_v15 = vcombine.low %v1732_v47, %v1736_v53  ;;  %v1551_v9 = vrot.slane %v11481_v57, %v11339_v30 }
 0x346   : > { %v1993_v19 = vrot.slane %v1985_v24, %v11350_v48  ;;  %v2002_v29 = vcombine.low %v1740_v8, %v1744_v49  ;;  %v2003_v59 = vcombine.low %v1748_v32, %v1752_v5  ;;  %v1558_v20 = vrot.slane %v1544_v4, %v11339_v30  ;;  %v2308_v5 = vld [vmem:[#allocation3 + $0x69] sm:$0xff]  ;;  %v11552_v24 = vpop.permute.xlu0 %8556 }
 0x347   : > { %v2052_v51 = vcombine.low %v2044_v7, %v2051_v37  ;;  %2158 = vst.msk [vmem:[#allocation3 + $0x109] sm:$0xff] %vm467_vm2, %v2035_v52  ;;  %2160 = vst.msk [vmem:[#allocation3 + $0x121] sm:$0xff] %vm467_vm2, %v2035_v52  ;;  %v2000_v45 = vrot.slane %v1986_v15, %v11350_v48  ;;  %v1559_v33 = vcombine.high %v1551_v9, %v1551_v9 }
 0x348   : > { %v1567_v57 = vrot.slane %v1551_v9, %v11339_v30  ;;  %v2010_v61 = vrot.slane %v2002_v29, %v11350_v48  ;;  %v2017_v11 = vrot.slane %v2003_v59, %v11350_v48  ;;  %v1560_v31 = vcombine.high %v1558_v20, %v1558_v20  ;;  %v11558_v9 = vpop.permute.xlu1 %8551 }
 0x349   : > { %v1574_v6 = vrot.slane %v1558_v20, %v11339_v30  ;;  %2159 = vst.msk [vmem:[#allocation3 + $0x111] sm:$0xff] %vm467_vm2, %v2052_v51  ;;  %2161 = vst.msk [vmem:[#allocation3 + $0x129] sm:$0xff] %vm467_vm2, %v2052_v51  ;;  %v2001_v4 = vcombine.low %v1993_v19, %v2000_v45  ;;  %v1581_v47 = vrot.slane %v1559_v33, %v11339_v30  ;;  %v2307_v51 = vld [vmem:[#allocation3 + $0x61] sm:$0xff]  ;;  %v2306_v45 = vld [vmem:[#allocation3 + $0x51] sm:$0xff] }
 0x34a   : > { %v1589_v53 = vcombine.high %v1567_v57, %v1567_v57  ;;  %v2018_v14 = vcombine.low %v2010_v61, %v2017_v11  ;;  %v1588_v54 = vrot.slane %v1560_v31, %v11339_v30  ;;  %v1820_v49 = vrot.slane %v1567_v57, %v11348_v56  ;;  %15776 = vst [vmem:[#allocation41_spill] sm:$0xff] %v11558_v9 }
 0x34b   : > { %v1590_v7 = vcombine.high %v1574_v6, %v1574_v6  ;;  %2154 = vst.msk [vmem:[#allocation3 + $0xd9] sm:$0xff] %vm467_vm2, %v2001_v4  ;;  %2156 = vst.msk [vmem:[#allocation3 + $0xf1] sm:$0xff] %vm467_vm2, %v2001_v4  ;;  %v1591_v8 = vcombine.high %v1581_v47, %v1581_v47  ;;  %v1824_v32 = vrot.slane %v1581_v47, %v11348_v56  ;;  %v2305_v47 = vld [vmem:[#allocation3 + $0x49] sm:$0xff] }
 0x34c   : > { %2155 = vst.msk [vmem:[#allocation3 + $0xe1] sm:$0xff] %vm467_vm2, %v2018_v14  ;;  %2157 = vst.msk [vmem:[#allocation3 + $0xf9] sm:$0xff] %vm467_vm2, %v2018_v14  ;;  %v1592_v52 = vcombine.high %v1588_v54, %v1588_v54  ;;  %v1836_v37 = vrot.slane %v1574_v6, %v11348_v56  ;;  %v1840_v15 = vrot.slane %v1588_v54, %v11348_v56  ;;  %v2372_v14 = vld [vmem:[#allocation3 + $0x6a] sm:$0xff] }
 0x34d   : > { %v1828_v19 = vrot.slane %v1589_v53, %v11348_v56  ;;  %v1832_v29 = vrot.slane %v1591_v8, %v11348_v56  ;;  %v2087_v59 = vcombine.low %v1820_v49, %v1824_v32  ;;  %v1185_v20 = vadd.f32 %v11337_v13, %v11388_v58  ;;  %v2371_v53 = vld [vmem:[#allocation3 + $0x62] sm:$0xff] }
 0x34e   : > { %v1844_v33 = vrot.slane %v1590_v7, %v11348_v56  ;;  %v1848_v57 = vrot.slane %v1592_v52, %v11348_v56  ;;  %v2104_v61 = vcombine.low %v1836_v37, %v1840_v15  ;;  %v11566_v11 = vpack.i.bf16 %v2308_v5, %v2307_v51  ;;  %v2369_v5 = vld [vmem:[#allocation3 + $0x4a] sm:$0xff]  ;;  %v2370_v52 = vld [vmem:[#allocation3 + $0x52] sm:$0xff]  ;;  %v11575_v37 = vpop.permute.xlu0 %8561 }
 0x34f   : > { %v2088_v31 = vcombine.low %v1828_v19, %v1832_v29  ;;  %v1495_v6 = vcombine.high %v1185_v20, %v1185_v20  ;;  %v1502_v4 = vrot.slane %v1185_v20, %v11339_v30  ;;  %v2095_v54 = vrot.slane %v2087_v59, %v11350_v48  ;;  %15777 = vst [vmem:[#allocation35_spill] sm:$0xff] %v11575_v37  ;;  %v11580_v59 = vpop.permute.xlu1 %8566  ;;  %v2242_v20 = vld [vmem:[#allocation3 + $0x50] sm:$0xff] }
 0x350   : > { %v2105_v8 = vcombine.low %v1844_v33, %v1848_v57  ;;  %8756 = vrot.lane.b32.xlu0 %v11566_v11, %s9951_s4  ;;  %v8750_v13 = vpack.i.bf16 %v2306_v45, %v2305_v47  ;;  %v2112_v15 = vrot.slane %v2104_v61, %v11350_v48  ;;  %v8765_v29 = vpack.i.bf16 %v2372_v14, %v2371_v53  ;;  %v2241_v61 = vld [vmem:[#allocation3 + $0x48] sm:$0xff] }
 0x351   : > { %v2102_v58 = vrot.slane %v2088_v31, %v11350_v48  ;;  %v1509_v7 = vrot.slane %v1495_v6, %v11339_v30  ;;  %v1510_v49 = vcombine.high %v1502_v4, %v1502_v4  ;;  %v1518_v32 = vrot.slane %v1502_v4, %v11339_v30  ;;  %15778 = vst [vmem:[#allocation51_spill] sm:$0xff] %v11580_v59  ;;  %v2387_v59 = vld [vmem:[#allocation3 + $0x122] sm:$0xff] }
 0x352   : > { %v2119_v19 = vrot.slane %v2105_v8, %v11350_v48  ;;  %8751 = vrot.lane.b32.xlu1 %v8750_v13, %s9951_s4  ;;  %v8760_v4 = vpack.i.bf16 %v2370_v52, %v2369_v5  ;;  %v2434_v8 = vld [vmem:[#allocation3 + $0x68] sm:$0xff]  ;;  %v11594_v5 = vpop.permute.xlu0 %8571  ;;  %v2445_v50 = vld [vmem:[#allocation3 + $0xf0] sm:$0xff] }
 0x353   : > { %v2103_v51 = vcombine.low %v2095_v54, %v2102_v58  ;;  %v1511_v45 = vcombine.high %v1509_v7, %v1509_v7  ;;  %v1525_v33 = vrot.slane %v1509_v7, %v11339_v30  ;;  %v1532_v57 = vrot.slane %v1510_v49, %v11339_v30  ;;  %15779 = vst [vmem:[#allocation52_spill] sm:$0xff] %v11594_v5  ;;  %v2383_v5 = vld [vmem:[#allocation3 + $0xf2] sm:$0xff]  ;;  %v2384_v42 = vld [vmem:[#allocation3 + $0xfa] sm:$0xff] }
 0x354   : > { %v2120_v31 = vcombine.low %v2112_v15, %v2119_v19  ;;  %v1540_v6 = vcombine.high %v1518_v32, %v1518_v32  ;;  %8766 = vrot.lane.b32.xlu0 %v8765_v29, %s9955_s0  ;;  %v1788_v58 = vrot.slane %v1518_v32, %v11348_v56  ;;  %v8770_v49 = vpack.i.bf16 %v2242_v20, %v2241_v61  ;;  %v2433_v29 = vld [vmem:[#allocation3 + $0x60] sm:$0xff]  ;;  %v2446_v28 = vld [vmem:[#allocation3 + $0xf8] sm:$0xff] }
 0x355   : > { %2166 = vst.msk [vmem:[#allocation3 + $0x169] sm:$0xff] %vm467_vm2, %v2103_v51  ;;  %2168 = vst.msk [vmem:[#allocation3 + $0x181] sm:$0xff] %vm467_vm2, %v2103_v51  ;;  %v1539_v47 = vrot.slane %v1511_v45, %v11339_v30  ;;  %v1541_v53 = vcombine.high %v1525_v33, %v1525_v33  ;;  %v1542_v14 = vcombine.high %v1532_v57, %v1532_v57  ;;  %v11600_v45 = vpop.permute.xlu1 %8576  ;;  %v2254_v27 = vld [vmem:[#allocation3 + $0xe0] sm:$0xff] }
 0x356   : > { %v1792_v54 = vrot.slane %v1532_v57, %v11348_v56  ;;  %2167 = vst.msk [vmem:[#allocation3 + $0x171] sm:$0xff] %vm467_vm2, %v2120_v31  ;;  %2169 = vst.msk [vmem:[#allocation3 + $0x189] sm:$0xff] %vm467_vm2, %v2120_v31  ;;  %v1796_v7 = vrot.slane %v1540_v6, %v11348_v56  ;;  %8761 = vrot.lane.b32.xlu1 %v8760_v4, %s9955_s0  ;;  %v1804_v15 = vrot.slane %v1525_v33, %v11348_v56 }
 0x357   : > { %v1543_v52 = vcombine.high %v1539_v47, %v1539_v47  ;;  %v1800_v30 = vrot.slane %v1542_v14, %v11348_v56  ;;  %v1808_v19 = vrot.slane %v1539_v47, %v11348_v56  ;;  %v8775_v32 = vpack.i.bf16 %v2434_v8, %v2433_v29  ;;  %15780 = vst [vmem:[#allocation53_spill] sm:$0xff] %v11600_v45  ;;  %v2304_v47 = vld [vmem:[#allocation3 + $0x39] sm:$0xff]  ;;  %v11608_v14 = vpop.permute.xlu0 %8581  ;;  %v2303_v8 = vld [vmem:[#allocation3 + $0x31] sm:$0xff] }
 0x358   : > { %v2053_v51 = vcombine.low %v1788_v58, %v1792_v54  ;;  %8771 = vrot.lane.b32.xlu0 %v8770_v49, %s9961_s20  ;;  %v1812_v57 = vrot.slane %v1541_v53, %v11348_v56  ;;  %15781 = vst [vmem:[#allocation54_spill] sm:$0xff] %v11608_v14  ;;  %v2302_v58 = vld [vmem:[#allocation3 + $0x21] sm:$0xff] }
 0x359   : > { %v1816_v20 = vrot.slane %v1543_v52, %v11348_v56  ;;  %v2054_v31 = vcombine.low %v1796_v7, %v1800_v30  ;;  %v2070_v6 = vcombine.low %v1804_v15, %v1808_v19  ;;  %v8795_v7 = vpack.i.bf16 %v2304_v47, %v2303_v8  ;;  %v11614_v49 = vpop.permute.xlu1 %8586  ;;  %v2367_v30 = vld [vmem:[#allocation3 + $0x32] sm:$0xff]  ;;  %v2368_v15 = vld [vmem:[#allocation3 + $0x3a] sm:$0xff] }
 0x35a   : > { %8776 = vrot.lane.b32.xlu1 %v8775_v32, %s9961_s20  ;;  %v2061_v33 = vrot.slane %v2053_v51, %v11350_v48  ;;  %15782 = vst [vmem:[#allocation55_spill] sm:$0xff] %v11614_v49  ;;  %v11622_v29 = vpack.i.bf16 %v2368_v15, %v2367_v30  ;;  %v2238_v32 = vld [vmem:[#allocation3 + $0x20] sm:$0xff]  ;;  %v2314_v8 = vld [vmem:[#allocation3 + $0xb1] sm:$0xff] }
 0x35b   : > { %v2068_v4 = vrot.slane %v2054_v31, %v11350_v48  ;;  %v2071_v61 = vcombine.low %v1812_v57, %v1816_v20  ;;  %v2078_v53 = vrot.slane %v2070_v6, %v11350_v48  ;;  %v11624_v51 = vpop.permute.xlu0 %8591  ;;  %v2237_v31 = vld [vmem:[#allocation3 + $0x18] sm:$0xff]  ;;  %v2379_v30 = vld [vmem:[#allocation3 + $0xc2] sm:$0xff]  ;;  %v2380_v15 = vld [vmem:[#allocation3 + $0xca] sm:$0xff] }
 0x35c   : > { %8781 = vrot.lane.b32.xlu0 %v8750_v13, %s9962_s23  ;;  %v2301_v13 = vld [vmem:[#allocation3 + $0x19] sm:$0xff]  ;;  %15783 = vst [vmem:[#allocation56_spill] sm:$0xff] %v11624_v51  ;;  %v11752_v44 = vld [vmem:[#allocation3 + $0x168] sm:$0xff] }
 0x35d   : > { %v2069_v54 = vcombine.low %v2061_v33, %v2068_v4  ;;  %v2085_v56 = vrot.slane %v2071_v61, %v11350_v48  ;;  %v8790_v19 = vpack.i.bf16 %v2302_v58, %v2301_v13  ;;  %v2365_v48 = vld [vmem:[#allocation3 + $0x1a] sm:$0xff]  ;;  %v11630_v20 = vpop.permute.xlu1 %8596  ;;  %v8810_v33 = vpack.i.bf16 %v2238_v32, %v2237_v31  ;;  %v2429_v4 = vld [vmem:[#allocation3 + $0x30] sm:$0xff]  ;;  %v2458_v3 = vld [vmem:[#allocation3 + $0x188] sm:$0xff] }
 0x35e   : > { %8786 = vrot.lane.b32.xlu1 %v11566_v11, %s9962_s23  ;;  %v2366_v11 = vld [vmem:[#allocation3 + $0x22] sm:$0xff]  ;;  %15784 = vst [vmem:[#allocation57_spill] sm:$0xff] %v11630_v20  ;;  %v2430_v6 = vld [vmem:[#allocation3 + $0x38] sm:$0xff]  ;;  %v2377_v32 = vld [vmem:[#allocation3 + $0xaa] sm:$0xff] }
 0x35f   : > { %v2086_v52 = vcombine.low %v2078_v53, %v2085_v56  ;;  %2162 = vst.msk [vmem:[#allocation3 + $0x139] sm:$0xff] %vm467_vm2, %v2069_v54  ;;  %2164 = vst.msk [vmem:[#allocation3 + $0x151] sm:$0xff] %vm467_vm2, %v2069_v54  ;;  %v11628_v57 = vpack.i.bf16 %v2366_v11, %v2365_v48  ;;  %v8815_v61 = vpack.i.bf16 %v2430_v6, %v2429_v4  ;;  %v11635_v47 = vpop.permute.xlu0 %8601  ;;  %v2316_v53 = vld [vmem:[#allocation3 + $0xc9] sm:$0xff]  ;;  %v2315_v56 = vld [vmem:[#allocation3 + $0xc1] sm:$0xff] }
 0x360   : > { %8796 = vrot.lane.b32.xlu0 %v8795_v7, %s9951_s4  ;;  %15785 = vst [vmem:[#allocation58_spill] sm:$0xff] %v11635_v47  ;;  %v8835_v58 = vpack.i.bf16 %v2316_v53, %v2315_v56  ;;  %v2313_v13 = vld [vmem:[#allocation3 + $0xa9] sm:$0xff]  ;;  %v2378_v31 = vld [vmem:[#allocation3 + $0xb2] sm:$0xff]  ;;  %v2376_v20 = vld [vmem:[#allocation3 + $0x9a] sm:$0xff] }
 0x361   : > { %2163 = vst.msk [vmem:[#allocation3 + $0x141] sm:$0xff] %vm467_vm2, %v2086_v52  ;;  %2165 = vst.msk [vmem:[#allocation3 + $0x159] sm:$0xff] %vm467_vm2, %v2086_v52  ;;  %v11638_v54 = vpop.permute.xlu1 %8606  ;;  %v8830_v48 = vpack.i.bf16 %v2314_v8, %v2313_v13  ;;  %v2250_v6 = vld [vmem:[#allocation3 + $0xb0] sm:$0xff]  ;;  %v2249_v4 = vld [vmem:[#allocation3 + $0xa8] sm:$0xff] }
 0x362   : > { %8791 = vrot.lane.b32.xlu1 %v8790_v19, %s9951_s4  ;;  %15786 = vst [vmem:[#allocation59_spill] sm:$0xff] %v11638_v54  ;;  %v8850_v53 = vpack.i.bf16 %v2250_v6, %v2249_v4  ;;  %v2441_v8 = vld [vmem:[#allocation3 + $0xc0] sm:$0xff]  ;;  %v2375_v54 = vld [vmem:[#allocation3 + $0x92] sm:$0xff] }
 0x363   : > { %v11642_v52 = vpop.permute.xlu0 %8611  ;;  %v2309_v4 = vld [vmem:[#allocation3 + $0x79] sm:$0xff]  ;;  %v2322_v47 = vld [vmem:[#allocation3 + $0x111] sm:$0xff] }
 0x364   : > { %8806 = vrot.lane.b32.xlu0 %v11622_v29, %s9955_s0  ;;  %15787 = vst [vmem:[#allocation60_spill] sm:$0xff] %v11642_v52  ;;  %v2246_v45 = vld [vmem:[#allocation3 + $0x80] sm:$0xff]  ;;  %v2330_v2 = vld [vmem:[#allocation3 + $0x171] sm:$0xff] }
 0x365   : > { %v11645_v11 = vpop.permute.xlu1 %8616 }
 0x366   : > { %8801 = vrot.lane.b32.xlu1 %v11628_v57, %s9955_s0 }
 0x368   : > { %8811 = vrot.lane.b32.xlu0 %v8810_v33, %s9961_s20  ;;  %v11651_v33 = vpop.permute.xlu0 %8621  ;;  %v2328_v55 = vld [vmem:[#allocation3 + $0x159] sm:$0xff] }
 0x369   : > { %v11655_v56 = vpop.permute.xlu1 %8626  ;;  %v2392_v60 = vld [vmem:[#allocation3 + $0x15a] sm:$0xff] }
 0x36a   : > { %8816 = vrot.lane.b32.xlu1 %v8815_v61, %s9961_s20  ;;  %v2442_v61 = vld [vmem:[#allocation3 + $0xc8] sm:$0xff]  ;;  %15788 = vst [vmem:[#allocation61_spill] sm:$0xff] %v11655_v56  ;;  %v2643_v38 = vld [vmem:[#allocation3 + $0x140] sm:$0xff]  ;;  %v12133_v56 = vld [vmem:[#allocation3 + $0x31] sm:$0xff] }
 0x36b   : > { %v8855_v13 = vpack.i.bf16 %v2442_v61, %v2441_v8  ;;  %v2373_v8 = vld [vmem:[#allocation3 + $0x7a] sm:$0xff] }
 0x36c   : > { %8821 = vrot.lane.b32.xlu0 %v8790_v19, %s9962_s23  ;;  %v8845_v19 = vpack.i.bf16 %v2380_v15, %v2379_v30  ;;  %v11659_v30 = vpop.permute.xlu0 %8631  ;;  %v2312_v15 = vld [vmem:[#allocation3 + $0x99] sm:$0xff] }
 0x36d   : > { %15789 = vst [vmem:[#allocation62_spill] sm:$0xff] %v11659_v30  ;;  %v12222_v30 = vld [vmem:[#allocation4 + $0x158] sm:$0xff] }
 0x36e   : > { %8826 = vrot.lane.b32.xlu1 %v8795_v7, %s9962_s23  ;;  %v11649_v7 = vpack.i.bf16 %v2378_v31, %v2377_v32  ;;  %v11662_v32 = vpop.permute.xlu1 %8636  ;;  %v2311_v31 = vld [vmem:[#allocation3 + $0x91] sm:$0xff] }
 0x36f   : > { %15790 = vst [vmem:[#allocation63_spill] sm:$0xff] %v11662_v32  ;;  %v8875_v6 = vpack.i.bf16 %v2312_v15, %v2311_v31  ;;  %v2245_v15 = vld [vmem:[#allocation3 + $0x78] sm:$0xff] }
 0x370   : > { %8836 = vrot.lane.b32.xlu0 %v8835_v58, %s9951_s4  ;;  %v2438_v31 = vld [vmem:[#allocation3 + $0x98] sm:$0xff] }
 0x371   : > { %v12161_v32 = vld [vmem:[#allocation4 + $0xa8] sm:$0xff] }
 0x372   : > { %8831 = vrot.lane.b32.xlu1 %v8830_v48, %s9951_s4  ;;  %v11671_v49 = vpop.permute.xlu1 %8646 }
 0x373   : > { %15792 = vst [vmem:[#allocation65_spill] sm:$0xff] %v11671_v49  ;;  %v2324_v49 = vld [vmem:[#allocation3 + $0x129] sm:$0xff] }
 0x374   : > { %8846 = vrot.lane.b32.xlu0 %v8845_v19, %s9955_s0  ;;  %v2310_v19 = vld [vmem:[#allocation3 + $0x81] sm:$0xff] }
 0x375   : > { %v8870_v61 = vpack.i.bf16 %v2310_v19, %v2309_v4  ;;  %v8890_v19 = vpack.i.bf16 %v2246_v45, %v2245_v15 }
 0x376   : > { %8841 = vrot.lane.b32.xlu1 %v11649_v7, %s9955_s0 }
 0x378   : > { %8851 = vrot.lane.b32.xlu0 %v8850_v53, %s9961_s20  ;;  %v11666_v53 = vpop.permute.xlu0 %8641 }
 0x379   : > { %15791 = vst [vmem:[#allocation64_spill] sm:$0xff] %v11666_v53  ;;  %v2437_v53 = vld [vmem:[#allocation3 + $0x90] sm:$0xff] }
 0x37a   : > { %8856 = vrot.lane.b32.xlu1 %v8855_v13, %s9961_s20  ;;  %v2374_v13 = vld [vmem:[#allocation3 + $0x82] sm:$0xff] }
 0x37c   : > { %8861 = vrot.lane.b32.xlu0 %v8830_v48, %s9962_s23  ;;  %v11669_v48 = vpack.i.bf16 %v2376_v20, %v2375_v54  ;;  %v11679_v4 = vpop.permute.xlu0 %8651  ;;  %v8895_v20 = vpack.i.bf16 %v2438_v31, %v2437_v53  ;;  %v11682_v54 = vpop.permute.xlu1 %8656  ;;  %v2385_v31 = vld [vmem:[#allocation3 + $0x10a] sm:$0xff] }
 0x37d   : > { %15793 = vst [vmem:[#allocation66_spill] sm:$0xff] %v11679_v4  ;;  %15794 = vst [vmem:[#allocation67_spill] sm:$0xff] %v11682_v54  ;;  %v2321_v4 = vld [vmem:[#allocation3 + $0x109] sm:$0xff] }
 0x37e   : > { %8866 = vrot.lane.b32.xlu1 %v8835_v58, %s9962_s23  ;;  %v11675_v58 = vpack.i.bf16 %v2374_v13, %v2373_v8  ;;  %v2323_v13 = vld [vmem:[#allocation3 + $0x121] sm:$0xff]  ;;  %v8910_v53 = vpack.i.bf16 %v2322_v47, %v2321_v4  ;;  %v11697_v54 = vld [vmem:[#allocation3 + $0x110] sm:$0xff] }
 0x37f   : > { %v8915_v45 = vpack.i.bf16 %v2324_v49, %v2323_v13  ;;  %v11705_v13 = vld [vmem:[#allocation3 + $0x108] sm:$0xff]  ;;  %v11713_v4 = vld [vmem:[#allocation3 + $0x120] sm:$0xff] }
 0x380   : > { %8876 = vrot.lane.b32.xlu0 %v8875_v6, %s9951_s4  ;;  %v11686_v8 = vpop.permute.xlu0 %8661  ;;  %v11689_v15 = vpop.permute.xlu1 %8666  ;;  %v11707_v47 = vld [vmem:[#allocation3 + $0x128] sm:$0xff]  ;;  %15800 = vst [vmem:[#allocation73_spill] sm:$0xff] %v11713_v4 }
 0x381   : > { %15795 = vst [vmem:[#allocation68_spill] sm:$0xff] %v11686_v8  ;;  %15796 = vst [vmem:[#allocation69_spill] sm:$0xff] %v11689_v15  ;;  %v2318_v15 = vld [vmem:[#allocation3 + $0xe1] sm:$0xff] }
 0x382   : > { %8871 = vrot.lane.b32.xlu1 %v8870_v61, %s9951_s4  ;;  %15799 = vst [vmem:[#allocation72_spill] sm:$0xff] %v11707_v47 }
 0x384   : > { %8886 = vrot.lane.b32.xlu0 %v11669_v48, %s9955_s0  ;;  %v11695_v8 = vpop.permute.xlu0 %8671 }
 0x385   : > { %15797 = vst [vmem:[#allocation70_spill] sm:$0xff] %v11695_v8  ;;  %v2320_v8 = vld [vmem:[#allocation3 + $0xf9] sm:$0xff] }
 0x386   : > { %8881 = vrot.lane.b32.xlu1 %v11675_v58, %s9955_s0 }
 0x387   : > { %v15891_v26 = vld [vmem:[#allocation73_spill] sm:$0xff] }
 0x388   : > { %8891 = vrot.lane.b32.xlu0 %v8890_v19, %s9961_s20  ;;  %v2388_v19 = vld [vmem:[#allocation3 + $0x12a] sm:$0xff] }
 0x38a   : > { %8896 = vrot.lane.b32.xlu1 %v8895_v20, %s9961_s20  ;;  %v2386_v20 = vld [vmem:[#allocation3 + $0x112] sm:$0xff] }
 0x38b   : > { %v11701_v49 = vpack.i.bf16 %v2386_v20, %v2385_v31  ;;  %v11718_v31 = vpop.permute.xlu0 %8681 }
 0x38c   : > { %8901 = vrot.lane.b32.xlu0 %v8870_v61, %s9962_s23  ;;  %v11693_v61 = vpack.i.bf16 %v2388_v19, %v2387_v59  ;;  %v8930_v59 = vpack.i.bf16 %v11697_v54, %v11705_v13  ;;  %v8935_v19 = vpack.i.bf16 %v11707_v47, %v11713_v4  ;;  %15801 = vst [vmem:[#allocation74_spill] sm:$0xff] %v11718_v31  ;;  %v2522_v47 = vld [vmem:[#allocation3 + $0x189] sm:$0xff]  ;;  %v2326_v4 = vld [vmem:[#allocation3 + $0x141] sm:$0xff] }
 0x38e   : > { %8906 = vrot.lane.b32.xlu1 %v8875_v6, %s9962_s23  ;;  %v11703_v6 = vpop.permute.xlu1 %8676 }
 0x38f   : > { %15798 = vst [vmem:[#allocation71_spill] sm:$0xff] %v11703_v6  ;;  %v2319_v6 = vld [vmem:[#allocation3 + $0xf1] sm:$0xff]  ;;  %v11725_v14 = vpop.permute.xlu0 %8691 }
 0x390   : > { %8916 = vrot.lane.b32.xlu0 %v8915_v45, %s9951_s4  ;;  %v8955_v51 = vpack.i.bf16 %v2320_v8, %v2319_v6  ;;  %15803 = vst [vmem:[#allocation76_spill] sm:$0xff] %v11725_v14  ;;  %v2253_v6 = vld [vmem:[#allocation3 + $0xd8] sm:$0xff] }
 0x391   : > { %v2543_v14 = vld [vmem:[#allocation4 + $0x109] sm:$0xff] }
 0x392   : > { %8911 = vrot.lane.b32.xlu1 %v8910_v53, %s9951_s4  ;;  %v11721_v20 = vpop.permute.xlu1 %8686 }
 0x393   : > { %15802 = vst [vmem:[#allocation75_spill] sm:$0xff] %v11721_v20  ;;  %v2382_v20 = vld [vmem:[#allocation3 + $0xe2] sm:$0xff] }
 0x394   : > { %8926 = vrot.lane.b32.xlu0 %v11693_v61, %s9955_s0 }
 0x396   : > { %8921 = vrot.lane.b32.xlu1 %v11701_v49, %s9955_s0  ;;  %v11728_v18 = vpop.permute.xlu1 %8696 }
 0x397   : > { %15804 = vst [vmem:[#allocation77_spill] sm:$0xff] %v11728_v18  ;;  %v2547_v18 = vld [vmem:[#allocation4 + $0x139] sm:$0xff] }
 0x398   : > { %8931 = vrot.lane.b32.xlu0 %v8930_v59, %s9961_s20  ;;  %v2317_v59 = vld [vmem:[#allocation3 + $0xd9] sm:$0xff] }
 0x399   : > { %v8950_v31 = vpack.i.bf16 %v2318_v15, %v2317_v59  ;;  %v8970_v15 = vpack.i.bf16 %v2254_v27, %v2253_v6  ;;  %v2329_v6 = vld [vmem:[#allocation3 + $0x169] sm:$0xff] }
 0x39a   : > { %8936 = vrot.lane.b32.xlu1 %v8935_v19, %s9961_s20  ;;  %v2381_v19 = vld [vmem:[#allocation3 + $0xda] sm:$0xff]  ;;  %v11741_v59 = vpop.permute.xlu1 %8706 }
 0x39b   : > { %v11735_v8 = vpack.i.bf16 %v2382_v20, %v2381_v19  ;;  %15806 = vst [vmem:[#allocation79_spill] sm:$0xff] %v11741_v59  ;;  %v11747_v20 = vld [vmem:[#allocation3 + $0x170] sm:$0xff] }
 0x39c   : > { %8941 = vrot.lane.b32.xlu0 %v8910_v53, %s9962_s23  ;;  %v11731_v53 = vpack.i.bf16 %v2384_v42, %v2383_v5  ;;  %v8975_v42 = vpack.i.bf16 %v2446_v28, %v2445_v50  ;;  %v9000_v27 = vpack.i.bf16 %v11747_v20, %v11752_v44  ;;  %v8990_v50 = vpack.i.bf16 %v2330_v2, %v2329_v6  ;;  %v2457_v6 = vld [vmem:[#allocation3 + $0x180] sm:$0xff]  ;;  %v2540_v59 = vld [vmem:[#allocation4 + $0xe1] sm:$0xff] }
 0x39d   : > { %v9005_v37 = vpack.i.bf16 %v2458_v3, %v2457_v6  ;;  %v2535_v6 = vld [vmem:[#allocation4 + $0xa9] sm:$0xff] }
 0x39e   : > { %8946 = vrot.lane.b32.xlu1 %v8915_v45, %s9962_s23  ;;  %v11737_v45 = vpop.permute.xlu0 %8701  ;;  %v11750_v19 = vpop.permute.xlu1 %8716 }
 0x39f   : > { %15805 = vst [vmem:[#allocation78_spill] sm:$0xff] %v11737_v45  ;;  %15808 = vst [vmem:[#allocation81_spill] sm:$0xff] %v11750_v19  ;;  %v2454_v19 = vld [vmem:[#allocation3 + $0x158] sm:$0xff]  ;;  %v2539_v45 = vld [vmem:[#allocation4 + $0xd9] sm:$0xff] }
 0x3a0   : > { %8956 = vrot.lane.b32.xlu0 %v8955_v51, %s9951_s4 }
 0x3a2   : > { %8951 = vrot.lane.b32.xlu1 %v8950_v31, %s9951_s4  ;;  %v11745_v5 = vpop.permute.xlu0 %8711 }
 0x3a3   : > { %15807 = vst [vmem:[#allocation80_spill] sm:$0xff] %v11745_v5  ;;  %v2390_v5 = vld [vmem:[#allocation3 + $0x142] sm:$0xff] }
 0x3a4   : > { %8966 = vrot.lane.b32.xlu0 %v11731_v53, %s9955_s0 }
 0x3a6   : > { %8961 = vrot.lane.b32.xlu1 %v11735_v8, %s9955_s0  ;;  %v11758_v28 = vpop.permute.xlu0 %8721 }
 0x3a7   : > { %15809 = vst [vmem:[#allocation82_spill] sm:$0xff] %v11758_v28  ;;  %v2391_v28 = vld [vmem:[#allocation3 + $0x152] sm:$0xff] }
 0x3a8   : > { %8971 = vrot.lane.b32.xlu0 %v8970_v15, %s9961_s20  ;;  %v2393_v15 = vld [vmem:[#allocation3 + $0x16a] sm:$0xff] }
 0x3aa   : > { %8976 = vrot.lane.b32.xlu1 %v8975_v42, %s9961_s20  ;;  %v2394_v42 = vld [vmem:[#allocation3 + $0x172] sm:$0xff]  ;;  %v11768_v2 = vpop.permute.xlu0 %8731 }
 0x3ab   : > { %v11764_v62 = vpack.i.bf16 %v2394_v42, %v2393_v15  ;;  %15811 = vst [vmem:[#allocation84_spill] sm:$0xff] %v11768_v2  ;;  %v11776_v15 = vld [vmem:[#allocation3 + $0x140] sm:$0xff]  ;;  %v11782_v2 = vld [vmem:[#allocation3 + $0x138] sm:$0xff] }
 0x3ac   : > { %8981 = vrot.lane.b32.xlu0 %v8950_v31, %s9962_s23  ;;  %v11761_v31 = vpop.permute.xlu1 %8726  ;;  %15813 = vst [vmem:[#allocation86_spill] sm:$0xff] %v11776_v15  ;;  %v2521_v42 = vld [vmem:[#allocation3 + $0x181] sm:$0xff] }
 0x3ad   : > { %15810 = vst [vmem:[#allocation83_spill] sm:$0xff] %v11761_v31 }
 0x3ae   : > { %8986 = vrot.lane.b32.xlu1 %v8955_v51, %s9962_s23  ;;  %v2327_v51 = vld [vmem:[#allocation3 + $0x151] sm:$0xff] }
 0x3b0   : > { %9001 = vrot.lane.b32.xlu0 %v9000_v27, %s9961_s20  ;;  %v9025_v27 = vpack.i.bf16 %v2328_v55, %v2327_v51  ;;  %v11771_v31 = vpop.permute.xlu1 %8736  ;;  %v9015_v55 = vpack.i.bf16 %v2522_v47, %v2521_v42  ;;  %v11780_v51 = vpop.permute.xlu0 %8741  ;;  %v2536_v47 = vld [vmem:[#allocation4 + $0xb1] sm:$0xff] }
 0x3b1   : > { %15812 = vst [vmem:[#allocation85_spill] sm:$0xff] %v11771_v31  ;;  %15814 = vst [vmem:[#allocation87_spill] sm:$0xff] %v11780_v51  ;;  %v2389_v31 = vld [vmem:[#allocation3 + $0x13a] sm:$0xff] }
 0x3b2   : > { %8991 = vrot.lane.b32.xlu1 %v8990_v50, %s9951_s4 }
 0x3b4   : > { %9011 = vrot.lane.b32.xlu0 %v8990_v50, %s9962_s23  ;;  %v11774_v50 = vpack.i.bf16 %v2392_v60, %v2391_v28  ;;  %v11785_v3 = vpop.permute.xlu1 %8746  ;;  %v9040_v60 = vpack.i.bf16 %v11776_v15, %v11782_v2  ;;  %v2548_v15 = vld [vmem:[#allocation4 + $0x141] sm:$0xff] }
 0x3b5   : > { %15815 = vst [vmem:[#allocation88_spill] sm:$0xff] %v11785_v3  ;;  %v9055_v3 = vpack.i.bf16 %v2536_v47, %v2535_v6  ;;  %v2538_v6 = vld [vmem:[#allocation4 + $0xc9] sm:$0xff] }
 0x3b6   : > { %8996 = vrot.lane.b32.xlu1 %v11764_v62, %s9955_s0 }
 0x3b8   : > { %9026 = vrot.lane.b32.xlu0 %v9025_v27, %s9951_s4 }
 0x3ba   : > { %9006 = vrot.lane.b32.xlu1 %v9005_v37, %s9961_s20  ;;  %v2325_v37 = vld [vmem:[#allocation3 + $0x139] sm:$0xff] }
 0x3bb   : > { %v9020_v28 = vpack.i.bf16 %v2326_v4, %v2325_v37 }
 0x3bc   : > { %9036 = vrot.lane.b32.xlu0 %v11774_v50, %s9955_s0 }
 0x3be   : > { %9016 = vrot.lane.b32.xlu1 %v9015_v55, %s9962_s23  ;;  %v11796_v55 = vpack.i.bf16 %v2390_v5, %v2389_v31  ;;  %v2537_v31 = vld [vmem:[#allocation4 + $0xc1] sm:$0xff] }
 0x3c0   : > { %9041 = vrot.lane.b32.xlu0 %v9040_v60, %s9961_s20  ;;  %v2453_v60 = vld [vmem:[#allocation3 + $0x150] sm:$0xff] }
 0x3c2   : > { %9021 = vrot.lane.b32.xlu1 %v9020_v28, %s9951_s4  ;;  %v11791_v42 = vpop.permute.xlu0 %8756 }
 0x3c3   : > { %15816 = vst [vmem:[#allocation89_spill] sm:$0xff] %v11791_v42  ;;  %v9045_v42 = vpack.i.bf16 %v2454_v19, %v2453_v60  ;;  %v2542_v19 = vld [vmem:[#allocation4 + $0xf9] sm:$0xff] }
 0x3c4   : > { %v11793_v51 = vpop.permute.xlu1 %8751  ;;  %9051 = vrot.lane.b32.xlu0 %v9020_v28, %s9962_s23  ;;  %v2544_v28 = vld [vmem:[#allocation4 + $0x111] sm:$0xff] }
 0x3c5   : > { %15817 = vst [vmem:[#allocation90_spill] sm:$0xff] %v11793_v51  ;;  %v9070_v51 = vpack.i.bf16 %v2540_v59, %v2539_v45  ;;  %v9065_v45 = vpack.i.bf16 %v2538_v6, %v2537_v31  ;;  %v2541_v59 = vld [vmem:[#allocation4 + $0xf1] sm:$0xff] }
 0x3c6   : > { %9031 = vrot.lane.b32.xlu1 %v11796_v55, %s9955_s0  ;;  %v11800_v4 = vpop.permute.xlu0 %8766 }
 0x3c7   : > { %15818 = vst [vmem:[#allocation91_spill] sm:$0xff] %v11800_v4  ;;  %v9080_v4 = vpack.i.bf16 %v2544_v28, %v2543_v14  ;;  %v9075_v14 = vpack.i.bf16 %v2542_v19, %v2541_v59  ;;  %v2545_v28 = vld [vmem:[#allocation4 + $0x121] sm:$0xff] }
 0x3c8   : > { %v11802_v37 = vpop.permute.xlu1 %8761  ;;  %9056 = vrot.lane.b32.xlu0 %v9055_v3, %s9958_s2  ;;  %v2559_v19 = vld [vmem:[#allocation3 + $0x4a] sm:$0xff] }
 0x3c9   : > { %15819 = vst [vmem:[#allocation92_spill] sm:$0xff] %v11802_v37  ;;  %v2552_v37 = vld [vmem:[#allocation4 + $0x171] sm:$0xff] }
 0x3ca   : > { %9046 = vrot.lane.b32.xlu1 %v9045_v42, %s9961_s20  ;;  %v11806_v5 = vpop.permute.xlu0 %8771  ;;  %v9090_v42 = vpack.i.bf16 %v2548_v15, %v2547_v18  ;;  %v2549_v18 = vld [vmem:[#allocation4 + $0x151] sm:$0xff]  ;;  %v2550_v15 = vld [vmem:[#allocation4 + $0x159] sm:$0xff] }
 0x3cb   : > { %15820 = vst [vmem:[#allocation93_spill] sm:$0xff] %v11806_v5  ;;  %v2551_v5 = vld [vmem:[#allocation4 + $0x169] sm:$0xff]  ;;  %v9095_v59 = vpack.i.bf16 %v2550_v15, %v2549_v18  ;;  %v2562_v15 = vld [vmem:[#allocation3 + $0x6a] sm:$0xff] }
 0x3cc   : > { %v11808_v47 = vpop.permute.xlu1 %8776  ;;  %9071 = vrot.lane.b32.xlu0 %v9070_v51, %s9958_s2  ;;  %v9100_v31 = vpack.i.bf16 %v2552_v37, %v2551_v5  ;;  %v2554_v37 = vld [vmem:[#allocation4 + $0x189] sm:$0xff] }
 0x3cd   : > { %15821 = vst [vmem:[#allocation94_spill] sm:$0xff] %v11808_v47  ;;  %v2546_v47 = vld [vmem:[#allocation4 + $0x129] sm:$0xff] }
 0x3ce   : > { %9061 = vrot.lane.b32.xlu1 %v9025_v27, %s9962_s23  ;;  %v11812_v3 = vpop.permute.xlu0 %8781 }
 0x3cf   : > { %15822 = vst [vmem:[#allocation95_spill] sm:$0xff] %v11812_v3 }
 0x3d0   : > { %v11814_v60 = vpop.permute.xlu1 %8786  ;;  %9081 = vrot.lane.b32.xlu0 %v9080_v4, %s9958_s2  ;;  %v9085_v4 = vpack.i.bf16 %v2546_v47, %v2545_v28 }
 0x3d1   : > { %15823 = vst [vmem:[#allocation96_spill] sm:$0xff] %v11814_v60  ;;  %v2560_v60 = vld [vmem:[#allocation3 + $0x52] sm:$0xff] }
 0x3d2   : > { %9066 = vrot.lane.b32.xlu1 %v9065_v45, %s9958_s2  ;;  %v11818_v51 = vpop.permute.xlu0 %8796 }
 0x3d3   : > { %15824 = vst [vmem:[#allocation97_spill] sm:$0xff] %v11818_v51  ;;  %v8474_v51 = vunpack.i.h.bf16 %v11342_v1 }
 0x3d4   : > { %v11820_v27 = vpop.permute.xlu1 %8791  ;;  %9091 = vrot.lane.b32.xlu0 %v9090_v42, %s9958_s2  ;;  %v2553_v42 = vld [vmem:[#allocation4 + $0x181] sm:$0xff] }
 0x3d5   : > { %15825 = vst [vmem:[#allocation98_spill] sm:$0xff] %v11820_v27  ;;  %v9105_v28 = vpack.i.bf16 %v2554_v37, %v2553_v42  ;;  %v2236_v27 = vld [vmem:[#allocation3 + $0x8] sm:$0xff] }
 0x3d6   : > { %9076 = vrot.lane.b32.xlu1 %v9075_v14, %s9958_s2  ;;  %v11824_v6 = vpop.permute.xlu0 %8806  ;;  %v9120_v14 = vpack.i.bf16 %v2560_v60, %v2559_v19 }
 0x3d7   : > { %15826 = vst [vmem:[#allocation99_spill] sm:$0xff] %v11824_v6  ;;  %v2641_v6 = vld [vmem:[#allocation3 + $0x128] sm:$0xff] }
 0x3d8   : > { %v11826_v3 = vpop.permute.xlu1 %8801  ;;  %9101 = vrot.lane.b32.xlu0 %v9100_v31, %s9958_s2 }
 0x3d9   : > { %15827 = vst [vmem:[#allocation100_spill] sm:$0xff] %v11826_v3 }
 0x3da   : > { %9086 = vrot.lane.b32.xlu1 %v9085_v4, %s9958_s2  ;;  %v11830_v45 = vpop.permute.xlu0 %8811 }
 0x3db   : > { %15828 = vst [vmem:[#allocation101_spill] sm:$0xff] %v11830_v45 }
 0x3dc   : > { %v11832_v5 = vpop.permute.xlu1 %8816  ;;  %9111 = vrot.lane.b32.xlu0 %v11628_v57, %s9963_s26  ;;  %v2561_v57 = vld [vmem:[#allocation3 + $0x62] sm:$0xff] }
 0x3dd   : > { %15829 = vst [vmem:[#allocation102_spill] sm:$0xff] %v11832_v5  ;;  %v9125_v19 = vpack.i.bf16 %v2562_v15, %v2561_v57  ;;  %v2614_v5 = vld [vmem:[#allocation4 + $0x15a] sm:$0xff] }
 0x3de   : > { %9096 = vrot.lane.b32.xlu1 %v9095_v59, %s9958_s2  ;;  %v11837_v47 = vpop.permute.xlu0 %8821 }
 0x3df   : > { %15830 = vst [vmem:[#allocation103_spill] sm:$0xff] %v11837_v47  ;;  %v2610_v47 = vld [vmem:[#allocation4 + $0x12a] sm:$0xff] }
 0x3e0   : > { %v11839_v31 = vpop.permute.xlu1 %8826  ;;  %9121 = vrot.lane.b32.xlu0 %v9120_v14, %s9963_s26  ;;  %v2570_v14 = vld [vmem:[#allocation3 + $0xca] sm:$0xff] }
 0x3e1   : > { %15831 = vst [vmem:[#allocation104_spill] sm:$0xff] %v11839_v31  ;;  %v2616_v31 = vld [vmem:[#allocation4 + $0x172] sm:$0xff] }
 0x3e2   : > { %9106 = vrot.lane.b32.xlu1 %v9105_v28, %s9958_s2  ;;  %v11843_v4 = vpop.permute.xlu0 %8836 }
 0x3e3   : > { %15832 = vst [vmem:[#allocation105_spill] sm:$0xff] %v11843_v4  ;;  %v2606_v4 = vld [vmem:[#allocation4 + $0xfa] sm:$0xff] }
 0x3e4   : > { %v11845_v18 = vpop.permute.xlu1 %8831  ;;  %9131 = vrot.lane.b32.xlu0 %v11675_v58, %s9963_s26  ;;  %v2569_v58 = vld [vmem:[#allocation3 + $0xc2] sm:$0xff] }
 0x3e5   : > { %15833 = vst [vmem:[#allocation106_spill] sm:$0xff] %v11845_v18  ;;  %v2612_v18 = vld [vmem:[#allocation4 + $0x142] sm:$0xff] }
 0x3e6   : > { %9116 = vrot.lane.b32.xlu1 %v11622_v29, %s9963_s26  ;;  %v11851_v60 = vpop.permute.xlu0 %8846 }
 0x3e7   : > { %15834 = vst [vmem:[#allocation107_spill] sm:$0xff] %v11851_v60  ;;  %v2602_v60 = vld [vmem:[#allocation4 + $0xca] sm:$0xff] }
 0x3e8   : > { %v11853_v59 = vpop.permute.xlu1 %8841  ;;  %9141 = vrot.lane.b32.xlu0 %v11649_v7, %s9963_s26  ;;  %v9145_v7 = vpack.i.bf16 %v2570_v14, %v2569_v58  ;;  %v2591_v58 = vld [vmem:[#allocation4 + $0x4a] sm:$0xff]  ;;  %v2592_v14 = vld [vmem:[#allocation4 + $0x52] sm:$0xff] }
 0x3e9   : > { %15835 = vst [vmem:[#allocation108_spill] sm:$0xff] %v11853_v59  ;;  %v2603_v59 = vld [vmem:[#allocation4 + $0xda] sm:$0xff] }
 0x3ea   : > { %9126 = vrot.lane.b32.xlu1 %v9125_v19, %s9963_s26  ;;  %v11858_v42 = vpop.permute.xlu0 %8851  ;;  %v2588_v19 = vld [vmem:[#allocation4 + $0x22] sm:$0xff] }
 0x3eb   : > { %15836 = vst [vmem:[#allocation109_spill] sm:$0xff] %v11858_v42  ;;  %v2586_v42 = vld [vmem:[#allocation3 + $0x18a] sm:$0xff] }
 0x3ec   : > { %v11860_v37 = vpop.permute.xlu1 %8856  ;;  %9151 = vrot.lane.b32.xlu0 %v11735_v8, %s9963_s26  ;;  %v2587_v8 = vld [vmem:[#allocation4 + $0x1a] sm:$0xff] }
 0x3ed   : > { %15837 = vst [vmem:[#allocation110_spill] sm:$0xff] %v11860_v37  ;;  %v2599_v37 = vld [vmem:[#allocation4 + $0xaa] sm:$0xff] }
 0x3ee   : > { %9136 = vrot.lane.b32.xlu1 %v11669_v48, %s9963_s26  ;;  %v11866_v29 = vpop.permute.xlu0 %8861 }
 0x3ef   : > { %15838 = vst [vmem:[#allocation111_spill] sm:$0xff] %v11866_v29  ;;  %v2585_v29 = vld [vmem:[#allocation3 + $0x182] sm:$0xff] }
 0x3f0   : > { %v11868_v28 = vpop.permute.xlu1 %8866  ;;  %9161 = vrot.lane.b32.xlu0 %v11701_v49, %s9963_s26  ;;  %v9190_v49 = vpack.i.bf16 %v2588_v19, %v2587_v8  ;;  %v2589_v8 = vld [vmem:[#allocation4 + $0x32] sm:$0xff]  ;;  %v2590_v19 = vld [vmem:[#allocation4 + $0x3a] sm:$0xff] }
 0x3f1   : > { %15839 = vst [vmem:[#allocation112_spill] sm:$0xff] %v11868_v28 }
 0x3f2   : > { %9146 = vrot.lane.b32.xlu1 %v9145_v7, %s9963_s26  ;;  %v11873_v57 = vpop.permute.xlu0 %8876 }
 0x3f3   : > { %15840 = vst [vmem:[#allocation113_spill] sm:$0xff] %v11873_v57  ;;  %v2594_v57 = vld [vmem:[#allocation4 + $0x6a] sm:$0xff] }
 0x3f4   : > { %v11875_v15 = vpop.permute.xlu1 %8871  ;;  %9171 = vrot.lane.b32.xlu0 %v11796_v55, %s9963_s26 }
 0x3f5   : > { %15841 = vst [vmem:[#allocation114_spill] sm:$0xff] %v11875_v15  ;;  %v2596_v15 = vld [vmem:[#allocation4 + $0x82] sm:$0xff] }
 0x3f6   : > { %9156 = vrot.lane.b32.xlu1 %v11731_v53, %s9963_s26  ;;  %v11881_v48 = vpop.permute.xlu0 %8886  ;;  %v9200_v53 = vpack.i.bf16 %v2592_v14, %v2591_v58  ;;  %v9195_v14 = vpack.i.bf16 %v2590_v19, %v2589_v8  ;;  %v2607_v8 = vld [vmem:[#allocation4 + $0x10a] sm:$0xff]  ;;  %v2608_v19 = vld [vmem:[#allocation4 + $0x112] sm:$0xff] }
 0x3f7   : > { %15842 = vst [vmem:[#allocation115_spill] sm:$0xff] %v11881_v48  ;;  %v2593_v48 = vld [vmem:[#allocation4 + $0x62] sm:$0xff] }
 0x3f8   : > { %v11883_v28 = vpop.permute.xlu1 %8881  ;;  %9181 = vrot.lane.b32.xlu0 %v11764_v62, %s9963_s26 }
 0x3f9   : > { %15843 = vst [vmem:[#allocation116_spill] sm:$0xff] %v11883_v28  ;;  %v2595_v28 = vld [vmem:[#allocation4 + $0x7a] sm:$0xff] }
 0x3fa   : > { %9166 = vrot.lane.b32.xlu1 %v11693_v61, %s9963_s26  ;;  %v11889_v7 = vpop.permute.xlu0 %8891 }
 0x3fb   : > { %15844 = vst [vmem:[#allocation117_spill] sm:$0xff] %v11889_v7  ;;  %v9210_v7 = vpack.i.bf16 %v2596_v15, %v2595_v28  ;;  %v2597_v28 = vld [vmem:[#allocation4 + $0x92] sm:$0xff]  ;;  %v2598_v15 = vld [vmem:[#allocation4 + $0x9a] sm:$0xff] }
 0x3fc   : > { %v11891_v55 = vpop.permute.xlu1 %8896  ;;  %9191 = vrot.lane.b32.xlu0 %v9190_v49, %s9964_s5  ;;  %v2600_v49 = vld [vmem:[#allocation4 + $0xb2] sm:$0xff] }
 0x3fd   : > { %15845 = vst [vmem:[#allocation118_spill] sm:$0xff] %v11891_v55  ;;  %v9185_v55 = vpack.i.bf16 %v2586_v42, %v2585_v29  ;;  %v9205_v29 = vpack.i.bf16 %v2594_v57, %v2593_v48  ;;  %v9240_v57 = vpack.i.bf16 %v2608_v19, %v2607_v8  ;;  %v2611_v48 = vld [vmem:[#allocation4 + $0x13a] sm:$0xff]  ;;  %v2609_v19 = vld [vmem:[#allocation4 + $0x122] sm:$0xff] }
 0x3fe   : > { %9176 = vrot.lane.b32.xlu1 %v11774_v50, %s9963_s26  ;;  %v11896_v62 = vpop.permute.xlu0 %8901 }
 0x3ff   : > { %15846 = vst [vmem:[#allocation119_spill] sm:$0xff] %v11896_v62  ;;  %v9220_v62 = vpack.i.bf16 %v2600_v49, %v2599_v37  ;;  %v9215_v37 = vpack.i.bf16 %v2598_v15, %v2597_v28  ;;  %v2601_v49 = vld [vmem:[#allocation4 + $0xc2] sm:$0xff]  ;;  %v9250_v28 = vpack.i.bf16 %v2612_v18, %v2611_v48  ;;  %v2615_v15 = vld [vmem:[#allocation4 + $0x16a] sm:$0xff]  ;;  %v2613_v48 = vld [vmem:[#allocation4 + $0x152] sm:$0xff] }
 0x400   : > { %v11898_v61 = vpop.permute.xlu1 %8906  ;;  %9201 = vrot.lane.b32.xlu0 %v9200_v53, %s9964_s5  ;;  %v2621_v18 = vld [vmem:[#allocation3 + $0x38] sm:$0xff] }
 0x401   : > { %15847 = vst [vmem:[#allocation120_spill] sm:$0xff] %v11898_v61  ;;  %v2604_v61 = vld [vmem:[#allocation4 + $0xe2] sm:$0xff] }
 0x402   : > { %9186 = vrot.lane.b32.xlu1 %v9185_v55, %s9963_s26  ;;  %v11902_v58 = vpop.permute.xlu0 %8916  ;;  %v9230_v53 = vpack.i.bf16 %v2604_v61, %v2603_v59  ;;  %v9225_v59 = vpack.i.bf16 %v2602_v60, %v2601_v49  ;;  %v2605_v61 = vld [vmem:[#allocation4 + $0xf2] sm:$0xff]  ;;  %v9260_v60 = vpack.i.bf16 %v2616_v31, %v2615_v15  ;;  %v2617_v15 = vld [vmem:[#allocation4 + $0x182] sm:$0xff] }
 0x403   : > { %v9235_v8 = vpack.i.bf16 %v2606_v4, %v2605_v61  ;;  %v2620_v4 = vld [vmem:[#allocation3 + $0x30] sm:$0xff]  ;;  %v2625_v31 = vld [vmem:[#allocation3 + $0x68] sm:$0xff]  ;;  %v8918_v9 = vunpack.i.l.bf16 %v11902_v58 }
 0x404   : > { %v11904_v50 = vpop.permute.xlu1 %8911  ;;  %9211 = vrot.lane.b32.xlu0 %v9210_v7, %s9964_s5  ;;  %v9270_v61 = vpack.i.bf16 %v2621_v18, %v2620_v4  ;;  %v2623_v18 = vld [vmem:[#allocation3 + $0x50] sm:$0xff] }
 0x406   : > { %9196 = vrot.lane.b32.xlu1 %v9195_v14, %s9964_s5  ;;  %v11908_v42 = vpop.permute.xlu0 %8926 }
 0x408   : > { %v11910_v55 = vpop.permute.xlu1 %8921  ;;  %9221 = vrot.lane.b32.xlu0 %v9220_v62, %s9964_s5 }
 0x40a   : > { %9206 = vrot.lane.b32.xlu1 %v9205_v29, %s9964_s5  ;;  %v11914_v7 = vpop.permute.xlu0 %8931 }
 0x40b   : > { %15848 = vst [vmem:[#allocation121_spill] sm:$0xff] %v11914_v7 }
 0x40c   : > { %v11916_v14 = vpop.permute.xlu1 %8936  ;;  %9231 = vrot.lane.b32.xlu0 %v9230_v53, %s9964_s5 }
 0x40e   : > { %9216 = vrot.lane.b32.xlu1 %v9215_v37, %s9964_s5  ;;  %v11920_v62 = vpop.permute.xlu0 %8941 }
 0x40f   : > { %15849 = vst [vmem:[#allocation122_spill] sm:$0xff] %v11920_v62  ;;  %v11999_v62 = vld [vmem:[#allocation3 + $0x150] sm:$0xff] }
 0x410   : > { %v11922_v29 = vpop.permute.xlu1 %8946  ;;  %9241 = vrot.lane.b32.xlu0 %v9240_v57, %s9964_s5  ;;  %v9245_v57 = vpack.i.bf16 %v2610_v47, %v2609_v19  ;;  %v2624_v47 = vld [vmem:[#allocation3 + $0x60] sm:$0xff] }
 0x411   : > { %15850 = vst [vmem:[#allocation123_spill] sm:$0xff] %v11922_v29  ;;  %v2640_v29 = vld [vmem:[#allocation3 + $0x120] sm:$0xff] }
 0x412   : > { %9226 = vrot.lane.b32.xlu1 %v9225_v59, %s9964_s5  ;;  %v11926_v53 = vpop.permute.xlu0 %8956 }
 0x413   : > { %15851 = vst [vmem:[#allocation124_spill] sm:$0xff] %v11926_v53 }
 0x414   : > { %v11928_v37 = vpop.permute.xlu1 %8951  ;;  %9251 = vrot.lane.b32.xlu0 %v9250_v28, %s9964_s5  ;;  %v9255_v28 = vpack.i.bf16 %v2614_v5, %v2613_v48  ;;  %v2628_v5 = vld [vmem:[#allocation3 + $0x90] sm:$0xff] }
 0x415   : > { %15852 = vst [vmem:[#allocation125_spill] sm:$0xff] %v11928_v37 }
 0x416   : > { %9236 = vrot.lane.b32.xlu1 %v9235_v8, %s9964_s5  ;;  %v11932_v49 = vpop.permute.xlu0 %8966  ;;  %v2618_v8 = vld [vmem:[#allocation4 + $0x18a] sm:$0xff] }
 0x417   : > { %15853 = vst [vmem:[#allocation126_spill] sm:$0xff] %v11932_v49 }
 0x418   : > { %v11934_v45 = vpop.permute.xlu1 %8961  ;;  %9261 = vrot.lane.b32.xlu0 %v9260_v60, %s9964_s5  ;;  %v9280_v60 = vpack.i.bf16 %v2625_v31, %v2624_v47  ;;  %v2632_v31 = vld [vmem:[#allocation3 + $0xc0] sm:$0xff] }
 0x419   : > { %15854 = vst [vmem:[#allocation127_spill] sm:$0xff] %v11934_v45  ;;  %v9265_v45 = vpack.i.bf16 %v2618_v8, %v2617_v15  ;;  %v2627_v15 = vld [vmem:[#allocation3 + $0x80] sm:$0xff] }
 0x41a   : > { %9246 = vrot.lane.b32.xlu1 %v9245_v57, %s9964_s5  ;;  %v11938_v59 = vpop.permute.xlu0 %8971  ;;  %v2629_v57 = vld [vmem:[#allocation3 + $0x98] sm:$0xff] }
 0x41b   : > { %15855 = vst [vmem:[#allocation128_spill] sm:$0xff] %v11938_v59  ;;  %v9290_v4 = vpack.i.bf16 %v2629_v57, %v2628_v5  ;;  %v8394_v5 = vunpack.i.h.bf16 %v11309_v46 }
 0x41c   : > { %v11940_v37 = vpop.permute.xlu1 %8976  ;;  %9271 = vrot.lane.b32.xlu0 %v9270_v61, %s9965_s13  ;;  %v2622_v61 = vld [vmem:[#allocation3 + $0x48] sm:$0xff] }
 0x41d   : > { %15856 = vst [vmem:[#allocation129_spill] sm:$0xff] %v11940_v37  ;;  %v2633_v37 = vld [vmem:[#allocation3 + $0xc8] sm:$0xff] }
 0x41e   : > { %9256 = vrot.lane.b32.xlu1 %v9255_v28, %s9964_s5  ;;  %v11944_v19 = vpop.permute.xlu0 %8981  ;;  %v9275_v28 = vpack.i.bf16 %v2623_v18, %v2622_v61  ;;  %v9300_v47 = vpack.i.bf16 %v2633_v37, %v2632_v31  ;;  %v2255_v18 = vld [vmem:[#allocation3 + $0xf0] sm:$0xff]  ;;  %v2630_v31 = vld [vmem:[#allocation3 + $0xa8] sm:$0xff] }
 0x41f   : > { %15857 = vst [vmem:[#allocation130_spill] sm:$0xff] %v11944_v19  ;;  %v2631_v61 = vld [vmem:[#allocation3 + $0xb0] sm:$0xff]  ;;  %v2235_v19 = vld [vmem:[#allocation3] sm:$0xff] }
 0x420   : > { %v11946_v3 = vpop.permute.xlu1 %8986  ;;  %9281 = vrot.lane.b32.xlu0 %v9280_v60, %s9965_s13  ;;  %v11958_v60 = vld [vmem:[#allocation3 + $0xf8] sm:$0xff] }
 0x421   : > { %15858 = vst [vmem:[#allocation131_spill] sm:$0xff] %v11946_v3  ;;  %v9310_v37 = vpack.i.bf16 %v11958_v60, %v2255_v18 }
 0x422   : > { %9266 = vrot.lane.b32.xlu1 %v9265_v45, %s9964_s5  ;;  %v11950_v48 = vpop.permute.xlu0 %9001  ;;  %v2626_v45 = vld [vmem:[#allocation3 + $0x78] sm:$0xff] }
 0x423   : > { %15859 = vst [vmem:[#allocation132_spill] sm:$0xff] %v11950_v48  ;;  %v9285_v57 = vpack.i.bf16 %v2627_v15, %v2626_v45  ;;  %v8473_v15 = vunpack.i.l.bf16 %v11342_v1  ;;  %v4734_v45 = vsel %vm467_vm2, %v2236_v27, %v8394_v5  ;;  %v2635_v48 = vld [vmem:[#allocation3 + $0xe0] sm:$0xff]  ;;  %v8478_v5 = vunpack.i.l.bf16 %v11365_v23  ;;  %v2649_v27 = vld [vmem:[#allocation3 + $0x188] sm:$0xff] }
 0x424   : > { %v11952_v59 = vpop.permute.xlu1 %8991  ;;  %9291 = vrot.lane.b32.xlu0 %v9290_v4, %s9965_s13  ;;  %v8393_v4 = vunpack.i.l.bf16 %v11309_v46  ;;  %v9295_v46 = vpack.i.bf16 %v2631_v61, %v2630_v31  ;;  %v2634_v31 = vld [vmem:[#allocation3 + $0xd8] sm:$0xff]  ;;  %v2638_v61 = vld [vmem:[#allocation3 + $0x108] sm:$0xff] }
 0x426   : > { %9276 = vrot.lane.b32.xlu1 %v9275_v28, %s9965_s13  ;;  %v11956_v8 = vpop.permute.xlu0 %9011 }
 0x427   : > { %15860 = vst [vmem:[#allocation133_spill] sm:$0xff] %v11956_v8  ;;  %v4733_v8 = vsel %vm467_vm2, %v2235_v19, %v8393_v4  ;;  %v8479_v19 = vunpack.i.h.bf16 %v11365_v23  ;;  %v11987_v4 = vld [vmem:[#allocation3 + $0x158] sm:$0xff]  ;;  %v8559_v23 = vunpack.i.h.bf16 %v11552_v24 }
 0x428   : > { %v11960_v3 = vpop.permute.xlu1 %8996  ;;  %9301 = vrot.lane.b32.xlu0 %v9300_v47, %s9965_s13  ;;  %v4765_v18 = vsel %vm1002_vm6, %v4733_v8, %v8473_v15  ;;  %v8448_v15 = vunpack.i.l.bf16 %v11335_v25 }
 0x429   : > { %15861 = vst [vmem:[#allocation134_spill] sm:$0xff] %v11960_v3 }
 0x42a   : > { %9286 = vrot.lane.b32.xlu1 %v9285_v57, %s9965_s13  ;;  %v11966_v28 = vpop.permute.xlu0 %9026  ;;  %v2639_v57 = vld [vmem:[#allocation3 + $0x110] sm:$0xff] }
 0x42b   : > { %v9315_v16 = vpack.i.bf16 %v2639_v57, %v2638_v61 }
 0x42c   : > { %v11971_v47 = vpop.permute.xlu1 %9006  ;;  %9311 = vrot.lane.b32.xlu0 %v9310_v37, %s9965_s13  ;;  %v9320_v37 = vpack.i.bf16 %v2641_v6, %v2640_v29  ;;  %v9305_v6 = vpack.i.bf16 %v2635_v48, %v2634_v31  ;;  %v8558_v29 = vunpack.i.l.bf16 %v11552_v24 }
 0x42d   : > { %15862 = vst [vmem:[#allocation135_spill] sm:$0xff] %v11971_v47  ;;  %v12137_v47 = vld [vmem:[#allocation3 + $0x91] sm:$0xff] }
 0x42e   : > { %9296 = vrot.lane.b32.xlu1 %v9295_v46, %s9965_s13  ;;  %v11981_v1 = vpop.permute.xlu0 %9036  ;;  %v4766_v46 = vsel %vm1002_vm6, %v4734_v45, %v8474_v51  ;;  %v9330_v45 = vpack.i.bf16 %v11987_v4, %v11999_v62  ;;  %v2653_v51 = vld [vmem:[#allocation4 + $0x30] sm:$0xff]  ;;  %15886 = vst [vmem:[#allocation152_spill] sm:$0xff] %v12137_v47  ;;  %v12236_v47 = vld [vmem:[#allocation4 + $0x188] sm:$0xff] }
 0x42f   : > { %v4798_v31 = vsel %vm1020_vm8, %v4766_v46, %v8479_v19  ;;  %v8449_v19 = vunpack.i.h.bf16 %v11335_v25  ;;  %v2642_v46 = vld [vmem:[#allocation3 + $0x138] sm:$0xff]  ;;  %v2651_v25 = vld [vmem:[#allocation3 + $0x1a0] sm:$0xff] }
 0x430   : > { %v11992_v3 = vpop.permute.xlu1 %9016  ;;  %9321 = vrot.lane.b32.xlu0 %v9320_v37, %s9965_s13  ;;  %v4797_v37 = vsel %vm1020_vm8, %v4765_v18, %v8478_v5  ;;  %v2648_v18 = vld [vmem:[#allocation3 + $0x180] sm:$0xff]  ;;  %v12034_v24 = vsel %vm1038_vm10, %v4798_v31, %v8559_v23  ;;  %v8468_v23 = vunpack.i.l.bf16 %v11376_v35  ;;  %v2647_v31 = vld [vmem:[#allocation3 + $0x170] sm:$0xff] }
 0x431   : > { %15863 = vst [vmem:[#allocation136_spill] sm:$0xff] %v11992_v3  ;;  %v9340_v61 = vpack.i.bf16 %v2649_v27, %v2648_v18  ;;  %v12031_v5 = vsel %vm1038_vm10, %v4797_v37, %v8558_v29  ;;  %15868 = vst [vmem:[#allocation141_spill] sm:$0xff] %v12034_v24  ;;  %v9350_v27 = vpack.i.bf16 %v2654_v17, %v2653_v51  ;;  %v8458_v18 = vunpack.i.l.bf16 %v11346_v10  ;;  %v2650_v37 = vld [vmem:[#allocation3 + $0x198] sm:$0xff]  ;;  %v12114_v24 = vld [vmem:[#allocation4 + $0xc0] sm:$0xff] }
 0x432   : > { %9306 = vrot.lane.b32.xlu1 %v9305_v6, %s9965_s13  ;;  %v12005_v48 = vpop.permute.xlu0 %9041  ;;  %15867 = vst [vmem:[#allocation140_spill] sm:$0xff] %v12031_v5  ;;  %v8469_v29 = vunpack.i.h.bf16 %v11376_v35  ;;  %v12064_v35 = vsel %vm467_vm2, %v11705_v13, %v8448_v15  ;;  %v12068_v51 = vsel %vm467_vm2, %v11697_v54, %v8449_v19  ;;  %v12072_v40 = vsel %vm467_vm2, %v11752_v44, %v8468_v23  ;;  %v12091_v23 = vld [vmem:[#allocation4 + $0x48] sm:$0xff]  ;;  %v12139_v5 = vld [vmem:[#allocation3 + $0x49] sm:$0xff]  ;;  %v12163_v3 = vld [vmem:[#allocation3 + $0xc1] sm:$0xff] }
 0x433   : > { %15864 = vst [vmem:[#allocation137_spill] sm:$0xff] %v12005_v48  ;;  %v9345_v15 = vpack.i.bf16 %v2651_v25, %v2650_v37  ;;  %v12086_v44 = vsel %vm467_vm2, %v11782_v2, %v8458_v18  ;;  %v12102_v18 = vld [vmem:[#allocation3 + $0x39] sm:$0xff]  ;;  %15887 = vst [vmem:[#allocation153_spill] sm:$0xff] %v12139_v5  ;;  %v8919_v5 = vunpack.i.h.bf16 %v11902_v58 }
 0x434   : > { %v12016_v8 = vpop.permute.xlu1 %9021  ;;  %9331 = vrot.lane.b32.xlu0 %v9330_v45, %s9965_s13  ;;  %v2657_v45 = vld [vmem:[#allocation4 + $0x60] sm:$0xff]  ;;  %v12076_v63 = vsel %vm467_vm2, %v11747_v20, %v8469_v29  ;;  %15874 = vst [vmem:[#allocation147_spill] sm:$0xff] %v12086_v44  ;;  %v12106_v19 = vld [vmem:[#allocation3 + $0x99] sm:$0xff]  ;;  %15894 = vst [vmem:[#allocation73_spill] sm:$0xff] %v12163_v3 }
 0x435   : > { %15865 = vst [vmem:[#allocation138_spill] sm:$0xff] %v12016_v8  ;;  %v9360_v10 = vpack.i.bf16 %v2658_v43, %v2657_v45  ;;  %15872 = vst [vmem:[#allocation145_spill] sm:$0xff] %v12076_v63  ;;  %v12104_v20 = vld [vmem:[#allocation3 + $0x69] sm:$0xff]  ;;  %v12108_v29 = vld [vmem:[#allocation3 + $0x51] sm:$0xff] }
 0x436   : > { %9316 = vrot.lane.b32.xlu1 %v9315_v16, %s9965_s13  ;;  %v12027_v57 = vpop.permute.xlu0 %9051  ;;  %v9325_v16 = vpack.i.bf16 %v2643_v38, %v2642_v46  ;;  %v2661_v46 = vld [vmem:[#allocation4 + $0x90] sm:$0xff]  ;;  %15879 = vst [vmem:[#allocation149_spill] sm:$0xff] %v12106_v19  ;;  %15880 = vst [vmem:[#allocation150_spill] sm:$0xff] %v12108_v29  ;;  %v12196_v45 = vld [vmem:[#allocation4 + $0x128] sm:$0xff] }
 0x437   : > { %15866 = vst [vmem:[#allocation139_spill] sm:$0xff] %v12027_v57  ;;  %v15893_v57 = vld [vmem:[#allocation72_spill] sm:$0xff] }
 0x438   : > { %v12039_v6 = vpop.permute.xlu1 %9031  ;;  %9341 = vrot.lane.b32.xlu0 %v9340_v61, %s9965_s13  ;;  %v2646_v61 = vld [vmem:[#allocation3 + $0x168] sm:$0xff]  ;;  %v12234_v29 = vld [vmem:[#allocation4 + $0x180] sm:$0xff]  ;;  %v12242_v19 = vld [vmem:[#allocation3 + $0xd9] sm:$0xff] }
 0x439   : > { %15869 = vst [vmem:[#allocation142_spill] sm:$0xff] %v12039_v6  ;;  %v15892_v6 = vunpack.i.h.bf16 %v11329_v12  ;;  %15903 = vst [vmem:[#allocation159_spill] sm:$0xff] %v12242_v19 }
 0x43a   : > { %9326 = vrot.lane.b32.xlu1 %v9325_v16, %s9965_s13  ;;  %v12051_v17 = vpop.permute.xlu0 %9056  ;;  %v9335_v16 = vpack.i.bf16 %v2647_v31, %v2646_v61  ;;  %v2656_v31 = vld [vmem:[#allocation4 + $0x50] sm:$0xff] }
 0x43b   : > { %15870 = vst [vmem:[#allocation143_spill] sm:$0xff] %v12051_v17  ;;  %v15875_v61 = vld [vmem:[#allocation86_spill] sm:$0xff]  ;;  %v9355_v43 = vpack.i.bf16 %v2656_v31, %v12091_v23  ;;  %v15890_v31 = vunpack.i.l.bf16 %v11329_v12  ;;  %v12155_v44 = vsel %vm467_vm2, %v15893_v57, %v15892_v6  ;;  %v12165_v23 = vld [vmem:[#allocation3 + $0x79] sm:$0xff]  ;;  %v15898_v6 = vunpack.i.l.bf16 %v11333_v22 }
 0x43c   : > { %v12059_v38 = vpop.permute.xlu1 %9046  ;;  %9351 = vrot.lane.b32.xlu0 %v9350_v27, %s9966_s19  ;;  %v2662_v27 = vld [vmem:[#allocation4 + $0x98] sm:$0xff]  ;;  %v12095_v13 = vsel %vm467_vm2, %v15875_v61, %v8459_v36  ;;  %v12131_v61 = vld [vmem:[#allocation4 + $0x80] sm:$0xff]  ;;  %15895 = vst [vmem:[#allocation72_spill] sm:$0xff] %v12165_v23 }
 0x43d   : > { %15871 = vst [vmem:[#allocation144_spill] sm:$0xff] %v12059_v38  ;;  %15876 = vst [vmem:[#allocation86_spill] sm:$0xff] %v12095_v13  ;;  %v9370_v2 = vpack.i.bf16 %v2662_v27, %v2661_v46  ;;  %v12118_v46 = vld [vmem:[#allocation3 + $0xc9] sm:$0xff]  ;;  %v12120_v27 = vld [vmem:[#allocation3 + $0x81] sm:$0xff]  ;;  %v4757_v37 = vsel %vm467_vm2, %v15891_v26, %v15890_v31  ;;  %v15897_v26 = vunpack.i.h.bf16 %v11325_v0  ;;  %v12179_v57 = vsel %vm467_vm2, %v11999_v62, %v15898_v6 }
 0x43e   : > { %9336 = vrot.lane.b32.xlu1 %v9335_v16, %s9965_s13  ;;  %v12082_v54 = vpop.permute.xlu0 %9071  ;;  %v12129_v17 = vld [vmem:[#allocation4 + $0x78] sm:$0xff]  ;;  %v12143_v36 = vld [vmem:[#allocation3 + $0xb1] sm:$0xff]  ;;  %v12157_v13 = vld [vmem:[#allocation4 + $0xf0] sm:$0xff]  ;;  %v15899_v31 = vunpack.i.h.bf16 %v11333_v22 }
 0x43f   : > { %15873 = vst [vmem:[#allocation146_spill] sm:$0xff] %v12082_v54  ;;  %v12135_v38 = vld [vmem:[#allocation3 + $0x61] sm:$0xff]  ;;  %15888 = vst [vmem:[#allocation154_spill] sm:$0xff] %v12143_v36  ;;  %v12173_v12 = vsel %vm467_vm2, %v11958_v60, %v15897_v26  ;;  %v12194_v0 = vld [vmem:[#allocation4 + $0x120] sm:$0xff]  ;;  %v9365_v63 = vpack.i.bf16 %v12131_v61, %v12129_v17  ;;  %v15908_v36 = vunpack.i.l.bf16 %v11514_v34 }
 0x440   : > { %v12099_v25 = vpop.permute.xlu1 %9061  ;;  %9361 = vrot.lane.b32.xlu0 %v9360_v10, %s9966_s19  ;;  %v12116_v10 = vld [vmem:[#allocation4 + $0xc8] sm:$0xff]  ;;  %v12185_v8 = vsel %vm467_vm2, %v11987_v4, %v15899_v31  ;;  %v12192_v26 = vld [vmem:[#allocation4 + $0xb0] sm:$0xff]  ;;  %v12200_v22 = vld [vmem:[#allocation3 + $0xa9] sm:$0xff] }
 0x441   : > { %15878 = vst [vmem:[#allocation148_spill] sm:$0xff] %v12099_v25  ;;  %v12141_v25 = vld [vmem:[#allocation3 + $0xf9] sm:$0xff]  ;;  %v9380_v60 = vpack.i.bf16 %v12116_v10, %v12114_v24  ;;  %v12198_v62 = vld [vmem:[#allocation3 + $0xf1] sm:$0xff]  ;;  %15902 = vst [vmem:[#allocation158_spill] sm:$0xff] %v12200_v22  ;;  %v8913_v10 = vunpack.i.l.bf16 %v11904_v50  ;;  %v8969_v22 = vunpack.i.h.bf16 %v11932_v49 }
 0x442   : > { %9346 = vrot.lane.b32.xlu1 %v9345_v15, %s9965_s13  ;;  %v12126_v54 = vpop.permute.xlu0 %9081  ;;  %v12167_v15 = vld [vmem:[#allocation3 + $0xe1] sm:$0xff]  ;;  %15901 = vst [vmem:[#allocation157_spill] sm:$0xff] %v12198_v62  ;;  %v12204_v4 = vld [vmem:[#allocation4 + $0xe0] sm:$0xff] }
 0x443   : > { %15885 = vst [vmem:[#allocation151_spill] sm:$0xff] %v12126_v54  ;;  %v12159_v54 = vld [vmem:[#allocation4 + $0xf8] sm:$0xff]  ;;  %15896 = vst [vmem:[#allocation155_spill] sm:$0xff] %v12167_v15  ;;  %v12206_v31 = vld [vmem:[#allocation4 + $0x150] sm:$0xff] }
 0x444   : > { %v12187_v48 = vpop.permute.xlu1 %9066  ;;  %9371 = vrot.lane.b32.xlu0 %v9370_v2, %s9966_s19  ;;  %v12202_v6 = vld [vmem:[#allocation4 + $0xd8] sm:$0xff]  ;;  %v12224_v2 = vld [vmem:[#allocation4 + $0x108] sm:$0xff]  ;;  %v12226_v24 = vld [vmem:[#allocation4 + $0x110] sm:$0xff]  ;;  %v9390_v58 = vpack.i.bf16 %v12159_v54, %v12157_v13  ;;  %v4789_v54 = vsel %vm1002_vm6, %v4757_v37, %v8918_v9  ;;  %v4790_v13 = vsel %vm1002_vm6, %v12155_v44, %v8919_v5  ;;  %v8928_v37 = vunpack.i.l.bf16 %v11908_v42 }
 0x445   : > { %15900 = vst [vmem:[#allocation156_spill] sm:$0xff] %v12187_v48  ;;  %v9375_v48 = vpack.i.bf16 %v12192_v26, %v12161_v32  ;;  %v12252_v23 = vld [vmem:[#allocation4 + $0x138] sm:$0xff]  ;;  %v12254_v17 = vld [vmem:[#allocation4 + $0x140] sm:$0xff]  ;;  %v12266_v32 = vld [vmem:[#allocation4 + $0x168] sm:$0xff]  ;;  %v8959_v26 = vunpack.i.h.bf16 %v11926_v53  ;;  %v8929_v53 = vunpack.i.h.bf16 %v11908_v42  ;;  %v8923_v5 = vunpack.i.l.bf16 %v11910_v55 }
 0x446   : > { %9356 = vrot.lane.b32.xlu1 %v9355_v43, %s9966_s19  ;;  %v12218_v16 = vpop.permute.xlu0 %9091  ;;  %v8914_v43 = vunpack.i.h.bf16 %v11904_v50  ;;  %v9400_v50 = vpack.i.bf16 %v12196_v45, %v12194_v0  ;;  %v12275_v45 = vld [vmem:[#allocation4 + $0x170] sm:$0xff]  ;;  %v4787_v0 = vsel %vm1002_vm6, %v12064_v35, %v8913_v10 }
 0x447   : > { %v5384_v35 = vld [vmem:[#allocation14] sm:$0xff]  ;;  %v5385_v10 = vld [vmem:[#allocation14 + $0x8] sm:$0xff]  ;;  %v4786_v15 = vsel %vm1002_vm6, %v12173_v12, %v8959_v26  ;;  %v4819_v62 = vsel %vm1020_vm8, %v4787_v0, %v15908_v36  ;;  %v15909_v12 = vunpack.i.h.bf16 %v11514_v34  ;;  %v8939_v34 = vunpack.i.h.bf16 %v11916_v14 }
 0x448   : > { %v12245_v3 = vpop.permute.xlu1 %9076  ;;  %9381 = vrot.lane.b32.xlu0 %v9380_v60, %s9966_s19  ;;  %v4788_v9 = vsel %vm1002_vm6, %v12068_v51, %v8914_v43  ;;  %v15592_v60 = vmov 0.0|0.0   ;;  %v9028_v51 = vunpack.i.l.bf16 %v11966_v28  ;;  %v15905_v43 = vunpack.i.l.bf16 %v11512_v39  ;;  %v16075_v49 = vld [vmem:[#allocation29_spill] sm:$0xff] }
 0x449   : > { %15904 = vst [vmem:[#allocation160_spill] sm:$0xff] %v12245_v3  ;;  %v9385_v3 = vpack.i.bf16 %v12204_v4, %v12202_v6  ;;  %v12277_v6 = vld [vmem:[#allocation4 + $0x198] sm:$0xff]  ;;  %v12279_v4 = vld [vmem:[#allocation4 + $0x1a0] sm:$0xff]  ;;  %8234 = vmatprep.subr.bf16.mxu1 %v15592_v60  ;;  %8191 = vmatprep.subr.bf16.mxu0 %v15592_v60  ;;  %v8924_v60 = vunpack.i.h.bf16 %v11910_v55  ;;  %v8192_v55 = vpack.c.bf16 %v5385_v10, %v5384_v35  ;;  %v8938_v0 = vunpack.i.l.bf16 %v11916_v14 }
 0x44a   : > { %9366 = vrot.lane.b32.xlu1 %v9365_v63, %s9966_s19  ;;  %v12271_v61 = vpop.permute.xlu0 %9101  ;;  %v4821_v63 = vsel %vm1020_vm8, %v4789_v54, %v15905_v43  ;;  %v15907_v43 = vunpack.i.h.bf16 %v11512_v39  ;;  %v4820_v26 = vsel %vm1020_vm8, %v4788_v9, %v15909_v12  ;;  %v4793_v39 = vsel %vm1002_vm6, %v12179_v57, %v9028_v51  ;;  %v5386_v57 = vld [vmem:[#allocation14 + $0x10] sm:$0xff]  ;;  %v5387_v9 = vld [vmem:[#allocation14 + $0x18] sm:$0xff] }
 0x44b   : > { %v4853_v42 = vsel %vm1038_vm10, %v4821_v63, %v8928_v37  ;;  %8243 = vmatpush1.bf16.msra.mxu1 %v8192_v55  ;;  %v4852_v36 = vsel %vm1038_vm10, %v4820_v26, %v8924_v60  ;;  %8193 = vmatpush1.bf16.msra.mxu0 %v8192_v55  ;;  %v9039_v60 = vunpack.i.h.bf16 %v11981_v1  ;;  %v8195_v14 = vpack.c.bf16 %v5387_v9, %v5386_v57  ;;  %v15923_v57 = vld [vmem:[#allocation122_spill] sm:$0xff] }
 0x44c   : > { %v12295_v44 = vpop.permute.xlu1 %9086  ;;  %9391 = vrot.lane.b32.xlu0 %v9390_v58, %s9966_s19  ;;  %v9029_v58 = vunpack.i.h.bf16 %v11966_v28  ;;  %v4822_v19 = vsel %vm1020_vm8, %v4790_v13, %v15907_v43  ;;  %v9038_v13 = vunpack.i.l.bf16 %v11981_v1  ;;  %v15915_v1 = vunpack.i.h.bf16 %v11651_v33 }
 0x44d   : > { %v4854_v28 = vsel %vm1038_vm10, %v4822_v19, %v8929_v53  ;;  %v15910_v53 = vunpack.i.h.bf16 %v11489_v21  ;;  %v15917_v55 = vunpack.i.h.bf16 %v11645_v11  ;;  %v8994_v12 = vunpack.i.h.bf16 %v11952_v59  ;;  %v16070_v21 = vld [vmem:[#allocation90_spill] sm:$0xff] }
 0x44e   : > { %9376 = vrot.lane.b32.xlu1 %v9375_v48, %s9966_s19  ;;  %v12311_v54 = vpop.permute.xlu0 %9111  ;;  %v4851_v48 = vsel %vm1038_vm10, %v4819_v62, %v8923_v5  ;;  %v15911_v62 = vmov 0.0|0.0   ;;  %v15913_v5 = vunpack.i.l.bf16 %v11531_v41  ;;  %v8944_v9 = vunpack.i.h.bf16 %v15923_v57 }
 0x44f   : > { %15906 = vst [vmem:[#allocation161_spill] sm:$0xff] %v12311_v54  ;;  %v4818_v19 = vsel %vm1020_vm8, %v4786_v15, %v15910_v53  ;;  %8235 = vmatprep.subr.bf16.mxu1 %v15911_v62  ;;  %8194 = vmatprep.subr.bf16.mxu0 %v15911_v62  ;;  %v8993_v15 = vunpack.i.l.bf16 %v11952_v59  ;;  %v4885_v43 = vsel %vm4861_vm12, %v4852_v36, %v15917_v55  ;;  %v5389_v36 = vld [vmem:[#allocation14 + $0x28] sm:$0xff]  ;;  %v16066_v54 = vld [vmem:[#allocation84_spill] sm:$0xff] }
 0x450   : > { %v12328_v35 = vpop.permute.xlu1 %9096  ;;  %9401 = vrot.lane.b32.xlu0 %v9400_v50, %s9966_s19  ;;  %v4850_v37 = vsel %vm1038_vm10, %v4818_v19, %v8969_v22  ;;  %v4794_v50 = vsel %vm1002_vm6, %v12185_v8, %v9029_v58  ;;  %v4825_v51 = vsel %vm1020_vm8, %v4793_v39, %v15913_v5  ;;  %v15914_v22 = vunpack.i.l.bf16 %v11651_v33  ;;  %8244 = vmatpush1.bf16.msra.mxu1 %v8195_v14 }
 0x451   : > { %v15916_v8 = vunpack.i.l.bf16 %v11645_v11  ;;  %v4857_v26 = vsel %vm1038_vm10, %v4825_v51, %v9038_v13  ;;  %v15918_v33 = vpack.i.bf16 %v12222_v30, %v12206_v31  ;;  %8236 = vmatprep.subr.bf16.mxu1 %v15911_v62  ;;  %v5388_v13 = vld [vmem:[#allocation14 + $0x20] sm:$0xff]  ;;  %8196 = vmatpush1.bf16.msra.mxu0 %v8195_v14  ;;  %v8934_v30 = vunpack.i.h.bf16 %v11914_v7  ;;  %v2781_v7 = vld [vmem:[#allocation4 + $0x32] sm:$0xff] }
 0x452   : > { %9386 = vrot.lane.b32.xlu1 %v9385_v3, %s9966_s19  ;;  %v12343_v63 = vpop.permute.xlu0 %9121  ;;  %v12353_v10 = vsel %vm4861_vm12, %v4853_v42, %v15914_v22  ;;  %v12358_v3 = vsel %vm4861_vm12, %v4854_v28, %v15915_v1  ;;  %v15919_v28 = vunpack.i.h.bf16 %v11642_v52  ;;  %v4918_v31 = vsel %vm4894_vm13, %v4885_v43, %v8939_v34  ;;  %8197 = vmatprep.subr.bf16.mxu0 %v15911_v62  ;;  %v15925_v34 = vld [vmem:[#allocation62_spill] sm:$0xff]  ;;  %v15928_v22 = vld [vmem:[#allocation145_spill] sm:$0xff] }
 0x453   : > { %15912 = vst [vmem:[#allocation162_spill] sm:$0xff] %v12343_v63  ;;  %v4884_v58 = vsel %vm4861_vm12, %v4851_v48, %v15916_v8  ;;  %v15920_v48 = vunpack.i.h.bf16 %v11531_v41  ;;  %v8198_v41 = vpack.c.bf16 %v5389_v36, %v5388_v13  ;;  %v15926_v5 = vunpack.i.l.bf16 %v15925_v34  ;;  %v2718_v52 = vld [vmem:[#allocation4 + $0x39] sm:$0xff] }
 0x454   : > { %v12368_v39 = vpop.permute.xlu1 %9106  ;;  %9411 = vrot.lane.b32.xlu0 %v15918_v33, %s9966_s19  ;;  %v4917_v42 = vsel %vm4894_vm13, %v4884_v58, %v8938_v0  ;;  %v4883_v11 = vsel %vm4861_vm12, %v4850_v37, %v15919_v28  ;;  %v15921_v0 = vpack.i.bf16 %v12226_v24, %v12224_v2  ;;  %v4795_v37 = vsel %vm1002_vm6, %v12072_v40, %v8993_v15  ;;  %v15927_v2 = vld [vmem:[#allocation132_spill] sm:$0xff]  ;;  %v15931_v15 = vld [vmem:[#allocation123_spill] sm:$0xff] }
 0x455   : > { %v4826_v59 = vsel %vm1020_vm8, %v4794_v50, %v15920_v48  ;;  %v15924_v50 = vld [vmem:[#allocation134_spill] sm:$0xff]  ;;  %v4916_v51 = vsel %vm4894_vm13, %v4883_v11, %v8934_v30  ;;  %v9003_v24 = vunpack.i.l.bf16 %v15927_v2  ;;  %v4796_v1 = vsel %vm1002_vm6, %v15928_v22, %v8994_v12  ;;  %8245 = vmatpush1.bf16.msra.mxu1 %v8198_v41  ;;  %8199 = vmatpush1.bf16.msra.mxu0 %v8198_v41  ;;  %v15943_v22 = vld [vmem:[#allocation137_spill] sm:$0xff] }
 0x456   : > { %v4858_v53 = vsel %vm1038_vm10, %v4826_v59, %v9039_v60  ;;  %9396 = vrot.lane.b32.xlu1 %v15921_v0, %s9966_s19  ;;  %v12389_v19 = vpop.permute.xlu0 %9131  ;;  %v8998_v14 = vunpack.i.l.bf16 %v15924_v50  ;;  %v4890_v60 = vsel %vm4861_vm12, %v4857_v26, %v15926_v5  ;;  %v8999_v8 = vunpack.i.h.bf16 %v15924_v50  ;;  %v15932_v26 = vld [vmem:[#allocation77_spill] sm:$0xff]  ;;  %8237 = vmatprep.subr.bf16.mxu1 %v15911_v62  ;;  %v5390_v48 = vld [vmem:[#allocation14 + $0x30] sm:$0xff]  ;;  %v5391_v59 = vld [vmem:[#allocation14 + $0x38] sm:$0xff] }
 0x457   : > { %15922 = vst [vmem:[#allocation163_spill] sm:$0xff] %v12389_v19  ;;  %v15930_v40 = vpack.i.bf16 %v12236_v47, %v12234_v29  ;;  %v8949_v55 = vunpack.i.h.bf16 %v15931_v15  ;;  %v8948_v43 = vunpack.i.l.bf16 %v15931_v15  ;;  %v15933_v33 = vunpack.i.l.bf16 %v15932_v26  ;;  %v15935_v29 = vld [vmem:[#allocation41_spill] sm:$0xff]  ;;  %8200 = vmatprep.subr.bf16.mxu0 %v15911_v62 }
 0x458   : > { %v12404_v58 = vpop.permute.xlu1 %9116  ;;  %v15934_v12 = vunpack.i.h.bf16 %v15925_v34  ;;  %v9004_v47 = vunpack.i.h.bf16 %v15927_v2  ;;  %v15936_v13 = vunpack.i.l.bf16 %v15935_v29  ;;  %v4923_v30 = vsel %vm4894_vm13, %v4890_v60, %v9003_v24  ;;  %v15941_v60 = vld [vmem:[#allocation76_spill] sm:$0xff] }
 0x459   : > { %15929 = vst [vmem:[#allocation134_spill] sm:$0xff] %v12404_v58  ;;  %9421 = vrot.lane.b32.xlu0 %v15930_v40, %s9966_s19  ;;  %v4950_v28 = vsel %vm4927_vm14, %v4917_v42, %v15933_v33  ;;  %v15937_v42 = vpack.i.bf16 %v12254_v17, %v12252_v23  ;;  %v15939_v41 = vunpack.i.h.bf16 %v15932_v26  ;;  %v15940_v34 = vunpack.i.h.bf16 %v15935_v29  ;;  %v15947_v33 = vld [vmem:[#allocation80_spill] sm:$0xff]  ;;  %v16054_v58 = vld [vmem:[#allocation66_spill] sm:$0xff] }
 0x45a   : > { %v4891_v11 = vsel %vm4861_vm12, %v4858_v53, %v15934_v12  ;;  %v4827_v36 = vsel %vm1020_vm8, %v4795_v37, %v15936_v13  ;;  %v12428_v0 = vpop.permute.xlu0 %9141  ;;  %v8201_v53 = vpack.c.bf16 %v5391_v59, %v5390_v48  ;;  %v15942_v2 = vunpack.i.h.bf16 %v15941_v60  ;;  %v5392_v48 = vld [vmem:[#allocation14 + $0x40] sm:$0xff]  ;;  %v5393_v59 = vld [vmem:[#allocation14 + $0x48] sm:$0xff]  ;;  %v2796_v60 = vld [vmem:[#allocation4 + $0xe2] sm:$0xff] }
 0x45b   : > { %9406 = vrot.lane.b32.xlu1 %v15937_v42, %s9966_s19  ;;  %15938 = vst [vmem:[#allocation62_spill] sm:$0xff] %v12428_v0  ;;  %v4951_v50 = vsel %vm4927_vm14, %v4918_v31, %v15939_v41  ;;  %v4828_v37 = vsel %vm1020_vm8, %v4796_v1, %v15940_v34  ;;  %v4859_v5 = vsel %vm1038_vm10, %v4827_v36, %v8998_v14  ;;  %v9044_v40 = vunpack.i.h.bf16 %v15943_v22  ;;  %v15946_v1 = vld [vmem:[#allocation138_spill] sm:$0xff]  ;;  %v15956_v34 = vld [vmem:[#allocation151_spill] sm:$0xff] }
 0x45c   : > { %v4949_v23 = vsel %vm4927_vm14, %v4916_v51, %v15942_v2  ;;  %v4860_v17 = vsel %vm1038_vm10, %v4828_v37, %v8999_v8  ;;  %v4924_v24 = vsel %vm4894_vm13, %v4891_v11, %v9004_v47  ;;  %v9043_v15 = vunpack.i.l.bf16 %v15943_v22  ;;  %v12445_v31 = vpop.permute.xlu1 %9126  ;;  %8246 = vmatpush1.bf16.msra.mxu1 %v8201_v53  ;;  %8202 = vmatpush1.bf16.msra.mxu0 %v8201_v53 }
 0x45d   : > { %15944 = vst [vmem:[#allocation132_spill] sm:$0xff] %v12445_v31  ;;  %v15945_v14 = vpack.i.bf16 %v12102_v18, %v12133_v56  ;;  %v12452_v51 = vsel %vm4960_vm15, %v4950_v28, %v8948_v43  ;;  %v9024_v8 = vunpack.i.h.bf16 %v15946_v1  ;;  %v9023_v26 = vunpack.i.l.bf16 %v15946_v1  ;;  %8238 = vmatprep.subr.bf16.mxu1 %v15911_v62  ;;  %v15949_v18 = vld [vmem:[#allocation133_spill] sm:$0xff]  ;;  %8203 = vmatprep.subr.bf16.mxu0 %v15911_v62  ;;  %v5395_v1 = vld [vmem:[#allocation14 + $0x58] sm:$0xff]  ;;  %v2731_v31 = vld [vmem:[#allocation4 + $0xd9] sm:$0xff] }
 0x45e   : > { %v15948_v12 = vunpack.i.l.bf16 %v15947_v33  ;;  %v12461_v56 = vsel %vm4960_vm15, %v4951_v50, %v8949_v55  ;;  %v9013_v47 = vunpack.i.l.bf16 %v15949_v18  ;;  %v4982_v43 = vsel %vm4960_vm15, %v4949_v23, %v8944_v9  ;;  %v12469_v29 = vpop.permute.xlu0 %9151 }
 0x45f   : > { %9431 = vrot.lane.b32.xlu0 %v15945_v14, %s9968_s22  ;;  %v15950_v28 = vpack.i.bf16 %v12275_v45, %v12266_v32  ;;  %15951 = vst [vmem:[#allocation145_spill] sm:$0xff] %v12469_v29  ;;  %v8204_v13 = vpack.c.bf16 %v5393_v59, %v5392_v48  ;;  %v9014_v36 = vunpack.i.h.bf16 %v15949_v18  ;;  %v15955_v32 = vunpack.i.h.bf16 %v15947_v33  ;;  %v5394_v14 = vld [vmem:[#allocation14 + $0x50] sm:$0xff] }
 0x460   : > { %v4956_v11 = vsel %vm4927_vm14, %v4923_v30, %v15948_v12  ;;  %v15952_v30 = vld [vmem:[#allocation63_spill] sm:$0xff]  ;;  %v4919_v41 = vsel %vm4894_vm13, %v12353_v10, %v9043_v15  ;;  %v4920_v50 = vsel %vm4894_vm13, %v12358_v3, %v9044_v40  ;;  %v9084_v37 = vunpack.i.h.bf16 %v15956_v34  ;;  %v12494_v2 = vpop.permute.xlu1 %9136  ;;  %v15962_v33 = vld [vmem:[#allocation142_spill] sm:$0xff] }
 0x461   : > { %9416 = vrot.lane.b32.xlu1 %v15950_v28, %s9966_s19  ;;  %v15953_v42 = vunpack.i.l.bf16 %v15952_v30  ;;  %v15954_v53 = vunpack.i.h.bf16 %v15952_v30  ;;  %v4957_v45 = vsel %vm4927_vm14, %v4924_v24, %v15955_v32  ;;  %15957 = vst [vmem:[#allocation123_spill] sm:$0xff] %v12494_v2  ;;  %v15958_v23 = vpack.i.bf16 %v12104_v20, %v12135_v38  ;;  %8247 = vmatpush1.bf16.msra.mxu1 %v8204_v13  ;;  %v15960_v10 = vld [vmem:[#allocation147_spill] sm:$0xff]  ;;  %v15965_v48 = vld [vmem:[#allocation78_spill] sm:$0xff] }
 0x462   : > { %v4791_v22 = vsel %vm1002_vm6, %v15960_v10, %v9023_v26  ;;  %v15961_v3 = vld [vmem:[#allocation139_spill] sm:$0xff]  ;;  %8239 = vmatprep.subr.bf16.mxu1 %v15911_v62  ;;  %8205 = vmatpush1.bf16.msra.mxu0 %v8204_v13  ;;  %v9034_v12 = vunpack.i.h.bf16 %v15962_v33  ;;  %v9033_v38 = vunpack.i.l.bf16 %v15962_v33  ;;  %v12510_v20 = vsel %vm4960_vm15, %v4957_v45, %v9014_v36  ;;  %v12516_v26 = vpop.permute.xlu0 %9161  ;;  %v15968_v30 = vld [vmem:[#allocation34_spill] sm:$0xff]  ;;  %v15976_v33 = vld [vmem:[#allocation144_spill] sm:$0xff] }
 0x463   : > { %v12476_v55 = vsel %vm4861_vm12, %v4859_v5, %v15953_v42  ;;  %v12481_v9 = vsel %vm4861_vm12, %v4860_v17, %v15954_v53  ;;  %v12492_v5 = vsel %vm4960_vm15, %v4956_v11, %v9013_v47  ;;  %9441 = vrot.lane.b32.xlu0 %v15958_v23, %s9968_s22  ;;  %v15959_v17 = vld [vmem:[#allocation86_spill] sm:$0xff]  ;;  %v9054_v40 = vunpack.i.h.bf16 %v15961_v3  ;;  %15964 = vst [vmem:[#allocation77_spill] sm:$0xff] %v12516_v26  ;;  %v15973_v23 = vld [vmem:[#allocation152_spill] sm:$0xff]  ;;  %v15975_v10 = vld [vmem:[#allocation135_spill] sm:$0xff] }
 0x464   : > { %v4792_v24 = vsel %vm1002_vm6, %v15959_v17, %v9024_v8  ;;  %v9053_v15 = vunpack.i.l.bf16 %v15961_v3  ;;  %v15963_v8 = vpack.i.bf16 %v12279_v4, %v12277_v6  ;;  %v8207_v11 = vpack.c.bf16 %v5395_v1, %v5394_v14  ;;  %8206 = vmatprep.subr.bf16.mxu0 %v15911_v62  ;;  %v9599_v2 = vld [vmem:[#allocation3 + $0xe0] sm:$0xff] }
 0x465   : > { %v15966_v59 = vunpack.i.l.bf16 %v15965_v48  ;;  %v15967_v47 = vunpack.i.h.bf16 %v15965_v48  ;;  %v9093_v13 = vunpack.i.l.bf16 %v12218_v16  ;;  %v9164_v36 = vunpack.i.h.bf16 %v12516_v26  ;;  %v15977_v48 = vld [vmem:[#allocation150_spill] sm:$0xff] }
 0x466   : > { %9426 = vrot.lane.b32.xlu1 %v15963_v8, %s9966_s19  ;;  %v15969_v6 = vunpack.i.l.bf16 %v15968_v30  ;;  %v15970_v42 = vunpack.i.h.bf16 %v15968_v30  ;;  %v5015_v32 = vsel %vm4993_vm0, %v4982_v43, %v9084_v37  ;;  %v9094_v45 = vunpack.i.h.bf16 %v12218_v16  ;;  %8248 = vmatpush1.bf16.msra.mxu1 %v8207_v11  ;;  %v5396_v16 = vld [vmem:[#allocation14 + $0x60] sm:$0xff]  ;;  %v5397_v43 = vld [vmem:[#allocation14 + $0x68] sm:$0xff] }
 0x467   : > { %v4952_v18 = vsel %vm4927_vm14, %v4919_v41, %v15966_v59  ;;  %v4953_v28 = vsel %vm4927_vm14, %v4920_v50, %v15967_v47  ;;  %v12535_v41 = vpop.permute.xlu1 %9146  ;;  %v15972_v50 = vld [vmem:[#allocation149_spill] sm:$0xff]  ;;  %v9009_v3 = vunpack.i.h.bf16 %v15975_v10  ;;  %8240 = vmatprep.subr.bf16.mxu1 %v15911_v62  ;;  %8208 = vmatpush1.bf16.msra.mxu0 %v8207_v11  ;;  %v9048_v8 = vunpack.i.l.bf16 %v15976_v33 }
 0x468   : > { %v4823_v4 = vsel %vm1020_vm8, %v4791_v22, %v15969_v6  ;;  %v4824_v53 = vsel %vm1020_vm8, %v4792_v24, %v15970_v42  ;;  %15971 = vst [vmem:[#allocation41_spill] sm:$0xff] %v12535_v41  ;;  %v15974_v17 = vpack.i.bf16 %v15972_v50, %v15973_v23  ;;  %v4985_v22 = vsel %vm4960_vm15, %v4952_v18, %v9053_v15  ;;  %v15978_v59 = vld [vmem:[#allocation153_spill] sm:$0xff] }
 0x469   : > { %v4986_v14 = vsel %vm4960_vm15, %v4953_v28, %v9054_v40  ;;  %v12545_v24 = vsel %vm5026_vm1, %v5015_v32, %v9164_v36  ;;  %v4855_v37 = vsel %vm1038_vm10, %v4823_v4, %v9033_v38  ;;  %v4856_v1 = vsel %vm1038_vm10, %v4824_v53, %v9034_v12  ;;  %v9172_v40 = vpop.permute.xlu0 %9171  ;;  %8209 = vmatprep.subr.bf16.mxu0 %v15911_v62  ;;  %v15981_v42 = vld [vmem:[#allocation73_spill] sm:$0xff] }
 0x46a   : > { %9451 = vrot.lane.b32.xlu0 %v15974_v17, %s9968_s22  ;;  %v15979_v15 = vpack.i.bf16 %v15977_v48, %v15978_v59  ;;  %v8210_v18 = vpack.c.bf16 %v5397_v43, %v5396_v16  ;;  %v9049_v47 = vunpack.i.h.bf16 %v15976_v33  ;;  %v5018_v28 = vsel %vm4993_vm0, %v4985_v22, %v9093_v13  ;;  %v15983_v32 = vld [vmem:[#allocation61_spill] sm:$0xff]  ;;  %v5398_v17 = vld [vmem:[#allocation14 + $0x70] sm:$0xff]  ;;  %v5399_v22 = vld [vmem:[#allocation14 + $0x78] sm:$0xff] }
 0x46b   : > { %v9174_v11 = vunpack.i.h.bf16 %v9172_v40  ;;  %v9173_v36 = vunpack.i.l.bf16 %v9172_v40  ;;  %v5019_v38 = vsel %vm4993_vm0, %v4986_v14, %v9094_v45  ;;  %v9104_v12 = vunpack.i.h.bf16 %v12271_v61  ;;  %v12562_v4 = vpop.permute.xlu1 %9156  ;;  %v15988_v40 = vld [vmem:[#allocation148_spill] sm:$0xff]  ;;  %v9591_v26 = vld [vmem:[#allocation3 + $0x20] sm:$0xff] }
 0x46c   : > { %9436 = vrot.lane.b32.xlu1 %v15979_v15, %s9968_s22  ;;  %v9103_v30 = vunpack.i.l.bf16 %v12271_v61  ;;  %v9088_v6 = vunpack.i.l.bf16 %v12295_v44  ;;  %15980 = vst [vmem:[#allocation137_spill] sm:$0xff] %v12562_v4  ;;  %v15982_v53 = vpack.i.bf16 %v12118_v46, %v15981_v42  ;;  %8249 = vmatpush1.bf16.msra.mxu1 %v8210_v18  ;;  %v9008_v13 = vunpack.i.l.bf16 %v15975_v10  ;;  %v2790_v4 = vld [vmem:[#allocation4 + $0x9a] sm:$0xff] }
 0x46d   : > { %v15984_v50 = vunpack.i.l.bf16 %v15983_v32  ;;  %v12573_v23 = vsel %vm5026_vm1, %v5018_v28, %v9173_v36  ;;  %v12576_v61 = vsel %vm5026_vm1, %v5019_v38, %v9174_v11  ;;  %8241 = vmatprep.subr.bf16.mxu1 %v15911_v62  ;;  %8211 = vmatpush1.bf16.msra.mxu0 %v8210_v18  ;;  %v15985_v46 = vunpack.i.h.bf16 %v15983_v32  ;;  %v9182_v48 = vpop.permute.xlu0 %9181  ;;  %v15989_v38 = vld [vmem:[#allocation157_spill] sm:$0xff]  ;;  %v2787_v32 = vld [vmem:[#allocation4 + $0x7a] sm:$0xff] }
 0x46e   : > { %9461 = vrot.lane.b32.xlu0 %v15982_v53, %s9968_s22  ;;  %v9089_v43 = vunpack.i.h.bf16 %v12295_v44  ;;  %v8213_v59 = vpack.c.bf16 %v5399_v22, %v5398_v17  ;;  %8212 = vmatprep.subr.bf16.mxu0 %v15911_v62  ;;  %v9064_v18 = vunpack.i.h.bf16 %v15988_v40  ;;  %v9184_v28 = vunpack.i.h.bf16 %v9182_v48 }
 0x46f   : > { %v4888_v45 = vsel %vm4861_vm12, %v4855_v37, %v15984_v50  ;;  %v4889_v14 = vsel %vm4861_vm12, %v4856_v1, %v15985_v46  ;;  %v15986_v37 = vld [vmem:[#allocation72_spill] sm:$0xff]  ;;  %v9183_v11 = vunpack.i.l.bf16 %v9182_v48  ;;  %v9063_v1 = vunpack.i.l.bf16 %v15988_v40  ;;  %v9167_v36 = vpop.permute.xlu1 %9166  ;;  %v15991_v50 = vld [vmem:[#allocation154_spill] sm:$0xff] }
 0x470   : > { %v4921_v16 = vsel %vm4894_vm13, %v4888_v45, %v9048_v8  ;;  %v15987_v33 = vpack.i.bf16 %v12120_v27, %v15986_v37  ;;  %v4922_v15 = vsel %vm4894_vm13, %v4889_v14, %v9049_v47  ;;  %v5022_v44 = vsel %vm4993_vm0, %v12492_v5, %v9103_v30  ;;  %8250 = vmatpush1.bf16.msra.mxu1 %v8213_v59  ;;  %v15992_v45 = vld [vmem:[#allocation158_spill] sm:$0xff]  ;;  %v15995_v37 = vld [vmem:[#allocation136_spill] sm:$0xff] }
 0x471   : > { %v5023_v8 = vsel %vm4993_vm0, %v12510_v20, %v9104_v12  ;;  %v5016_v27 = vsel %vm4993_vm0, %v12452_v51, %v9088_v6  ;;  %v15990_v47 = vpack.i.bf16 %v12141_v25, %v15989_v38  ;;  %v12603_v42 = vsel %vm5026_vm1, %v5022_v44, %v9183_v11  ;;  %8242 = vmatprep.subr.bf16.mxu1 %v15911_v62  ;;  %v5400_v20 = vld [vmem:[#allocation14 + $0x80] sm:$0xff]  ;;  %v5401_v51 = vld [vmem:[#allocation14 + $0x88] sm:$0xff]  ;;  %v12617_v22 = vpop.permute.xlu0 %9191 }
 0x472   : > { %9446 = vrot.lane.b32.xlu1 %v15987_v33, %s9968_s22  ;;  %v12606_v53 = vsel %vm5026_vm1, %v5023_v8, %v9184_v28  ;;  %v9169_v5 = vunpack.i.h.bf16 %v9167_v36  ;;  %v9168_v30 = vunpack.i.l.bf16 %v9167_v36  ;;  %8214 = vmatpush1.bf16.msra.mxu0 %v8213_v59  ;;  %v5017_v12 = vsel %vm4993_vm0, %v12461_v56, %v9089_v43  ;;  %15994 = vst [vmem:[#allocation138_spill] sm:$0xff] %v12617_v22  ;;  %v15996_v59 = vld [vmem:[#allocation79_spill] sm:$0xff] }
 0x473   : > { %9471 = vrot.lane.b32.xlu0 %v15990_v47, %s9968_s22  ;;  %v9099_v25 = vunpack.i.h.bf16 %v12328_v35  ;;  %v9098_v6 = vunpack.i.l.bf16 %v12328_v35  ;;  %v15993_v17 = vpack.i.bf16 %v15991_v50, %v15992_v45  ;;  %v8216_v46 = vpack.c.bf16 %v5401_v51, %v5400_v20  ;;  %8215 = vmatprep.subr.bf16.mxu0 %v15911_v62  ;;  %v2788_v8 = vld [vmem:[#allocation4 + $0x82] sm:$0xff]  ;;  %v2726_v36 = vld [vmem:[#allocation4 + $0x99] sm:$0xff]  ;;  %v16004_v45 = vld [vmem:[#allocation81_spill] sm:$0xff] }
 0x474   : > { %v4925_v14 = vsel %vm4894_vm13, %v12476_v55, %v9008_v13  ;;  %v4926_v56 = vsel %vm4894_vm13, %v12481_v9, %v9009_v3  ;;  %v12627_v35 = vsel %vm5026_vm1, %v5016_v27, %v9168_v30  ;;  %v12630_v43 = vsel %vm5026_vm1, %v5017_v12, %v9169_v5  ;;  %v9177_v13 = vpop.permute.xlu1 %9176  ;;  %v2704_v9 = vld [vmem:[#allocation3 + $0x111] sm:$0xff]  ;;  %v2725_v27 = vld [vmem:[#allocation4 + $0x91] sm:$0xff]  ;;  %v2723_v50 = vld [vmem:[#allocation4 + $0x79] sm:$0xff] }
 0x475   : > { %v9019_v33 = vunpack.i.h.bf16 %v15995_v37  ;;  %v9018_v48 = vunpack.i.l.bf16 %v15995_v37  ;;  %v15997_v62 = vunpack.i.l.bf16 %v15996_v59  ;;  %v15998_v55 = vunpack.i.h.bf16 %v15996_v59  ;;  %8251 = vmatpush1.bf16.msra.mxu1 %v8216_v46  ;;  %v15999_v5 = vld [vmem:[#allocation155_spill] sm:$0xff] }
 0x476   : > { %9456 = vrot.lane.b32.xlu1 %v15993_v17, %s9968_s22  ;;  %v9179_v11 = vunpack.i.h.bf16 %v9177_v13  ;;  %v9178_v44 = vunpack.i.l.bf16 %v9177_v13  ;;  %8217 = vmatpush1.bf16.msra.mxu0 %v8216_v46  ;;  %v9108_v47 = vunpack.i.l.bf16 %v12368_v39  ;;  %v16000_v30 = vld [vmem:[#allocation159_spill] sm:$0xff]  ;;  %v16005_v17 = vunpack.i.l.bf16 %v16004_v45 }
 0x477   : > { %v4954_v40 = vsel %vm4927_vm14, %v4921_v16, %v15997_v62  ;;  %v4955_v10 = vsel %vm4927_vm14, %v4922_v15, %v15998_v55  ;;  %5268 = vrot.lane.b32.xlu0 %v2787_v32, %s9949_s21  ;;  %v9109_v15 = vunpack.i.h.bf16 %v12368_v39  ;;  %v16003_v32 = vld [vmem:[#allocation35_spill] sm:$0xff]  ;;  %v16006_v37 = vunpack.i.h.bf16 %v16004_v45  ;;  %v16014_v45 = vld [vmem:[#allocation45_spill] sm:$0xff] }
 0x478   : > { %v4987_v3 = vsel %vm4960_vm15, %v4954_v40, %v9063_v1  ;;  %v4988_v28 = vsel %vm4960_vm15, %v4955_v10, %v9064_v18  ;;  %v16001_v1 = vpack.i.bf16 %v15999_v5, %v16000_v30  ;;  %v12651_v18 = vpop.permute.xlu0 %9201  ;;  %v8564_v20 = vunpack.i.h.bf16 %v16003_v32  ;;  %v2724_v39 = vld [vmem:[#allocation4 + $0x81] sm:$0xff]  ;;  %v9187_v62 = vpop.permute.xlu1 %9186  ;;  %v16011_v30 = vld [vmem:[#allocation141_spill] sm:$0xff]  ;;  %v9601_v22 = vld [vmem:[#allocation3 + $0x68] sm:$0xff] }
 0x479   : > { %v5020_v16 = vsel %vm4993_vm0, %v4987_v3, %v9098_v6  ;;  %v5021_v38 = vsel %vm4993_vm0, %v4988_v28, %v9099_v25  ;;  %16002 = vst [vmem:[#allocation80_spill] sm:$0xff] %v12651_v18  ;;  %v8563_v51 = vunpack.i.l.bf16 %v16003_v32  ;;  %v2703_v6 = vld [vmem:[#allocation3 + $0x109] sm:$0xff]  ;;  %v4958_v46 = vsel %vm4927_vm14, %v4925_v14, %v16005_v17 }
 0x47a   : > { %9466 = vrot.lane.b32.xlu1 %v16001_v1, %s9968_s22  ;;  %v12656_v12 = vsel %vm5026_vm1, %v5020_v16, %v9178_v44  ;;  %v12659_v25 = vsel %vm5026_vm1, %v5021_v38, %v9179_v11  ;;  %v4959_v59 = vsel %vm4927_vm14, %v4926_v56, %v16006_v37  ;;  %v9475_v40 = vpack.i.bf16 %v2704_v9, %v2703_v6  ;;  %v16007_v11 = vld [vmem:[#allocation32_spill] sm:$0xff]  ;;  %v16013_v6 = vld [vmem:[#allocation46_spill] sm:$0xff] }
 0x47b   : > { %5270 = vrot.lane.b32.xlu0 %v2788_v8, %s9949_s21  ;;  %v9485_v55 = vpack.i.bf16 %v2726_v36, %v2725_v27  ;;  %v4991_v10 = vsel %vm4960_vm15, %v4958_v46, %v9018_v48  ;;  %v4992_v13 = vsel %vm4960_vm15, %v4959_v59, %v9019_v33  ;;  %v9189_v3 = vunpack.i.h.bf16 %v9187_v62  ;;  %v16009_v27 = vld [vmem:[#allocation28_spill] sm:$0xff]  ;;  %v2792_v46 = vld [vmem:[#allocation4 + $0xb2] sm:$0xff] }
 0x47c   : > { %v9188_v28 = vunpack.i.l.bf16 %v9187_v62  ;;  %v5024_v16 = vsel %vm4993_vm0, %v4991_v10, %v9108_v47  ;;  %v5025_v14 = vsel %vm4993_vm0, %v4992_v13, %v9109_v15  ;;  %v12674_v56 = vpop.permute.xlu0 %9211  ;;  %v9480_v38 = vpack.i.bf16 %v2724_v39, %v2723_v50  ;;  %v16010_v15 = vld [vmem:[#allocation140_spill] sm:$0xff]  ;;  %v12694_v32 = vpop.permute.xlu1 %9196  ;;  %v2717_v44 = vld [vmem:[#allocation4 + $0x31] sm:$0xff]  ;;  %v16028_v62 = vld [vmem:[#allocation51_spill] sm:$0xff] }
 0x47d   : > { %16008 = vst [vmem:[#allocation133_spill] sm:$0xff] %v12674_v56  ;;  %v12682_v33 = vsel %vm5026_vm1, %v5025_v14, %v9189_v3  ;;  %v12688_v5 = vsel %vm4861_vm12, %v16010_v15, %v8563_v51  ;;  %v12692_v1 = vsel %vm4861_vm12, %v16011_v30, %v8564_v20  ;;  %16012 = vst [vmem:[#allocation63_spill] sm:$0xff] %v12694_v32  ;;  %v2791_v37 = vld [vmem:[#allocation4 + $0xaa] sm:$0xff]  ;;  %v16016_v20 = vld [vmem:[#allocation42_spill] sm:$0xff]  ;;  %v16038_v34 = vunpack.i.h.bf16 %v16009_v27 }
 0x47e   : > { %9476 = vrot.lane.b32.xlu1 %v9475_v40, %s9968_s22  ;;  %v12679_v48 = vsel %vm5026_vm1, %v5024_v16, %v9188_v28  ;;  %v16015_v51 = vld [vmem:[#allocation36_spill] sm:$0xff]  ;;  %v16019_v16 = vld [vmem:[#allocation47_spill] sm:$0xff]  ;;  %v2789_v30 = vld [vmem:[#allocation4 + $0x92] sm:$0xff] }
 0x47f   : > { %9486 = vrot.lane.b32.xlu0 %v9485_v55, %s9969_s24  ;;  %v16018_v13 = vld [vmem:[#allocation44_spill] sm:$0xff]  ;;  %v16025_v9 = vld [vmem:[#allocation54_spill] sm:$0xff]  ;;  %v16030_v59 = vld [vmem:[#allocation53_spill] sm:$0xff]  ;;  %v12758_v41 = vsel %vm467_vm2, %v9591_v26, %v16038_v34  ;;  %v16041_v34 = vunpack.i.l.bf16 %v16014_v45 }
 0x480   : > { %v12706_v55 = vpop.permute.xlu0 %9221  ;;  %v16024_v14 = vld [vmem:[#allocation52_spill] sm:$0xff]  ;;  %v2784_v10 = vld [vmem:[#allocation4 + $0x52] sm:$0xff] }
 0x481   : > { %16017 = vst [vmem:[#allocation86_spill] sm:$0xff] %v12706_v55  ;;  %v2729_v50 = vld [vmem:[#allocation4 + $0xc1] sm:$0xff]  ;;  %v2727_v39 = vld [vmem:[#allocation4 + $0xa9] sm:$0xff]  ;;  %v2728_v55 = vld [vmem:[#allocation4 + $0xb1] sm:$0xff] }
 0x482   : > { %9481 = vrot.lane.b32.xlu1 %v9480_v38, %s9969_s24  ;;  %v12716_v38 = vpop.permute.xlu1 %9206  ;;  %v9495_v28 = vpack.i.bf16 %v2717_v44, %v2729_v50  ;;  %v16035_v36 = vld [vmem:[#allocation64_spill] sm:$0xff]  ;;  %v16037_v50 = vunpack.i.l.bf16 %v16009_v27 }
 0x483   : > { %16022 = vst [vmem:[#allocation147_spill] sm:$0xff] %v12716_v38  ;;  %5276 = vrot.lane.b32.xlu0 %v2791_v37, %s9949_s21  ;;  %v9590_v44 = vld [vmem:[#allocation3 + $0x18] sm:$0xff]  ;;  %v16039_v38 = vunpack.i.l.bf16 %v16013_v6 }
 0x484   : > { %v12728_v37 = vpop.permute.xlu0 %9231  ;;  %v12753_v17 = vsel %vm467_vm2, %v9590_v44, %v16037_v50  ;;  %v16040_v44 = vunpack.i.h.bf16 %v16013_v6  ;;  %v9594_v27 = vld [vmem:[#allocation3 + $0x78] sm:$0xff]  ;;  %v9596_v6 = vld [vmem:[#allocation3 + $0xa8] sm:$0xff] }
 0x485   : > { %16027 = vst [vmem:[#allocation139_spill] sm:$0xff] %v12728_v37  ;;  %v12775_v26 = vsel %vm467_vm2, %v9594_v27, %v16041_v34  ;;  %v16047_v27 = vunpack.i.h.bf16 %v16015_v51  ;;  %v2730_v3 = vld [vmem:[#allocation4 + $0xc9] sm:$0xff] }
 0x486   : > { %5272 = vrot.lane.b32.xlu1 %v2789_v30, %s9949_s21  ;;  %v12737_v30 = vpop.permute.xlu1 %9216  ;;  %16042 = vst [vmem:[#allocation34_spill] sm:$0xff] %v12775_v26  ;;  %v2733_v26 = vld [vmem:[#allocation4 + $0xf1] sm:$0xff] }
 0x487   : > { %16031 = vst [vmem:[#allocation142_spill] sm:$0xff] %v12737_v30  ;;  %5278 = vrot.lane.b32.xlu0 %v2792_v46, %s9949_s21  ;;  %v9490_v46 = vpack.i.bf16 %v2728_v55, %v2727_v39  ;;  %v9593_v55 = vld [vmem:[#allocation3 + $0x50] sm:$0xff] }
 0x488   : > { %v12748_v47 = vpop.permute.xlu0 %9241  ;;  %v12770_v50 = vsel %vm467_vm2, %v9593_v55, %v16040_v44  ;;  %v16046_v55 = vunpack.i.l.bf16 %v16015_v51  ;;  %v9597_v30 = vld [vmem:[#allocation3 + $0xb0] sm:$0xff]  ;;  %v16052_v51 = vld [vmem:[#allocation65_spill] sm:$0xff] }
 0x489   : > { %16036 = vst [vmem:[#allocation78_spill] sm:$0xff] %v12748_v47  ;;  %v9244_v56 = vunpack.i.h.bf16 %v12748_v47  ;;  %v9595_v47 = vld [vmem:[#allocation3 + $0x80] sm:$0xff]  ;;  %v12793_v34 = vsel %vm467_vm2, %v9597_v30, %v16047_v27 }
 0x48a   : > { %5274 = vrot.lane.b32.xlu1 %v2790_v4, %s9949_s21  ;;  %v9592_v4 = vld [vmem:[#allocation3 + $0x48] sm:$0xff]  ;;  %v12777_v18 = vpop.permute.xlu1 %9226  ;;  %v12788_v44 = vsel %vm467_vm2, %v9596_v6, %v16046_v55  ;;  %v16050_v6 = vunpack.i.h.bf16 %v16016_v20 }
 0x48b   : > { %v12765_v39 = vsel %vm467_vm2, %v9592_v4, %v16039_v38  ;;  %16043 = vst [vmem:[#allocation149_spill] sm:$0xff] %v12777_v18  ;;  %9496 = vrot.lane.b32.xlu0 %v9495_v28, %s9969_s24  ;;  %v16044_v38 = vunpack.i.h.bf16 %v16014_v45  ;;  %v12797_v28 = vsel %vm5059_vm3, %v12545_v24, %v9244_v56  ;;  %v2794_v45 = vld [vmem:[#allocation4 + $0xca] sm:$0xff]  ;;  %v16053_v56 = vld [vmem:[#allocation67_spill] sm:$0xff] }
 0x48c   : > { %v9598_v18 = vld [vmem:[#allocation3 + $0xd8] sm:$0xff]  ;;  %v12807_v55 = vsel %vm467_vm2, %v9599_v2, %v16050_v6  ;;  %v9252_v24 = vpop.permute.xlu0 %9251  ;;  %v16072_v2 = vld [vmem:[#allocation31_spill] sm:$0xff] }
 0x48d   : > { %v12783_v4 = vsel %vm467_vm2, %v9595_v47, %v16044_v38  ;;  %v16048_v47 = vunpack.i.l.bf16 %v16016_v20  ;;  %16051 = vst [vmem:[#allocation144_spill] sm:$0xff] %v12807_v55  ;;  %v9254_v0 = vunpack.i.h.bf16 %v9252_v24  ;;  %v2782_v20 = vld [vmem:[#allocation4 + $0x3a] sm:$0xff]  ;;  %v2719_v6 = vld [vmem:[#allocation4 + $0x49] sm:$0xff] }
 0x48e   : > { %16045 = vst [vmem:[#allocation152_spill] sm:$0xff] %v12783_v4  ;;  %9491 = vrot.lane.b32.xlu1 %v9490_v46, %s9969_s24  ;;  %v12818_v63 = vpop.permute.xlu1 %9236  ;;  %v16076_v46 = vunpack.i.l.bf16 %v16075_v49  ;;  %v16084_v4 = vld [vmem:[#allocation91_spill] sm:$0xff] }
 0x48f   : > { %v12802_v38 = vsel %vm467_vm2, %v9598_v18, %v16048_v47  ;;  %v9253_v18 = vunpack.i.l.bf16 %v9252_v24  ;;  %v2793_v47 = vld [vmem:[#allocation4 + $0xc2] sm:$0xff]  ;;  %16056 = vst [vmem:[#allocation150_spill] sm:$0xff] %v12818_v63  ;;  %5282 = vrot.lane.b32.xlu0 %v2794_v45, %s9949_s21  ;;  %v12829_v19 = vsel %vm5059_vm3, %v12576_v61, %v9254_v0 }
 0x490   : > { %16049 = vst [vmem:[#allocation135_spill] sm:$0xff] %v12802_v38  ;;  %v9262_v29 = vpop.permute.xlu0 %9261  ;;  %v16063_v38 = vld [vmem:[#allocation82_spill] sm:$0xff] }
 0x491   : > { %v12825_v24 = vsel %vm5059_vm3, %v12573_v23, %v9253_v18  ;;  %v9264_v0 = vunpack.i.h.bf16 %v9262_v29  ;;  %v9263_v61 = vunpack.i.l.bf16 %v9262_v29 }
 0x492   : > { %5280 = vrot.lane.b32.xlu1 %v2793_v47, %s9949_s21  ;;  %v9247_v55 = vpop.permute.xlu1 %9246  ;;  %v9505_v47 = vpack.i.bf16 %v2719_v6, %v2731_v31  ;;  %v9500_v31 = vpack.i.bf16 %v2718_v52, %v2730_v3  ;;  %v16065_v6 = vld [vmem:[#allocation85_spill] sm:$0xff] }
 0x493   : > { %5258 = vrot.lane.b32.xlu0 %v2782_v20, %s9949_s21  ;;  %v12844_v18 = vsel %vm5059_vm3, %v12603_v42, %v9263_v61  ;;  %v12848_v29 = vsel %vm5059_vm3, %v12606_v53, %v9264_v0  ;;  %v9249_v57 = vunpack.i.h.bf16 %v9247_v55  ;;  %v9248_v27 = vunpack.i.l.bf16 %v9247_v55 }
 0x494   : > { %v12854_v20 = vpop.permute.xlu0 %9271  ;;  %v16073_v42 = vunpack.i.l.bf16 %v16072_v2 }
 0x495   : > { %16064 = vst [vmem:[#allocation153_spill] sm:$0xff] %v12854_v20  ;;  %v12860_v53 = vsel %vm5059_vm3, %v12627_v35, %v9248_v27  ;;  %v12864_v55 = vsel %vm5059_vm3, %v12630_v43, %v9249_v57  ;;  %v16069_v43 = vld [vmem:[#allocation89_spill] sm:$0xff] }
 0x496   : > { %5256 = vrot.lane.b32.xlu1 %v2781_v7, %s9949_s21  ;;  %v9257_v3 = vpop.permute.xlu1 %9256  ;;  %v8759_v0 = vunpack.i.h.bf16 %v16069_v43  ;;  %v8758_v63 = vunpack.i.l.bf16 %v16069_v43  ;;  %v8753_v7 = vunpack.i.l.bf16 %v16070_v21 }
 0x497   : > { %9506 = vrot.lane.b32.xlu0 %v9505_v47, %s9969_s24  ;;  %v9259_v27 = vunpack.i.h.bf16 %v9257_v3  ;;  %v9258_v20 = vunpack.i.l.bf16 %v9257_v3  ;;  %v9600_v47 = vld [vmem:[#allocation3 + $0x60] sm:$0xff]  ;;  %v16074_v3 = vunpack.i.h.bf16 %v16072_v2  ;;  %v16077_v2 = vunpack.i.h.bf16 %v16075_v49 }
 0x498   : > { %v12878_v52 = vpop.permute.xlu0 %9281  ;;  %v4741_v35 = vsel %vm467_vm2, %v9600_v47, %v16073_v42  ;;  %v9603_v42 = vld [vmem:[#allocation3 + $0x38] sm:$0xff]  ;;  %v9604_v47 = vld [vmem:[#allocation3 + $0xc0] sm:$0xff]  ;;  %v8754_v49 = vunpack.i.h.bf16 %v16070_v21  ;;  %v8768_v21 = vunpack.i.l.bf16 %v16084_v4 }
 0x499   : > { %16071 = vst [vmem:[#allocation73_spill] sm:$0xff] %v12878_v52  ;;  %v4742_v57 = vsel %vm467_vm2, %v9601_v22, %v16074_v3  ;;  %v12888_v61 = vsel %vm5059_vm3, %v12656_v12, %v9258_v20  ;;  %v12892_v43 = vsel %vm5059_vm3, %v12659_v25, %v9259_v27  ;;  %v9602_v52 = vld [vmem:[#allocation3 + $0x30] sm:$0xff]  ;;  %v12902_v22 = vsel %vm467_vm2, %v9603_v42, %v16077_v2  ;;  %v16078_v12 = vld [vmem:[#allocation37_spill] sm:$0xff]  ;;  %v9605_v25 = vld [vmem:[#allocation3 + $0xc8] sm:$0xff] }
 0x49a   : > { %9501 = vrot.lane.b32.xlu1 %v9500_v31, %s9969_s24  ;;  %v2795_v31 = vld [vmem:[#allocation4 + $0xda] sm:$0xff]  ;;  %v12897_v37 = vsel %vm467_vm2, %v9602_v52, %v16076_v46  ;;  %v16079_v20 = vunpack.i.l.bf16 %v16078_v12  ;;  %v16080_v27 = vunpack.i.h.bf16 %v16078_v12  ;;  %v9267_v46 = vpop.permute.xlu1 %9266 }
 0x49b   : > { %5286 = vrot.lane.b32.xlu0 %v2796_v60, %s9949_s21  ;;  %v12915_v52 = vld [vmem:[#allocation3 + $0x129] sm:$0xff]  ;;  %v2721_v12 = vld [vmem:[#allocation4 + $0x61] sm:$0xff]  ;;  %v4771_v60 = vsel %vm1002_vm6, %v12765_v39, %v8753_v7  ;;  %v2783_v39 = vld [vmem:[#allocation4 + $0x4a] sm:$0xff] }
 0x49c   : > { %v12907_v3 = vsel %vm467_vm2, %v9604_v47, %v16079_v20  ;;  %v12912_v45 = vsel %vm467_vm2, %v9605_v25, %v16080_v27  ;;  %v9606_v42 = vld [vmem:[#allocation3 + $0x90] sm:$0xff]  ;;  %v9269_v47 = vunpack.i.h.bf16 %v9267_v46  ;;  %v9268_v20 = vunpack.i.l.bf16 %v9267_v46  ;;  %v12929_v32 = vpop.permute.xlu0 %9291  ;;  %v2720_v7 = vld [vmem:[#allocation4 + $0x51] sm:$0xff] }
 0x49d   : > { %v16081_v2 = vld [vmem:[#allocation43_spill] sm:$0xff]  ;;  %v4773_v25 = vsel %vm1002_vm6, %v4741_v35, %v8758_v63  ;;  %v4774_v27 = vsel %vm1002_vm6, %v4742_v57, %v8759_v0  ;;  %16085 = vst [vmem:[#allocation72_spill] sm:$0xff] %v12929_v32  ;;  %v8769_v46 = vunpack.i.h.bf16 %v16084_v4  ;;  %v9607_v57 = vld [vmem:[#allocation3 + $0x98] sm:$0xff] }
 0x49e   : > { %v16082_v8 = vunpack.i.l.bf16 %v16081_v2  ;;  %5284 = vrot.lane.b32.xlu1 %v2795_v31, %s9949_s21  ;;  %v12937_v63 = vsel %vm5059_vm3, %v12679_v48, %v9268_v20  ;;  %v12941_v0 = vsel %vm5059_vm3, %v12682_v33, %v9269_v47  ;;  %v2732_v35 = vld [vmem:[#allocation4 + $0xe1] sm:$0xff]  ;;  %v16087_v31 = vunpack.i.h.bf16 %v16081_v2  ;;  %v12953_v48 = vpop.permute.xlu1 %9276  ;;  %v16093_v20 = vld [vmem:[#allocation30_spill] sm:$0xff]  ;;  %v16098_v47 = vld [vmem:[#allocation97_spill] sm:$0xff] }
 0x49f   : > { %v9608_v4 = vld [vmem:[#allocation3 + $0xf0] sm:$0xff]  ;;  %16092 = vst [vmem:[#allocation154_spill] sm:$0xff] %v12953_v48  ;;  %5262 = vrot.lane.b32.xlu0 %v2784_v10, %s9949_s21  ;;  %v9515_v33 = vpack.i.bf16 %v2721_v12, %v2733_v26  ;;  %v4772_v2 = vsel %vm1002_vm6, %v12770_v50, %v8754_v49  ;;  %v12967_v48 = vld [vmem:[#allocation3 + $0x141] sm:$0xff]  ;;  %v12969_v10 = vld [vmem:[#allocation3 + $0x159] sm:$0xff]  ;;  %v16097_v50 = vunpack.i.l.bf16 %v16019_v16 }
 0x4a0   : > { %v12921_v30 = vsel %vm467_vm2, %v9606_v42, %v16082_v8  ;;  %v12931_v8 = vld [vmem:[#allocation3 + $0x121] sm:$0xff]  ;;  %v16086_v42 = vld [vmem:[#allocation92_spill] sm:$0xff]  ;;  %v12946_v32 = vsel %vm467_vm2, %v9607_v57, %v16087_v31  ;;  %v16094_v57 = vunpack.i.l.bf16 %v16093_v20 }
 0x4a1   : > { %16083 = vst [vmem:[#allocation61_spill] sm:$0xff] %v12921_v30  ;;  %v8763_v15 = vunpack.i.l.bf16 %v16086_v42  ;;  %16088 = vst [vmem:[#allocation148_spill] sm:$0xff] %v12946_v32  ;;  %v16089_v30 = vld [vmem:[#allocation49_spill] sm:$0xff]  ;;  %v12971_v26 = vld [vmem:[#allocation3 + $0x171] sm:$0xff]  ;;  %v4803_v49 = vsel %vm1020_vm8, %v4771_v60, %v16097_v50 }
 0x4a2   : > { %v16090_v40 = vunpack.i.l.bf16 %v16089_v30  ;;  %v4805_v31 = vsel %vm1020_vm8, %v4773_v25, %v16094_v57  ;;  %v16095_v30 = vunpack.i.h.bf16 %v16093_v20  ;;  %16096 = vst [vmem:[#allocation158_spill] sm:$0xff] %v12971_v26  ;;  %v8798_v25 = vunpack.i.l.bf16 %v16098_v47  ;;  %5260 = vrot.lane.b32.xlu1 %v2783_v39, %s9949_s21  ;;  %v12979_v20 = vpop.permute.xlu0 %9301  ;;  %v12989_v60 = vld [vmem:[#allocation3 + $0x151] sm:$0xff]  ;;  %v12991_v50 = vld [vmem:[#allocation3 + $0x169] sm:$0xff] }
 0x4a3   : > { %v4837_v12 = vsel %vm1038_vm10, %v4805_v31, %v8768_v21  ;;  %16099 = vst [vmem:[#allocation136_spill] sm:$0xff] %v12979_v20  ;;  %v8799_v21 = vunpack.i.h.bf16 %v16098_v47  ;;  %v12987_v31 = vld [vmem:[#allocation3 + $0x139] sm:$0xff]  ;;  %16102 = vst [vmem:[#allocation155_spill] sm:$0xff] %v12989_v60  ;;  %v16104_v39 = vunpack.i.h.bf16 %v16019_v16  ;;  %9516 = vrot.lane.b32.xlu0 %v9515_v33, %s9969_s24  ;;  %v2798_v33 = vld [vmem:[#allocation4 + $0xfa] sm:$0xff]  ;;  %v16122_v26 = vunpack.i.l.bf16 %v16053_v56 }
 0x4a4   : > { %v12951_v23 = vsel %vm467_vm2, %v9608_v4, %v16090_v40  ;;  %v4806_v40 = vsel %vm1020_vm8, %v4774_v27, %v16095_v30  ;;  %v8764_v4 = vunpack.i.h.bf16 %v16086_v42  ;;  %v9510_v27 = vpack.i.bf16 %v2720_v7, %v2732_v35  ;;  %v12981_v42 = vld [vmem:[#allocation3 + $0x189] sm:$0xff]  ;;  %16103 = vst [vmem:[#allocation159_spill] sm:$0xff] %v12991_v50  ;;  %v12996_v35 = vpop.permute.xlu1 %9286  ;;  %v2736_v50 = vld [vmem:[#allocation4 + $0x111] sm:$0xff] }
 0x4a5   : > { %16091 = vst [vmem:[#allocation157_spill] sm:$0xff] %v12951_v23  ;;  %16100 = vst [vmem:[#allocation79_spill] sm:$0xff] %v12981_v42  ;;  %v4838_v57 = vsel %vm1038_vm10, %v4806_v40, %v8769_v46  ;;  %v4835_v30 = vsel %vm1038_vm10, %v4803_v49, %v8763_v15  ;;  %v16101_v23 = vld [vmem:[#allocation94_spill] sm:$0xff]  ;;  %v4804_v7 = vsel %vm1020_vm8, %v4772_v2, %v16104_v39  ;;  %v16107_v2 = vunpack.i.l.bf16 %v16025_v9 }
 0x4a6   : > { %v8778_v32 = vunpack.i.l.bf16 %v16101_v23  ;;  %16105 = vst [vmem:[#allocation35_spill] sm:$0xff] %v12996_v35  ;;  %v13005_v40 = vld [vmem:[#allocation3 + $0x181] sm:$0xff]  ;;  %v4836_v49 = vsel %vm1038_vm10, %v4804_v7, %v8764_v4  ;;  %v8779_v16 = vunpack.i.h.bf16 %v16101_v23  ;;  %v16109_v46 = vunpack.i.l.bf16 %v16030_v59  ;;  %v16110_v35 = vld [vmem:[#allocation99_spill] sm:$0xff]  ;;  %9511 = vrot.lane.b32.xlu1 %v9510_v27, %s9969_s24 }
 0x4a7   : > { %16106 = vst [vmem:[#allocation81_spill] sm:$0xff] %v13005_v40  ;;  %v13012_v39 = vsel %vm4861_vm12, %v4837_v12, %v16107_v2  ;;  %v4769_v47 = vsel %vm1002_vm6, %v12897_v37, %v8798_v25  ;;  %v8808_v4 = vunpack.i.l.bf16 %v16110_v35  ;;  %v16111_v23 = vunpack.i.h.bf16 %v16025_v9  ;;  %v13028_v12 = vpop.permute.xlu0 %9311  ;;  %v2797_v25 = vld [vmem:[#allocation4 + $0xf2] sm:$0xff]  ;;  %5290 = vrot.lane.b32.xlu0 %v2798_v33, %s9949_s21 }
 0x4a8   : > { %16108 = vst [vmem:[#allocation32_spill] sm:$0xff] %v13012_v39  ;;  %v4868_v20 = vsel %vm4861_vm12, %v4835_v30, %v16109_v46  ;;  %16113 = vst [vmem:[#allocation140_spill] sm:$0xff] %v13028_v12  ;;  %v4770_v15 = vsel %vm1002_vm6, %v12902_v22, %v8799_v21  ;;  %v16114_v30 = vld [vmem:[#allocation98_spill] sm:$0xff]  ;;  %v8809_v37 = vunpack.i.h.bf16 %v16110_v35  ;;  %v16115_v40 = vld [vmem:[#allocation93_spill] sm:$0xff]  ;;  %v13041_v39 = vpop.permute.xlu1 %9296 }
 0x4a9   : > { %v13025_v7 = vsel %vm4861_vm12, %v4838_v57, %v16111_v23  ;;  %v4901_v2 = vsel %vm4894_vm13, %v4868_v20, %v8778_v32  ;;  %v8793_v46 = vunpack.i.l.bf16 %v16114_v30  ;;  %v8774_v42 = vunpack.i.h.bf16 %v16115_v40  ;;  %v16117_v23 = vld [vmem:[#allocation96_spill] sm:$0xff]  ;;  %16118 = vst [vmem:[#allocation141_spill] sm:$0xff] %v13041_v39 }
 0x4aa   : > { %16112 = vst [vmem:[#allocation28_spill] sm:$0xff] %v13025_v7  ;;  %v8773_v9 = vunpack.i.l.bf16 %v16115_v40  ;;  %v16116_v57 = vunpack.i.h.bf16 %v16030_v59  ;;  %v8788_v12 = vunpack.i.l.bf16 %v16117_v23  ;;  %v8789_v22 = vunpack.i.h.bf16 %v16117_v23  ;;  %v16119_v21 = vld [vmem:[#allocation48_spill] sm:$0xff]  ;;  %5288 = vrot.lane.b32.xlu1 %v2797_v25, %s9949_s21 }
 0x4ab   : > { %v8794_v20 = vunpack.i.h.bf16 %v16114_v30  ;;  %v16120_v35 = vunpack.i.l.bf16 %v16119_v21  ;;  %v2786_v7 = vld [vmem:[#allocation4 + $0x6a] sm:$0xff]  ;;  %v4934_v39 = vsel %vm4927_vm14, %v4901_v2, %v16122_v26  ;;  %v16123_v33 = vunpack.i.h.bf16 %v16119_v21  ;;  %v13059_v30 = vpop.permute.xlu0 %9321  ;;  %v2785_v26 = vld [vmem:[#allocation4 + $0x62] sm:$0xff]  ;;  %v2734_v21 = vld [vmem:[#allocation4 + $0xf9] sm:$0xff] }
 0x4ac   : > { %v4869_v27 = vsel %vm4861_vm12, %v4836_v49, %v16116_v57  ;;  %v2735_v59 = vld [vmem:[#allocation4 + $0x109] sm:$0xff]  ;;  %v16121_v49 = vld [vmem:[#allocation95_spill] sm:$0xff]  ;;  %16124 = vst [vmem:[#allocation46_spill] sm:$0xff] %v13059_v30  ;;  %v9324_v60 = vunpack.i.h.bf16 %v13059_v30  ;;  %v4967_v25 = vsel %vm4960_vm15, %v4934_v39, %v8788_v12  ;;  %5266 = vrot.lane.b32.xlu0 %v2786_v7, %s9949_s21  ;;  %v16128_v39 = vunpack.i.h.bf16 %v16024_v14 }
 0x4ad   : > { %v4902_v32 = vsel %vm4894_vm13, %v4869_v27, %v8779_v16  ;;  %v4801_v40 = vsel %vm1020_vm8, %v4769_v47, %v16120_v35  ;;  %v4802_v16 = vsel %vm1020_vm8, %v4770_v15, %v16123_v33  ;;  %v4767_v47 = vsel %vm1002_vm6, %v12753_v17, %v8793_v46  ;;  %v16125_v35 = vld [vmem:[#allocation100_spill] sm:$0xff] }
 0x4ae   : > { %v4833_v27 = vsel %vm1038_vm10, %v4801_v40, %v8808_v4  ;;  %v4834_v23 = vsel %vm1038_vm10, %v4802_v16, %v8809_v37  ;;  %v8803_v57 = vunpack.i.l.bf16 %v16125_v35  ;;  %v2722_v2 = vld [vmem:[#allocation4 + $0x69] sm:$0xff]  ;;  %v16126_v15 = vunpack.i.h.bf16 %v16053_v56  ;;  %v13070_v40 = vpop.permute.xlu1 %9306  ;;  %5264 = vrot.lane.b32.xlu1 %v2785_v26, %s9949_s21 }
 0x4af   : > { %v9525_v17 = vpack.i.bf16 %v2736_v50, %v2735_v59  ;;  %v4768_v37 = vsel %vm1002_vm6, %v12758_v41, %v8794_v20  ;;  %v16127_v33 = vunpack.i.l.bf16 %v16024_v14  ;;  %v13081_v56 = vsel %vm5092_vm4, %v12797_v28, %v9324_v60  ;;  %v9332_v41 = vpop.permute.xlu0 %9331 }
 0x4b0   : > { %v4935_v4 = vsel %vm4927_vm14, %v4902_v32, %v16126_v15  ;;  %v4867_v12 = vsel %vm4861_vm12, %v4834_v23, %v16128_v39  ;;  %v8804_v7 = vunpack.i.h.bf16 %v16125_v35  ;;  %v16129_v50 = vunpack.i.l.bf16 %v16018_v13 }
 0x4b1   : > { %v4968_v46 = vsel %vm4960_vm15, %v4935_v4, %v8789_v22  ;;  %v4866_v16 = vsel %vm4861_vm12, %v4833_v27, %v16127_v33  ;;  %v9520_v22 = vpack.i.bf16 %v2722_v2, %v2734_v21  ;;  %v8783_v20 = vunpack.i.l.bf16 %v16121_v49  ;;  %v16130_v27 = vld [vmem:[#allocation101_spill] sm:$0xff]  ;;  %9526 = vrot.lane.b32.xlu0 %v9525_v17, %s9969_s24 }
 0x4b2   : > { %v4799_v32 = vsel %vm1020_vm8, %v4767_v47, %v16129_v50  ;;  %v9334_v28 = vunpack.i.h.bf16 %v9332_v41  ;;  %v9333_v60 = vunpack.i.l.bf16 %v9332_v41  ;;  %v4899_v14 = vsel %vm4894_vm13, %v4866_v16, %v8773_v9  ;;  %v13105_v2 = vpop.permute.xlu1 %9316  ;;  %v16135_v16 = vld [vmem:[#allocation102_spill] sm:$0xff] }
 0x4b3   : > { %v4831_v59 = vsel %vm1038_vm10, %v4799_v32, %v8803_v57  ;;  %v8813_v23 = vunpack.i.l.bf16 %v16130_v27  ;;  %v16131_v35 = vunpack.i.l.bf16 %v16065_v6  ;;  %v16132_v47 = vunpack.i.h.bf16 %v16065_v6  ;;  %16133 = vst [vmem:[#allocation45_spill] sm:$0xff] %v13105_v2  ;;  %9521 = vrot.lane.b32.xlu1 %v9520_v22, %s9969_s24 }
 0x4b4   : > { %v4900_v57 = vsel %vm4894_vm13, %v4867_v12, %v8774_v42  ;;  %v16134_v9 = vunpack.i.h.bf16 %v16018_v13  ;;  %v13114_v4 = vsel %vm5092_vm4, %v12825_v24, %v9333_v60  ;;  %v13118_v6 = vsel %vm5092_vm4, %v12829_v19, %v9334_v28  ;;  %v9342_v24 = vpop.permute.xlu0 %9341  ;;  %v16138_v28 = vld [vmem:[#allocation103_spill] sm:$0xff] }
 0x4b5   : > { %v13098_v15 = vsel %vm4993_vm0, %v4967_v25, %v16131_v35  ;;  %v13103_v26 = vsel %vm4993_vm0, %v4968_v46, %v16132_v47  ;;  %v2737_v25 = vld [vmem:[#allocation4 + $0x121] sm:$0xff]  ;;  %v2738_v46 = vld [vmem:[#allocation4 + $0x129] sm:$0xff]  ;;  %v8814_v17 = vunpack.i.h.bf16 %v16130_v27  ;;  %v8818_v42 = vunpack.i.l.bf16 %v16135_v16 }
 0x4b6   : > { %v4800_v21 = vsel %vm1020_vm8, %v4768_v37, %v16134_v9  ;;  %v16136_v13 = vunpack.i.l.bf16 %v16028_v62  ;;  %v8819_v39 = vunpack.i.h.bf16 %v16135_v16  ;;  %v16137_v19 = vunpack.i.l.bf16 %v16054_v58  ;;  %v9327_v22 = vpop.permute.xlu1 %9326  ;;  %v16143_v16 = vld [vmem:[#allocation104_spill] sm:$0xff] }
 0x4b7   : > { %v4832_v33 = vsel %vm1038_vm10, %v4800_v21, %v8804_v7  ;;  %v9344_v50 = vunpack.i.h.bf16 %v9342_v24  ;;  %v9343_v32 = vunpack.i.l.bf16 %v9342_v24  ;;  %v2799_v7 = vld [vmem:[#allocation4 + $0x10a] sm:$0xff]  ;;  %v4895_v41 = vsel %vm4894_vm13, %v12688_v5, %v8813_v23 }
 0x4b8   : > { %v4864_v37 = vsel %vm4861_vm12, %v4831_v59, %v16136_v13  ;;  %v4932_v12 = vsel %vm4927_vm14, %v4899_v14, %v16137_v19  ;;  %v8823_v60 = vunpack.i.l.bf16 %v16138_v28  ;;  %v16139_v27 = vunpack.i.h.bf16 %v16054_v58  ;;  %5292 = vrot.lane.b32.xlu1 %v2799_v7, %s9949_s21  ;;  %v2740_v7 = vld [vmem:[#allocation4 + $0x141] sm:$0xff] }
 0x4b9   : > { %v16140_v35 = vpack.i.bf16 %v12915_v52, %v12931_v8  ;;  %v9535_v47 = vpack.i.bf16 %v2738_v46, %v2737_v25  ;;  %v13143_v14 = vsel %vm5092_vm4, %v12844_v18, %v9343_v32  ;;  %v13147_v5 = vsel %vm5092_vm4, %v12848_v29, %v9344_v50  ;;  %v13157_v18 = vpop.permute.xlu0 %9351  ;;  %v2739_v32 = vld [vmem:[#allocation4 + $0x139] sm:$0xff] }
 0x4ba   : > { %v4933_v59 = vsel %vm4927_vm14, %v4900_v57, %v16139_v27  ;;  %v9329_v23 = vunpack.i.h.bf16 %v9327_v22  ;;  %v9328_v9 = vunpack.i.l.bf16 %v9327_v22  ;;  %v4896_v58 = vsel %vm4894_vm13, %v12692_v1, %v8814_v17  ;;  %v9337_v24 = vpop.permute.xlu1 %9336 }
 0x4bb   : > { %9531 = vrot.lane.b32.xlu0 %v16140_v35, %s9968_s22  ;;  %v16141_v57 = vunpack.i.h.bf16 %v16028_v62  ;;  %v4897_v52 = vsel %vm4894_vm13, %v4864_v37, %v8818_v42  ;;  %v4965_v8 = vsel %vm4960_vm15, %v4932_v12, %v8783_v20  ;;  %v8824_v29 = vunpack.i.h.bf16 %v16138_v28 }
 0x4bc   : > { %v16142_v25 = vunpack.i.l.bf16 %v16035_v36  ;;  %v13165_v1 = vsel %vm5092_vm4, %v12860_v53, %v9328_v9  ;;  %v13169_v62 = vsel %vm5092_vm4, %v12864_v55, %v9329_v23  ;;  %v8828_v42 = vunpack.i.l.bf16 %v16143_v16  ;;  %v16145_v53 = vld [vmem:[#allocation105_spill] sm:$0xff] }
 0x4bd   : > { %v4865_v21 = vsel %vm4861_vm12, %v4832_v33, %v16141_v57  ;;  %v2800_v33 = vld [vmem:[#allocation4 + $0x112] sm:$0xff]  ;;  %v16144_v13 = vunpack.i.h.bf16 %v16121_v49  ;;  %v8839_v19 = vunpack.i.h.bf16 %v16145_v53  ;;  %v8838_v12 = vunpack.i.l.bf16 %v16145_v53  ;;  %v13189_v22 = vpop.permute.xlu0 %9361 }
 0x4be   : > { %v4928_v46 = vsel %vm4927_vm14, %v4895_v41, %v16142_v25  ;;  %v4898_v20 = vsel %vm4894_vm13, %v4865_v21, %v8819_v39  ;;  %v9339_v55 = vunpack.i.h.bf16 %v9337_v24  ;;  %v9338_v50 = vunpack.i.l.bf16 %v9337_v24  ;;  %5294 = vrot.lane.b32.xlu1 %v2800_v33, %s9949_s21  ;;  %v16154_v53 = vld [vmem:[#allocation113_spill] sm:$0xff] }
 0x4bf   : > { %v4961_v17 = vsel %vm4960_vm15, %v4928_v46, %v8823_v60  ;;  %v4966_v37 = vsel %vm4960_vm15, %v4933_v59, %v16144_v13  ;;  %9536 = vrot.lane.b32.xlu0 %v9535_v47, %s9969_s24  ;;  %v16146_v39 = vunpack.i.h.bf16 %v16035_v36  ;;  %v16147_v28 = vunpack.i.l.bf16 %v16052_v51  ;;  %v16148_v60 = vld [vmem:[#allocation106_spill] sm:$0xff] }
 0x4c0   : > { %v8834_v27 = vunpack.i.h.bf16 %v16148_v60  ;;  %v8833_v59 = vunpack.i.l.bf16 %v16148_v60  ;;  %v16149_v47 = vunpack.i.h.bf16 %v16052_v51  ;;  %v13197_v23 = vsel %vm5092_vm4, %v12888_v61, %v9338_v50  ;;  %v9347_v51 = vpop.permute.xlu1 %9346  ;;  %v16159_v60 = vld [vmem:[#allocation83_spill] sm:$0xff] }
 0x4c1   : > { %v4929_v41 = vsel %vm4927_vm14, %v4896_v58, %v16146_v39  ;;  %v4930_v49 = vsel %vm4927_vm14, %v4897_v52, %v16147_v28  ;;  %v13201_v9 = vsel %vm5092_vm4, %v12892_v43, %v9339_v55  ;;  %v2801_v58 = vld [vmem:[#allocation4 + $0x122] sm:$0xff]  ;;  %v8829_v57 = vunpack.i.h.bf16 %v16143_v16 }
 0x4c2   : > { %v4962_v35 = vsel %vm4960_vm15, %v4929_v41, %v8824_v29  ;;  %v4931_v36 = vsel %vm4927_vm14, %v4898_v20, %v16149_v47  ;;  %v4963_v21 = vsel %vm4960_vm15, %v4930_v49, %v8828_v42  ;;  %v16150_v52 = vunpack.i.l.bf16 %v16063_v38  ;;  %v16152_v42 = vld [vmem:[#allocation107_spill] sm:$0xff]  ;;  %5296 = vrot.lane.b32.xlu1 %v2801_v58, %s9949_s21 }
 0x4c3   : > { %v16151_v61 = vpack.i.bf16 %v12967_v48, %v12987_v31  ;;  %v9545_v25 = vpack.i.bf16 %v2740_v7, %v2739_v32  ;;  %v4782_v43 = vsel %vm1002_vm6, %v12912_v45, %v8839_v19  ;;  %v4781_v46 = vsel %vm1002_vm6, %v12907_v3, %v8838_v12  ;;  %v13225_v31 = vpop.permute.xlu0 %9371  ;;  %v16153_v45 = vld [vmem:[#allocation108_spill] sm:$0xff] }
 0x4c4   : > { %v13208_v29 = vsel %vm4993_vm0, %v4961_v17, %v16150_v52  ;;  %v9349_v33 = vunpack.i.h.bf16 %v9347_v51  ;;  %v9348_v20 = vunpack.i.l.bf16 %v9347_v51  ;;  %v4780_v16 = vsel %vm1002_vm6, %v12793_v34, %v8834_v27 }
 0x4c5   : > { %9541 = vrot.lane.b32.xlu0 %v16151_v61, %s9968_s22  ;;  %v4779_v17 = vsel %vm1002_vm6, %v12788_v44, %v8833_v59  ;;  %v8849_v13 = vunpack.i.h.bf16 %v16152_v42  ;;  %v8848_v48 = vunpack.i.l.bf16 %v16152_v42  ;;  %v8843_v24 = vunpack.i.l.bf16 %v16153_v45  ;;  %v2802_v44 = vld [vmem:[#allocation4 + $0x12a] sm:$0xff]  ;;  %v16167_v42 = vld [vmem:[#allocation110_spill] sm:$0xff] }
 0x4c6   : > { %v8878_v3 = vunpack.i.l.bf16 %v16154_v53  ;;  %v13231_v19 = vsel %vm5092_vm4, %v12937_v63, %v9348_v20  ;;  %v13235_v34 = vsel %vm5092_vm4, %v12941_v0, %v9349_v33  ;;  %v8844_v12 = vunpack.i.h.bf16 %v16153_v45  ;;  %v13253_v0 = vpop.permute.xlu1 %9356  ;;  %5298 = vrot.lane.b32.xlu1 %v2802_v44, %s9949_s21  ;;  %v2803_v20 = vld [vmem:[#allocation4 + $0x13a] sm:$0xff]  ;;  %v16170_v44 = vld [vmem:[#allocation148_spill] sm:$0xff] }
 0x4c7   : > { %v16155_v55 = vunpack.i.h.bf16 %v16063_v38  ;;  %v16156_v32 = vunpack.i.l.bf16 %v16066_v54  ;;  %v16157_v63 = vunpack.i.h.bf16 %v16066_v54  ;;  %v4964_v41 = vsel %vm4960_vm15, %v4931_v36, %v8829_v57  ;;  %v2741_v54 = vld [vmem:[#allocation4 + $0x151] sm:$0xff]  ;;  %v16162_v36 = vld [vmem:[#allocation39_spill] sm:$0xff] }
 0x4c8   : > { %v16158_v38 = vunpack.i.l.bf16 %v16007_v11  ;;  %v8879_v49 = vunpack.i.h.bf16 %v16154_v53  ;;  %v16161_v59 = vunpack.i.h.bf16 %v16007_v11  ;;  %v16163_v58 = vunpack.i.l.bf16 %v16162_v36  ;;  %v16168_v53 = vld [vmem:[#allocation155_spill] sm:$0xff] }
 0x4c9   : > { %v13241_v50 = vsel %vm4993_vm0, %v4962_v35, %v16155_v55  ;;  %v13246_v7 = vsel %vm4993_vm0, %v4965_v8, %v16156_v32  ;;  %v13251_v39 = vsel %vm4993_vm0, %v4966_v37, %v16157_v63  ;;  %9546 = vrot.lane.b32.xlu0 %v9545_v25, %s9969_s24  ;;  %v16160_v8 = vunpack.i.l.bf16 %v16159_v60  ;;  %v2742_v37 = vld [vmem:[#allocation4 + $0x159] sm:$0xff]  ;;  %v16165_v25 = vld [vmem:[#allocation61_spill] sm:$0xff] }
 0x4ca   : > { %v4813_v28 = vsel %vm1020_vm8, %v4781_v46, %v16158_v38  ;;  %v4814_v35 = vsel %vm1020_vm8, %v4782_v43, %v16161_v59  ;;  %v4811_v57 = vsel %vm1020_vm8, %v4779_v17, %v16163_v58  ;;  %v16164_v52 = vunpack.i.h.bf16 %v16162_v36  ;;  %v16166_v46 = vld [vmem:[#allocation115_spill] sm:$0xff]  ;;  %v13287_v45 = vpop.permute.xlu1 %9366  ;;  %v16171_v55 = vld [vmem:[#allocation114_spill] sm:$0xff]  ;;  %5300 = vrot.lane.b32.xlu1 %v2803_v20, %s9949_s21 }
 0x4cb   : > { %v13264_v27 = vsel %vm4993_vm0, %v4963_v21, %v16160_v8  ;;  %v4845_v47 = vsel %vm1038_vm10, %v4813_v28, %v8848_v48  ;;  %v13277_v21 = vpop.permute.xlu0 %9381  ;;  %v4846_v61 = vsel %vm1038_vm10, %v4814_v35, %v8849_v13  ;;  %v4843_v11 = vsel %vm1038_vm10, %v4811_v57, %v8843_v24  ;;  %v16173_v8 = vld [vmem:[#allocation50_spill] sm:$0xff]  ;;  %v16179_v57 = vld [vmem:[#allocation57_spill] sm:$0xff] }
 0x4cc   : > { %v4812_v51 = vsel %vm1020_vm8, %v4780_v16, %v16164_v52  ;;  %v4777_v43 = vsel %vm1002_vm6, %v16165_v25, %v8878_v3  ;;  %v8888_v33 = vunpack.i.l.bf16 %v16166_v46  ;;  %v8859_v48 = vunpack.i.h.bf16 %v16167_v42  ;;  %v16175_v35 = vld [vmem:[#allocation58_spill] sm:$0xff] }
 0x4cd   : > { %v4844_v17 = vsel %vm1038_vm10, %v4812_v51, %v8844_v12  ;;  %v8858_v16 = vunpack.i.l.bf16 %v16167_v42  ;;  %v16169_v13 = vpack.i.bf16 %v12969_v10, %v16168_v53  ;;  %v9555_v24 = vpack.i.bf16 %v2742_v37, %v2741_v54 }
 0x4ce   : > { %v4778_v3 = vsel %vm1002_vm6, %v16170_v44, %v8879_v49  ;;  %v8874_v32 = vunpack.i.h.bf16 %v16171_v55  ;;  %v8889_v63 = vunpack.i.h.bf16 %v16166_v46  ;;  %v16172_v12 = vunpack.i.h.bf16 %v16159_v60  ;;  %v16178_v60 = vld [vmem:[#allocation109_spill] sm:$0xff]  ;;  %v2804_v46 = vld [vmem:[#allocation4 + $0x142] sm:$0xff]  ;;  %v13333_v44 = vpop.permute.xlu1 %9376 }
 0x4cf   : > { %9551 = vrot.lane.b32.xlu0 %v16169_v13, %s9968_s22  ;;  %v8873_v28 = vunpack.i.l.bf16 %v16171_v55  ;;  %v16174_v59 = vunpack.i.l.bf16 %v16173_v8  ;;  %v16176_v54 = vunpack.i.l.bf16 %v16175_v35  ;;  %v16177_v49 = vunpack.i.h.bf16 %v16175_v35  ;;  %v16186_v35 = vld [vmem:[#allocation56_spill] sm:$0xff]  ;;  %5302 = vrot.lane.b32.xlu1 %v2804_v46, %s9949_s21 }
 0x4d0   : > { %v13300_v38 = vsel %vm4993_vm0, %v4964_v41, %v16172_v12  ;;  %v13317_v41 = vpop.permute.xlu0 %9391  ;;  %v8854_v58 = vunpack.i.h.bf16 %v16178_v60  ;;  %v16180_v52 = vunpack.i.l.bf16 %v16179_v57  ;;  %v16181_v25 = vunpack.i.h.bf16 %v16179_v57 }
 0x4d1   : > { %v4809_v10 = vsel %vm1020_vm8, %v4777_v43, %v16174_v59  ;;  %v13309_v37 = vsel %vm4861_vm12, %v4845_v47, %v16176_v54  ;;  %v13314_v36 = vsel %vm4861_vm12, %v4846_v61, %v16177_v49  ;;  %v8853_v61 = vunpack.i.l.bf16 %v16178_v60  ;;  %v16188_v49 = vld [vmem:[#allocation116_spill] sm:$0xff] }
 0x4d2   : > { %v4876_v51 = vsel %vm4861_vm12, %v4843_v11, %v16180_v52  ;;  %v4877_v47 = vsel %vm4861_vm12, %v4844_v17, %v16181_v25  ;;  %v4841_v43 = vsel %vm1038_vm10, %v4809_v10, %v8888_v33  ;;  %v16182_v53 = vunpack.i.h.bf16 %v16173_v8  ;;  %v16183_v11 = vld [vmem:[#allocation111_spill] sm:$0xff]  ;;  %v16184_v33 = vld [vmem:[#allocation152_spill] sm:$0xff]  ;;  %v2744_v10 = vld [vmem:[#allocation4 + $0x171] sm:$0xff] }
 0x4d3   : > { %v4909_v42 = vsel %vm4894_vm13, %v4876_v51, %v8858_v16  ;;  %v4910_v20 = vsel %vm4894_vm13, %v4877_v47, %v8859_v48  ;;  %9556 = vrot.lane.b32.xlu0 %v9555_v24, %s9969_s24  ;;  %v8863_v17 = vunpack.i.l.bf16 %v16183_v11  ;;  %v4776_v12 = vsel %vm1002_vm6, %v16184_v33, %v8874_v32  ;;  %v2743_v16 = vld [vmem:[#allocation4 + $0x169] sm:$0xff]  ;;  %v16185_v48 = vld [vmem:[#allocation34_spill] sm:$0xff] }
 0x4d4   : > { %v4810_v13 = vsel %vm1020_vm8, %v4778_v3, %v16182_v53  ;;  %v4775_v8 = vsel %vm1002_vm6, %v16185_v48, %v8873_v28  ;;  %v16187_v3 = vunpack.i.l.bf16 %v16186_v35  ;;  %v8884_v24 = vunpack.i.h.bf16 %v16188_v49  ;;  %v13349_v57 = vpop.permute.xlu0 %9401  ;;  %v16190_v32 = vld [vmem:[#allocation112_spill] sm:$0xff]  ;;  %v2805_v53 = vld [vmem:[#allocation4 + $0x152] sm:$0xff]  ;;  %v13363_v48 = vpop.permute.xlu1 %9386 }
 0x4d5   : > { %v4842_v59 = vsel %vm1038_vm10, %v4810_v13, %v8889_v63  ;;  %v8883_v60 = vunpack.i.l.bf16 %v16188_v49  ;;  %16189 = vst [vmem:[#allocation36_spill] sm:$0xff] %v13349_v57  ;;  %v8869_v52 = vunpack.i.h.bf16 %v16190_v32  ;;  %v16191_v63 = vld [vmem:[#allocation71_spill] sm:$0xff]  ;;  %v8868_v13 = vunpack.i.l.bf16 %v16190_v32  ;;  %5304 = vrot.lane.b32.xlu1 %v2805_v53, %s9949_s21 }
 0x4d6   : > { %v4874_v54 = vsel %vm4861_vm12, %v4841_v43, %v16187_v3  ;;  %v16192_v51 = vunpack.i.l.bf16 %v16191_v63  ;;  %v16193_v28 = vunpack.i.h.bf16 %v16191_v63  ;;  %v9404_v43 = vunpack.i.h.bf16 %v13349_v57  ;;  %v16195_v3 = vld [vmem:[#allocation158_spill] sm:$0xff]  ;;  %v16196_v49 = vld [vmem:[#allocation159_spill] sm:$0xff]  ;;  %v16236_v57 = vld [vmem:[#allocation144_spill] sm:$0xff] }
 0x4d7   : > { %v16194_v33 = vunpack.i.h.bf16 %v16186_v35  ;;  %v9565_v63 = vpack.i.bf16 %v2744_v10, %v2743_v16 }
 0x4d8   : > { %v4942_v25 = vsel %vm4927_vm14, %v4909_v42, %v16192_v51  ;;  %v4943_v47 = vsel %vm4927_vm14, %v4910_v20, %v16193_v28  ;;  %v16197_v42 = vpack.i.bf16 %v16195_v3, %v16196_v49  ;;  %v4907_v20 = vsel %vm4894_vm13, %v4874_v54, %v8853_v61  ;;  %v16198_v51 = vld [vmem:[#allocation38_spill] sm:$0xff]  ;;  %v16202_v49 = vld [vmem:[#allocation117_spill] sm:$0xff]  ;;  %v9412_v10 = vpop.permute.xlu0 %9411 }
 0x4d9   : > { %v4875_v46 = vsel %vm4861_vm12, %v4842_v59, %v16194_v33  ;;  %v16199_v28 = vunpack.i.l.bf16 %v16198_v51  ;;  %v16200_v32 = vunpack.i.h.bf16 %v16198_v51  ;;  %v13378_v59 = vsel %vm5125_vm5, %v13081_v56, %v9404_v43  ;;  %v16203_v54 = vld [vmem:[#allocation118_spill] sm:$0xff] }
 0x4da   : > { %9561 = vrot.lane.b32.xlu0 %v16197_v42, %s9968_s22  ;;  %16201 = vst [vmem:[#allocation42_spill] sm:$0xff] %v13378_v59  ;;  %v8894_v16 = vunpack.i.h.bf16 %v16202_v49  ;;  %v8893_v61 = vunpack.i.l.bf16 %v16202_v49  ;;  %v8898_v42 = vunpack.i.l.bf16 %v16203_v54  ;;  %v9413_v51 = vunpack.i.l.bf16 %v9412_v10  ;;  %v16224_v59 = vld [vmem:[#allocation157_spill] sm:$0xff] }
 0x4db   : > { %v4807_v55 = vsel %vm1020_vm8, %v4775_v8, %v16199_v28  ;;  %v4808_v35 = vsel %vm1020_vm8, %v4776_v12, %v16200_v32  ;;  %v4908_v8 = vsel %vm4894_vm13, %v4875_v46, %v8854_v58  ;;  %v9414_v12 = vunpack.i.h.bf16 %v9412_v10  ;;  %v2806_v28 = vld [vmem:[#allocation4 + $0x15a] sm:$0xff]  ;;  %v13397_v32 = vpop.permute.xlu1 %9396  ;;  %v16212_v10 = vld [vmem:[#allocation28_spill] sm:$0xff] }
 0x4dc   : > { %v4839_v33 = vsel %vm1038_vm10, %v4807_v55, %v8883_v60  ;;  %v4840_v3 = vsel %vm1038_vm10, %v4808_v35, %v8884_v24  ;;  %v13388_v56 = vsel %vm4960_vm15, %v4942_v25, %v8868_v13  ;;  %v13391_v55 = vsel %vm4960_vm15, %v4943_v47, %v8869_v52  ;;  %v16204_v60 = vld [vmem:[#allocation70_spill] sm:$0xff]  ;;  %16206 = vst [vmem:[#allocation44_spill] sm:$0xff] %v13397_v32  ;;  %v16207_v58 = vld [vmem:[#allocation55_spill] sm:$0xff]  ;;  %v2746_v47 = vld [vmem:[#allocation4 + $0x189] sm:$0xff] }
 0x4dd   : > { %v8899_v24 = vunpack.i.h.bf16 %v16203_v54  ;;  %v16205_v43 = vunpack.i.l.bf16 %v16204_v60  ;;  %v16208_v46 = vunpack.i.l.bf16 %v16207_v58  ;;  %v16209_v25 = vunpack.i.h.bf16 %v16207_v58  ;;  %v2745_v52 = vld [vmem:[#allocation4 + $0x181] sm:$0xff]  ;;  %5306 = vrot.lane.b32.xlu1 %v2806_v28, %s9949_s21  ;;  %v2756_v32 = vld [vmem:[#allocation3 + $0x82] sm:$0xff] }
 0x4de   : > { %9566 = vrot.lane.b32.xlu0 %v9565_v63, %s9969_s24  ;;  %v13408_v49 = vsel %vm5125_vm5, %v13114_v4, %v9413_v51  ;;  %v4904_v63 = vsel %vm4894_vm13, %v16212_v10, %v8894_v16  ;;  %v16213_v54 = vld [vmem:[#allocation32_spill] sm:$0xff]  ;;  %v9422_v4 = vpop.permute.xlu0 %9421  ;;  %v16216_v10 = vld [vmem:[#allocation119_spill] sm:$0xff] }
 0x4df   : > { %v4940_v53 = vsel %vm4927_vm14, %v4907_v20, %v16205_v43  ;;  %v4872_v35 = vsel %vm4861_vm12, %v4839_v33, %v16208_v46  ;;  %v4873_v13 = vsel %vm4861_vm12, %v4840_v3, %v16209_v25  ;;  %16210 = vst [vmem:[#allocation47_spill] sm:$0xff] %v13408_v49  ;;  %v13412_v20 = vsel %vm5125_vm5, %v13118_v6, %v9414_v12  ;;  %v16214_v43 = vld [vmem:[#allocation124_spill] sm:$0xff] }
 0x4e0   : > { %16211 = vst [vmem:[#allocation52_spill] sm:$0xff] %v13412_v20  ;;  %v4903_v33 = vsel %vm4894_vm13, %v16213_v54, %v8893_v61  ;;  %v8958_v58 = vunpack.i.l.bf16 %v16214_v43  ;;  %v16215_v3 = vunpack.i.h.bf16 %v16204_v60  ;;  %v4905_v51 = vsel %vm4894_vm13, %v4872_v35, %v8898_v42  ;;  %v2807_v25 = vld [vmem:[#allocation4 + $0x16a] sm:$0xff]  ;;  %v9407_v43 = vpop.permute.xlu1 %9406 }
 0x4e1   : > { %v13427_v6 = vsel %vm4960_vm15, %v4940_v53, %v8863_v17  ;;  %v9424_v12 = vunpack.i.h.bf16 %v9422_v4  ;;  %v9423_v16 = vunpack.i.l.bf16 %v9422_v4  ;;  %v4906_v61 = vsel %vm4894_vm13, %v4873_v13, %v8899_v24  ;;  %v2715_v17 = vld [vmem:[#allocation3 + $0x199] sm:$0xff]  ;;  %v2716_v53 = vld [vmem:[#allocation3 + $0x1a1] sm:$0xff]  ;;  %5308 = vrot.lane.b32.xlu1 %v2807_v25, %s9949_s21 }
 0x4e2   : > { %v13422_v46 = vsel %vm4927_vm14, %v4908_v8, %v16215_v3  ;;  %v8904_v54 = vunpack.i.h.bf16 %v16216_v10  ;;  %v8903_v60 = vunpack.i.l.bf16 %v16216_v10  ;;  %v16217_v8 = vld [vmem:[#allocation79_spill] sm:$0xff]  ;;  %v16218_v3 = vld [vmem:[#allocation81_spill] sm:$0xff]  ;;  %v9575_v20 = vpack.i.bf16 %v2746_v47, %v2745_v52  ;;  %v16222_v13 = vld [vmem:[#allocation68_spill] sm:$0xff] }
 0x4e3   : > { %v16219_v28 = vpack.i.bf16 %v16217_v8, %v16218_v3  ;;  %v9409_v42 = vunpack.i.h.bf16 %v9407_v43  ;;  %v9408_v35 = vunpack.i.l.bf16 %v9407_v43  ;;  %v13438_v4 = vsel %vm5125_vm5, %v13143_v14, %v9423_v16  ;;  %v16225_v52 = vld [vmem:[#allocation125_spill] sm:$0xff]  ;;  %v13452_v3 = vpop.permute.xlu0 %9431 }
 0x4e4   : > { %16220 = vst [vmem:[#allocation54_spill] sm:$0xff] %v13438_v4  ;;  %v13442_v24 = vsel %vm5125_vm5, %v13147_v5, %v9424_v12  ;;  %v16223_v10 = vunpack.i.l.bf16 %v16222_v13  ;;  %v4785_v8 = vsel %vm1002_vm6, %v16224_v59, %v8958_v58  ;;  %v8954_v47 = vunpack.i.h.bf16 %v16225_v52  ;;  %v16227_v12 = vld [vmem:[#allocation126_spill] sm:$0xff]  ;;  %v16230_v58 = vld [vmem:[#allocation120_spill] sm:$0xff] }
 0x4e5   : > { %9571 = vrot.lane.b32.xlu0 %v16219_v28, %s9968_s22  ;;  %16221 = vst [vmem:[#allocation51_spill] sm:$0xff] %v13442_v24  ;;  %v8953_v43 = vunpack.i.l.bf16 %v16225_v52  ;;  %v16226_v14 = vunpack.i.h.bf16 %v16222_v13  ;;  %v8968_v16 = vunpack.i.l.bf16 %v16227_v12  ;;  %v2808_v28 = vld [vmem:[#allocation4 + $0x172] sm:$0xff]  ;;  %v13464_v59 = vsel %vm5125_vm5, %v13169_v62, %v9409_v42 }
 0x4e6   : > { %v4936_v49 = vsel %vm4927_vm14, %v4903_v33, %v16223_v10  ;;  %v13460_v33 = vsel %vm5125_vm5, %v13165_v1, %v9408_v35  ;;  %16229 = vst [vmem:[#allocation64_spill] sm:$0xff] %v13464_v59  ;;  %v8909_v10 = vunpack.i.h.bf16 %v16230_v58  ;;  %v8908_v25 = vunpack.i.l.bf16 %v16230_v58  ;;  %v16231_v52 = vld [vmem:[#allocation69_spill] sm:$0xff]  ;;  %v2748_v58 = vld [vmem:[#allocation4 + $0x1a1] sm:$0xff]  ;;  %5310 = vrot.lane.b32.xlu1 %v2808_v28, %s9949_s21 }
 0x4e7   : > { %v4937_v5 = vsel %vm4927_vm14, %v4904_v63, %v16226_v14  ;;  %16228 = vst [vmem:[#allocation53_spill] sm:$0xff] %v13460_v33  ;;  %v16232_v24 = vunpack.i.l.bf16 %v16231_v52  ;;  %v9417_v63 = vpop.permute.xlu1 %9416  ;;  %v9580_v14 = vpack.i.bf16 %v2716_v53, %v2715_v17  ;;  %v16233_v12 = vunpack.i.h.bf16 %v16231_v52  ;;  %v16234_v35 = vld [vmem:[#allocation33_spill] sm:$0xff]  ;;  %v2747_v33 = vld [vmem:[#allocation4 + $0x199] sm:$0xff]  ;;  %v2809_v52 = vld [vmem:[#allocation4 + $0x182] sm:$0xff] }
 0x4e8   : > { %v16235_v4 = vunpack.i.l.bf16 %v16234_v35  ;;  %v9419_v42 = vunpack.i.h.bf16 %v9417_v63  ;;  %v9418_v59 = vunpack.i.l.bf16 %v9417_v63  ;;  %v4784_v30 = vsel %vm1002_vm6, %v16236_v57, %v8954_v47 }
 0x4e9   : > { %v4938_v13 = vsel %vm4927_vm14, %v4905_v51, %v16232_v24  ;;  %9576 = vrot.lane.b32.xlu0 %v9575_v20, %s9969_s24  ;;  %v4939_v1 = vsel %vm4927_vm14, %v4906_v61, %v16233_v12  ;;  %v16237_v51 = vld [vmem:[#allocation135_spill] sm:$0xff]  ;;  %v13485_v61 = vpop.permute.xlu0 %9441  ;;  %v4970_v47 = vsel %vm4960_vm15, %v4937_v5, %v8904_v54 }
 0x4ea   : > { %v4817_v62 = vsel %vm1020_vm8, %v4785_v8, %v16235_v4  ;;  %v4783_v24 = vsel %vm1002_vm6, %v16237_v51, %v8953_v43  ;;  %v16238_v20 = vld [vmem:[#allocation127_spill] sm:$0xff]  ;;  %v4969_v4 = vsel %vm4960_vm15, %v4936_v49, %v8903_v60  ;;  %v13491_v63 = vsel %vm5125_vm5, %v13197_v23, %v9418_v59  ;;  %v16241_v60 = vld [vmem:[#allocation40_spill] sm:$0xff]  ;;  %5312 = vrot.lane.b32.xlu1 %v2809_v52, %s9949_s21 }
 0x4eb   : > { %v8964_v17 = vunpack.i.h.bf16 %v16238_v20  ;;  %v8963_v53 = vunpack.i.l.bf16 %v16238_v20  ;;  %v4849_v8 = vsel %vm1038_vm10, %v4817_v62, %v8968_v16  ;;  %16239 = vst [vmem:[#allocation65_spill] sm:$0xff] %v13491_v63  ;;  %v13495_v57 = vsel %vm5125_vm5, %v13201_v9, %v9419_v42  ;;  %v9427_v12 = vpop.permute.xlu1 %9426  ;;  %v16244_v42 = vld [vmem:[#allocation60_spill] sm:$0xff] }
 0x4ec   : > { %16240 = vst [vmem:[#allocation67_spill] sm:$0xff] %v13495_v57  ;;  %v4971_v43 = vsel %vm4960_vm15, %v4938_v13, %v8908_v25  ;;  %v4972_v28 = vsel %vm4960_vm15, %v4939_v1, %v8909_v10  ;;  %v9585_v49 = vpack.i.bf16 %v2748_v58, %v2747_v33  ;;  %v16242_v16 = vunpack.i.l.bf16 %v16241_v60  ;;  %v16246_v13 = vld [vmem:[#allocation128_spill] sm:$0xff]  ;;  %v16247_v58 = vld [vmem:[#allocation129_spill] sm:$0xff] }
 0x4ed   : > { %9581 = vrot.lane.b32.xlu0 %v9580_v14, %s9968_s22  ;;  %v16243_v23 = vunpack.i.h.bf16 %v16241_v60  ;;  %v9429_v9 = vunpack.i.h.bf16 %v9427_v12  ;;  %v9428_v62 = vunpack.i.l.bf16 %v9427_v12  ;;  %v16245_v54 = vunpack.i.l.bf16 %v16244_v42  ;;  %v13514_v14 = vpop.permute.xlu0 %9451  ;;  %v2810_v51 = vld [vmem:[#allocation4 + $0x18a] sm:$0xff]  ;;  %v16252_v60 = vld [vmem:[#allocation87_spill] sm:$0xff] }
 0x4ee   : > { %v4815_v35 = vsel %vm1020_vm8, %v4783_v24, %v16242_v16  ;;  %v8973_v33 = vunpack.i.l.bf16 %v16246_v13  ;;  %v8974_v1 = vunpack.i.h.bf16 %v16246_v13  ;;  %v16251_v52 = vunpack.i.h.bf16 %v16183_v11  ;;  %v16256_v11 = vld [vmem:[#allocation88_spill] sm:$0xff]  ;;  %v16259_v13 = vld [vmem:[#allocation59_spill] sm:$0xff]  ;;  %5314 = vrot.lane.b32.xlu1 %v2810_v51, %s9949_s21 }
 0x4ef   : > { %v4816_v59 = vsel %vm1020_vm8, %v4784_v30, %v16243_v23  ;;  %v4882_v5 = vsel %vm4861_vm12, %v4849_v8, %v16245_v54  ;;  %v4847_v10 = vsel %vm1038_vm10, %v4815_v35, %v8963_v53  ;;  %v8978_v30 = vunpack.i.l.bf16 %v16247_v58 }
 0x4f0   : > { %v4848_v25 = vsel %vm1038_vm10, %v4816_v59, %v8964_v17  ;;  %v13520_v24 = vsel %vm5125_vm5, %v13231_v19, %v9428_v62  ;;  %v13524_v20 = vsel %vm5125_vm5, %v13235_v34, %v9429_v9  ;;  %v16250_v17 = vld [vmem:[#allocation121_spill] sm:$0xff]  ;;  %v8979_v8 = vunpack.i.h.bf16 %v16247_v58  ;;  %v13537_v19 = vpop.permute.xlu1 %9436  ;;  %v16286_v34 = vld [vmem:[#allocation123_spill] sm:$0xff] }
 0x4f1   : > { %16248 = vst [vmem:[#allocation66_spill] sm:$0xff] %v13520_v24  ;;  %16249 = vst [vmem:[#allocation82_spill] sm:$0xff] %v13524_v20  ;;  %v8933_v53 = vunpack.i.l.bf16 %v16250_v17  ;;  %v4974_v12 = vsel %vm4960_vm15, %v13422_v46, %v16251_v52  ;;  %v16253_v16 = vunpack.i.l.bf16 %v16252_v60  ;;  %9586 = vrot.lane.b32.xlu0 %v9585_v49, %s9969_s24  ;;  %v16255_v59 = vunpack.i.h.bf16 %v16252_v60  ;;  %v16274_v24 = vld [vmem:[#allocation156_spill] sm:$0xff] }
 0x4f2   : > { %v16257_v62 = vunpack.i.l.bf16 %v16256_v11  ;;  %v16258_v42 = vunpack.i.h.bf16 %v16256_v11  ;;  %v4911_v49 = vsel %vm4894_vm13, %v13309_v37, %v8973_v33  ;;  %v16260_v58 = vunpack.i.l.bf16 %v16259_v13  ;;  %v2811_v33 = vld [vmem:[#allocation4 + $0x19a] sm:$0xff] }
 0x4f3   : > { %v13535_v35 = vsel %vm4993_vm0, %v4969_v4, %v16253_v16  ;;  %v13544_v9 = vsel %vm4993_vm0, %v4970_v47, %v16255_v59  ;;  %v4915_v54 = vsel %vm4894_vm13, %v4882_v5, %v8933_v53  ;;  %v16261_v17 = vunpack.i.h.bf16 %v16259_v13  ;;  %v16262_v53 = vld [vmem:[#allocation130_spill] sm:$0xff]  ;;  %v16263_v16 = vld [vmem:[#allocation131_spill] sm:$0xff]  ;;  %5316 = vrot.lane.b32.xlu1 %v2811_v33, %s9949_s21 }
 0x4f4   : > { %v13549_v46 = vsel %vm4993_vm0, %v4971_v43, %v16257_v62  ;;  %v13554_v4 = vsel %vm4993_vm0, %v4972_v28, %v16258_v42  ;;  %v4880_v47 = vsel %vm4861_vm12, %v4847_v10, %v16260_v58  ;;  %v13566_v43 = vpop.permute.xlu0 %9461  ;;  %v4912_v28 = vsel %vm4894_vm13, %v13314_v36, %v8974_v1  ;;  %v16264_v11 = vld [vmem:[#allocation143_spill] sm:$0xff]  ;;  %v13577_v62 = vpop.permute.xlu1 %9446  ;;  %v16265_v42 = vld [vmem:[#allocation74_spill] sm:$0xff] }
 0x4f5   : > { %v4881_v52 = vsel %vm4861_vm12, %v4848_v25, %v16261_v17  ;;  %v4913_v5 = vsel %vm4894_vm13, %v4880_v47, %v8978_v30  ;;  %v8984_v60 = vunpack.i.h.bf16 %v16262_v53  ;;  %v8983_v37 = vunpack.i.l.bf16 %v16262_v53  ;;  %v16267_v1 = vld [vmem:[#allocation146_spill] sm:$0xff]  ;;  %v16268_v47 = vld [vmem:[#allocation76_spill] sm:$0xff] }
 0x4f6   : > { %v4914_v10 = vsel %vm4894_vm13, %v4881_v52, %v8979_v8  ;;  %v8988_v59 = vunpack.i.l.bf16 %v16263_v16  ;;  %v9059_v25 = vunpack.i.h.bf16 %v16264_v11  ;;  %v9058_v51 = vunpack.i.l.bf16 %v16264_v11  ;;  %v16272_v11 = vld [vmem:[#allocation75_spill] sm:$0xff] }
 0x4f7   : > { %v16266_v13 = vunpack.i.l.bf16 %v16265_v42  ;;  %v9074_v30 = vunpack.i.h.bf16 %v16267_v1  ;;  %v9073_v58 = vunpack.i.l.bf16 %v16267_v1  ;;  %v16269_v17 = vunpack.i.l.bf16 %v16268_v47 }
 0x4f8   : > { %v16271_v52 = vunpack.i.h.bf16 %v16265_v42  ;;  %v16273_v23 = vunpack.i.l.bf16 %v16272_v11  ;;  %v9069_v57 = vunpack.i.h.bf16 %v16274_v24  ;;  %v5007_v33 = vsel %vm4993_vm0, %v4974_v12, %v9059_v25 }
 0x4f9   : > { %v4944_v36 = vsel %vm4927_vm14, %v4911_v49, %v16266_v13  ;;  %v13587_v8 = vsel %vm4927_vm14, %v4915_v54, %v16269_v17  ;;  %v9068_v49 = vunpack.i.l.bf16 %v16274_v24  ;;  %v13598_v13 = vpop.permute.xlu0 %9471  ;;  %v5006_v24 = vsel %vm4993_vm0, %v13427_v6, %v9058_v51  ;;  %v16277_v17 = vld [vmem:[#allocation160_spill] sm:$0xff] }
 0x4fa   : > { %16270 = vst [vmem:[#allocation85_spill] sm:$0xff] %v13587_v8  ;;  %v4945_v53 = vsel %vm4927_vm14, %v4912_v28, %v16271_v52  ;;  %v4946_v20 = vsel %vm4927_vm14, %v4913_v5, %v16273_v23  ;;  %v4977_v1 = vsel %vm4960_vm15, %v4944_v36, %v8983_v37  ;;  %v16275_v28 = vunpack.i.h.bf16 %v16272_v11  ;;  %v2812_v23 = vld [vmem:[#allocation4 + $0x1a2] sm:$0xff]  ;;  %v13613_v37 = vpop.permute.xlu1 %9456 }
 0x4fb   : > { %v4978_v54 = vsel %vm4960_vm15, %v4945_v53, %v8984_v60  ;;  %v4979_v5 = vsel %vm4960_vm15, %v4946_v20, %v8988_v59  ;;  %v9078_v52 = vunpack.i.l.bf16 %v16277_v17  ;;  %v5010_v60 = vsel %vm4993_vm0, %v4977_v1, %v9073_v58  ;;  %v16278_v53 = vld [vmem:[#allocation161_spill] sm:$0xff]  ;;  %v16279_v59 = vld [vmem:[#allocation162_spill] sm:$0xff]  ;;  %5318 = vrot.lane.b32.xlu1 %v2812_v23, %s9949_s21  ;;  %v16280_v58 = vld [vmem:[#allocation163_spill] sm:$0xff] }
 0x4fc   : > { %v13606_v47 = vsel %vm4927_vm14, %v4914_v10, %v16275_v28  ;;  %v13617_v36 = vsel %vm4993_vm0, %v4978_v54, %v9074_v30  ;;  %v9114_v10 = vunpack.i.h.bf16 %v16278_v53  ;;  %v9113_v11 = vunpack.i.l.bf16 %v16278_v53  ;;  %v2755_v30 = vld [vmem:[#allocation3 + $0x7a] sm:$0xff]  ;;  %v16281_v28 = vld [vmem:[#allocation134_spill] sm:$0xff] }
 0x4fd   : > { %16276 = vst [vmem:[#allocation84_spill] sm:$0xff] %v13606_v47  ;;  %v13623_v20 = vsel %vm4993_vm0, %v13388_v56, %v9068_v49  ;;  %v13627_v6 = vsel %vm4993_vm0, %v13391_v55, %v9069_v57  ;;  %v9124_v25 = vunpack.i.h.bf16 %v16279_v59  ;;  %v5269_v51 = vpop.permute.xlu0 %5268  ;;  %v9134_v1 = vunpack.i.h.bf16 %v16280_v58  ;;  %v16283_v57 = vld [vmem:[#allocation62_spill] sm:$0xff] }
 0x4fe   : > { %v9133_v54 = vunpack.i.l.bf16 %v16280_v58  ;;  %v9118_v53 = vunpack.i.l.bf16 %v16281_v28  ;;  %v5358_v56 = vsel %vm467_vm2, %v2755_v30, %v5269_v51  ;;  %v13637_v49 = vsel %vm4993_vm0, %v4979_v5, %v9078_v52  ;;  %v13642_v23 = vpop.permute.xlu1 %9466  ;;  %v16284_v51 = vld [vmem:[#allocation132_spill] sm:$0xff] }
 0x4ff   : > { %16282 = vst [vmem:[#allocation89_spill] sm:$0xff] %v13637_v49  ;;  %v9119_v55 = vunpack.i.h.bf16 %v16281_v28  ;;  %v9144_v12 = vunpack.i.h.bf16 %v16283_v57  ;;  %v9143_v42 = vunpack.i.l.bf16 %v16283_v57  ;;  %7974 = vmatprep.mubr.msk.f32.mxu1 %vm1002_vm6, %v5358_v56  ;;  %v5027_v58 = vsel %vm5026_vm1, %v13208_v29, %v9113_v11  ;;  %v16285_v57 = vld [vmem:[#allocation145_spill] sm:$0xff] }
 0x500   : > { %v5028_v63 = vsel %vm5026_vm1, %v13241_v50, %v9114_v10  ;;  %v9129_v30 = vunpack.i.h.bf16 %v16284_v51  ;;  %v9128_v5 = vunpack.i.l.bf16 %v16284_v51  ;;  %v13653_v52 = vsel %vm5026_vm1, %v13251_v39, %v9124_v25  ;;  %v16287_v39 = vld [vmem:[#allocation147_spill] sm:$0xff] }
 0x501   : > { %v9153_v8 = vunpack.i.l.bf16 %v16285_v57  ;;  %v9138_v56 = vunpack.i.l.bf16 %v16286_v34  ;;  %v5271_v17 = vpop.permute.xlu0 %5270  ;;  %v5035_v29 = vsel %vm5026_vm1, %v13535_v35, %v9133_v54  ;;  %v13662_v50 = vsel %vm5026_vm1, %v13544_v9, %v9134_v1  ;;  %v16288_v35 = vld [vmem:[#allocation35_spill] sm:$0xff] }
 0x502   : > { %v13666_v10 = vsel %vm5026_vm1, %v13264_v27, %v9118_v53  ;;  %v9208_v11 = vunpack.i.l.bf16 %v16287_v39  ;;  %v13671_v25 = vsel %vm5026_vm1, %v13300_v38, %v9119_v55  ;;  %v13674_v51 = vsel %vm5026_vm1, %v5006_v24, %v9143_v42  ;;  %v13680_v9 = vpop.permute.xlu1 %9476 }
 0x503   : > { %v13677_v28 = vsel %vm5026_vm1, %v5007_v33, %v9144_v12  ;;  %v9288_v54 = vunpack.i.l.bf16 %v16288_v35  ;;  %16289 = vst [vmem:[#allocation90_spill] sm:$0xff] %v13680_v9  ;;  %v5034_v27 = vsel %vm5026_vm1, %v13103_v26, %v9129_v30  ;;  %v5033_v1 = vsel %vm5026_vm1, %v13098_v15, %v9128_v5  ;;  %v16290_v26 = vld [vmem:[#allocation41_spill] sm:$0xff] }
 0x504   : > { %v9368_v38 = vunpack.i.l.bf16 %v13287_v45  ;;  %v13689_v42 = vsel %vm5026_vm1, %v5010_v60, %v9153_v8  ;;  %v9139_v24 = vunpack.i.h.bf16 %v16286_v34  ;;  %v13694_v33 = vsel %vm5026_vm1, %v13549_v46, %v9138_v56  ;;  %v16291_v8 = vld [vmem:[#allocation138_spill] sm:$0xff] }
 0x505   : > { %v9448_v12 = vunpack.i.l.bf16 %v13577_v62  ;;  %v13697_v55 = vpop.permute.xlu0 %9486  ;;  %v9149_v30 = vunpack.i.h.bf16 %v16290_v26  ;;  %v9148_v15 = vunpack.i.l.bf16 %v16290_v26  ;;  %v9209_v5 = vunpack.i.h.bf16 %v16287_v39 }
 0x506   : > { %v5066_v53 = vsel %vm5059_vm3, %v5033_v1, %v9208_v11  ;;  %v9193_v60 = vunpack.i.l.bf16 %v16291_v8  ;;  %v9289_v34 = vunpack.i.h.bf16 %v16288_v35  ;;  %v9482_v46 = vpop.permute.xlu1 %9481  ;;  %v9369_v56 = vunpack.i.h.bf16 %v13287_v45 }
 0x507   : > { %v5099_v47 = vsel %vm5092_vm4, %v5066_v53, %v9288_v54  ;;  %v9483_v16 = vunpack.i.l.bf16 %v9482_v46  ;;  %v13710_v26 = vsel %vm5026_vm1, %v13554_v4, %v9139_v24  ;;  %v9194_v39 = vunpack.i.h.bf16 %v16291_v8  ;;  %v16292_v54 = vld [vmem:[#allocation133_spill] sm:$0xff] }
 0x508   : > { %v5132_v9 = vsel %vm5125_vm5, %v5099_v47, %v9368_v38  ;;  %v9449_v11 = vunpack.i.h.bf16 %v13577_v62  ;;  %v9213_v53 = vunpack.i.l.bf16 %v16292_v54  ;;  %v5067_v45 = vsel %vm5059_vm3, %v5034_v27, %v9209_v5  ;;  %v16293_v38 = vld [vmem:[#allocation72_spill] sm:$0xff] }
 0x509   : > { %v13714_v1 = vpop.permute.xlu0 %5276  ;;  %v5165_v35 = vsel %vm5158_vm9, %v5132_v9, %v9448_v12  ;;  %v9484_v2 = vunpack.i.h.bf16 %v9482_v46  ;;  %v13722_v4 = vsel %vm5026_vm1, %v13623_v20, %v9148_v15  ;;  %v9293_v24 = vunpack.i.l.bf16 %v16293_v38 }
 0x50a   : > { %v5198_v47 = vsel %vm5191_vm7, %v5165_v35, %v9483_v16  ;;  %v5100_v62 = vsel %vm5092_vm4, %v5067_v45, %v9289_v34  ;;  %v5359_v8 = vsel %vm467_vm2, %v2756_v32, %v5271_v17  ;;  %v5273_v49 = vpop.permute.xlu1 %5272  ;;  %v13729_v9 = vsel %vm5026_vm1, %v13627_v6, %v9149_v30  ;;  %v16294_v30 = vld [vmem:[#allocation63_spill] sm:$0xff] }
 0x50b   : > { %5600 = vmatmul.mubr.f32.vlgmr.msra.gmra.mrb[0].mxu1 %v5198_v47  ;;  %v13732_v27 = vsel %vm5059_vm3, %v5027_v58, %v9193_v60  ;;  %v9373_v16 = vunpack.i.l.bf16 %v13225_v31  ;;  %v5133_v20 = vsel %vm5125_vm5, %v5100_v62, %v9369_v56  ;;  %v13738_v12 = vsel %vm5059_vm3, %v5028_v63, %v9194_v39  ;;  %v2757_v34 = vld [vmem:[#allocation3 + $0x92] sm:$0xff] }
 0x50c   : > { %7975 = vmatprep.mubr.msk.f32.mxu1 %vm1002_vm6, %v5359_v8  ;;  %v9214_v32 = vunpack.i.h.bf16 %v16292_v54  ;;  %v9453_v17 = vunpack.i.l.bf16 %v13514_v14  ;;  %v5166_v6 = vsel %vm5158_vm9, %v5133_v20, %v9449_v11  ;;  %v5068_v58 = vsel %vm5059_vm3, %v5035_v29, %v9213_v53  ;;  %v16295_v11 = vld [vmem:[#allocation80_spill] sm:$0xff]  ;;  %v16296_v29 = vld [vmem:[#allocation86_spill] sm:$0xff] }
 0x50d   : > { %v13742_v15 = vpop.permute.xlu0 %5278  ;;  %v9198_v5 = vunpack.i.l.bf16 %v16294_v30  ;;  %v9488_v60 = vunpack.i.l.bf16 %v13697_v55  ;;  %v5199_v46 = vsel %vm5191_vm7, %v5166_v6, %v9484_v2  ;;  %v9199_v63 = vunpack.i.h.bf16 %v16294_v30 }
 0x50e   : > { %v9294_v56 = vunpack.i.h.bf16 %v16293_v38  ;;  %v5101_v39 = vsel %vm5092_vm4, %v5068_v58, %v9293_v24  ;;  %v5360_v35 = vsel %vm467_vm2, %v2757_v34, %v5273_v49  ;;  %v5275_v54 = vpop.permute.xlu1 %5274  ;;  %v9203_v45 = vunpack.i.l.bf16 %v16295_v11 }
 0x50f   : > { %5605 = vmatmul.mubr.f32.gmra.mrb[2].mxu1 %v5199_v46  ;;  %v9223_v53 = vunpack.i.l.bf16 %v16296_v29  ;;  %v9374_v47 = vunpack.i.h.bf16 %v13225_v31  ;;  %v5134_v2 = vsel %vm5125_vm5, %v5101_v39, %v9373_v16  ;;  %v5069_v62 = vsel %vm5059_vm3, %v13662_v50, %v9214_v32  ;;  %v16297_v31 = vld [vmem:[#allocation142_spill] sm:$0xff]  ;;  %v2758_v16 = vld [vmem:[#allocation3 + $0x9a] sm:$0xff] }
 0x510   : > { %7976 = vmatprep.mubr.msk.f32.mxu1 %vm1002_vm6, %v5360_v35  ;;  %v9224_v38 = vunpack.i.h.bf16 %v16296_v29  ;;  %v9454_v24 = vunpack.i.h.bf16 %v13514_v14  ;;  %v5167_v8 = vsel %vm5158_vm9, %v5134_v2, %v9453_v17  ;;  %v13767_v20 = vsel %vm5059_vm3, %v13666_v10, %v9198_v5  ;;  %v16298_v32 = vld [vmem:[#allocation141_spill] sm:$0xff]  ;;  %v2759_v2 = vld [vmem:[#allocation3 + $0xaa] sm:$0xff] }
 0x511   : > { %v13762_v49 = vpop.permute.xlu0 %9496  ;;  %v9218_v6 = vunpack.i.l.bf16 %v16297_v31  ;;  %v9489_v58 = vunpack.i.h.bf16 %v13697_v55  ;;  %v5200_v30 = vsel %vm5191_vm7, %v5167_v8, %v9488_v60  ;;  %v13774_v50 = vsel %vm5059_vm3, %v13671_v25, %v9199_v63  ;;  %v16299_v63 = vld [vmem:[#allocation139_spill] sm:$0xff]  ;;  %v16300_v29 = vld [vmem:[#allocation153_spill] sm:$0xff] }
 0x512   : > { %v5102_v14 = vsel %vm5092_vm4, %v5069_v62, %v9294_v56  ;;  %v9298_v34 = vunpack.i.l.bf16 %v16298_v32  ;;  %v5361_v17 = vsel %vm467_vm2, %v2758_v16, %v5275_v54  ;;  %v13779_v46 = vpop.permute.xlu1 %9491  ;;  %v13783_v10 = vsel %vm5059_vm3, %v13674_v51, %v9223_v53 }
 0x513   : > { %5610 = vmatmul.mubr.f32.gmra.mrb[4].mxu1 %v5200_v30  ;;  %v9219_v55 = vunpack.i.h.bf16 %v16297_v31  ;;  %v9378_v5 = vunpack.i.l.bf16 %v13333_v44  ;;  %v5135_v25 = vsel %vm5125_vm5, %v5102_v14, %v9374_v47  ;;  %v13791_v60 = vsel %vm5059_vm3, %v13677_v28, %v9224_v38 }
 0x514   : > { %7977 = vmatprep.mubr.msk.f32.mxu1 %vm1002_vm6, %v5361_v17  ;;  %v9233_v56 = vunpack.i.l.bf16 %v16299_v63  ;;  %v9458_v39 = vunpack.i.l.bf16 %v13613_v37  ;;  %v5168_v51 = vsel %vm5158_vm9, %v5135_v25, %v9454_v24  ;;  %v5070_v54 = vsel %vm5059_vm3, %v13694_v33, %v9218_v6  ;;  %v16301_v17 = vld [vmem:[#allocation136_spill] sm:$0xff] }
 0x515   : > { %v13795_v35 = vpop.permute.xlu0 %5282  ;;  %v9273_v53 = vunpack.i.l.bf16 %v16300_v29  ;;  %v9493_v47 = vunpack.i.l.bf16 %v13779_v46  ;;  %v5201_v62 = vsel %vm5191_vm7, %v5168_v51, %v9489_v58  ;;  %v9299_v28 = vunpack.i.h.bf16 %v16298_v32 }
 0x516   : > { %v5103_v38 = vsel %vm5092_vm4, %v5070_v54, %v9298_v34  ;;  %v9353_v8 = vunpack.i.l.bf16 %v13157_v18  ;;  %v5362_v31 = vsel %vm467_vm2, %v2759_v2, %v13714_v1  ;;  %v5281_v24 = vpop.permute.xlu1 %5280  ;;  %v5071_v33 = vsel %vm5059_vm3, %v13710_v26, %v9219_v55  ;;  %v2760_v55 = vld [vmem:[#allocation3 + $0xb2] sm:$0xff] }
 0x517   : > { %5615 = vmatmul.mubr.f32.gmra.mrb[6].mxu1 %v5201_v62  ;;  %v9379_v6 = vunpack.i.h.bf16 %v13333_v44  ;;  %v9433_v16 = vunpack.i.l.bf16 %v13452_v3  ;;  %v5136_v58 = vsel %vm5125_vm5, %v5103_v38, %v9378_v5  ;;  %v9274_v30 = vunpack.i.h.bf16 %v16300_v29 }
 0x518   : > { %7978 = vmatprep.mubr.msk.f32.mxu1 %vm1002_vm6, %v5362_v31  ;;  %v9459_v14 = vunpack.i.h.bf16 %v13613_v37  ;;  %v9499_v32 = vunpack.i.h.bf16 %v13762_v49  ;;  %v5169_v34 = vsel %vm5158_vm9, %v5136_v58, %v9458_v39  ;;  %v5093_v26 = vsel %vm5092_vm4, %v13732_v27, %v9273_v53  ;;  %v2749_v39 = vld [vmem:[#allocation3 + $0x32] sm:$0xff]  ;;  %v16302_v31 = vld [vmem:[#allocation149_spill] sm:$0xff] }
 0x519   : > { %v5259_v1 = vpop.permute.xlu0 %5258  ;;  %v9303_v44 = vunpack.i.l.bf16 %v16301_v17  ;;  %v9494_v25 = vunpack.i.h.bf16 %v13779_v46  ;;  %v5202_v51 = vsel %vm5191_vm7, %v5169_v34, %v9493_v47  ;;  %v5104_v5 = vsel %vm5092_vm4, %v5071_v33, %v9299_v28  ;;  %v2750_v28 = vld [vmem:[#allocation3 + $0x3a] sm:$0xff] }
 0x51a   : > { %v9354_v54 = vunpack.i.h.bf16 %v13157_v18  ;;  %v5126_v37 = vsel %vm5125_vm5, %v5093_v26, %v9353_v8  ;;  %v5363_v29 = vsel %vm467_vm2, %v2760_v55, %v13742_v15  ;;  %v5257_v2 = vpop.permute.xlu1 %5256  ;;  %v9383_v27 = vunpack.i.l.bf16 %v13277_v21 }
 0x51b   : > { %5620 = vmatmul.mubr.f32.gmra.mrb[8].mxu1 %v5202_v51  ;;  %v5352_v53 = vsel %vm467_vm2, %v2749_v39, %v5257_v2  ;;  %v5159_v46 = vsel %vm5158_vm9, %v5126_v37, %v9433_v16  ;;  %v5137_v47 = vsel %vm5125_vm5, %v5104_v5, %v9379_v6  ;;  %v9434_v18 = vunpack.i.h.bf16 %v13452_v3  ;;  %v2761_v16 = vld [vmem:[#allocation3 + $0xc2] sm:$0xff]  ;;  %v2762_v37 = vld [vmem:[#allocation3 + $0xca] sm:$0xff] }
 0x51c   : > { %7979 = vmatprep.mubr.msk.f32.mxu1 %vm1002_vm6, %v5363_v29  ;;  %v9463_v62 = vunpack.i.l.bf16 %v13566_v43  ;;  %7968 = vmatprep.mubr.msk.f32.mxu0 %vm1002_vm6, %v5352_v53  ;;  %v5192_v15 = vsel %vm5191_vm7, %v5159_v46, %v9499_v32  ;;  %v5170_v8 = vsel %vm5158_vm9, %v5137_v47, %v9459_v14  ;;  %v9228_v33 = vunpack.i.l.bf16 %v16302_v31  ;;  %v16303_v51 = vld [vmem:[#allocation154_spill] sm:$0xff] }
 0x51d   : > { %v13837_v38 = vpop.permute.xlu0 %9506  ;;  %v9498_v58 = vunpack.i.l.bf16 %v13762_v49  ;;  %v5353_v6 = vsel %vm467_vm2, %v2750_v28, %v5259_v1  ;;  %5570 = vmatmul.mubr.f32.vlgmr.msra.gmra.mrb[8].mxu0 %v5192_v15  ;;  %v5203_v3 = vsel %vm5191_vm7, %v5170_v8, %v9494_v25  ;;  %v5094_v34 = vsel %vm5092_vm4, %v13738_v12, %v9274_v30 }
 0x51e   : > { %v9304_v26 = vunpack.i.h.bf16 %v16301_v17  ;;  %v5105_v32 = vsel %vm5092_vm4, %v13783_v10, %v9303_v44  ;;  %v5364_v14 = vsel %vm467_vm2, %v2761_v16, %v5281_v24  ;;  %7969 = vmatprep.mubr.msk.f32.mxu0 %vm1002_vm6, %v5353_v6  ;;  %v9502_v55 = vpop.permute.xlu1 %9501  ;;  %v9384_v49 = vunpack.i.h.bf16 %v13277_v21 }
 0x51f   : > { %5625 = vmatmul.mubr.f32.gmra.mrb[10].mxu1 %v5203_v3  ;;  %v9504_v1 = vunpack.i.h.bf16 %v9502_v55  ;;  %v5127_v25 = vsel %vm5125_vm5, %v5094_v34, %v9354_v54  ;;  %v5138_v12 = vsel %vm5125_vm5, %v5105_v32, %v9383_v27  ;;  %v9229_v30 = vunpack.i.h.bf16 %v16302_v31 }
 0x520   : > { %7980 = vmatprep.mubr.msk.f32.mxu1 %vm1002_vm6, %v5364_v14  ;;  %v9464_v17 = vunpack.i.h.bf16 %v13566_v43  ;;  %v5160_v24 = vsel %vm5158_vm9, %v5127_v25, %v9434_v18  ;;  %v5171_v44 = vsel %vm5158_vm9, %v5138_v12, %v9463_v62  ;;  %v9278_v5 = vunpack.i.l.bf16 %v16303_v51 }
 0x521   : > { %v5287_v10 = vpop.permute.xlu0 %5286  ;;  %v9503_v21 = vunpack.i.l.bf16 %v9502_v55  ;;  %v5193_v29 = vsel %vm5191_vm7, %v5160_v24, %v9504_v1  ;;  %v5204_v39 = vsel %vm5191_vm7, %v5171_v44, %v9498_v58  ;;  %v5106_v54 = vsel %vm5092_vm4, %v13791_v60, %v9304_v26  ;;  %v2763_v58 = vld [vmem:[#allocation3 + $0xda] sm:$0xff]  ;;  %v2751_v26 = vld [vmem:[#allocation3 + $0x4a] sm:$0xff]  ;;  %v2752_v1 = vld [vmem:[#allocation3 + $0x52] sm:$0xff] }
 0x522   : > { %v9308_v2 = vunpack.i.l.bf16 %v13070_v40  ;;  %v9358_v43 = vunpack.i.l.bf16 %v13253_v0  ;;  %v5365_v27 = vsel %vm467_vm2, %v2762_v37, %v13795_v35  ;;  %v5285_v53 = vpop.permute.xlu1 %5284  ;;  %5575 = vmatmul.mubr.f32.gmra.mrb[10].mxu0 %v5193_v29  ;;  %v5074_v46 = vsel %vm5059_vm3, %v13722_v4, %v9228_v33  ;;  %v2764_v44 = vld [vmem:[#allocation3 + $0xe2] sm:$0xff] }
 0x523   : > { %5630 = vmatmul.mubr.f32.gmra.mrb[12].mxu1 %v5204_v39  ;;  %v9388_v47 = vunpack.i.l.bf16 %v13363_v48  ;;  %v9438_v18 = vunpack.i.l.bf16 %v13537_v19  ;;  %v5139_v60 = vsel %vm5125_vm5, %v5106_v54, %v9384_v49  ;;  %v9279_v62 = vunpack.i.h.bf16 %v16303_v51  ;;  %v16304_v51 = vld [vmem:[#allocation140_spill] sm:$0xff] }
 0x524   : > { %7981 = vmatprep.mubr.msk.f32.mxu1 %vm1002_vm6, %v5365_v27  ;;  %v9468_v28 = vunpack.i.l.bf16 %v13642_v23  ;;  %v9509_v35 = vunpack.i.h.bf16 %v13837_v38  ;;  %v5172_v8 = vsel %vm5158_vm9, %v5139_v60, %v9464_v17  ;;  %v5095_v4 = vsel %vm5092_vm4, %v13767_v20, %v9278_v5 }
 0x525   : > { %v5263_v15 = vpop.permute.xlu0 %5262  ;;  %v9309_v31 = vunpack.i.h.bf16 %v13070_v40  ;;  %v9508_v33 = vunpack.i.l.bf16 %v13837_v38  ;;  %v5205_v16 = vsel %vm5191_vm7, %v5172_v8, %v9503_v21  ;;  %v5107_v6 = vsel %vm5092_vm4, %v5074_v46, %v9308_v2  ;;  %v16305_v46 = vld [vmem:[#allocation73_spill] sm:$0xff] }
 0x526   : > { %v9359_v3 = vunpack.i.h.bf16 %v13253_v0  ;;  %v5366_v34 = vsel %vm467_vm2, %v2763_v58, %v5285_v53  ;;  %v5261_v32 = vpop.permute.xlu1 %5260  ;;  %v5128_v14 = vsel %vm5125_vm5, %v5095_v4, %v9358_v43  ;;  %v9389_v20 = vunpack.i.h.bf16 %v13363_v48  ;;  %v2765_v4 = vld [vmem:[#allocation3 + $0xf2] sm:$0xff] }
 0x527   : > { %5635 = vmatmul.mubr.f32.gmra.mrb[14].mxu1 %v5205_v16  ;;  %v5354_v40 = vsel %vm467_vm2, %v2751_v26, %v5261_v32  ;;  %v5161_v38 = vsel %vm5158_vm9, %v5128_v14, %v9438_v18  ;;  %v5140_v55 = vsel %vm5125_vm5, %v5107_v6, %v9388_v47  ;;  %v9439_v49 = vunpack.i.h.bf16 %v13537_v19 }
 0x528   : > { %7982 = vmatprep.mubr.msk.f32.mxu1 %vm1002_vm6, %v5366_v34  ;;  %v9469_v0 = vunpack.i.h.bf16 %v13642_v23  ;;  %7970 = vmatprep.mubr.msk.f32.mxu0 %vm1002_vm6, %v5354_v40  ;;  %v5194_v25 = vsel %vm5191_vm7, %v5161_v38, %v9509_v35  ;;  %v5173_v48 = vsel %vm5158_vm9, %v5140_v55, %v9468_v28  ;;  %v5075_v17 = vsel %vm5059_vm3, %v13729_v9, %v9229_v30  ;;  %v2753_v55 = vld [vmem:[#allocation3 + $0x62] sm:$0xff] }
 0x529   : > { %v13896_v12 = vpop.permute.xlu0 %9516  ;;  %v5096_v24 = vsel %vm5092_vm4, %v13774_v50, %v9279_v62  ;;  %v5355_v19 = vsel %vm467_vm2, %v2752_v1, %v5263_v15  ;;  %5580 = vmatmul.mubr.f32.gmra.mrb[12].mxu0 %v5194_v25  ;;  %v5206_v23 = vsel %vm5191_vm7, %v5173_v48, %v9508_v33  ;;  %v9313_v5 = vunpack.i.l.bf16 %v16304_v51  ;;  %v16308_v33 = vld [vmem:[#allocation137_spill] sm:$0xff] }
 0x52a   : > { %v5108_v37 = vsel %vm5092_vm4, %v5075_v17, %v9309_v31  ;;  %v5367_v21 = vsel %vm467_vm2, %v2764_v44, %v5287_v10  ;;  %v9512_v29 = vpop.permute.xlu1 %9511  ;;  %7971 = vmatprep.mubr.msk.f32.mxu0 %vm1002_vm6, %v5355_v19  ;;  %v5129_v9 = vsel %vm5125_vm5, %v5096_v24, %v9359_v3  ;;  %v9393_v50 = vunpack.i.l.bf16 %v13317_v41  ;;  %v2754_v24 = vld [vmem:[#allocation3 + $0x6a] sm:$0xff] }
 0x52b   : > { %5640 = vmatmul.mubr.f32.gmra.mrb[16].mxu1 %v5206_v23  ;;  %v9514_v30 = vunpack.i.h.bf16 %v9512_v29  ;;  %v9513_v39 = vunpack.i.l.bf16 %v9512_v29  ;;  %v5141_v54 = vsel %vm5125_vm5, %v5108_v37, %v9389_v20  ;;  %v5076_v2 = vsel %vm5059_vm3, %v13689_v42, %v9233_v56  ;;  %v2766_v20 = vld [vmem:[#allocation3 + $0xfa] sm:$0xff]  ;;  %v16309_v23 = vld [vmem:[#allocation150_spill] sm:$0xff] }
 0x52c   : > { %7983 = vmatprep.mubr.msk.f32.mxu1 %vm1002_vm6, %v5367_v21  ;;  %v9473_v10 = vunpack.i.l.bf16 %v13598_v13  ;;  %v5162_v27 = vsel %vm5158_vm9, %v5129_v9, %v9439_v49  ;;  %v5174_v53 = vsel %vm5158_vm9, %v5141_v54, %v9469_v0  ;;  %v9283_v47 = vunpack.i.l.bf16 %v16305_v46  ;;  %v16311_v21 = vld [vmem:[#allocation45_spill] sm:$0xff] }
 0x52d   : > { %v5291_v43 = vpop.permute.xlu0 %5290  ;;  %v9518_v18 = vunpack.i.l.bf16 %v13896_v12  ;;  %v5195_v60 = vsel %vm5191_vm7, %v5162_v27, %v9514_v30  ;;  %v5207_v62 = vsel %vm5191_vm7, %v5174_v53, %v9513_v39  ;;  %v16306_v28 = vunpack.i.l.bf16 %v16279_v59  ;;  %v16312_v30 = vld [vmem:[#allocation44_spill] sm:$0xff]  ;;  %v16313_v27 = vld [vmem:[#allocation90_spill] sm:$0xff] }
 0x52e   : > { %v16307_v56 = vunpack.i.h.bf16 %v16285_v57  ;;  %v5109_v15 = vsel %vm5092_vm4, %v5076_v2, %v9313_v5  ;;  %v9363_v8 = vunpack.i.l.bf16 %v13189_v22  ;;  %v5289_v31 = vpop.permute.xlu1 %5288  ;;  %5585 = vmatmul.mubr.f32.gmra.mrb[14].mxu0 %v5195_v60  ;;  %v9158_v58 = vunpack.i.l.bf16 %v16308_v33 }
 0x52f   : > { %v5031_v42 = vsel %vm5026_vm1, %v13246_v7, %v16306_v28  ;;  %5645 = vmatmul.mubr.f32.gmra.mrb[18].mxu1 %v5207_v62  ;;  %v9443_v59 = vunpack.i.l.bf16 %v13485_v61  ;;  %v5368_v16 = vsel %vm467_vm2, %v2765_v4, %v5289_v31  ;;  %v5142_v7 = vsel %vm5125_vm5, %v5109_v15, %v9393_v50  ;;  %v16316_v15 = vld [vmem:[#allocation84_spill] sm:$0xff]  ;;  %v16317_v4 = vld [vmem:[#allocation151_spill] sm:$0xff] }
 0x530   : > { %v5044_v35 = vsel %vm5026_vm1, %v13617_v36, %v16307_v56  ;;  %v9204_v57 = vunpack.i.h.bf16 %v16295_v11  ;;  %v5064_v36 = vsel %vm5059_vm3, %v5031_v42, %v9203_v45  ;;  %v9519_v6 = vunpack.i.h.bf16 %v13896_v12  ;;  %7984 = vmatprep.mubr.msk.f32.mxu1 %vm1002_vm6, %v5368_v16  ;;  %v16314_v56 = vld [vmem:[#allocation131_spill] sm:$0xff] }
 0x531   : > { %v5267_v3 = vpop.permute.xlu0 %5266  ;;  %v5175_v34 = vsel %vm5158_vm9, %v5142_v7, %v9473_v10  ;;  %v9234_v26 = vunpack.i.h.bf16 %v16299_v63  ;;  %v9284_v32 = vunpack.i.h.bf16 %v16305_v46  ;;  %v5097_v14 = vsel %vm5092_vm4, %v5064_v36, %v9283_v47  ;;  %v16318_v7 = vld [vmem:[#allocation160_spill] sm:$0xff] }
 0x532   : > { %v5208_v40 = vsel %vm5191_vm7, %v5175_v34, %v9518_v18  ;;  %v9314_v11 = vunpack.i.h.bf16 %v16304_v51  ;;  %v9364_v45 = vunpack.i.h.bf16 %v13189_v22  ;;  %v5369_v38 = vsel %vm467_vm2, %v2766_v20, %v5291_v43  ;;  %v5265_v49 = vpop.permute.xlu1 %5264 }
 0x533   : > { %5650 = vmatmul.mubr.f32.gmra.mrb[20].mxu1 %v5208_v40  ;;  %v5130_v0 = vsel %vm5125_vm5, %v5097_v14, %v9363_v8  ;;  %v9159_v63 = vunpack.i.h.bf16 %v16308_v33  ;;  %v9394_v1 = vunpack.i.h.bf16 %v13317_v41  ;;  %v5356_v25 = vsel %vm467_vm2, %v2753_v55, %v5265_v49 }
 0x534   : > { %7985 = vmatprep.mubr.msk.f32.mxu1 %vm1002_vm6, %v5369_v38  ;;  %v5163_v12 = vsel %vm5158_vm9, %v5130_v0, %v9443_v59  ;;  %v5065_v22 = vsel %vm5059_vm3, %v13653_v52, %v9204_v57  ;;  %v9444_v48 = vunpack.i.h.bf16 %v13485_v61  ;;  %v9474_v17 = vunpack.i.h.bf16 %v13598_v13  ;;  %7972 = vmatprep.mubr.msk.f32.mxu0 %vm1002_vm6, %v5356_v25  ;;  %v16310_v52 = vld [vmem:[#allocation89_spill] sm:$0xff]  ;;  %v2767_v59 = vld [vmem:[#allocation3 + $0x10a] sm:$0xff] }
 0x535   : > { %v5196_v44 = vsel %vm5191_vm7, %v5163_v12, %v9519_v6  ;;  %v13964_v19 = vpop.permute.xlu0 %9526  ;;  %v5077_v41 = vsel %vm5059_vm3, %v5044_v35, %v9234_v26  ;;  %v9238_v51 = vunpack.i.l.bf16 %v16309_v23  ;;  %v5098_v5 = vsel %vm5092_vm4, %v5065_v22, %v9284_v32  ;;  %v16320_v26 = vld [vmem:[#allocation77_spill] sm:$0xff]  ;;  %v16325_v22 = vld [vmem:[#allocation46_spill] sm:$0xff] }
 0x536   : > { %v5357_v37 = vsel %vm467_vm2, %v2754_v24, %v5267_v3  ;;  %5590 = vmatmul.mubr.f32.gmra.mrb[16].mxu0 %v5196_v44  ;;  %v5045_v61 = vsel %vm5026_vm1, %v16310_v52, %v9158_v58  ;;  %v5110_v13 = vsel %vm5092_vm4, %v5077_v41, %v9314_v11  ;;  %v9318_v29 = vunpack.i.l.bf16 %v16311_v21  ;;  %v9522_v9 = vpop.permute.xlu1 %9521  ;;  %v16324_v12 = vld [vmem:[#allocation85_spill] sm:$0xff]  ;;  %v2768_v24 = vld [vmem:[#allocation3 + $0x112] sm:$0xff] }
 0x537   : > { %7973 = vmatprep.mubr.msk.f32.mxu0 %vm1002_vm6, %v5357_v37  ;;  %v5131_v50 = vsel %vm5125_vm5, %v5098_v5, %v9364_v45  ;;  %v9398_v39 = vunpack.i.l.bf16 %v16312_v30  ;;  %v9524_v54 = vunpack.i.h.bf16 %v9522_v9  ;;  %v9523_v2 = vunpack.i.l.bf16 %v9522_v9  ;;  %v16321_v45 = vld [vmem:[#allocation78_spill] sm:$0xff] }
 0x538   : > { %v5143_v10 = vsel %vm5125_vm5, %v5110_v13, %v9394_v1  ;;  %v9239_v43 = vunpack.i.h.bf16 %v16309_v23  ;;  %v9478_v53 = vunpack.i.l.bf16 %v16313_v27  ;;  %v5164_v47 = vsel %vm5158_vm9, %v5131_v50, %v9444_v48  ;;  %v16322_v1 = vld [vmem:[#allocation122_spill] sm:$0xff]  ;;  %v16326_v23 = vld [vmem:[#allocation36_spill] sm:$0xff] }
 0x539   : > { %v13980_v46 = vpop.permute.xlu0 %9531  ;;  %v5176_v18 = vsel %vm5158_vm9, %v5143_v10, %v9474_v17  ;;  %v5078_v60 = vsel %vm5059_vm3, %v5045_v61, %v9238_v51  ;;  %v9528_v62 = vunpack.i.l.bf16 %v13964_v19  ;;  %v5197_v28 = vsel %vm5191_vm7, %v5164_v47, %v9524_v54 }
 0x53a   : > { %v5209_v42 = vsel %vm5191_vm7, %v5176_v18, %v9523_v2  ;;  %v16315_v35 = vunpack.i.h.bf16 %v16314_v56  ;;  %v9083_v31 = vunpack.i.l.bf16 %v16317_v4  ;;  %v9319_v33 = vunpack.i.h.bf16 %v16311_v21  ;;  %v5293_v16 = vpop.permute.xlu1 %5292  ;;  %5595 = vmatmul.mubr.f32.gmra.mrb[18].mxu0 %v5197_v28  ;;  %v2770_v18 = vld [vmem:[#allocation3 + $0x12a] sm:$0xff] }
 0x53b   : > { %v5111_v58 = vsel %vm5092_vm4, %v5078_v60, %v9318_v29  ;;  %5655 = vmatmul.mubr.f32.gmra.mrb[22].mxu1 %v5209_v42  ;;  %v16319_v57 = vunpack.i.h.bf16 %v16318_v7  ;;  %v9399_v6 = vunpack.i.h.bf16 %v16312_v30  ;;  %v5370_v3 = vsel %vm467_vm2, %v2767_v59, %v5293_v16  ;;  %v2769_v30 = vld [vmem:[#allocation3 + $0x122] sm:$0xff] }
 0x53c   : > { %v4980_v8 = vsel %vm4960_vm15, %v16316_v15, %v16315_v35  ;;  %v5144_v34 = vsel %vm5125_vm5, %v5111_v58, %v9398_v39  ;;  %v9163_v32 = vunpack.i.l.bf16 %v16320_v26  ;;  %v9479_v20 = vunpack.i.h.bf16 %v16313_v27  ;;  %7986 = vmatprep.mubr.msk.f32.mxu1 %vm1002_vm6, %v5370_v3  ;;  %v16327_v56 = vld [vmem:[#allocation42_spill] sm:$0xff]  ;;  %v16328_v59 = vld [vmem:[#allocation53_spill] sm:$0xff] }
 0x53d   : > { %v5013_v36 = vsel %vm4993_vm0, %v4980_v8, %v16319_v57  ;;  %v9537_v40 = vpop.permute.xlu0 %9536  ;;  %v5177_v11 = vsel %vm5158_vm9, %v5144_v34, %v9478_v53  ;;  %v9243_v38 = vunpack.i.l.bf16 %v16321_v45  ;;  %v9529_v49 = vunpack.i.h.bf16 %v13964_v19  ;;  %v2771_v8 = vld [vmem:[#allocation3 + $0x13a] sm:$0xff] }
 0x53e   : > { %v5046_v14 = vsel %vm5026_vm1, %v5013_v36, %v9159_v63  ;;  %v5210_v0 = vsel %vm5191_vm7, %v5177_v11, %v9528_v62  ;;  %v16323_v25 = vunpack.i.l.bf16 %v16322_v1  ;;  %v9323_v48 = vunpack.i.l.bf16 %v16325_v22  ;;  %v5295_v44 = vpop.permute.xlu1 %5294  ;;  %v2772_v36 = vld [vmem:[#allocation3 + $0x142] sm:$0xff]  ;;  %v2773_v11 = vld [vmem:[#allocation3 + $0x152] sm:$0xff] }
 0x53f   : > { %v5079_v55 = vsel %vm5059_vm3, %v5046_v14, %v9239_v43  ;;  %5660 = vmatmul.mubr.f32.gmra.mrb[24].mxu1 %v5210_v0  ;;  %v9403_v51 = vunpack.i.l.bf16 %v16326_v23  ;;  %v5371_v19 = vsel %vm467_vm2, %v2768_v24, %v5295_v44  ;;  %v9533_v52 = vunpack.i.l.bf16 %v13980_v46  ;;  %v16330_v0 = vld [vmem:[#allocation47_spill] sm:$0xff]  ;;  %v16331_v44 = vld [vmem:[#allocation52_spill] sm:$0xff] }
 0x540   : > { %v4981_v63 = vsel %vm4960_vm15, %v16324_v12, %v16323_v25  ;;  %v5112_v17 = vsel %vm5092_vm4, %v5079_v55, %v9319_v33  ;;  %7987 = vmatprep.mubr.msk.f32.mxu1 %vm1002_vm6, %v5371_v19  ;;  %v9538_v29 = vunpack.i.l.bf16 %v9537_v40  ;;  %v9534_v10 = vunpack.i.h.bf16 %v13980_v46  ;;  %v2775_v19 = vld [vmem:[#allocation3 + $0x16a] sm:$0xff] }
 0x541   : > { %v5014_v41 = vsel %vm4993_vm0, %v4981_v63, %v9083_v31  ;;  %v5145_v5 = vsel %vm5125_vm5, %v5112_v17, %v9399_v6  ;;  %v9542_v61 = vpop.permute.xlu0 %9541  ;;  %v9539_v53 = vunpack.i.h.bf16 %v9537_v40  ;;  %v2774_v63 = vld [vmem:[#allocation3 + $0x15a] sm:$0xff] }
 0x542   : > { %v5047_v37 = vsel %vm5026_vm1, %v5014_v41, %v9163_v32  ;;  %v5178_v13 = vsel %vm5158_vm9, %v5145_v5, %v9479_v20  ;;  %v5297_v39 = vpop.permute.xlu1 %5296  ;;  %v9543_v28 = vunpack.i.l.bf16 %v9542_v61  ;;  %v5180_v46 = vsel %vm5158_vm9, %v16327_v56, %v9534_v10  ;;  %v16329_v32 = vld [vmem:[#allocation64_spill] sm:$0xff]  ;;  %v16333_v10 = vld [vmem:[#allocation67_spill] sm:$0xff] }
 0x543   : > { %v5080_v21 = vsel %vm5059_vm3, %v5047_v37, %v9243_v38  ;;  %v5211_v9 = vsel %vm5191_vm7, %v5178_v13, %v9529_v49  ;;  %v5372_v54 = vsel %vm467_vm2, %v2769_v30, %v5297_v39  ;;  %v5213_v15 = vsel %vm5191_vm7, %v5180_v46, %v9539_v53  ;;  %v16332_v13 = vld [vmem:[#allocation65_spill] sm:$0xff] }
 0x544   : > { %v5113_v50 = vsel %vm5092_vm4, %v5080_v21, %v9323_v48  ;;  %5665 = vmatmul.mubr.f32.gmra.mrb[26].mxu1 %v5211_v9  ;;  %v9544_v33 = vunpack.i.h.bf16 %v9542_v61  ;;  %v5181_v16 = vsel %vm5158_vm9, %v16328_v59, %v9543_v28  ;;  %v16334_v28 = vld [vmem:[#allocation54_spill] sm:$0xff]  ;;  %v2779_v59 = vld [vmem:[#allocation3 + $0x19a] sm:$0xff] }
 0x545   : > { %v5146_v2 = vsel %vm5125_vm5, %v5113_v50, %v9403_v51  ;;  %7988 = vmatprep.mubr.msk.f32.mxu1 %vm1002_vm6, %v5372_v54  ;;  %v9547_v43 = vpop.permute.xlu0 %9546  ;;  %v2776_v50 = vld [vmem:[#allocation3 + $0x172] sm:$0xff] }
 0x546   : > { %v5179_v27 = vsel %vm5158_vm9, %v5146_v2, %v9533_v52  ;;  %v5299_v60 = vpop.permute.xlu1 %5298  ;;  %v9548_v35 = vunpack.i.l.bf16 %v9547_v43  ;;  %v9549_v7 = vunpack.i.h.bf16 %v9547_v43  ;;  %v5182_v14 = vsel %vm5158_vm9, %v16329_v32, %v9544_v33  ;;  %v16335_v33 = vld [vmem:[#allocation51_spill] sm:$0xff] }
 0x547   : > { %v5212_v47 = vsel %vm5191_vm7, %v5179_v27, %v9538_v29  ;;  %v5373_v62 = vsel %vm467_vm2, %v2770_v18, %v5299_v60 }
 0x548   : > { %5670 = vmatmul.mubr.f32.gmra.mrb[28].mxu1 %v5212_v47  ;;  %v5214_v57 = vsel %vm5191_vm7, %v5181_v16, %v9548_v35  ;;  %v5215_v40 = vsel %vm5191_vm7, %v5182_v14, %v9549_v7  ;;  %v2777_v47 = vld [vmem:[#allocation3 + $0x182] sm:$0xff] }
 0x549   : > { %7989 = vmatprep.mubr.msk.f32.mxu1 %vm1002_vm6, %v5373_v62  ;;  %v9552_v42 = vpop.permute.xlu0 %9551 }
 0x54a   : > { %v5301_v4 = vpop.permute.xlu1 %5300  ;;  %v9553_v34 = vunpack.i.l.bf16 %v9552_v42  ;;  %v9554_v55 = vunpack.i.h.bf16 %v9552_v42 }
 0x54b   : > { %v5374_v31 = vsel %vm467_vm2, %v2771_v8, %v5301_v4 }
 0x54c   : > { %5675 = vmatmul.mubr.f32.gmra.mrb[30].mxu1 %v5213_v15  ;;  %v5183_v1 = vsel %vm5158_vm9, %v16330_v0, %v9553_v34  ;;  %v5184_v41 = vsel %vm5158_vm9, %v16331_v44, %v9554_v55  ;;  %v2778_v15 = vld [vmem:[#allocation3 + $0x18a] sm:$0xff]  ;;  %v5827_v55 = vld [vmem:[#allocation5 + $0x1] sm:$0xff] }
 0x54d   : > { %7990 = vmatprep.mubr.msk.f32.mxu1 %vm1002_vm6, %v5374_v31  ;;  %v9557_v58 = vpop.permute.xlu0 %9556  ;;  %6116 = vrot.lane.b32.xlu0 %v5827_v55, %s9949_s21  ;;  %v5859_v0 = vld [vmem:[#allocation5 + $0x2] sm:$0xff] }
 0x54e   : > { %v5303_v6 = vpop.permute.xlu1 %5302  ;;  %v9558_v20 = vunpack.i.l.bf16 %v9557_v58  ;;  %v9559_v25 = vunpack.i.h.bf16 %v9557_v58 }
 0x54f   : > { %v5375_v3 = vsel %vm467_vm2, %v2772_v36, %v5303_v6 }
 0x550   : > { %5680 = vmatmul.mubr.f32.gmra.mrb[32].mxu1 %v5214_v57  ;;  %v5216_v12 = vsel %vm5191_vm7, %v5183_v1, %v9558_v20  ;;  %v5217_v51 = vsel %vm5191_vm7, %v5184_v41, %v9559_v25  ;;  %v5860_v1 = vld [vmem:[#allocation5 + $0xa] sm:$0xff] }
 0x551   : > { %7991 = vmatprep.mubr.msk.f32.mxu1 %vm1002_vm6, %v5375_v3  ;;  %v9562_v26 = vpop.permute.xlu0 %9561  ;;  %v16336_v3 = vld [vmem:[#allocation66_spill] sm:$0xff]  ;;  %6244 = vrot.lane.b32.xlu0 %v5859_v0, %s9951_s4 }
 0x552   : > { %v5305_v45 = vpop.permute.xlu1 %5304  ;;  %v9563_v17 = vunpack.i.l.bf16 %v9562_v26  ;;  %v9564_v52 = vunpack.i.h.bf16 %v9562_v26  ;;  %v2780_v26 = vld [vmem:[#allocation3 + $0x1a2] sm:$0xff]  ;;  %v14092_v25 = vld [vmem:[#allocation15] ss:$0 sm:$0xff] }
 0x553   : > { %v5376_v38 = vsel %vm467_vm2, %v2773_v11, %v5305_v45  ;;  %v16337_v11 = vld [vmem:[#allocation82_spill] sm:$0xff] }
 0x554   : > { %5685 = vmatmul.mubr.f32.gmra.mrb[34].mxu1 %v5215_v40  ;;  %v5185_v21 = vsel %vm5158_vm9, %v16332_v13, %v9563_v17  ;;  %v5186_v43 = vsel %vm5158_vm9, %v16333_v10, %v9564_v52 }
 0x555   : > { %7992 = vmatprep.mubr.msk.f32.mxu1 %vm1002_vm6, %v5376_v38  ;;  %v9567_v49 = vpop.permute.xlu0 %9566 }
 0x556   : > { %v5307_v22 = vpop.permute.xlu1 %5306  ;;  %v9568_v23 = vunpack.i.l.bf16 %v9567_v49  ;;  %v9569_v29 = vunpack.i.h.bf16 %v9567_v49  ;;  %v5828_v49 = vld [vmem:[#allocation5 + $0x9] sm:$0xff] }
 0x557   : > { %v5377_v48 = vsel %vm467_vm2, %v2774_v63, %v5307_v22  ;;  %6118 = vrot.lane.b32.xlu1 %v5828_v49, %s9949_s21 }
 0x558   : > { %5690 = vmatmul.mubr.f32.gmra.mrb[36].mxu1 %v5216_v12  ;;  %v5218_v9 = vsel %vm5191_vm7, %v5185_v21, %v9568_v23  ;;  %v5219_v53 = vsel %vm5191_vm7, %v5186_v43, %v9569_v29 }
 0x559   : > { %7993 = vmatprep.mubr.msk.f32.mxu1 %vm1002_vm6, %v5377_v48  ;;  %v9572_v24 = vpop.permute.xlu0 %9571 }
 0x55a   : > { %v5309_v5 = vpop.permute.xlu1 %5308  ;;  %v9573_v54 = vunpack.i.l.bf16 %v9572_v24  ;;  %v9574_v62 = vunpack.i.h.bf16 %v9572_v24 }
 0x55b   : > { %v5378_v37 = vsel %vm467_vm2, %v2775_v19, %v5309_v5  ;;  %6246 = vrot.lane.b32.xlu1 %v5860_v1, %s9951_s4 }
 0x55c   : > { %5695 = vmatmul.mubr.f32.gmra.mrb[38].mxu1 %v5217_v51  ;;  %v5187_v42 = vsel %vm5158_vm9, %v16334_v28, %v9573_v54  ;;  %v5188_v58 = vsel %vm5158_vm9, %v16335_v33, %v9574_v62 }
 0x55d   : > { %7994 = vmatprep.mubr.msk.f32.mxu1 %vm1002_vm6, %v5378_v37  ;;  %v9577_v61 = vpop.permute.xlu0 %9576 }
 0x55e   : > { %v5311_v30 = vpop.permute.xlu1 %5310  ;;  %v9578_v27 = vunpack.i.l.bf16 %v9577_v61  ;;  %v9579_v56 = vunpack.i.h.bf16 %v9577_v61 }
 0x55f   : > { %v5379_v39 = vsel %vm467_vm2, %v2776_v50, %v5311_v30 }
 0x560   : > { %5700 = vmatmul.mubr.f32.gmra.mrb[40].mxu1 %v5218_v9  ;;  %v5220_v46 = vsel %vm5191_vm7, %v5187_v42, %v9578_v27  ;;  %v5221_v7 = vsel %vm5191_vm7, %v5188_v58, %v9579_v56 }
 0x561   : > { %7995 = vmatprep.mubr.msk.f32.mxu1 %vm1002_vm6, %v5379_v39  ;;  %v9582_v2 = vpop.permute.xlu0 %9581 }
 0x562   : > { %v5313_v18 = vpop.permute.xlu1 %5312  ;;  %v9583_v31 = vunpack.i.l.bf16 %v9582_v2  ;;  %v9584_v6 = vunpack.i.h.bf16 %v9582_v2 }
 0x563   : > { %v5380_v60 = vsel %vm467_vm2, %v2777_v47, %v5313_v18 }
 0x564   : > { %5705 = vmatmul.mubr.f32.gmra.mrb[42].mxu1 %v5219_v53  ;;  %v5189_v34 = vsel %vm5158_vm9, %v16336_v3, %v9583_v31  ;;  %v5190_v45 = vsel %vm5158_vm9, %v16337_v11, %v9584_v6 }
 0x565   : > { %7996 = vmatprep.mubr.msk.f32.mxu1 %vm1002_vm6, %v5380_v60  ;;  %v9587_v35 = vpop.permute.xlu0 %9586 }
 0x566   : > { %v5315_v8 = vpop.permute.xlu1 %5314  ;;  %v9588_v16 = vunpack.i.l.bf16 %v9587_v35  ;;  %v9589_v32 = vunpack.i.h.bf16 %v9587_v35 }
 0x567   : > { %v5381_v4 = vsel %vm467_vm2, %v2778_v15, %v5315_v8 }
 0x568   : > { %5710 = vmatmul.mubr.f32.gmra.mrb[44].mxu1 %v5220_v46  ;;  %v5222_v14 = vsel %vm5191_vm7, %v5189_v34, %v9588_v16  ;;  %v5223_v38 = vsel %vm5191_vm7, %v5190_v45, %v9589_v32 }
 0x569   : > { %7997 = vmatprep.mubr.msk.f32.mxu1 %vm1002_vm6, %v5381_v4 }
 0x56a   : > { %v5317_v57 = vpop.permute.xlu1 %5316 }
 0x56b   : > { %v5382_v36 = vsel %vm467_vm2, %v2779_v59, %v5317_v57 }
 0x56c   : > { %5715 = vmatmul.mubr.f32.gmra.mrb[46].mxu1 %v5221_v7 }
 0x56d   : > { %7998 = vmatprep.mubr.msk.f32.mxu1 %vm1002_vm6, %v5382_v36 }
 0x56e   : > { %v5319_v20 = vpop.permute.xlu1 %5318 }
 0x56f   : > { %v5383_v40 = vsel %vm467_vm2, %v2780_v26, %v5319_v20 }
 0x570   : > { %5720 = vmatmul.mubr.f32.gmra.mrb[48].mxu1 %v5222_v14 }
 0x571   : > { %7999 = vmatprep.mubr.msk.f32.mxu1 %vm1002_vm6, %v5383_v40 }
 0x574   : > { %5725 = vmatmul.mubr.f32.gmra.mrb[50].mxu1 %v5223_v38 }
 0x5de   : > { %v5601_v12 = vpop.f32.mrb[0].mxu1 }
 0x5df   : > { %v5602_v63 = vadd.f32 %v14092_v25, %v5601_v12  ;;  %v5603_v22 = vpop.f32.mrb[1].mxu1 }
 0x5e1   : > { %v5736_v48 = vmax.f32 %v5602_v63, 0.0 }
 0x5e2   : > { %v5606_v17 = vpop.f32.mrb[2].mxu1 }
 0x5e3   : > { %5769 = vst.msk [vmem:[#allocation5 + $0x61] sm:$0xff] %vm467_vm2, %v5736_v48  ;;  %v5607_v24 = vadd.f32 %v14092_v25, %v5606_v17  ;;  %v5608_v44 = vpop.f32.mrb[3].mxu1 }
 0x5e5   : > { %v5737_v41 = vmax.f32 %v5607_v24, 0.0 }
 0x5e6   : > { %v5611_v23 = vpop.f32.mrb[4].mxu1 }
 0x5e7   : > { %5770 = vst.msk [vmem:[#allocation5 + $0x69] sm:$0xff] %vm467_vm2, %v5737_v41  ;;  %v5612_v51 = vadd.f32 %v14092_v25, %v5611_v23  ;;  %v5613_v19 = vpop.f32.mrb[5].mxu1 }
 0x5e9   : > { %v5738_v5 = vmax.f32 %v5612_v51, 0.0 }
 0x5ea   : > { %v5616_v37 = vpop.f32.mrb[6].mxu1  ;;  %v14132_v55 = vld [vmem:[#allocation5 + $0x61] sm:$0xff] }
 0x5eb   : > { %5771 = vst.msk [vmem:[#allocation5 + $0x79] sm:$0xff] %vm467_vm2, %v5738_v5  ;;  %v5617_v52 = vadd.f32 %v14092_v25, %v5616_v37  ;;  %v5618_v61 = vpop.f32.mrb[7].mxu1  ;;  %v14143_v48 = vld [vmem:[#allocation5 + $0x60] sm:$0xff] }
 0x5ed   : > { %v5739_v13 = vmax.f32 %v5617_v52, 0.0 }
 0x5ee   : > { %v5621_v21 = vpop.f32.mrb[8].mxu1  ;;  %v14158_v5 = vld [vmem:[#allocation5 + $0x69] sm:$0xff] }
 0x5ef   : > { %5772 = vst.msk [vmem:[#allocation5 + $0x81] sm:$0xff] %vm467_vm2, %v5739_v13  ;;  %v5622_v29 = vadd.f32 %v14092_v25, %v5621_v21  ;;  %v5623_v9 = vpop.f32.mrb[9].mxu1 }
 0x5f0   : > { %v5571_v30 = vpop.f32.mrb[8].mxu0  ;;  %v14164_v9 = vld [vmem:[#allocation5 + $0x62] sm:$0xff] }
 0x5f1   : > { %v5740_v50 = vmax.f32 %v5622_v29, 0.0  ;;  %v5572_v39 = vadd.f32 %v14092_v25, %v5571_v30  ;;  %v5573_v54 = vpop.f32.mrb[9].mxu0  ;;  %v14168_v30 = vld [vmem:[#allocation5 + $0x6a] sm:$0xff] }
 0x5f2   : > { %v5626_v2 = vpop.f32.mrb[10].mxu1 }
 0x5f3   : > { %5773 = vst.msk [vmem:[#allocation5 + $0x91] sm:$0xff] %vm467_vm2, %v5740_v50  ;;  %v5627_v10 = vadd.f32 %v14092_v25, %v5626_v2  ;;  %v5628_v43 = vpop.f32.mrb[11].mxu1  ;;  %v5730_v27 = vmax.f32 %v5572_v39, 0.0 }
 0x5f5   : > { %v5741_v53 = vmax.f32 %v5627_v10, 0.0  ;;  %5763 = vst.msk [vmem:[#allocation5 + $0x19] sm:$0xff] %vm467_vm2, %v5730_v27  ;;  %v5576_v47 = vpop.f32.mrb[10].mxu0  ;;  %v14179_v27 = vld [vmem:[#allocation5 + $0x68] sm:$0xff] }
 0x5f6   : > { %v5631_v18 = vpop.f32.mrb[12].mxu1  ;;  %v5577_v60 = vadd.f32 %v14092_v25, %v5576_v47  ;;  %v5578_v28 = vpop.f32.mrb[11].mxu0 }
 0x5f7   : > { %5774 = vst.msk [vmem:[#allocation5 + $0x99] sm:$0xff] %vm467_vm2, %v5741_v53  ;;  %v5632_v62 = vadd.f32 %v14092_v25, %v5631_v18  ;;  %v5633_v42 = vpop.f32.mrb[13].mxu1 }
 0x5f8   : > { %v5731_v56 = vmax.f32 %v5577_v60, 0.0 }
 0x5f9   : > { %v5742_v46 = vmax.f32 %v5632_v62, 0.0 }
 0x5fa   : > { %v5636_v35 = vpop.f32.mrb[14].mxu1  ;;  %5764 = vst.msk [vmem:[#allocation5 + $0x21] sm:$0xff] %vm467_vm2, %v5731_v56 }
 0x5fb   : > { %5775 = vst.msk [vmem:[#allocation5 + $0xa9] sm:$0xff] %vm467_vm2, %v5742_v46  ;;  %v5637_v15 = vadd.f32 %v14092_v25, %v5636_v35  ;;  %v5638_v8 = vpop.f32.mrb[15].mxu1  ;;  %v14195_v35 = vld [vmem:[#allocation5 + $0x79] sm:$0xff] }
 0x5fc   : > { %v5581_v31 = vpop.f32.mrb[12].mxu0  ;;  %v14113_v33 = vld [vmem:[#allocation5 + $0x19] sm:$0xff] }
 0x5fd   : > { %v5743_v4 = vmax.f32 %v5637_v15, 0.0  ;;  %v5582_v58 = vadd.f32 %v14092_v25, %v5581_v31  ;;  %6120 = vrot.lane.b32.xlu0 %v14113_v33, %s9949_s21  ;;  %v5583_v59 = vpop.f32.mrb[13].mxu0  ;;  %v14120_v3 = vld [vmem:[#allocation5 + $0x18] sm:$0xff] }
 0x5fe   : > { %v5641_v16 = vpop.f32.mrb[16].mxu1  ;;  %v14205_v59 = vld [vmem:[#allocation5 + $0x78] sm:$0xff] }
 0x5ff   : > { %5776 = vst.msk [vmem:[#allocation5 + $0xb1] sm:$0xff] %vm467_vm2, %v5743_v4  ;;  %v5642_v7 = vadd.f32 %v14092_v25, %v5641_v16  ;;  %v5643_v57 = vpop.f32.mrb[17].mxu1  ;;  %v5732_v36 = vmax.f32 %v5582_v58, 0.0 }
 0x601   : > { %v5744_v6 = vmax.f32 %v5642_v7, 0.0  ;;  %5765 = vst.msk [vmem:[#allocation5 + $0x31] sm:$0xff] %vm467_vm2, %v5732_v36  ;;  %6372 = vrot.lane.b32.xlu0 %v14120_v3, %s9953_s9  ;;  %v5586_v34 = vpop.f32.mrb[14].mxu0  ;;  %v14125_v32 = vld [vmem:[#allocation5 + $0x21] sm:$0xff] }
 0x602   : > { %v5646_v26 = vpop.f32.mrb[18].mxu1  ;;  %v5587_v14 = vadd.f32 %v14092_v25, %v5586_v34  ;;  %6122 = vrot.lane.b32.xlu1 %v14125_v32, %s9949_s21  ;;  %v5588_v40 = vpop.f32.mrb[15].mxu0  ;;  %v14136_v0 = vld [vmem:[#allocation5 + $0x22] sm:$0xff]  ;;  %v14153_v23 = vld [vmem:[#allocation5 + $0x1a] sm:$0xff] }
 0x603   : > { %5777 = vst.msk [vmem:[#allocation5 + $0xc1] sm:$0xff] %vm467_vm2, %v5744_v6  ;;  %v5647_v20 = vadd.f32 %v14092_v25, %v5646_v26  ;;  %v5648_v11 = vpop.f32.mrb[19].mxu1  ;;  %v14148_v44 = vld [vmem:[#allocation5 + $0x20] sm:$0xff] }
 0x604   : > { %v5733_v45 = vmax.f32 %v5587_v14, 0.0  ;;  %16338 = vst [vmem:[#allocation31_spill] sm:$0xff] %v14148_v44  ;;  %v14219_v14 = vld [vmem:[#allocation5 + $0x81] sm:$0xff] }
 0x605   : > { %v5745_v38 = vmax.f32 %v5647_v20, 0.0  ;;  %6132 = vrot.lane.b32.xlu0 %v14132_v55, %s9949_s21 }
 0x606   : > { %v5651_v49 = vpop.f32.mrb[20].mxu1  ;;  %5766 = vst.msk [vmem:[#allocation5 + $0x39] sm:$0xff] %vm467_vm2, %v5733_v45  ;;  %6250 = vrot.lane.b32.xlu1 %v14136_v0, %s9951_s4  ;;  %v14225_v45 = vld [vmem:[#allocation5 + $0x7a] sm:$0xff] }
 0x607   : > { %5778 = vst.msk [vmem:[#allocation5 + $0xc9] sm:$0xff] %vm467_vm2, %v5745_v38  ;;  %v5652_v1 = vadd.f32 %v14092_v25, %v5651_v49  ;;  %v5653_v12 = vpop.f32.mrb[21].mxu1  ;;  %v14229_v49 = vld [vmem:[#allocation5 + $0x82] sm:$0xff] }
 0x608   : > { %v14175_v10 = vld [vmem:[#allocation5 + $0x31] sm:$0xff] }
 0x609   : > { %v5746_v63 = vmax.f32 %v5652_v1, 0.0  ;;  %v5591_v22 = vpop.f32.mrb[16].mxu0  ;;  %6384 = vrot.lane.b32.xlu0 %v14143_v48, %s9953_s9  ;;  %v14185_v60 = vld [vmem:[#allocation5 + $0x30] sm:$0xff] }
 0x60a   : > { %v5592_v17 = vadd.f32 %v14092_v25, %v5591_v22  ;;  %v5593_v24 = vpop.f32.mrb[17].mxu0  ;;  %6374 = vrot.lane.b32.xlu1 %v14148_v44, %s9953_s9 }
 0x60b   : > { %5779 = vst.msk [vmem:[#allocation5 + $0xd9] sm:$0xff] %vm467_vm2, %v5746_v63  ;;  %v14239_v24 = vld [vmem:[#allocation5 + $0x80] sm:$0xff] }
 0x60c   : > { %v5734_v41 = vmax.f32 %v5592_v17, 0.0 }
 0x60d   : > { %6248 = vrot.lane.b32.xlu0 %v14153_v23, %s9951_s4  ;;  %v5596_v51 = vpop.f32.mrb[18].mxu0  ;;  %v14189_v28 = vld [vmem:[#allocation5 + $0x39] sm:$0xff] }
 0x60e   : > { %5767 = vst.msk [vmem:[#allocation5 + $0x49] sm:$0xff] %vm467_vm2, %v5734_v41  ;;  %v5656_v19 = vpop.f32.mrb[22].mxu1  ;;  %v5597_v37 = vadd.f32 %v14092_v25, %v5596_v51  ;;  %6134 = vrot.lane.b32.xlu1 %v14158_v5, %s9949_s21  ;;  %v5598_v61 = vpop.f32.mrb[19].mxu0  ;;  %v14199_v8 = vld [vmem:[#allocation5 + $0x3a] sm:$0xff]  ;;  %v14215_v34 = vld [vmem:[#allocation5 + $0x32] sm:$0xff] }
 0x60f   : > { %v5657_v52 = vadd.f32 %v14092_v25, %v5656_v19  ;;  %v5658_v13 = vpop.f32.mrb[23].mxu1  ;;  %v14209_v7 = vld [vmem:[#allocation5 + $0x38] sm:$0xff] }
 0x610   : > { %v5735_v21 = vmax.f32 %v5597_v37, 0.0 }
 0x611   : > { %v5747_v29 = vmax.f32 %v5657_v52, 0.0  ;;  %6260 = vrot.lane.b32.xlu0 %v14164_v9, %s9951_s4 }
 0x612   : > { %v5661_v50 = vpop.f32.mrb[24].mxu1  ;;  %5768 = vst.msk [vmem:[#allocation5 + $0x51] sm:$0xff] %vm467_vm2, %v5735_v21  ;;  %6262 = vrot.lane.b32.xlu1 %v14168_v30, %s9951_s4 }
 0x613   : > { %5780 = vst.msk [vmem:[#allocation5 + $0xe1] sm:$0xff] %vm467_vm2, %v5747_v29  ;;  %v5662_v39 = vadd.f32 %v14092_v25, %v5661_v50  ;;  %v5663_v54 = vpop.f32.mrb[25].mxu1  ;;  %v14255_v50 = vld [vmem:[#allocation5 + $0x91] sm:$0xff] }
 0x615   : > { %v5748_v2 = vmax.f32 %v5662_v39, 0.0  ;;  %6124 = vrot.lane.b32.xlu0 %v14175_v10, %s9949_s21  ;;  %v14235_v22 = vld [vmem:[#allocation5 + $0x49] sm:$0xff] }
 0x616   : > { %6386 = vrot.lane.b32.xlu1 %v14179_v27, %s9953_s9  ;;  %v14245_v37 = vld [vmem:[#allocation5 + $0x48] sm:$0xff] }
 0x617   : > { %v5666_v43 = vpop.f32.mrb[26].mxu1  ;;  %5781 = vst.msk [vmem:[#allocation5 + $0xf1] sm:$0xff] %vm467_vm2, %v5748_v2 }
 0x618   : > { %v5667_v53 = vadd.f32 %v14092_v25, %v5666_v43  ;;  %v5668_v47 = vpop.f32.mrb[27].mxu1 }
 0x619   : > { %6376 = vrot.lane.b32.xlu0 %v14185_v60, %s9953_s9  ;;  %v14249_v61 = vld [vmem:[#allocation5 + $0x51] sm:$0xff] }
 0x61a   : > { %v5749_v18 = vmax.f32 %v5667_v53, 0.0  ;;  %6126 = vrot.lane.b32.xlu1 %v14189_v28, %s9949_s21  ;;  %v14259_v54 = vld [vmem:[#allocation5 + $0x52] sm:$0xff] }
 0x61b   : > { %v5671_v62 = vpop.f32.mrb[28].mxu1  ;;  %v14265_v47 = vld [vmem:[#allocation5 + $0x90] sm:$0xff] }
 0x61c   : > { %5782 = vst.msk [vmem:[#allocation5 + $0xf9] sm:$0xff] %vm467_vm2, %v5749_v18  ;;  %v5672_v42 = vadd.f32 %v14092_v25, %v5671_v62  ;;  %v5673_v56 = vpop.f32.mrb[29].mxu1  ;;  %v14269_v62 = vld [vmem:[#allocation5 + $0x50] sm:$0xff] }
 0x61d   : > { %6136 = vrot.lane.b32.xlu0 %v14195_v35, %s9949_s21 }
 0x61e   : > { %v5750_v46 = vmax.f32 %v5672_v42, 0.0  ;;  %6254 = vrot.lane.b32.xlu1 %v14199_v8, %s9951_s4  ;;  %v14444_v44 = vld [vmem:[#allocation5 + $0xf0] sm:$0xff] }
 0x61f   : > { %v5676_v15 = vpop.f32.mrb[30].mxu1  ;;  %16362 = vst [vmem:[#allocation108_spill] sm:$0xff] %v14444_v44 }
 0x620   : > { %5783 = vst.msk [vmem:[#allocation5 + $0x109] sm:$0xff] %vm467_vm2, %v5750_v46  ;;  %v5677_v4 = vadd.f32 %v14092_v25, %v5676_v15  ;;  %v5678_v31 = vpop.f32.mrb[31].mxu1  ;;  %v14275_v15 = vld [vmem:[#allocation5 + $0x4a] sm:$0xff] }
 0x621   : > { %6388 = vrot.lane.b32.xlu0 %v14205_v59, %s9953_s9  ;;  %v14279_v31 = vld [vmem:[#allocation5 + $0x99] sm:$0xff] }
 0x622   : > { %v5751_v58 = vmax.f32 %v5677_v4, 0.0  ;;  %6378 = vrot.lane.b32.xlu1 %v14209_v7, %s9953_s9 }
 0x623   : > { %v5681_v16 = vpop.f32.mrb[32].mxu1 }
 0x624   : > { %5784 = vst.msk [vmem:[#allocation5 + $0x111] sm:$0xff] %vm467_vm2, %v5751_v58  ;;  %v5682_v57 = vadd.f32 %v14092_v25, %v5681_v16  ;;  %v5683_v36 = vpop.f32.mrb[33].mxu1 }
 0x625   : > { %6252 = vrot.lane.b32.xlu0 %v14215_v34, %s9951_s4  ;;  %v14285_v36 = vld [vmem:[#allocation5 + $0x92] sm:$0xff] }
 0x626   : > { %v5752_v6 = vmax.f32 %v5682_v57, 0.0  ;;  %6138 = vrot.lane.b32.xlu1 %v14219_v14, %s9949_s21 }
 0x627   : > { %v5686_v26 = vpop.f32.mrb[34].mxu1 }
 0x628   : > { %5785 = vst.msk [vmem:[#allocation5 + $0x121] sm:$0xff] %vm467_vm2, %v5752_v6  ;;  %v5687_v20 = vadd.f32 %v14092_v25, %v5686_v26  ;;  %v5688_v40 = vpop.f32.mrb[35].mxu1  ;;  %v14289_v26 = vld [vmem:[#allocation5 + $0x9a] sm:$0xff] }
 0x629   : > { %6264 = vrot.lane.b32.xlu0 %v14225_v45, %s9951_s4 }
 0x62a   : > { %v5753_v11 = vmax.f32 %v5687_v20, 0.0  ;;  %6266 = vrot.lane.b32.xlu1 %v14229_v49, %s9951_s4 }
 0x62b   : > { %v5691_v38 = vpop.f32.mrb[36].mxu1 }
 0x62c   : > { %5786 = vst.msk [vmem:[#allocation5 + $0x129] sm:$0xff] %vm467_vm2, %v5753_v11  ;;  %v5692_v1 = vadd.f32 %v14092_v25, %v5691_v38  ;;  %v5693_v12 = vpop.f32.mrb[37].mxu1  ;;  %v14295_v38 = vld [vmem:[#allocation5 + $0xa9] sm:$0xff] }
 0x62d   : > { %6128 = vrot.lane.b32.xlu0 %v14235_v22, %s9949_s21  ;;  %v14299_v12 = vld [vmem:[#allocation5 + $0x98] sm:$0xff] }
 0x62e   : > { %v5754_v63 = vmax.f32 %v5692_v1, 0.0  ;;  %6390 = vrot.lane.b32.xlu1 %v14239_v24, %s9953_s9 }
 0x62f   : > { %v5696_v17 = vpop.f32.mrb[38].mxu1 }
 0x630   : > { %5787 = vst.msk [vmem:[#allocation5 + $0x139] sm:$0xff] %vm467_vm2, %v5754_v63  ;;  %v5697_v41 = vadd.f32 %v14092_v25, %v5696_v17  ;;  %v5698_v51 = vpop.f32.mrb[39].mxu1 }
 0x631   : > { %6380 = vrot.lane.b32.xlu0 %v14245_v37, %s9953_s9  ;;  %v14305_v51 = vld [vmem:[#allocation5 + $0xaa] sm:$0xff] }
 0x632   : > { %v5755_v19 = vmax.f32 %v5697_v41, 0.0  ;;  %6130 = vrot.lane.b32.xlu1 %v14249_v61, %s9949_s21 }
 0x633   : > { %v5701_v52 = vpop.f32.mrb[40].mxu1 }
 0x634   : > { %5788 = vst.msk [vmem:[#allocation5 + $0x141] sm:$0xff] %vm467_vm2, %v5755_v19  ;;  %v5702_v13 = vadd.f32 %v14092_v25, %v5701_v52  ;;  %v5703_v21 = vpop.f32.mrb[41].mxu1  ;;  %v14309_v19 = vld [vmem:[#allocation5 + $0xb1] sm:$0xff]  ;;  %v14314_v52 = vld [vmem:[#allocation5 + $0xc1] sm:$0xff] }
 0x635   : > { %6140 = vrot.lane.b32.xlu0 %v14255_v50, %s9949_s21  ;;  %v14326_v21 = vld [vmem:[#allocation5 + $0xc9] sm:$0xff] }
 0x636   : > { %v5756_v29 = vmax.f32 %v5702_v13, 0.0  ;;  %6258 = vrot.lane.b32.xlu1 %v14259_v54, %s9951_s4  ;;  %v14322_v13 = vld [vmem:[#allocation5 + $0xc2] sm:$0xff] }
 0x637   : > { %v5706_v39 = vpop.f32.mrb[42].mxu1 }
 0x638   : > { %5789 = vst.msk [vmem:[#allocation5 + $0x151] sm:$0xff] %vm467_vm2, %v5756_v29  ;;  %v5707_v2 = vadd.f32 %v14092_v25, %v5706_v39  ;;  %v5708_v43 = vpop.f32.mrb[43].mxu1  ;;  %v14330_v29 = vld [vmem:[#allocation5 + $0xd9] sm:$0xff]  ;;  %v14334_v39 = vld [vmem:[#allocation5 + $0xca] sm:$0xff] }
 0x639   : > { %6392 = vrot.lane.b32.xlu0 %v14265_v47, %s9953_s9  ;;  %16339 = vst [vmem:[#allocation29_spill] sm:$0xff] %v14330_v29  ;;  %v14342_v43 = vld [vmem:[#allocation5 + $0xe1] sm:$0xff] }
 0x63a   : > { %v5757_v53 = vmax.f32 %v5707_v2, 0.0  ;;  %6382 = vrot.lane.b32.xlu1 %v14269_v62, %s9953_s9  ;;  %v14338_v2 = vld [vmem:[#allocation5 + $0xda] sm:$0xff]  ;;  %16341 = vst [vmem:[#allocation43_spill] sm:$0xff] %v14342_v43 }
 0x63b   : > { %v5711_v18 = vpop.f32.mrb[44].mxu1  ;;  %16340 = vst [vmem:[#allocation37_spill] sm:$0xff] %v14338_v2 }
 0x63c   : > { %5790 = vst.msk [vmem:[#allocation5 + $0x159] sm:$0xff] %vm467_vm2, %v5757_v53  ;;  %v5712_v42 = vadd.f32 %v14092_v25, %v5711_v18  ;;  %v5713_v56 = vpop.f32.mrb[45].mxu1  ;;  %v5847_v53 = vld [vmem:[#allocation5 + $0xf1] sm:$0xff]  ;;  %v14347_v18 = vld [vmem:[#allocation5 + $0xe2] sm:$0xff] }
 0x63d   : > { %6256 = vrot.lane.b32.xlu0 %v14275_v15, %s9951_s4  ;;  %16342 = vst [vmem:[#allocation91_spill] sm:$0xff] %v14347_v18  ;;  %v5848_v56 = vld [vmem:[#allocation5 + $0xf9] sm:$0xff] }
 0x63e   : > { %v5758_v46 = vmax.f32 %v5712_v42, 0.0  ;;  %6142 = vrot.lane.b32.xlu1 %v14279_v31, %s9949_s21  ;;  %v5879_v42 = vld [vmem:[#allocation5 + $0xf2] sm:$0xff] }
 0x63f   : > { %v5716_v4 = vpop.f32.mrb[46].mxu1 }
 0x640   : > { %5791 = vst.msk [vmem:[#allocation5 + $0x169] sm:$0xff] %vm467_vm2, %v5758_v46  ;;  %v5717_v58 = vadd.f32 %v14092_v25, %v5716_v4  ;;  %v5718_v16 = vpop.f32.mrb[47].mxu1  ;;  %v14353_v46 = vpop.permute.xlu0 %6116  ;;  %v5849_v4 = vld [vmem:[#allocation5 + $0x109] sm:$0xff] }
 0x641   : > { %6268 = vrot.lane.b32.xlu0 %v14285_v36, %s9951_s4  ;;  %v5881_v16 = vld [vmem:[#allocation5 + $0x10a] sm:$0xff] }
 0x642   : > { %v5759_v57 = vmax.f32 %v5717_v58, 0.0  ;;  %6270 = vrot.lane.b32.xlu1 %v14289_v26, %s9951_s4  ;;  %v5880_v58 = vld [vmem:[#allocation5 + $0xfa] sm:$0xff] }
 0x643   : > { %v5721_v6 = vpop.f32.mrb[48].mxu1 }
 0x644   : > { %5792 = vst.msk [vmem:[#allocation5 + $0x171] sm:$0xff] %vm467_vm2, %v5759_v57  ;;  %v5722_v20 = vadd.f32 %v14092_v25, %v5721_v6  ;;  %v5723_v40 = vpop.f32.mrb[49].mxu1  ;;  %v5850_v57 = vld [vmem:[#allocation5 + $0x111] sm:$0xff]  ;;  %v14358_v6 = vpop.permute.xlu0 %6244 }
 0x645   : > { %6144 = vrot.lane.b32.xlu0 %v14295_v38, %s9949_s21  ;;  %v5851_v40 = vld [vmem:[#allocation5 + $0x121] sm:$0xff] }
 0x646   : > { %v5760_v11 = vmax.f32 %v5722_v20, 0.0  ;;  %6394 = vrot.lane.b32.xlu1 %v14299_v12, %s9953_s9  ;;  %v14360_v20 = vpop.permute.xlu1 %6118 }
 0x647   : > { %v5726_v1 = vpop.f32.mrb[50].mxu1 }
 0x648   : > { %5793 = vst.msk [vmem:[#allocation5 + $0x181] sm:$0xff] %vm467_vm2, %v5760_v11  ;;  %v5727_v63 = vadd.f32 %v14092_v25, %v5726_v1  ;;  %v5728_v17 = vpop.f32.mrb[51].mxu1  ;;  %v14318_v25 = vld [vmem:[#allocation5 + $0xb2] sm:$0xff] }
 0x649   : > { %6272 = vrot.lane.b32.xlu0 %v14305_v51, %s9951_s4  ;;  %v5882_v11 = vld [vmem:[#allocation5 + $0x112] sm:$0xff]  ;;  %v5883_v17 = vld [vmem:[#allocation5 + $0x122] sm:$0xff] }
 0x64a   : > { %v5761_v41 = vmax.f32 %v5727_v63, 0.0  ;;  %6146 = vrot.lane.b32.xlu1 %v14309_v19, %s9949_s21  ;;  %v14367_v63 = vpop.permute.xlu1 %6246 }
 0x64c   : > { %5794 = vst.msk [vmem:[#allocation5 + $0x189] sm:$0xff] %vm467_vm2, %v5761_v41  ;;  %v5852_v41 = vld [vmem:[#allocation5 + $0x129] sm:$0xff] }
 0x64d   : > { %6148 = vrot.lane.b32.xlu0 %v14314_v52, %s9949_s21 }
 0x64e   : > { %6274 = vrot.lane.b32.xlu1 %v14318_v25, %s9951_s4 }
 0x651   : > { %6276 = vrot.lane.b32.xlu0 %v14322_v13, %s9951_s4 }
 0x652   : > { %6150 = vrot.lane.b32.xlu1 %v14326_v21, %s9949_s21 }
 0x655   : > { %6152 = vrot.lane.b32.xlu0 %v14330_v29, %s9949_s21  ;;  %v14456_v29 = vld [vmem:[#allocation5 + $0x108] sm:$0xff] }
 0x656   : > { %6278 = vrot.lane.b32.xlu1 %v14334_v39, %s9951_s4  ;;  %16366 = vst [vmem:[#allocation61_spill] sm:$0xff] %v14456_v29 }
 0x659   : > { %6280 = vrot.lane.b32.xlu0 %v14338_v2, %s9951_s4 }
 0x65a   : > { %6154 = vrot.lane.b32.xlu1 %v14342_v43, %s9949_s21  ;;  %v5857_v43 = vld [vmem:[#allocation5 + $0x169] sm:$0xff] }
 0x65d   : > { %6156 = vrot.lane.b32.xlu0 %v5847_v53, %s9949_s21 }
 0x65e   : > { %6282 = vrot.lane.b32.xlu1 %v14347_v18, %s9951_s4  ;;  %v5887_v18 = vld [vmem:[#allocation5 + $0x152] sm:$0xff] }
 0x661   : > { %6284 = vrot.lane.b32.xlu0 %v5879_v42, %s9951_s4 }
 0x662   : > { %6158 = vrot.lane.b32.xlu1 %v5848_v56, %s9949_s21  ;;  %v5853_v56 = vld [vmem:[#allocation5 + $0x139] sm:$0xff] }
 0x665   : > { %6160 = vrot.lane.b32.xlu0 %v5849_v4, %s9949_s21  ;;  %v5884_v4 = vld [vmem:[#allocation5 + $0x12a] sm:$0xff] }
 0x666   : > { %6286 = vrot.lane.b32.xlu1 %v5880_v58, %s9951_s4 }
 0x669   : > { %6288 = vrot.lane.b32.xlu0 %v5881_v16, %s9951_s4 }
 0x66a   : > { %6162 = vrot.lane.b32.xlu1 %v5850_v57, %s9949_s21  ;;  %v5885_v57 = vld [vmem:[#allocation5 + $0x13a] sm:$0xff] }
 0x66d   : > { %6164 = vrot.lane.b32.xlu0 %v5851_v40, %s9949_s21  ;;  %v5854_v40 = vld [vmem:[#allocation5 + $0x141] sm:$0xff] }
 0x66e   : > { %6290 = vrot.lane.b32.xlu1 %v5882_v11, %s9951_s4 }
 0x66f   : > { %v14365_v1 = vpop.permute.xlu0 %6120 }
 0x671   : > { %6292 = vrot.lane.b32.xlu0 %v5883_v17, %s9951_s4 }
 0x672   : > { %6166 = vrot.lane.b32.xlu1 %v5852_v41, %s9949_s21  ;;  %v5855_v41 = vld [vmem:[#allocation5 + $0x151] sm:$0xff] }
 0x673   : > { %v14371_v53 = vpop.permute.xlu0 %6372 }
 0x674   : > { %v14373_v42 = vpop.permute.xlu1 %6122 }
 0x675   : > { %16343 = vst [vmem:[#allocation92_spill] sm:$0xff] %v14373_v42  ;;  %6168 = vrot.lane.b32.xlu0 %v5853_v56, %s9949_s21  ;;  %v5886_v56 = vld [vmem:[#allocation5 + $0x142] sm:$0xff] }
 0x676   : > { %6294 = vrot.lane.b32.xlu1 %v5884_v4, %s9951_s4 }
 0x677   : > { %v14377_v58 = vpop.permute.xlu0 %6132 }
 0x678   : > { %16344 = vst [vmem:[#allocation49_spill] sm:$0xff] %v14377_v58  ;;  %v14379_v16 = vpop.permute.xlu1 %6250 }
 0x679   : > { %16345 = vst [vmem:[#allocation30_spill] sm:$0xff] %v14379_v16  ;;  %6296 = vrot.lane.b32.xlu0 %v5885_v57, %s9951_s4  ;;  %v5856_v57 = vld [vmem:[#allocation5 + $0x159] sm:$0xff] }
 0x67a   : > { %6170 = vrot.lane.b32.xlu1 %v5854_v40, %s9949_s21  ;;  %v14432_v16 = vld [vmem:[#allocation5 + $0xd8] sm:$0xff] }
 0x67b   : > { %v14383_v11 = vpop.permute.xlu0 %6384  ;;  %16359 = vst [vmem:[#allocation105_spill] sm:$0xff] %v14432_v16 }
 0x67c   : > { %16346 = vst [vmem:[#allocation97_spill] sm:$0xff] %v14383_v11  ;;  %v14385_v17 = vpop.permute.xlu1 %6374 }
 0x67d   : > { %6172 = vrot.lane.b32.xlu0 %v5855_v41, %s9949_s21  ;;  %v5888_v41 = vld [vmem:[#allocation5 + $0x15a] sm:$0xff] }
 0x67e   : > { %6298 = vrot.lane.b32.xlu1 %v5886_v56, %s9951_s4 }
 0x67f   : > { %v14389_v4 = vpop.permute.xlu0 %6248 }
 0x680   : > { %16347 = vst [vmem:[#allocation94_spill] sm:$0xff] %v14389_v4  ;;  %v14391_v58 = vpop.permute.xlu1 %6134 }
 0x681   : > { %16348 = vst [vmem:[#allocation99_spill] sm:$0xff] %v14391_v58  ;;  %6300 = vrot.lane.b32.xlu0 %v5887_v18, %s9951_s4  ;;  %v5889_v58 = vld [vmem:[#allocation5 + $0x16a] sm:$0xff] }
 0x682   : > { %6174 = vrot.lane.b32.xlu1 %v5856_v57, %s9949_s21  ;;  %v5858_v18 = vld [vmem:[#allocation5 + $0x171] sm:$0xff] }
 0x683   : > { %v14395_v40 = vpop.permute.xlu0 %6260 }
 0x684   : > { %16349 = vst [vmem:[#allocation98_spill] sm:$0xff] %v14395_v40  ;;  %v14397_v11 = vpop.permute.xlu1 %6262 }
 0x685   : > { %16350 = vst [vmem:[#allocation93_spill] sm:$0xff] %v14397_v11  ;;  %6176 = vrot.lane.b32.xlu0 %v5857_v43, %s9949_s21  ;;  %v14411_v11 = vld [vmem:[#allocation5 + $0xa8] sm:$0xff]  ;;  %v5890_v43 = vld [vmem:[#allocation5 + $0x172] sm:$0xff] }
 0x686   : > { %6302 = vrot.lane.b32.xlu1 %v5888_v41, %s9951_s4 }
 0x687   : > { %v14401_v56 = vpop.permute.xlu0 %6124 }
 0x688   : > { %16351 = vst [vmem:[#allocation96_spill] sm:$0xff] %v14401_v56  ;;  %v14403_v2 = vpop.permute.xlu1 %6386 }
 0x689   : > { %16352 = vst [vmem:[#allocation48_spill] sm:$0xff] %v14403_v2  ;;  %6304 = vrot.lane.b32.xlu0 %v5889_v58, %s9951_s4  ;;  %v14420_v58 = vld [vmem:[#allocation5 + $0xc0] sm:$0xff] }
 0x68a   : > { %6178 = vrot.lane.b32.xlu1 %v5858_v18, %s9949_s21  ;;  %v14424_v18 = vld [vmem:[#allocation5 + $0xb0] sm:$0xff] }
 0x68b   : > { %v14407_v57 = vpop.permute.xlu0 %6376 }
 0x68c   : > { %16353 = vst [vmem:[#allocation95_spill] sm:$0xff] %v14407_v57  ;;  %v14409_v40 = vpop.permute.xlu1 %6126 }
 0x68d   : > { %16354 = vst [vmem:[#allocation100_spill] sm:$0xff] %v14409_v40  ;;  %6396 = vrot.lane.b32.xlu0 %v14411_v11, %s9953_s9 }
 0x68e   : > { %6306 = vrot.lane.b32.xlu1 %v5890_v43, %s9951_s4  ;;  %v14436_v43 = vld [vmem:[#allocation5 + $0xc8] sm:$0xff]  ;;  %s15159_s4 = scalar_lea.vmem [#allocation20], %s7949_s12  ;;  %s8040_s12 = sshll.u32 %s10038_s11, 12 }
 0x68f   : > { %v14416_v41 = vpop.permute.xlu0 %6136  ;;  %s7779_s16 = sshll.u32 %s15159_s4, 4  ;;  %s7766_s11 = scalar_lea.sflag [#allocation8], %s10332_s6  ;;  %s15376_s16 = int_to_ptr.vmem [resolvable:$true] %s7779_s16 }
 0x690   : > { %16355 = vst [vmem:[#allocation101_spill] sm:$0xff] %v14416_v41  ;;  %v14418_v2 = vpop.permute.xlu1 %6254 }
 0x691   : > { %16356 = vst [vmem:[#allocation102_spill] sm:$0xff] %v14418_v2  ;;  %6400 = vrot.lane.b32.xlu0 %v14420_v58, %s9953_s9 }
 0x692   : > { %6398 = vrot.lane.b32.xlu1 %v14424_v18, %s9953_s9 }
 0x693   : > { %v14428_v40 = vpop.permute.xlu0 %6388 }
 0x694   : > { %16357 = vst [vmem:[#allocation103_spill] sm:$0xff] %v14428_v40  ;;  %v14430_v56 = vpop.permute.xlu1 %6378  ;;  %v14448_v40 = vld [vmem:[#allocation5 + $0xe0] sm:$0xff] }
 0x695   : > { %16358 = vst [vmem:[#allocation104_spill] sm:$0xff] %v14430_v56  ;;  %6404 = vrot.lane.b32.xlu0 %v14432_v16, %s9953_s9  ;;  %16363 = vst [vmem:[#allocation113_spill] sm:$0xff] %v14448_v40  ;;  %v7364_v16 = vld [vmem:[#allocation17] sm:$0xff] }
 0x696   : > { %6402 = vrot.lane.b32.xlu1 %v14436_v43, %s9953_s9 }
 0x697   : > { %v14440_v41 = vpop.permute.xlu0 %6252 }
 0x698   : > { %16360 = vst [vmem:[#allocation106_spill] sm:$0xff] %v14440_v41  ;;  %v14442_v2 = vpop.permute.xlu1 %6138  ;;  %v7365_v41 = vld [vmem:[#allocation17 + $0x8] sm:$0xff] }
 0x699   : > { %16361 = vst [vmem:[#allocation107_spill] sm:$0xff] %v14442_v2  ;;  %6408 = vrot.lane.b32.xlu0 %v14444_v44, %s9953_s9  ;;  %v14460_v2 = vld [vmem:[#allocation5 + $0xf8] sm:$0xff]  ;;  %v8218_v57 = vpack.c.bf16 %v7365_v41, %v7364_v16  ;;  %v7368_v41 = vld [vmem:[#allocation17 + $0x20] sm:$0xff] }
 0x69a   : > { %6406 = vrot.lane.b32.xlu1 %v14448_v40, %s9953_s9 }
 0x69b   : > { %v14452_v56 = vpop.permute.xlu0 %6264  ;;  %8219 = vmatprep.subr.bf16.mxu0 %v8218_v57 }
 0x69c   : > { %16364 = vst [vmem:[#allocation83_spill] sm:$0xff] %v14452_v56  ;;  %v14454_v42 = vpop.permute.xlu1 %6266  ;;  %8221 = vmatpush3.bf16.msra.mxu0 %v8218_v57  ;;  %v7367_v56 = vld [vmem:[#allocation17 + $0x18] sm:$0xff] }
 0x69d   : > { %16365 = vst [vmem:[#allocation39_spill] sm:$0xff] %v14454_v42  ;;  %6412 = vrot.lane.b32.xlu0 %v14456_v29, %s9953_s9  ;;  %v7366_v42 = vld [vmem:[#allocation17 + $0x10] sm:$0xff] }
 0x69e   : > { %6410 = vrot.lane.b32.xlu1 %v14460_v2, %s9953_s9  ;;  %v8222_v4 = vpack.c.bf16 %v7367_v56, %v7366_v42  ;;  %v7371_v56 = vld [vmem:[#allocation17 + $0x38] sm:$0xff] }
 0x69f   : > { %v14464_v44 = vpop.permute.xlu0 %6128 }
 0x6a0   : > { %16367 = vst [vmem:[#allocation115_spill] sm:$0xff] %v14464_v44  ;;  %v14466_v40 = vpop.permute.xlu1 %6390  ;;  %8223 = vmatprep.subr.bf16.mxu0 %v8222_v4  ;;  %v7369_v44 = vld [vmem:[#allocation17 + $0x28] sm:$0xff] }
 0x6a1   : > { %6502 = vrot.lane.b32.xlu0 %v14125_v32, %s9955_s0  ;;  %8225 = vmatpush3.bf16.msra.mxu0 %v8222_v4  ;;  %v8226_v57 = vpack.c.bf16 %v7369_v44, %v7368_v41 }
 0x6a2   : > { %6500 = vrot.lane.b32.xlu1 %v14113_v33, %s9955_s0  ;;  %v7370_v33 = vld [vmem:[#allocation17 + $0x30] sm:$0xff] }
 0x6a3   : > { %v14472_v29 = vpop.permute.xlu0 %6380  ;;  %8227 = vmatprep.subr.bf16.mxu0 %v8226_v57  ;;  %v8230_v4 = vpack.c.bf16 %v7371_v56, %v7370_v33 }
 0x6a4   : > { %v14474_v16 = vpop.permute.xlu1 %6130 }
 0x6a5   : > { %6630 = vrot.lane.b32.xlu0 %v14136_v0, %s9956_s3  ;;  %8229 = vmatpush3.bf16.msra.mxu0 %v8226_v57 }
 0x6a6   : > { %6628 = vrot.lane.b32.xlu1 %v14153_v23, %s9956_s3  ;;  %8231 = vmatprep.subr.bf16.mxu0 %v8230_v4  ;;  %v7372_v23 = vld [vmem:[#allocation17 + $0x40] sm:$0xff] }
 0x6a7   : > { %v14480_v32 = vpop.permute.xlu0 %6140 }
 0x6a8   : > { %v14482_v42 = vpop.permute.xlu1 %6258 }
 0x6a9   : > { %6758 = vrot.lane.b32.xlu0 %v14209_v7, %s9961_s20  ;;  %8233 = vmatpush3.bf16.msra.mxu0 %v8230_v4 }
 0x6aa   : > { %6756 = vrot.lane.b32.xlu1 %v14185_v60, %s9961_s20  ;;  %8133 = vmatprep.subr.mxu0 %v7372_v23 }
 0x6ab   : > { %v14488_v0 = vpop.permute.xlu0 %6392 }
 0x6ac   : > { %v14490_v44 = vpop.permute.xlu1 %6382 }
 0x6ad   : > { %6504 = vrot.lane.b32.xlu0 %v14175_v10, %s9955_s0  ;;  %8134 = vmatpush3.msra.mxu0 %v7372_v23 }
 0x6ae   : > { %6884 = vrot.lane.b32.xlu1 %v14175_v10, %s9957_s25 }
 0x6af   : > { %v14496_v41 = vpop.permute.xlu0 %6256 }
 0x6b0   : > { %v14498_v57 = vpop.permute.xlu1 %6142 }
 0x6b1   : > { %16368 = vst [vmem:[#allocation110_spill] sm:$0xff] %v14498_v57  ;;  %7012 = vrot.lane.b32.xlu0 %v14215_v34, %s9962_s23 }
 0x6b2   : > { %6886 = vrot.lane.b32.xlu1 %v14189_v28, %s9957_s25 }
 0x6b3   : > { %v14504_v33 = vpop.permute.xlu0 %6268 }
 0x6b4   : > { %v14506_v56 = vpop.permute.xlu1 %6270 }
 0x6b5   : > { %6632 = vrot.lane.b32.xlu0 %v14215_v34, %s9956_s3 }
 0x6b6   : > { %6506 = vrot.lane.b32.xlu1 %v14189_v28, %s9955_s0 }
 0x6b7   : > { %v14512_v10 = vpop.permute.xlu0 %6144 }
 0x6b8   : > { %v14514_v4 = vpop.permute.xlu1 %6394 }
 0x6b9   : > { %6634 = vrot.lane.b32.xlu0 %v14199_v8, %s9956_s3 }
 0x6ba   : > { %7014 = vrot.lane.b32.xlu1 %v14199_v8, %s9962_s23 }
 0x6bb   : > { %v14520_v23 = vpop.permute.xlu0 %6272 }
 0x6bc   : > { %16369 = vst [vmem:[#allocation155_spill] sm:$0xff] %v14520_v23  ;;  %v14522_v57 = vpop.permute.xlu1 %6146 }
 0x6bd   : > { %16370 = vst [vmem:[#allocation148_spill] sm:$0xff] %v14522_v57  ;;  %6762 = vrot.lane.b32.xlu0 %v14269_v62, %s9961_s20 }
 0x6be   : > { %6760 = vrot.lane.b32.xlu1 %v14245_v37, %s9961_s20 }
 0x6bf   : > { %v14528_v28 = vpop.permute.xlu0 %6148 }
 0x6c0   : > { %16371 = vst [vmem:[#allocation114_spill] sm:$0xff] %v14528_v28  ;;  %v14530_v34 = vpop.permute.xlu1 %6274 }
 0x6c1   : > { %6508 = vrot.lane.b32.xlu0 %v14235_v22, %s9955_s0 }
 0x6c2   : > { %6888 = vrot.lane.b32.xlu1 %v14235_v22, %s9957_s25 }
 0x6c3   : > { %v14536_v8 = vpop.permute.xlu0 %6276 }
 0x6c4   : > { %16372 = vst [vmem:[#allocation50_spill] sm:$0xff] %v14536_v8  ;;  %v14538_v23 = vpop.permute.xlu1 %6150 }
 0x6c5   : > { %16373 = vst [vmem:[#allocation58_spill] sm:$0xff] %v14538_v23  ;;  %7016 = vrot.lane.b32.xlu0 %v14275_v15, %s9962_s23 }
 0x6c6   : > { %6890 = vrot.lane.b32.xlu1 %v14249_v61, %s9957_s25 }
 0x6c7   : > { %v14544_v57 = vpop.permute.xlu0 %6152 }
 0x6c8   : > { %16374 = vst [vmem:[#allocation109_spill] sm:$0xff] %v14544_v57  ;;  %v14546_v28 = vpop.permute.xlu1 %6278 }
 0x6c9   : > { %6636 = vrot.lane.b32.xlu0 %v14275_v15, %s9956_s3 }
 0x6ca   : > { %6510 = vrot.lane.b32.xlu1 %v14249_v61, %s9955_s0 }
 0x6cb   : > { %v14552_v22 = vpop.permute.xlu0 %6280 }
 0x6cc   : > { %v14554_v8 = vpop.permute.xlu1 %6154 }
 0x6cd   : > { %6638 = vrot.lane.b32.xlu0 %v14259_v54, %s9956_s3 }
 0x6ce   : > { %7018 = vrot.lane.b32.xlu1 %v14259_v54, %s9962_s23 }
 0x6cf   : > { %v14560_v23 = vpop.permute.xlu0 %6156 }
 0x6d0   : > { %16375 = vst [vmem:[#allocation57_spill] sm:$0xff] %v14560_v23  ;;  %v14562_v57 = vpop.permute.xlu1 %6282 }
 0x6d1   : > { %6766 = vrot.lane.b32.xlu0 %v14179_v27, %s9961_s20 }
 0x6d2   : > { %6764 = vrot.lane.b32.xlu1 %v14143_v48, %s9961_s20 }
 0x6d3   : > { %v14568_v61 = vpop.permute.xlu0 %6284 }
 0x6d4   : > { %v14570_v15 = vpop.permute.xlu1 %6158 }
 0x6d5   : > { %6512 = vrot.lane.b32.xlu0 %v14132_v55, %s9955_s0 }
 0x6d6   : > { %6892 = vrot.lane.b32.xlu1 %v14132_v55, %s9957_s25 }
 0x6d7   : > { %v14576_v54 = vpop.permute.xlu0 %6160 }
 0x6d8   : > { %16376 = vst [vmem:[#allocation111_spill] sm:$0xff] %v14576_v54  ;;  %v14578_v23 = vpop.permute.xlu1 %6286 }
 0x6d9   : > { %16377 = vst [vmem:[#allocation152_spill] sm:$0xff] %v14578_v23  ;;  %7020 = vrot.lane.b32.xlu0 %v14164_v9, %s9962_s23 }
 0x6da   : > { %6894 = vrot.lane.b32.xlu1 %v14158_v5, %s9957_s25 }
 0x6db   : > { %v14584_v48 = vpop.permute.xlu0 %6288 }
 0x6dc   : > { %16378 = vst [vmem:[#allocation34_spill] sm:$0xff] %v14584_v48  ;;  %v14586_v27 = vpop.permute.xlu1 %6162 }
 0x6dd   : > { %16379 = vst [vmem:[#allocation56_spill] sm:$0xff] %v14586_v27  ;;  %6640 = vrot.lane.b32.xlu0 %v14164_v9, %s9956_s3  ;;  %v5796_v27 = vld [vmem:[#allocation5 + $0x8] sm:$0xff] }
 0x6de   : > { %6514 = vrot.lane.b32.xlu1 %v14158_v5, %s9955_s0 }
 0x6df   : > { %v14592_v55 = vpop.permute.xlu0 %6164 }
 0x6e0   : > { %16380 = vst [vmem:[#allocation116_spill] sm:$0xff] %v14592_v55  ;;  %v14594_v54 = vpop.permute.xlu1 %6290 }
 0x6e1   : > { %16381 = vst [vmem:[#allocation112_spill] sm:$0xff] %v14594_v54  ;;  %6642 = vrot.lane.b32.xlu0 %v14168_v30, %s9956_s3 }
 0x6e2   : > { %7022 = vrot.lane.b32.xlu1 %v14168_v30, %s9962_s23 }
 0x6e3   : > { %v14600_v23 = vpop.permute.xlu0 %6292 }
 0x6e4   : > { %16382 = vst [vmem:[#allocation71_spill] sm:$0xff] %v14600_v23  ;;  %v14602_v48 = vpop.permute.xlu1 %6166 }
 0x6e5   : > { %16383 = vst [vmem:[#allocation158_spill] sm:$0xff] %v14602_v48  ;;  %6770 = vrot.lane.b32.xlu0 %v14239_v24, %s9961_s20 }
 0x6e6   : > { %6768 = vrot.lane.b32.xlu1 %v14205_v59, %s9961_s20 }
 0x6e7   : > { %v14608_v5 = vpop.permute.xlu0 %6168 }
 0x6e8   : > { %16384 = vst [vmem:[#allocation159_spill] sm:$0xff] %v14608_v5  ;;  %v14610_v9 = vpop.permute.xlu1 %6294 }
 0x6e9   : > { %16385 = vst [vmem:[#allocation38_spill] sm:$0xff] %v14610_v9  ;;  %6516 = vrot.lane.b32.xlu0 %v14195_v35, %s9955_s0 }
 0x6ea   : > { %6896 = vrot.lane.b32.xlu1 %v14195_v35, %s9957_s25 }
 0x6eb   : > { %v14616_v30 = vpop.permute.xlu0 %6296 }
 0x6ec   : > { %16386 = vst [vmem:[#allocation117_spill] sm:$0xff] %v14616_v30  ;;  %v14618_v23 = vpop.permute.xlu1 %6170 }
 0x6ed   : > { %16387 = vst [vmem:[#allocation118_spill] sm:$0xff] %v14618_v23  ;;  %7024 = vrot.lane.b32.xlu0 %v14225_v45, %s9962_s23 }
 0x6ee   : > { %6898 = vrot.lane.b32.xlu1 %v14219_v14, %s9957_s25 }
 0x6ef   : > { %v14624_v59 = vpop.permute.xlu0 %6172 }
 0x6f0   : > { %16388 = vst [vmem:[#allocation70_spill] sm:$0xff] %v14624_v59  ;;  %v14626_v24 = vpop.permute.xlu1 %6298 }
 0x6f1   : > { %16389 = vst [vmem:[#allocation55_spill] sm:$0xff] %v14626_v24  ;;  %6644 = vrot.lane.b32.xlu0 %v14225_v45, %s9956_s3 }
 0x6f2   : > { %6518 = vrot.lane.b32.xlu1 %v14219_v14, %s9955_s0 }
 0x6f3   : > { %v14632_v35 = vpop.permute.xlu0 %6300 }
 0x6f4   : > { %16390 = vst [vmem:[#allocation28_spill] sm:$0xff] %v14632_v35  ;;  %v14634_v30 = vpop.permute.xlu1 %6174  ;;  %v5795_v35 = vld [vmem:[#allocation5] sm:$0xff] }
 0x6f5   : > { %16391 = vst [vmem:[#allocation32_spill] sm:$0xff] %v14634_v30  ;;  %6646 = vrot.lane.b32.xlu0 %v14229_v49, %s9956_s3 }
 0x6f6   : > { %7026 = vrot.lane.b32.xlu1 %v14229_v49, %s9962_s23 }
 0x6f7   : > { %v14640_v23 = vpop.permute.xlu0 %6176 }
 0x6f8   : > { %16392 = vst [vmem:[#allocation124_spill] sm:$0xff] %v14640_v23  ;;  %v14642_v59 = vpop.permute.xlu1 %6302 }
 0x6f9   : > { %16393 = vst [vmem:[#allocation119_spill] sm:$0xff] %v14642_v59  ;;  %6774 = vrot.lane.b32.xlu0 %v14299_v12, %s9961_s20 }
 0x6fa   : > { %6772 = vrot.lane.b32.xlu1 %v14265_v47, %s9961_s20 }
 0x6fb   : > { %v14648_v14 = vpop.permute.xlu0 %6304 }
 0x6fc   : > { %16394 = vst [vmem:[#allocation79_spill] sm:$0xff] %v14648_v14  ;;  %v14650_v45 = vpop.permute.xlu1 %6178 }
 0x6fd   : > { %16395 = vst [vmem:[#allocation81_spill] sm:$0xff] %v14650_v45  ;;  %6520 = vrot.lane.b32.xlu0 %v14255_v50, %s9955_s0 }
 0x6fe   : > { %6900 = vrot.lane.b32.xlu1 %v14255_v50, %s9957_s25 }
 0x6ff   : > { %v14656_v49 = vpop.permute.xlu0 %6396 }
 0x700   : > { %v14658_v23 = vpop.permute.xlu1 %6306 }
 0x701   : > { %16396 = vst [vmem:[#allocation68_spill] sm:$0xff] %v14658_v23  ;;  %7028 = vrot.lane.b32.xlu0 %v14285_v36, %s9962_s23 }
 0x702   : > { %6902 = vrot.lane.b32.xlu1 %v14279_v31, %s9957_s25 }
 0x703   : > { %v14664_v47 = vpop.permute.xlu0 %6400 }
 0x704   : > { %v14666_v12 = vpop.permute.xlu1 %6398 }
 0x705   : > { %6648 = vrot.lane.b32.xlu0 %v14285_v36, %s9956_s3 }
 0x706   : > { %6522 = vrot.lane.b32.xlu1 %v14279_v31, %s9955_s0 }
 0x707   : > { %v14672_v50 = vpop.permute.xlu0 %6404 }
 0x708   : > { %v14674_v45 = vpop.permute.xlu1 %6402 }
 0x709   : > { %6650 = vrot.lane.b32.xlu0 %v14289_v26, %s9956_s3 }
 0x70a   : > { %7030 = vrot.lane.b32.xlu1 %v14289_v26, %s9962_s23 }
 0x70b   : > { %v14680_v23 = vpop.permute.xlu0 %6408 }
 0x70c   : > { %v14682_v14 = vpop.permute.xlu1 %6406 }
 0x70d   : > { %6778 = vrot.lane.b32.xlu0 %v14424_v18, %s9961_s20 }
 0x70e   : > { %6776 = vrot.lane.b32.xlu1 %v14411_v11, %s9961_s20 }
 0x70f   : > { %v14688_v31 = vpop.permute.xlu0 %6412 }
 0x710   : > { %v14690_v36 = vpop.permute.xlu1 %6410 }
 0x711   : > { %6524 = vrot.lane.b32.xlu0 %v14295_v38, %s9955_s0 }
 0x712   : > { %6904 = vrot.lane.b32.xlu1 %v14295_v38, %s9957_s25  ;;  %v7108_v38 = vsel %vm467_vm2, %v5795_v35, %v14353_v46 }
 0x713   : > { %v6503_v26 = vpop.permute.xlu0 %6502  ;;  %v7140_v48 = vsel %vm1002_vm6, %v7108_v38, %v14358_v6 }
 0x714   : > { %v6501_v59 = vpop.permute.xlu1 %6500 }
 0x715   : > { %7032 = vrot.lane.b32.xlu0 %v14305_v51, %s9962_s23 }
 0x716   : > { %6906 = vrot.lane.b32.xlu1 %v14309_v19, %s9957_s25 }
 0x717   : > { %v6631_v30 = vpop.permute.xlu0 %6630 }
 0x718   : > { %v6629_v24 = vpop.permute.xlu1 %6628 }
 0x719   : > { %6652 = vrot.lane.b32.xlu0 %v14305_v51, %s9956_s3  ;;  %v7172_v51 = vsel %vm1020_vm8, %v7140_v48, %v14371_v53  ;;  %v7109_v53 = vsel %vm467_vm2, %v5796_v27, %v14360_v20 }
 0x71a   : > { %6526 = vrot.lane.b32.xlu1 %v14309_v19, %s9955_s0  ;;  %v7204_v19 = vsel %vm1038_vm10, %v7172_v51, %v6501_v59 }
 0x71b   : > { %v6759_v5 = vpop.permute.xlu0 %6758  ;;  %v7236_v46 = vsel %vm4861_vm12, %v7204_v19, %v6629_v24 }
 0x71c   : > { %v6757_v9 = vpop.permute.xlu1 %6756 }
 0x71d   : > { %6654 = vrot.lane.b32.xlu0 %v14318_v25, %s9956_s3  ;;  %v7268_v35 = vsel %vm4894_vm13, %v7236_v46, %v6757_v9 }
 0x71e   : > { %7034 = vrot.lane.b32.xlu1 %v14318_v25, %s9962_s23 }
 0x71f   : > { %v6505_v55 = vpop.permute.xlu0 %6504 }
 0x720   : > { %v6885_v54 = vpop.permute.xlu1 %6884 }
 0x721   : > { %6782 = vrot.lane.b32.xlu0 %v14436_v43, %s9961_s20  ;;  %v7300_v25 = vsel %vm4927_vm14, %v7268_v35, %v6885_v54  ;;  %v7141_v43 = vsel %vm1002_vm6, %v7109_v53, %v14367_v63 }
 0x722   : > { %6780 = vrot.lane.b32.xlu1 %v14420_v58, %s9961_s20  ;;  %v7173_v54 = vsel %vm1020_vm8, %v7141_v43, %v14385_v17 }
 0x723   : > { %v7013_v6 = vpop.permute.xlu0 %7012  ;;  %v7205_v20 = vsel %vm1038_vm10, %v7173_v54, %v6503_v26  ;;  %v16397_v26 = vld [vmem:[#allocation94_spill] sm:$0xff] }
 0x724   : > { %v7332_v48 = vsel %vm4960_vm15, %v7300_v25, %v7013_v6  ;;  %v6887_v59 = vpop.permute.xlu1 %6886  ;;  %v7237_v27 = vsel %vm4861_vm12, %v7205_v20, %v6631_v30  ;;  %v16401_v20 = vld [vmem:[#allocation29_spill] sm:$0xff] }
 0x725   : > { %6528 = vrot.lane.b32.xlu0 %v14314_v52, %s9955_s0  ;;  %8135 = vmatprep.mubr.msk.f32.mxu0 %vm4993_vm0, %v7332_v48  ;;  %v16400_v48 = vld [vmem:[#allocation105_spill] sm:$0xff] }
 0x726   : > { %6908 = vrot.lane.b32.xlu1 %v14314_v52, %s9957_s25  ;;  %v7269_v52 = vsel %vm4894_vm13, %v7237_v27, %v6759_v5  ;;  %v7110_v5 = vsel %vm467_vm2, %v14120_v3, %v14365_v1  ;;  %v16399_v3 = vld [vmem:[#allocation113_spill] sm:$0xff] }
 0x727   : > { %v6633_v9 = vpop.permute.xlu0 %6632  ;;  %v7301_v63 = vsel %vm4927_vm14, %v7269_v52, %v6887_v59  ;;  %v7142_v46 = vsel %vm1002_vm6, %v7110_v5, %v16397_v26  ;;  %v16404_v52 = vld [vmem:[#allocation30_spill] sm:$0xff] }
 0x728   : > { %v6507_v24 = vpop.permute.xlu1 %6506 }
 0x729   : > { %7036 = vrot.lane.b32.xlu0 %v14322_v13, %s9962_s23 }
 0x72a   : > { %6910 = vrot.lane.b32.xlu1 %v14326_v21, %s9957_s25 }
 0x72b   : > { %v6635_v38 = vpop.permute.xlu0 %6634 }
 0x72c   : > { %v7015_v51 = vpop.permute.xlu1 %7014 }
 0x72d   : > { %v7333_v19 = vsel %vm4960_vm15, %v7301_v63, %v7015_v51  ;;  %6656 = vrot.lane.b32.xlu0 %v14322_v13, %s9956_s3  ;;  %v16398_v13 = vld [vmem:[#allocation95_spill] sm:$0xff] }
 0x72e   : > { %6530 = vrot.lane.b32.xlu1 %v14326_v21, %s9955_s0  ;;  %8136 = vmatmul.mubr.msk.f32.vlgmr.msra.gmra.mrb[20].mxu0 %vm4993_vm0, %v7333_v19  ;;  %v7174_v21 = vsel %vm1020_vm8, %v7142_v46, %v16398_v13  ;;  %v16405_v19 = vld [vmem:[#allocation104_spill] sm:$0xff]  ;;  %v16406_v46 = vld [vmem:[#allocation37_spill] sm:$0xff] }
 0x72f   : > { %v6763_v17 = vpop.permute.xlu0 %6762  ;;  %v7206_v25 = vsel %vm1038_vm10, %v7174_v21, %v6505_v55  ;;  %v16402_v55 = vld [vmem:[#allocation92_spill] sm:$0xff]  ;;  %v16407_v21 = vld [vmem:[#allocation43_spill] sm:$0xff] }
 0x730   : > { %v6761_v30 = vpop.permute.xlu1 %6760  ;;  %v7238_v53 = vsel %vm4861_vm12, %v7206_v25, %v6633_v9  ;;  %v16403_v9 = vld [vmem:[#allocation31_spill] sm:$0xff] }
 0x731   : > { %6658 = vrot.lane.b32.xlu0 %v14334_v39, %s9956_s3  ;;  %v7270_v1 = vsel %vm4894_vm13, %v7238_v53, %v6761_v30  ;;  %v7111_v27 = vsel %vm467_vm2, %v16403_v9, %v16402_v55 }
 0x732   : > { %7038 = vrot.lane.b32.xlu1 %v14334_v39, %s9962_s23  ;;  %v7143_v63 = vsel %vm1002_vm6, %v7111_v27, %v16404_v52  ;;  %v16411_v52 = vld [vmem:[#allocation108_spill] sm:$0xff] }
 0x733   : > { %v6509_v35 = vpop.permute.xlu0 %6508  ;;  %v7175_v30 = vsel %vm1020_vm8, %v7143_v63, %v16405_v19 }
 0x734   : > { %v6889_v6 = vpop.permute.xlu1 %6888  ;;  %v7207_v26 = vsel %vm1038_vm10, %v7175_v30, %v6507_v24 }
 0x735   : > { %6786 = vrot.lane.b32.xlu0 %v16399_v3, %s9961_s20  ;;  %v7302_v59 = vsel %vm4927_vm14, %v7270_v1, %v6889_v6  ;;  %v7239_v13 = vsel %vm4861_vm12, %v7207_v26, %v6635_v38  ;;  %v5941_v26 = vld [vmem:[#allocation5 + $0xf1] sm:$0xff] }
 0x736   : > { %6784 = vrot.lane.b32.xlu1 %v16400_v48, %s9961_s20  ;;  %v7271_v25 = vsel %vm4894_vm13, %v7239_v13, %v6763_v17  ;;  %v16408_v48 = vld [vmem:[#allocation96_spill] sm:$0xff] }
 0x737   : > { %v7017_v39 = vpop.permute.xlu0 %7016  ;;  %v7112_v17 = vsel %vm467_vm2, %v14185_v60, %v16408_v48 }
 0x738   : > { %v7334_v43 = vsel %vm4960_vm15, %v7302_v59, %v7017_v39  ;;  %v6891_v54 = vpop.permute.xlu1 %6890  ;;  %v16409_v59 = vld [vmem:[#allocation91_spill] sm:$0xff]  ;;  %v16410_v39 = vld [vmem:[#allocation106_spill] sm:$0xff] }
 0x739   : > { %6532 = vrot.lane.b32.xlu0 %v16401_v20, %s9955_s0  ;;  %8138 = vmatprep.mubr.msk.f32.mxu0 %vm4993_vm0, %v7334_v43  ;;  %v7303_v53 = vsel %vm4927_vm14, %v7271_v25, %v6891_v54  ;;  %v7144_v43 = vsel %vm1002_vm6, %v7112_v17, %v16410_v39 }
 0x73a   : > { %6912 = vrot.lane.b32.xlu1 %v16401_v20, %s9957_s25  ;;  %v7176_v54 = vsel %vm1020_vm8, %v7144_v43, %v14472_v29 }
 0x73b   : > { %v6637_v51 = vpop.permute.xlu0 %6636  ;;  %v7208_v55 = vsel %vm1038_vm10, %v7176_v54, %v6509_v35  ;;  %v16412_v35 = vld [vmem:[#allocation100_spill] sm:$0xff] }
 0x73c   : > { %v6511_v5 = vpop.permute.xlu1 %6510  ;;  %v7240_v27 = vsel %vm4861_vm12, %v7208_v55, %v6637_v51  ;;  %v16413_v51 = vld [vmem:[#allocation102_spill] sm:$0xff]  ;;  %v5974_v54 = vld [vmem:[#allocation5 + $0xfa] sm:$0xff] }
 0x73d   : > { %7040 = vrot.lane.b32.xlu0 %v16406_v46, %s9962_s23  ;;  %v16415_v55 = vld [vmem:[#allocation97_spill] sm:$0xff] }
 0x73e   : > { %6914 = vrot.lane.b32.xlu1 %v16407_v21, %s9957_s25 }
 0x73f   : > { %v6639_v6 = vpop.permute.xlu0 %6638 }
 0x740   : > { %v7019_v3 = vpop.permute.xlu1 %7018 }
 0x741   : > { %v7335_v1 = vsel %vm4960_vm15, %v7303_v53, %v7019_v3  ;;  %6660 = vrot.lane.b32.xlu0 %v16406_v46, %s9956_s3  ;;  %v6068_v53 = vld [vmem:[#allocation5 + $0xf2] sm:$0xff] }
 0x742   : > { %6534 = vrot.lane.b32.xlu1 %v16407_v21, %s9955_s0  ;;  %8139 = vmatmul.mubr.msk.f32.gmra.mrb[22].mxu0 %vm4993_vm0, %v7335_v1  ;;  %v6037_v1 = vld [vmem:[#allocation5 + $0xf9] sm:$0xff] }
 0x743   : > { %v6767_v24 = vpop.permute.xlu0 %6766 }
 0x744   : > { %v6765_v38 = vpop.permute.xlu1 %6764 }
 0x745   : > { %6662 = vrot.lane.b32.xlu0 %v16409_v59, %s9956_s3  ;;  %v7272_v60 = vsel %vm4894_vm13, %v7240_v27, %v6765_v38 }
 0x746   : > { %7042 = vrot.lane.b32.xlu1 %v16409_v59, %s9962_s23 }
 0x747   : > { %v6513_v20 = vpop.permute.xlu0 %6512 }
 0x748   : > { %v6893_v9 = vpop.permute.xlu1 %6892 }
 0x749   : > { %6790 = vrot.lane.b32.xlu0 %v14460_v2, %s9961_s20  ;;  %v7304_v63 = vsel %vm4927_vm14, %v7272_v60, %v6893_v9  ;;  %v7113_v2 = vsel %vm467_vm2, %v14209_v7, %v16412_v35  ;;  %v14843_v60 = vld [vmem:[#allocation5 + $0x110] sm:$0xff] }
 0x74a   : > { %6788 = vrot.lane.b32.xlu1 %v16411_v52, %s9961_s20  ;;  %v7145_v46 = vsel %vm1002_vm6, %v7113_v2, %v16413_v51  ;;  %v6038_v51 = vld [vmem:[#allocation5 + $0x109] sm:$0xff] }
 0x74b   : > { %v7021_v19 = vpop.permute.xlu0 %7020  ;;  %v7177_v21 = vsel %vm1020_vm8, %v7145_v46, %v14490_v44  ;;  %v16414_v44 = vld [vmem:[#allocation115_spill] sm:$0xff] }
 0x74c   : > { %v7336_v30 = vsel %vm4960_vm15, %v7304_v63, %v7021_v19  ;;  %v6895_v29 = vpop.permute.xlu1 %6894  ;;  %v7209_v3 = vsel %vm1038_vm10, %v7177_v21, %v6511_v5  ;;  %v7114_v5 = vsel %vm467_vm2, %v14245_v37, %v16414_v44  ;;  %v16416_v19 = vld [vmem:[#allocation61_spill] sm:$0xff] }
 0x74d   : > { %6536 = vrot.lane.b32.xlu0 %v5941_v26, %s9955_s0  ;;  %8141 = vmatprep.mubr.msk.f32.mxu0 %vm4993_vm0, %v7336_v30  ;;  %v7241_v38 = vsel %vm4861_vm12, %v7209_v3, %v6639_v6  ;;  %v9609_v44 = vld [vmem:[#allocation5 + $0x60] sm:$0xff] }
 0x74e   : > { %6916 = vrot.lane.b32.xlu1 %v5941_v26, %s9957_s25  ;;  %v7273_v7 = vsel %vm4894_vm13, %v7241_v38, %v6767_v24  ;;  %v7146_v24 = vsel %vm1002_vm6, %v7114_v5, %v14496_v41  ;;  %v7115_v26 = vsel %vm467_vm2, %v14269_v62, %v14474_v16  ;;  %v6039_v62 = vld [vmem:[#allocation5 + $0x111] sm:$0xff]  ;;  %v16418_v5 = vld [vmem:[#allocation49_spill] sm:$0xff] }
 0x74f   : > { %v6641_v13 = vpop.permute.xlu0 %6640  ;;  %v7305_v17 = vsel %vm4927_vm14, %v7273_v7, %v6895_v29  ;;  %v7178_v9 = vsel %vm1020_vm8, %v7146_v24, %v16415_v55  ;;  %v7147_v2 = vsel %vm1002_vm6, %v7115_v26, %v14482_v42  ;;  %v16419_v24 = vld [vmem:[#allocation98_spill] sm:$0xff] }
 0x750   : > { %v6515_v25 = vpop.permute.xlu1 %6514  ;;  %v7210_v52 = vsel %vm1038_vm10, %v7178_v9, %v6513_v20  ;;  %v14892_v26 = vld [vmem:[#allocation5 + $0x128] sm:$0xff] }
 0x751   : > { %7044 = vrot.lane.b32.xlu0 %v6068_v53, %s9962_s23  ;;  %v7242_v37 = vsel %vm4861_vm12, %v7210_v52, %v6641_v13  ;;  %v16417_v13 = vld [vmem:[#allocation48_spill] sm:$0xff]  ;;  %v14883_v52 = vld [vmem:[#allocation5 + $0x120] sm:$0xff] }
 0x752   : > { %6918 = vrot.lane.b32.xlu1 %v6037_v1, %s9957_s25  ;;  %v7179_v21 = vsel %vm1020_vm8, %v7147_v2, %v16417_v13  ;;  %v16421_v2 = vld [vmem:[#allocation99_spill] sm:$0xff] }
 0x753   : > { %v6643_v48 = vpop.permute.xlu0 %6642  ;;  %v7211_v16 = vsel %vm1038_vm10, %v7179_v21, %v6515_v25 }
 0x754   : > { %v7023_v59 = vpop.permute.xlu1 %7022  ;;  %v7243_v42 = vsel %vm4861_vm12, %v7211_v16, %v6643_v48  ;;  %v6071_v48 = vld [vmem:[#allocation5 + $0x112] sm:$0xff] }
 0x755   : > { %v7337_v39 = vsel %vm4960_vm15, %v7305_v17, %v7023_v59  ;;  %6664 = vrot.lane.b32.xlu0 %v6068_v53, %s9956_s3  ;;  %v6070_v59 = vld [vmem:[#allocation5 + $0x10a] sm:$0xff] }
 0x756   : > { %6538 = vrot.lane.b32.xlu1 %v6037_v1, %s9955_s0  ;;  %8142 = vmatmul.mubr.msk.f32.gmra.mrb[24].mxu0 %vm4993_vm0, %v7337_v39 }
 0x757   : > { %v6771_v6 = vpop.permute.xlu0 %6770 }
 0x758   : > { %v6769_v43 = vpop.permute.xlu1 %6768  ;;  %v7275_v3 = vsel %vm4894_vm13, %v7243_v42, %v6771_v6  ;;  %v7116_v6 = vsel %vm467_vm2, %v9609_v44, %v16418_v5  ;;  %v16423_v5 = vld [vmem:[#allocation101_spill] sm:$0xff] }
 0x759   : > { %6666 = vrot.lane.b32.xlu0 %v5974_v54, %s9956_s3  ;;  %v7274_v41 = vsel %vm4894_vm13, %v7242_v37, %v6769_v43  ;;  %v7148_v43 = vsel %vm1002_vm6, %v7116_v6, %v16419_v24  ;;  %v16424_v24 = vld [vmem:[#allocation83_spill] sm:$0xff] }
 0x75a   : > { %7046 = vrot.lane.b32.xlu1 %v5974_v54, %s9962_s23  ;;  %v16420_v54 = vld [vmem:[#allocation103_spill] sm:$0xff] }
 0x75b   : > { %v6517_v27 = vpop.permute.xlu0 %6516  ;;  %v7180_v55 = vsel %vm1020_vm8, %v7148_v43, %v16420_v54 }
 0x75c   : > { %v6897_v63 = vpop.permute.xlu1 %6896 }
 0x75d   : > { %6794 = vrot.lane.b32.xlu0 %v14843_v60, %s9961_s20  ;;  %v7306_v30 = vsel %vm4927_vm14, %v7274_v41, %v6897_v63  ;;  %v7212_v63 = vsel %vm1038_vm10, %v7180_v55, %v6517_v27  ;;  %v9610_v27 = vld [vmem:[#allocation5 + $0x68] sm:$0xff] }
 0x75e   : > { %6792 = vrot.lane.b32.xlu1 %v16416_v19, %s9961_s20 }
 0x75f   : > { %v7025_v29 = vpop.permute.xlu0 %7024 }
 0x760   : > { %v7338_v20 = vsel %vm4960_vm15, %v7306_v30, %v7025_v29  ;;  %v6899_v35 = vpop.permute.xlu1 %6898 }
 0x761   : > { %6414 = vrot.lane.b32.xlu0 %v14843_v60, %s9953_s9  ;;  %8144 = vmatprep.mubr.msk.f32.mxu0 %vm4993_vm0, %v7338_v20  ;;  %v7307_v38 = vsel %vm4927_vm14, %v7275_v3, %v6899_v35  ;;  %v6040_v3 = vld [vmem:[#allocation5 + $0x121] sm:$0xff] }
 0x762   : > { %6920 = vrot.lane.b32.xlu1 %v6038_v51, %s9957_s25 }
 0x763   : > { %v6645_v46 = vpop.permute.xlu0 %6644 }
 0x764   : > { %v6519_v53 = vpop.permute.xlu1 %6518  ;;  %v7244_v41 = vsel %vm4861_vm12, %v7212_v63, %v6645_v46  ;;  %v16422_v46 = vld [vmem:[#allocation93_spill] sm:$0xff] }
 0x765   : > { %6922 = vrot.lane.b32.xlu0 %v6039_v62, %s9957_s25 }
 0x766   : > { %6540 = vrot.lane.b32.xlu1 %v6038_v51, %s9955_s0  ;;  %v7117_v51 = vsel %vm467_vm2, %v9610_v27, %v16421_v2  ;;  %v16425_v2 = vld [vmem:[#allocation107_spill] sm:$0xff] }
 0x767   : > { %v6647_v1 = vpop.permute.xlu0 %6646  ;;  %v7149_v13 = vsel %vm1002_vm6, %v7117_v51, %v16422_v46  ;;  %v16426_v46 = vld [vmem:[#allocation39_spill] sm:$0xff] }
 0x768   : > { %v7027_v7 = vpop.permute.xlu1 %7026 }
 0x769   : > { %v7339_v17 = vsel %vm4960_vm15, %v7307_v38, %v7027_v7  ;;  %6542 = vrot.lane.b32.xlu0 %v6039_v62, %s9955_s0  ;;  %v7181_v62 = vsel %vm1020_vm8, %v7149_v13, %v14466_v40 }
 0x76a   : > { %7048 = vrot.lane.b32.xlu1 %v6070_v59, %s9962_s23  ;;  %8145 = vmatmul.mubr.msk.f32.gmra.mrb[26].mxu0 %vm4993_vm0, %v7339_v17  ;;  %v7213_v42 = vsel %vm1038_vm10, %v7181_v62, %v6519_v53 }
 0x76b   : > { %v6775_v25 = vpop.permute.xlu0 %6774  ;;  %v7245_v38 = vsel %vm4861_vm12, %v7213_v42, %v6647_v1  ;;  %v9611_v1 = vld [vmem:[#allocation5 + $0x78] sm:$0xff]  ;;  %v14944_v42 = vld [vmem:[#allocation5 + $0x140] sm:$0xff] }
 0x76c   : > { %v6773_v39 = vpop.permute.xlu1 %6772  ;;  %v7277_v7 = vsel %vm4894_vm13, %v7245_v38, %v6775_v25  ;;  %v7118_v6 = vsel %vm467_vm2, %v9611_v1, %v16423_v5  ;;  %v6072_v25 = vld [vmem:[#allocation5 + $0x122] sm:$0xff]  ;;  %v9613_v5 = vld [vmem:[#allocation5 + $0x90] sm:$0xff] }
 0x76d   : > { %7050 = vrot.lane.b32.xlu0 %v6071_v48, %s9962_s23  ;;  %v7276_v19 = vsel %vm4894_vm13, %v7244_v41, %v6773_v39  ;;  %v7150_v43 = vsel %vm1002_vm6, %v7118_v6, %v16424_v24  ;;  %v6073_v41 = vld [vmem:[#allocation5 + $0x12a] sm:$0xff]  ;;  %v6043_v1 = vld [vmem:[#allocation5 + $0x141] sm:$0xff] }
 0x76e   : > { %6668 = vrot.lane.b32.xlu1 %v6070_v59, %s9956_s3  ;;  %v7182_v54 = vsel %vm1020_vm8, %v7150_v43, %v14488_v0 }
 0x76f   : > { %v6521_v9 = vpop.permute.xlu0 %6520 }
 0x770   : > { %v6901_v37 = vpop.permute.xlu1 %6900  ;;  %v7214_v63 = vsel %vm1038_vm10, %v7182_v54, %v6521_v9  ;;  %v9612_v9 = vld [vmem:[#allocation5 + $0x80] sm:$0xff] }
 0x771   : > { %6796 = vrot.lane.b32.xlu0 %v14883_v52, %s9961_s20  ;;  %v7308_v30 = vsel %vm4927_vm14, %v7276_v19, %v6901_v37  ;;  %v7119_v51 = vsel %vm467_vm2, %v9612_v9, %v16425_v2  ;;  %v14981_v9 = vld [vmem:[#allocation5 + $0x150] sm:$0xff] }
 0x772   : > { %6670 = vrot.lane.b32.xlu1 %v6071_v48, %s9956_s3  ;;  %v6041_v48 = vld [vmem:[#allocation5 + $0x129] sm:$0xff]  ;;  %v7151_v13 = vsel %vm1002_vm6, %v7119_v51, %v16426_v46 }
 0x773   : > { %v7029_v29 = vpop.permute.xlu0 %7028  ;;  %v7183_v62 = vsel %vm1020_vm8, %v7151_v13, %v14514_v4 }
 0x774   : > { %v7340_v20 = vsel %vm4960_vm15, %v7308_v30, %v7029_v29  ;;  %v6903_v35 = vpop.permute.xlu1 %6902 }
 0x775   : > { %6798 = vrot.lane.b32.xlu0 %v14892_v26, %s9961_s20  ;;  %8147 = vmatprep.mubr.msk.f32.mxu0 %vm4993_vm0, %v7340_v20  ;;  %v7309_v59 = vsel %vm4927_vm14, %v7277_v7, %v6903_v35  ;;  %v14931_v35 = vld [vmem:[#allocation5 + $0x138] sm:$0xff] }
 0x776   : > { %6416 = vrot.lane.b32.xlu1 %v14883_v52, %s9953_s9 }
 0x777   : > { %v6649_v21 = vpop.permute.xlu0 %6648 }
 0x778   : > { %v6523_v16 = vpop.permute.xlu1 %6522  ;;  %v7246_v19 = vsel %vm4861_vm12, %v7214_v63, %v6649_v21 }
 0x779   : > { %6418 = vrot.lane.b32.xlu0 %v14892_v26, %s9953_s9  ;;  %v7215_v38 = vsel %vm1038_vm10, %v7183_v62, %v6523_v16  ;;  %v6042_v16 = vld [vmem:[#allocation5 + $0x139] sm:$0xff] }
 0x77a   : > { %6924 = vrot.lane.b32.xlu1 %v6040_v3, %s9957_s25 }
 0x77b   : > { %v6651_v17 = vpop.permute.xlu0 %6650 }
 0x77c   : > { %v7031_v39 = vpop.permute.xlu1 %7030  ;;  %v7247_v7 = vsel %vm4861_vm12, %v7215_v38, %v6651_v17 }
 0x77d   : > { %v7341_v40 = vsel %vm4960_vm15, %v7309_v59, %v7031_v39  ;;  %6926 = vrot.lane.b32.xlu0 %v6041_v48, %s9957_s25 }
 0x77e   : > { %6544 = vrot.lane.b32.xlu1 %v6040_v3, %s9955_s0  ;;  %8148 = vmatmul.mubr.msk.f32.gmra.mrb[28].mxu0 %vm4993_vm0, %v7341_v40 }
 0x77f   : > { %v6779_v53 = vpop.permute.xlu0 %6778 }
 0x780   : > { %v6777_v44 = vpop.permute.xlu1 %6776  ;;  %v7279_v59 = vsel %vm4894_vm13, %v7247_v7, %v6779_v53  ;;  %v7120_v53 = vsel %vm467_vm2, %v9613_v5, %v14480_v32  ;;  %v6045_v5 = vld [vmem:[#allocation5 + $0x159] sm:$0xff] }
 0x781   : > { %6546 = vrot.lane.b32.xlu0 %v6041_v48, %s9955_s0  ;;  %v7278_v30 = vsel %vm4894_vm13, %v7246_v19, %v6777_v44  ;;  %v7152_v6 = vsel %vm1002_vm6, %v7120_v53, %v14504_v33 }
 0x782   : > { %7052 = vrot.lane.b32.xlu1 %v6072_v25, %s9962_s23 }
 0x783   : > { %v6525_v55 = vpop.permute.xlu0 %6524 }
 0x784   : > { %v6905_v37 = vpop.permute.xlu1 %6904 }
 0x785   : > { %7054 = vrot.lane.b32.xlu0 %v6073_v41, %s9962_s23  ;;  %v7310_v29 = vsel %vm4927_vm14, %v7278_v30, %v6905_v37  ;;  %v6074_v37 = vld [vmem:[#allocation5 + $0x13a] sm:$0xff] }
 0x786   : > { %6672 = vrot.lane.b32.xlu1 %v6072_v25, %s9956_s3  ;;  %v7184_v25 = vsel %vm1020_vm8, %v7152_v6, %v14656_v49  ;;  %v6075_v49 = vld [vmem:[#allocation5 + $0x142] sm:$0xff] }
 0x787   : > { %v7033_v20 = vpop.permute.xlu0 %7032  ;;  %v7216_v43 = vsel %vm1038_vm10, %v7184_v25, %v6525_v55  ;;  %v9614_v55 = vld [vmem:[#allocation5 + $0x98] sm:$0xff] }
 0x788   : > { %v7342_v0 = vsel %vm4960_vm15, %v7310_v29, %v7033_v20  ;;  %v6907_v27 = vpop.permute.xlu1 %6906  ;;  %v16427_v29 = vld [vmem:[#allocation110_spill] sm:$0xff] }
 0x789   : > { %6800 = vrot.lane.b32.xlu0 %v14931_v35, %s9961_s20  ;;  %8150 = vmatprep.mubr.msk.f32.mxu0 %vm4993_vm0, %v7342_v0  ;;  %v7311_v48 = vsel %vm4927_vm14, %v7279_v59, %v6907_v27  ;;  %v7121_v20 = vsel %vm467_vm2, %v9614_v55, %v16427_v29  ;;  %v15032_v55 = vld [vmem:[#allocation5 + $0x168] sm:$0xff] }
 0x78a   : > { %6674 = vrot.lane.b32.xlu1 %v6073_v41, %s9956_s3  ;;  %v7153_v0 = vsel %vm1002_vm6, %v7121_v20, %v14506_v56  ;;  %v14991_v56 = vld [vmem:[#allocation5 + $0x158] sm:$0xff] }
 0x78b   : > { %v6653_v21 = vpop.permute.xlu0 %6652  ;;  %v7185_v2 = vsel %vm1020_vm8, %v7153_v0, %v14666_v12  ;;  %v15040_v0 = vld [vmem:[#allocation5 + $0x170] sm:$0xff] }
 0x78c   : > { %v6527_v3 = vpop.permute.xlu1 %6526  ;;  %v7248_v63 = vsel %vm4861_vm12, %v7216_v43, %v6653_v21 }
 0x78d   : > { %6802 = vrot.lane.b32.xlu0 %v14944_v42, %s9961_s20  ;;  %v7217_v46 = vsel %vm1038_vm10, %v7185_v2, %v6527_v3  ;;  %v16430_v2 = vld [vmem:[#allocation114_spill] sm:$0xff] }
 0x78e   : > { %6420 = vrot.lane.b32.xlu1 %v14931_v35, %s9953_s9 }
 0x78f   : > { %v6655_v39 = vpop.permute.xlu0 %6654 }
 0x790   : > { %v7035_v40 = vpop.permute.xlu1 %7034  ;;  %v7249_v13 = vsel %vm4861_vm12, %v7217_v46, %v6655_v39  ;;  %v7122_v39 = vsel %vm467_vm2, %v14411_v11, %v14512_v10  ;;  %v16431_v46 = vld [vmem:[#allocation50_spill] sm:$0xff] }
 0x791   : > { %v7343_v4 = vsel %vm4960_vm15, %v7311_v48, %v7035_v40  ;;  %6422 = vrot.lane.b32.xlu0 %v14944_v42, %s9953_s9  ;;  %v6044_v48 = vld [vmem:[#allocation5 + $0x151] sm:$0xff] }
 0x792   : > { %6928 = vrot.lane.b32.xlu1 %v6042_v16, %s9957_s25  ;;  %8151 = vmatmul.mubr.msk.f32.gmra.mrb[30].mxu0 %vm4993_vm0, %v7343_v4  ;;  %v16428_v40 = vld [vmem:[#allocation155_spill] sm:$0xff] }
 0x793   : > { %v6783_v17 = vpop.permute.xlu0 %6782  ;;  %v7154_v4 = vsel %vm1002_vm6, %v7122_v39, %v16428_v40  ;;  %v6047_v40 = vld [vmem:[#allocation5 + $0x171] sm:$0xff] }
 0x794   : > { %v6781_v44 = vpop.permute.xlu1 %6780  ;;  %v7281_v21 = vsel %vm4894_vm13, %v7249_v13, %v6783_v17 }
 0x795   : > { %6930 = vrot.lane.b32.xlu0 %v6043_v1, %s9957_s25  ;;  %v7280_v32 = vsel %vm4894_vm13, %v7248_v63, %v6781_v44 }
 0x796   : > { %6548 = vrot.lane.b32.xlu1 %v6042_v16, %s9955_s0  ;;  %v7186_v16 = vsel %vm1020_vm8, %v7154_v4, %v14664_v47  ;;  %v6076_v47 = vld [vmem:[#allocation5 + $0x152] sm:$0xff]  ;;  %v9615_v4 = vld [vmem:[#allocation5 + $0xc8] sm:$0xff] }
 0x797   : > { %v6529_v24 = vpop.permute.xlu0 %6528 }
 0x798   : > { %v6909_v54 = vpop.permute.xlu1 %6908  ;;  %v7218_v44 = vsel %vm1038_vm10, %v7186_v16, %v6529_v24  ;;  %v16429_v24 = vld [vmem:[#allocation148_spill] sm:$0xff]  ;;  %v16432_v16 = vld [vmem:[#allocation58_spill] sm:$0xff] }
 0x799   : > { %6550 = vrot.lane.b32.xlu0 %v6043_v1, %s9955_s0  ;;  %v7312_v33 = vsel %vm4927_vm14, %v7280_v32, %v6909_v54  ;;  %v7123_v54 = vsel %vm467_vm2, %v14424_v18, %v16429_v24  ;;  %v6079_v24 = vld [vmem:[#allocation5 + $0x172] sm:$0xff] }
 0x79a   : > { %7056 = vrot.lane.b32.xlu1 %v6074_v37, %s9962_s23  ;;  %v7155_v63 = vsel %vm1002_vm6, %v7123_v54, %v14530_v34 }
 0x79b   : > { %v7037_v41 = vpop.permute.xlu0 %7036  ;;  %v7187_v32 = vsel %vm1020_vm8, %v7155_v63, %v14674_v45 }
 0x79c   : > { %v7344_v19 = vsel %vm4960_vm15, %v7312_v33, %v7037_v41  ;;  %v6911_v30 = vpop.permute.xlu1 %6910  ;;  %v6077_v41 = vld [vmem:[#allocation5 + $0x15a] sm:$0xff] }
 0x79d   : > { %7058 = vrot.lane.b32.xlu0 %v6075_v49, %s9962_s23  ;;  %8153 = vmatprep.mubr.msk.f32.mxu0 %vm4993_vm0, %v7344_v19  ;;  %v7313_v38 = vsel %vm4927_vm14, %v7281_v21, %v6911_v30 }
 0x79e   : > { %6676 = vrot.lane.b32.xlu1 %v6074_v37, %s9956_s3 }
 0x79f   : > { %v6657_v27 = vpop.permute.xlu0 %6656 }
 0x7a0   : > { %v6531_v51 = vpop.permute.xlu1 %6530  ;;  %v7250_v53 = vsel %vm4861_vm12, %v7218_v44, %v6657_v27 }
 0x7a1   : > { %6804 = vrot.lane.b32.xlu0 %v14981_v9, %s9961_s20  ;;  %v7219_v19 = vsel %vm1038_vm10, %v7187_v32, %v6531_v51  ;;  %v7124_v51 = vsel %vm467_vm2, %v14420_v58, %v16430_v2  ;;  %v6046_v58 = vld [vmem:[#allocation5 + $0x169] sm:$0xff] }
 0x7a2   : > { %6678 = vrot.lane.b32.xlu1 %v6075_v49, %s9956_s3  ;;  %v7156_v13 = vsel %vm1002_vm6, %v7124_v51, %v16431_v46  ;;  %v6048_v51 = vld [vmem:[#allocation5 + $0x181] sm:$0xff] }
 0x7a3   : > { %v6659_v62 = vpop.permute.xlu0 %6658  ;;  %v7188_v21 = vsel %vm1020_vm8, %v7156_v13, %v14672_v50 }
 0x7a4   : > { %v7039_v7 = vpop.permute.xlu1 %7038  ;;  %v7251_v30 = vsel %vm4861_vm12, %v7219_v19, %v6659_v62  ;;  %v9616_v19 = vld [vmem:[#allocation5 + $0xd8] sm:$0xff] }
 0x7a5   : > { %v7345_v12 = vsel %vm4960_vm15, %v7313_v38, %v7039_v7  ;;  %6806 = vrot.lane.b32.xlu0 %v14991_v56, %s9961_s20 }
 0x7a6   : > { %6424 = vrot.lane.b32.xlu1 %v14981_v9, %s9953_s9  ;;  %8154 = vmatmul.mubr.msk.f32.gmra.mrb[32].mxu0 %vm4993_vm0, %v7345_v12 }
 0x7a7   : > { %v6787_v3 = vpop.permute.xlu0 %6786 }
 0x7a8   : > { %v6785_v59 = vpop.permute.xlu1 %6784  ;;  %v7283_v18 = vsel %vm4894_vm13, %v7251_v30, %v6787_v3  ;;  %v16433_v30 = vld [vmem:[#allocation109_spill] sm:$0xff] }
 0x7a9   : > { %6426 = vrot.lane.b32.xlu0 %v14991_v56, %s9953_s9  ;;  %v7282_v11 = vsel %vm4894_vm13, %v7250_v53, %v6785_v59 }
 0x7aa   : > { %6932 = vrot.lane.b32.xlu1 %v6044_v48, %s9957_s25 }
 0x7ab   : > { %v6533_v17 = vpop.permute.xlu0 %6532 }
 0x7ac   : > { %v6913_v1 = vpop.permute.xlu1 %6912  ;;  %v7220_v38 = vsel %vm1038_vm10, %v7188_v21, %v6533_v17  ;;  %v7125_v17 = vsel %vm467_vm2, %v9615_v4, %v16432_v16  ;;  %v6081_v4 = vld [vmem:[#allocation5 + $0x18a] sm:$0xff]  ;;  %v6018_v16 = vld [vmem:[#allocation5 + $0x198] sm:$0xff] }
 0x7ad   : > { %6934 = vrot.lane.b32.xlu0 %v6045_v5, %s9957_s25  ;;  %v7314_v10 = vsel %vm4927_vm14, %v7282_v11, %v6913_v1  ;;  %v7157_v44 = vsel %vm1002_vm6, %v7125_v17, %v14546_v28 }
 0x7ae   : > { %6552 = vrot.lane.b32.xlu1 %v6044_v48, %s9955_s0 }
 0x7af   : > { %v7041_v6 = vpop.permute.xlu0 %7040 }
 0x7b0   : > { %v7346_v25 = vsel %vm4960_vm15, %v7314_v10, %v7041_v6  ;;  %v6915_v43 = vpop.permute.xlu1 %6914  ;;  %v6078_v10 = vld [vmem:[#allocation5 + $0x16a] sm:$0xff] }
 0x7b1   : > { %6554 = vrot.lane.b32.xlu0 %v6045_v5, %s9955_s0  ;;  %8156 = vmatprep.mubr.msk.f32.mxu0 %vm4993_vm0, %v7346_v25  ;;  %v7315_v34 = vsel %vm4927_vm14, %v7283_v18, %v6915_v43  ;;  %v7189_v5 = vsel %vm1020_vm8, %v7157_v44, %v14682_v14  ;;  %v7126_v18 = vsel %vm467_vm2, %v9616_v19, %v16433_v30 }
 0x7b2   : > { %7060 = vrot.lane.b32.xlu1 %v6076_v47, %s9962_s23 }
 0x7b3   : > { %v6661_v37 = vpop.permute.xlu0 %6660 }
 0x7b4   : > { %v6535_v33 = vpop.permute.xlu1 %6534  ;;  %v7252_v12 = vsel %vm4861_vm12, %v7220_v38, %v6661_v37  ;;  %v6016_v37 = vld [vmem:[#allocation5 + $0x180] sm:$0xff] }
 0x7b5   : > { %7062 = vrot.lane.b32.xlu0 %v6077_v41, %s9962_s23  ;;  %v7221_v11 = vsel %vm1038_vm10, %v7189_v5, %v6535_v33 }
 0x7b6   : > { %6680 = vrot.lane.b32.xlu1 %v6076_v47, %s9956_s3 }
 0x7b7   : > { %v6663_v49 = vpop.permute.xlu0 %6662 }
 0x7b8   : > { %v7043_v29 = vpop.permute.xlu1 %7042  ;;  %v7253_v6 = vsel %vm4861_vm12, %v7221_v11, %v6663_v49  ;;  %v7158_v49 = vsel %vm1002_vm6, %v7126_v18, %v14552_v22 }
 0x7b9   : > { %v7347_v45 = vsel %vm4960_vm15, %v7315_v34, %v7043_v29  ;;  %6808 = vrot.lane.b32.xlu0 %v15032_v55, %s9961_s20  ;;  %v7190_v29 = vsel %vm1020_vm8, %v7158_v49, %v14680_v23  ;;  %v6083_v49 = vld [vmem:[#allocation5 + $0x1a2] sm:$0xff] }
 0x7ba   : > { %6682 = vrot.lane.b32.xlu1 %v6077_v41, %s9956_s3  ;;  %8157 = vmatmul.mubr.msk.f32.gmra.mrb[34].mxu0 %vm4993_vm0, %v7347_v45  ;;  %v6017_v41 = vld [vmem:[#allocation5 + $0x188] sm:$0xff] }
 0x7bb   : > { %v6791_v20 = vpop.permute.xlu0 %6790 }
 0x7bc   : > { %v6789_v27 = vpop.permute.xlu1 %6788  ;;  %v7285_v25 = vsel %vm4894_vm13, %v7253_v6, %v6791_v20  ;;  %v9617_v20 = vld [vmem:[#allocation5 + $0xe0] sm:$0xff] }
 0x7bd   : > { %6810 = vrot.lane.b32.xlu0 %v15040_v0, %s9961_s20  ;;  %v7284_v3 = vsel %vm4894_vm13, %v7252_v12, %v6789_v27  ;;  %v7127_v27 = vsel %vm467_vm2, %v9617_v20, %v14554_v8  ;;  %v16434_v6 = vld [vmem:[#allocation57_spill] sm:$0xff] }
 0x7be   : > { %6428 = vrot.lane.b32.xlu1 %v15032_v55, %s9953_s9  ;;  %v7159_v46 = vsel %vm1002_vm6, %v7127_v27, %v14562_v57 }
 0x7bf   : > { %v6537_v62 = vpop.permute.xlu0 %6536  ;;  %v7191_v23 = vsel %vm1020_vm8, %v7159_v46, %v14690_v36 }
 0x7c0   : > { %v6917_v7 = vpop.permute.xlu1 %6916  ;;  %v7222_v2 = vsel %vm1038_vm10, %v7190_v29, %v6537_v62 }
 0x7c1   : > { %6430 = vrot.lane.b32.xlu0 %v15040_v0, %s9953_s9  ;;  %v7316_v59 = vsel %vm4927_vm14, %v7284_v3, %v6917_v7  ;;  %v6049_v7 = vld [vmem:[#allocation5 + $0x189] sm:$0xff] }
 0x7c2   : > { %6936 = vrot.lane.b32.xlu1 %v6046_v58, %s9957_s25 }
 0x7c3   : > { %v7045_v39 = vpop.permute.xlu0 %7044 }
 0x7c4   : > { %v7348_v48 = vsel %vm4960_vm15, %v7316_v59, %v7045_v39  ;;  %v6919_v50 = vpop.permute.xlu1 %6918 }
 0x7c5   : > { %6938 = vrot.lane.b32.xlu0 %v6047_v40, %s9957_s25  ;;  %8159 = vmatprep.mubr.msk.f32.mxu0 %vm4993_vm0, %v7348_v48  ;;  %v7317_v47 = vsel %vm4927_vm14, %v7285_v25, %v6919_v50  ;;  %v6080_v48 = vld [vmem:[#allocation5 + $0x182] sm:$0xff] }
 0x7c6   : > { %6556 = vrot.lane.b32.xlu1 %v6046_v58, %s9955_s0 }
 0x7c7   : > { %v6665_v1 = vpop.permute.xlu0 %6664 }
 0x7c8   : > { %v6539_v53 = vpop.permute.xlu1 %6538  ;;  %v7254_v13 = vsel %vm4861_vm12, %v7222_v2, %v6665_v1  ;;  %v6050_v1 = vld [vmem:[#allocation5 + $0x199] sm:$0xff] }
 0x7c9   : > { %6558 = vrot.lane.b32.xlu0 %v6047_v40, %s9955_s0  ;;  %v7223_v8 = vsel %vm1038_vm10, %v7191_v23, %v6539_v53  ;;  %v6019_v53 = vld [vmem:[#allocation5 + $0x1a0] sm:$0xff] }
 0x7ca   : > { %7064 = vrot.lane.b32.xlu1 %v6078_v10, %s9962_s23 }
 0x7cb   : > { %v6667_v43 = vpop.permute.xlu0 %6666 }
 0x7cc   : > { %v7047_v28 = vpop.permute.xlu1 %7046  ;;  %v7255_v12 = vsel %vm4861_vm12, %v7223_v8, %v6667_v43  ;;  %v6082_v43 = vld [vmem:[#allocation5 + $0x19a] sm:$0xff] }
 0x7cd   : > { %v7349_v54 = vsel %vm4960_vm15, %v7317_v47, %v7047_v28  ;;  %7066 = vrot.lane.b32.xlu0 %v6079_v24, %s9962_s23 }
 0x7ce   : > { %6684 = vrot.lane.b32.xlu1 %v6078_v10, %s9956_s3  ;;  %8160 = vmatmul.mubr.msk.f32.gmra.mrb[36].mxu0 %vm4993_vm0, %v7349_v54  ;;  %v9618_v10 = vld [vmem:[#allocation5 + $0xf0] sm:$0xff] }
 0x7cf   : > { %v6795_v14 = vpop.permute.xlu0 %6794  ;;  %v7128_v25 = vsel %vm467_vm2, %v9618_v10, %v16434_v6  ;;  %v16439_v10 = vld [vmem:[#allocation112_spill] sm:$0xff] }
 0x7d0   : > { %v6793_v63 = vpop.permute.xlu1 %6792  ;;  %v7287_v58 = vsel %vm4894_vm13, %v7255_v12, %v6795_v14  ;;  %v7160_v47 = vsel %vm1002_vm6, %v7128_v25, %v14568_v61 }
 0x7d1   : > { %6812 = vrot.lane.b32.xlu0 %v6016_v37, %s9961_s20  ;;  %v7286_v22 = vsel %vm4894_vm13, %v7254_v13, %v6793_v63  ;;  %v7192_v54 = vsel %vm1020_vm8, %v7160_v47, %v14688_v31  ;;  %v9619_v63 = vld [vmem:[#allocation5 + $0xf8] sm:$0xff] }
 0x7d2   : > { %6686 = vrot.lane.b32.xlu1 %v6079_v24, %s9956_s3  ;;  %v6051_v24 = vld [vmem:[#allocation5 + $0x1a1] sm:$0xff] }
 0x7d3   : > { %v15082_v32 = vpop.permute.xlu0 %6414 }
 0x7d4   : > { %v6921_v33 = vpop.permute.xlu1 %6920 }
 0x7d5   : > { %6814 = vrot.lane.b32.xlu0 %v6017_v41, %s9961_s20  ;;  %v7318_v62 = vsel %vm4927_vm14, %v7286_v22, %v6921_v33 }
 0x7d6   : > { %6432 = vrot.lane.b32.xlu1 %v6016_v37, %s9953_s9  ;;  %v7129_v37 = vsel %vm467_vm2, %v9619_v63, %v14570_v15 }
 0x7d7   : > { %v6923_v34 = vpop.permute.xlu0 %6922 }
 0x7d8   : > { %v6541_v45 = vpop.permute.xlu1 %6540  ;;  %v7319_v36 = vsel %vm4927_vm14, %v7287_v58, %v6923_v34 }
 0x7d9   : > { %6434 = vrot.lane.b32.xlu0 %v6017_v41, %s9953_s9  ;;  %v7224_v33 = vsel %vm1038_vm10, %v7192_v54, %v6541_v45  ;;  %v16435_v41 = vld [vmem:[#allocation152_spill] sm:$0xff] }
 0x7da   : > { %6940 = vrot.lane.b32.xlu1 %v6048_v51, %s9957_s25  ;;  %v7161_v19 = vsel %vm1002_vm6, %v7129_v37, %v16435_v41 }
 0x7db   : > { %v6543_v21 = vpop.permute.xlu0 %6542  ;;  %v7193_v61 = vsel %vm1020_vm8, %v7161_v19, %v15082_v32 }
 0x7dc   : > { %v7049_v38 = vpop.permute.xlu1 %7048  ;;  %v7225_v15 = vsel %vm1038_vm10, %v7193_v61, %v6543_v21  ;;  %v15151_v21 = vld [vmem:[#allocation18] ss:$0 sm:$0xff] }
 0x7dd   : > { %v7350_v57 = vsel %vm4960_vm15, %v7318_v62, %v7049_v38  ;;  %6942 = vrot.lane.b32.xlu0 %v6049_v7, %s9957_s25 }
 0x7de   : > { %6560 = vrot.lane.b32.xlu1 %v6048_v51, %s9955_s0  ;;  %8162 = vmatprep.mubr.msk.f32.mxu0 %vm4993_vm0, %v7350_v57 }
 0x7df   : > { %v7051_v3 = vpop.permute.xlu0 %7050 }
 0x7e0   : > { %v7351_v59 = vsel %vm4960_vm15, %v7319_v36, %v7051_v3  ;;  %v6669_v39 = vpop.permute.xlu1 %6668 }
 0x7e1   : > { %6562 = vrot.lane.b32.xlu0 %v6049_v7, %s9955_s0  ;;  %8163 = vmatmul.mubr.msk.f32.gmra.mrb[38].mxu0 %vm4993_vm0, %v7351_v59  ;;  %v7256_v30 = vsel %vm4861_vm12, %v7224_v33, %v6669_v39  ;;  %v9620_v59 = vld [vmem:[#allocation5 + $0x108] sm:$0xff]  ;;  %s15374_s0 = scalar_lea.hbm %s15433_s8, %s8040_s12 }
 0x7e2   : > { %7068 = vrot.lane.b32.xlu1 %v6080_v48, %s9962_s23  ;;  %v16436_v39 = vld [vmem:[#allocation111_spill] sm:$0xff] }
 0x7e3   : > { %v6797_v50 = vpop.permute.xlu0 %6796 }
 0x7e4   : > { %v6671_v40 = vpop.permute.xlu1 %6670  ;;  %v7288_v31 = vsel %vm4894_vm13, %v7256_v30, %v6797_v50  ;;  %v16437_v50 = vld [vmem:[#allocation34_spill] sm:$0xff] }
 0x7e5   : > { %7070 = vrot.lane.b32.xlu0 %v6081_v4, %s9962_s23  ;;  %v7257_v45 = vsel %vm4861_vm12, %v7225_v15, %v6671_v40 }
 0x7e6   : > { %6688 = vrot.lane.b32.xlu1 %v6080_v48, %s9956_s3  ;;  %v7130_v48 = vsel %vm467_vm2, %v9620_v59, %v16436_v39 }
 0x7e7   : > { %v6799_v17 = vpop.permute.xlu0 %6798  ;;  %v7162_v40 = vsel %vm1002_vm6, %v7130_v48, %v16437_v50 }
 0x7e8   : > { %v6417_v44 = vpop.permute.xlu1 %6416  ;;  %v7289_v27 = vsel %vm4894_vm13, %v7257_v45, %v6799_v17 }
 0x7e9   : > { %6816 = vrot.lane.b32.xlu0 %v6018_v16, %s9961_s20  ;;  %v7194_v16 = vsel %vm1020_vm8, %v7162_v40, %v6417_v44 }
 0x7ea   : > { %6690 = vrot.lane.b32.xlu1 %v6081_v4, %s9956_s3  ;;  %s9849_s3 = scalar_lea.vmem %s15376_s16, 4096 }
 0x7eb   : > { %v15120_v5 = vpop.permute.xlu0 %6418  ;;  %p9850_p4 = scmp.ne.s32.totalorder %s15376_s16, %s9849_s3 }
 0x7ec   : > { %v6925_v11 = vpop.permute.xlu1 %6924 }
 0x7ed   : > { %6944 = vrot.lane.b32.xlu0 %v6050_v1, %s9957_s25  ;;  %v7320_v34 = vsel %vm4927_vm14, %v7288_v31, %v6925_v11  ;;  %v16438_v1 = vld [vmem:[#allocation56_spill] sm:$0xff]  ;;  %p9851_p5 = pnand %p9850_p4, %p16456_p10 }
 0x7ee   : > { %6818 = vrot.lane.b32.xlu1 %v6019_v53, %s9961_s20  ;;  %v7131_v53 = vsel %vm467_vm2, %v14843_v60, %v16438_v1 }
 0x7ef   : > { %v6927_v28 = vpop.permute.xlu0 %6926  ;;  %v7163_v6 = vsel %vm1002_vm6, %v7131_v53, %v16439_v10  ;;  %p9852_p7 = pneg %p9851_p5 }
 0x7f0   : > { %v6545_v14 = vpop.permute.xlu1 %6544  ;;  %v7321_v32 = vsel %vm4927_vm14, %v7289_v27, %v6927_v28 }
 0x7f1   : > { %7072 = vrot.lane.b32.xlu0 %v6082_v43, %s9962_s23  ;;  %v7226_v11 = vsel %vm1038_vm10, %v7194_v16, %v6545_v14  ;;  %v7195_v43 = vsel %vm1020_vm8, %v7163_v6, %v15120_v5 }
 0x7f2   : > { %6946 = vrot.lane.b32.xlu1 %v6051_v24, %s9957_s25  ;;  %s9970_s25 = smov [#allocation20]  }
 0x7f3   : > { %v6547_v18 = vpop.permute.xlu0 %6546  ;;  %s9853_s2 = sshll.u32 %s9970_s25, 4  ;;  %s9854_s2 = int_to_ptr.vmem [resolvable:$false] %s9853_s2 }
 0x7f4   : > { %v7053_v29 = vpop.permute.xlu1 %7052  ;;  %v7227_v44 = vsel %vm1038_vm10, %v7195_v43, %v6547_v18  ;;  %s9855_s20 = scalar_lea.vmem %s9854_s2, 8192  ;;  %p9856_p9 = scmp.lt.s32.totalorder %s15376_s16, %s9854_s2 }
 0x7f5   : > { %v7352_v20 = vsel %vm4960_vm15, %v7320_v34, %v7053_v29  ;;  %p9857_p8 = scmp.lt.s32.totalorder %s9855_s20, %s9849_s3 }
 0x7f6   : > { %7074 = vrot.lane.b32.xlu1 %v6083_v49, %s9962_s23  ;;  %8165 = vmatprep.mubr.msk.f32.mxu0 %vm4993_vm0, %v7352_v20 }
 0x7f7   : > { %v7055_v2 = vpop.permute.xlu0 %7054  ;;  %p9858_p11 = por %p9857_p8, %p9856_p9 }
 0x7f8   : > { %v7353_v51 = vsel %vm4960_vm15, %v7321_v32, %v7055_v2  ;;  %v6673_v46 = vpop.permute.xlu1 %6672  ;;  %v16440_v32 = vld [vmem:[#allocation116_spill] sm:$0xff] }
 0x7f9   : > { %8166 = vmatmul.mubr.msk.f32.gmra.mrb[40].mxu0 %vm4993_vm0, %v7353_v51  ;;  %v7258_v25 = vsel %vm4861_vm12, %v7226_v11, %v6673_v46  ;;  %v7132_v2 = vsel %vm467_vm2, %v14883_v52, %v16440_v32  ;;  %v16441_v51 = vld [vmem:[#allocation71_spill] sm:$0xff]  ;;  %p9859_p3 = pnand %p9858_p11, %p9852_p7 }
 0x7fa   : > { %v7164_v46 = vsel %vm1002_vm6, %v7132_v2, %v16441_v51 }
 0x7fb   : > { %v6801_v13 = vpop.permute.xlu0 %6800 }
 0x7fc   : > { %v6675_v23 = vpop.permute.xlu1 %6674  ;;  %v7290_v47 = vsel %vm4894_vm13, %v7258_v25, %v6801_v13 }
 0x7fd   : > { %v7259_v60 = vsel %vm4861_vm12, %v7227_v44, %v6675_v23 }
 0x7ff   : > { %v6803_v22 = vpop.permute.xlu0 %6802 }
 0x800   : > { %v6421_v8 = vpop.permute.xlu1 %6420  ;;  %v7291_v63 = vsel %vm4894_vm13, %v7259_v60, %v6803_v22  ;;  %v16444_v60 = vld [vmem:[#allocation159_spill] sm:$0xff] }
 0x801   : > { %v8137_v62 = vpop.f32.mrb[20].mxu0  ;;  %v7196_v23 = vsel %vm1020_vm8, %v7164_v46, %v6421_v8 }
 0x802   : > { %v7548_v38 = vadd.f32 %v8137_v62, %v15151_v21  ;;  %v7542_v7 = vpop.f32.mrb[21].mxu0  ;;  %v16442_v62 = vld [vmem:[#allocation158_spill] sm:$0xff] }
 0x803   : > { %v7543_v12 = vadd.f32 %v15151_v21, %v7542_v7  ;;  %v6423_v57 = vpop.permute.xlu0 %6422 }
 0x804   : > { %v7702_v58 = vmax.f32 %v7548_v38, 0.0  ;;  %v6929_v36 = vpop.permute.xlu1 %6928  ;;  %v7133_v38 = vsel %vm467_vm2, %v14892_v26, %v16442_v62 }
 0x805   : > { %v7701_v3 = vmax.f32 %v7543_v12, 0.0  ;;  %v7322_v24 = vsel %vm4927_vm14, %v7290_v47, %v6929_v36  ;;  %v16443_v12 = vld [vmem:[#allocation38_spill] sm:$0xff] }
 0x806   : > { %7734 = vst.msk [vmem:[%s15159_s4 + $0x8] sm:$0xff] %vm467_vm2, %v7702_v58  ;;  %v7165_v58 = vsel %vm1002_vm6, %v7133_v38, %v16443_v12 }
 0x807   : > { %7733 = vst.msk [vmem:[%s15159_s4] sm:$0xff] %vm467_vm2, %v7701_v3  ;;  %v6931_v4 = vpop.permute.xlu0 %6930  ;;  %v7197_v52 = vsel %vm1020_vm8, %v7165_v58, %v6423_v57 }
 0x808   : > { %v6549_v17 = vpop.permute.xlu1 %6548  ;;  %v7323_v37 = vsel %vm4927_vm14, %v7291_v63, %v6931_v4  ;;  %v16445_v63 = vld [vmem:[#allocation117_spill] sm:$0xff] }
 0x809   : > { %v7228_v7 = vsel %vm1038_vm10, %v7196_v23, %v6549_v17 }
 0x80b   : > { %v6551_v28 = vpop.permute.xlu0 %6550 }
 0x80c   : > { %v7057_v54 = vpop.permute.xlu1 %7056  ;;  %v7229_v39 = vsel %vm1038_vm10, %v7197_v52, %v6551_v28 }
 0x80d   : > { %v7354_v14 = vsel %vm4960_vm15, %v7322_v24, %v7057_v54 }
 0x80e   : > { %8168 = vmatprep.mubr.msk.f32.mxu0 %vm4993_vm0, %v7354_v14  ;;  %v7134_v14 = vsel %vm467_vm2, %v14931_v35, %v16444_v60 }
 0x80f   : > { %v7059_v5 = vpop.permute.xlu0 %7058 }
 0x810   : > { %v7355_v33 = vsel %vm4960_vm15, %v7323_v37, %v7059_v5  ;;  %v6677_v41 = vpop.permute.xlu1 %6676  ;;  %v7166_v37 = vsel %vm1002_vm6, %v7134_v14, %v16445_v63 }
 0x811   : > { %8169 = vmatmul.mubr.msk.f32.gmra.mrb[42].mxu0 %vm4993_vm0, %v7355_v33  ;;  %v7260_v36 = vsel %vm4861_vm12, %v7228_v7, %v6677_v41 }
 0x813   : > { %v6805_v19 = vpop.permute.xlu0 %6804 }
 0x814   : > { %v6679_v30 = vpop.permute.xlu1 %6678  ;;  %v7292_v3 = vsel %vm4894_vm13, %v7260_v36, %v6805_v19  ;;  %v16446_v19 = vld [vmem:[#allocation118_spill] sm:$0xff] }
 0x815   : > { %v8140_v61 = vpop.f32.mrb[22].mxu0  ;;  %v7261_v50 = vsel %vm4861_vm12, %v7229_v39, %v6679_v30  ;;  %v7135_v30 = vsel %vm467_vm2, %v14944_v42, %v16446_v19 }
 0x816   : > { %v7558_v31 = vadd.f32 %v8140_v61, %v15151_v21  ;;  %v7552_v18 = vpop.f32.mrb[23].mxu0 }
 0x817   : > { %v7553_v49 = vadd.f32 %v15151_v21, %v7552_v18  ;;  %v6807_v15 = vpop.permute.xlu0 %6806 }
 0x818   : > { %v7704_v34 = vmax.f32 %v7558_v31, 0.0  ;;  %v6425_v29 = vpop.permute.xlu1 %6424  ;;  %v7293_v40 = vsel %vm4894_vm13, %v7261_v50, %v6807_v15  ;;  %v16447_v31 = vld [vmem:[#allocation55_spill] sm:$0xff]  ;;  %v16449_v50 = vld [vmem:[#allocation28_spill] sm:$0xff] }
 0x819   : > { %v7703_v45 = vmax.f32 %v7553_v49, 0.0  ;;  %v7198_v33 = vsel %vm1020_vm8, %v7166_v37, %v6425_v29  ;;  %v7167_v18 = vsel %vm1002_vm6, %v7135_v30, %v16447_v31 }
 0x81a   : > { %7736 = vst.msk [vmem:[%s15159_s4 + $0x18] sm:$0xff] %vm467_vm2, %v7704_v34 }
 0x81b   : > { %7735 = vst.msk [vmem:[%s15159_s4 + $0x10] sm:$0xff] %vm467_vm2, %v7703_v45  ;;  %v6427_v20 = vpop.permute.xlu0 %6426 }
 0x81c   : > { %v6933_v27 = vpop.permute.xlu1 %6932  ;;  %v7199_v35 = vsel %vm1020_vm8, %v7167_v18, %v6427_v20  ;;  %v16452_v18 = vld [vmem:[#allocation124_spill] sm:$0xff] }
 0x81d   : > { %v7324_v8 = vsel %vm4927_vm14, %v7292_v3, %v6933_v27 }
 0x81f   : > { %v6935_v13 = vpop.permute.xlu0 %6934 }
 0x820   : > { %v6553_v22 = vpop.permute.xlu1 %6552  ;;  %v7325_v57 = vsel %vm4927_vm14, %v7293_v40, %v6935_v13 }
 0x821   : > { %v7230_v61 = vsel %vm1038_vm10, %v7198_v33, %v6553_v22 }
 0x823   : > { %v6555_v59 = vpop.permute.xlu0 %6554 }
 0x824   : > { %v7061_v48 = vpop.permute.xlu1 %7060  ;;  %v7231_v45 = vsel %vm1038_vm10, %v7199_v35, %v6555_v59  ;;  %v16453_v35 = vld [vmem:[#allocation79_spill] sm:$0xff] }
 0x825   : > { %v7356_v26 = vsel %vm4960_vm15, %v7324_v8, %v7061_v48  ;;  %v16448_v8 = vld [vmem:[#allocation70_spill] sm:$0xff] }
 0x826   : > { %8171 = vmatprep.mubr.msk.f32.mxu0 %vm4993_vm0, %v7356_v26  ;;  %v7136_v48 = vsel %vm467_vm2, %v14981_v9, %v16448_v8 }
 0x827   : > { %v7063_v4 = vpop.permute.xlu0 %7062  ;;  %v7168_v26 = vsel %vm1002_vm6, %v7136_v48, %v16449_v50 }
 0x828   : > { %v7357_v16 = vsel %vm4960_vm15, %v7325_v57, %v7063_v4  ;;  %v6681_v17 = vpop.permute.xlu1 %6680 }
 0x829   : > { %v8143_v1 = vpop.f32.mrb[24].mxu0  ;;  %8172 = vmatmul.mubr.msk.f32.gmra.mrb[44].mxu0 %vm4993_vm0, %v7357_v16  ;;  %v7262_v49 = vsel %vm4861_vm12, %v7230_v61, %v6681_v17  ;;  %v16450_v16 = vld [vmem:[#allocation32_spill] sm:$0xff] }
 0x82a   : > { %v7568_v53 = vadd.f32 %v8143_v1, %v15151_v21  ;;  %v7562_v11 = vpop.f32.mrb[25].mxu0  ;;  %v7137_v17 = vsel %vm467_vm2, %v14991_v56, %v16450_v16 }
 0x82b   : > { %v7563_v10 = vadd.f32 %v15151_v21, %v7562_v11  ;;  %v6809_v6 = vpop.permute.xlu0 %6808  ;;  %v16451_v11 = vld [vmem:[#allocation119_spill] sm:$0xff] }
 0x82c   : > { %v7706_v25 = vmax.f32 %v7568_v53, 0.0  ;;  %v6683_v43 = vpop.permute.xlu1 %6682  ;;  %v7294_v15 = vsel %vm4894_vm13, %v7262_v49, %v6809_v6  ;;  %v7138_v49 = vsel %vm467_vm2, %v15032_v55, %v16452_v18 }
 0x82d   : > { %v7705_v47 = vmax.f32 %v7563_v10, 0.0  ;;  %v7263_v42 = vsel %vm4861_vm12, %v7231_v45, %v6683_v43  ;;  %v7169_v10 = vsel %vm1002_vm6, %v7137_v17, %v16451_v11 }
 0x82e   : > { %7738 = vst.msk [vmem:[%s15159_s4 + $0x28] sm:$0xff] %vm467_vm2, %v7706_v25 }
 0x82f   : > { %7737 = vst.msk [vmem:[%s15159_s4 + $0x20] sm:$0xff] %vm467_vm2, %v7705_v47  ;;  %v6811_v28 = vpop.permute.xlu0 %6810 }
 0x830   : > { %v6429_v44 = vpop.permute.xlu1 %6428  ;;  %v7295_v51 = vsel %vm4894_vm13, %v7263_v42, %v6811_v28 }
 0x831   : > { %v7200_v57 = vsel %vm1020_vm8, %v7168_v26, %v6429_v44 }
 0x833   : > { %v6431_v24 = vpop.permute.xlu0 %6430 }
 0x834   : > { %v6937_v54 = vpop.permute.xlu1 %6936  ;;  %v7201_v43 = vsel %vm1020_vm8, %v7169_v10, %v6431_v24 }
 0x835   : > { %v7326_v29 = vsel %vm4927_vm14, %v7294_v15, %v6937_v54  ;;  %v7170_v15 = vsel %vm1002_vm6, %v7138_v49, %v16453_v35 }
 0x837   : > { %v6939_v5 = vpop.permute.xlu0 %6938 }
 0x838   : > { %v6557_v41 = vpop.permute.xlu1 %6556  ;;  %v7327_v13 = vsel %vm4927_vm14, %v7295_v51, %v6939_v5 }
 0x839   : > { %v7232_v1 = vsel %vm1038_vm10, %v7200_v57, %v6557_v41 }
 0x83b   : > { %v6559_v34 = vpop.permute.xlu0 %6558 }
 0x83c   : > { %v7065_v27 = vpop.permute.xlu1 %7064  ;;  %v7233_v44 = vsel %vm1038_vm10, %v7201_v43, %v6559_v34 }
 0x83d   : > { %v7358_v32 = vsel %vm4960_vm15, %v7326_v29, %v7065_v27  ;;  %v8146_v2 = vpop.f32.mrb[26].mxu0 }
 0x83e   : > { %v7578_v46 = vadd.f32 %v8146_v2, %v15151_v21  ;;  %v7572_v20 = vpop.f32.mrb[27].mxu0  ;;  %8174 = vmatprep.mubr.msk.f32.mxu0 %vm4993_vm0, %v7358_v32  ;;  %v16454_v32 = vld [vmem:[#allocation81_spill] sm:$0xff] }
 0x83f   : > { %v7573_v23 = vadd.f32 %v15151_v21, %v7572_v20  ;;  %v7067_v22 = vpop.permute.xlu0 %7066  ;;  %v7139_v2 = vsel %vm467_vm2, %v15040_v0, %v16454_v32 }
 0x840   : > { %v7708_v62 = vmax.f32 %v7578_v46, 0.0  ;;  %v7359_v38 = vsel %vm4960_vm15, %v7327_v13, %v7067_v22  ;;  %v6685_v7 = vpop.permute.xlu1 %6684  ;;  %v16455_v46 = vld [vmem:[#allocation68_spill] sm:$0xff] }
 0x841   : > { %v7707_v12 = vmax.f32 %v7573_v23, 0.0  ;;  %8175 = vmatmul.mubr.msk.f32.gmra.mrb[46].mxu0 %vm4993_vm0, %v7359_v38  ;;  %v7264_v9 = vsel %vm4861_vm12, %v7232_v1, %v6685_v7  ;;  %v7171_v55 = vsel %vm1002_vm6, %v7139_v2, %v16455_v46 }
 0x842   : > { %7740 = vst.msk [vmem:[%s15159_s4 + $0x38] sm:$0xff] %vm467_vm2, %v7708_v62 }
 0x843   : > { %7739 = vst.msk [vmem:[%s15159_s4 + $0x30] sm:$0xff] %vm467_vm2, %v7707_v12  ;;  %v6813_v58 = vpop.permute.xlu0 %6812 }
 0x844   : > { %v6687_v36 = vpop.permute.xlu1 %6686  ;;  %v7296_v47 = vsel %vm4894_vm13, %v7264_v9, %v6813_v58 }
 0x845   : > { %v7265_v63 = vsel %vm4861_vm12, %v7233_v44, %v6687_v36 }
 0x847   : > { %v6815_v52 = vpop.permute.xlu0 %6814 }
 0x848   : > { %v6433_v3 = vpop.permute.xlu1 %6432  ;;  %v7297_v33 = vsel %vm4894_vm13, %v7265_v63, %v6815_v52 }
 0x849   : > { %v7202_v34 = vsel %vm1020_vm8, %v7170_v15, %v6433_v3 }
 0x84b   : > { %v6435_v59 = vpop.permute.xlu0 %6434 }
 0x84c   : > { %v6941_v39 = vpop.permute.xlu1 %6940  ;;  %v7203_v23 = vsel %vm1020_vm8, %v7171_v55, %v6435_v59 }
 0x84d   : > { %v7328_v54 = vsel %vm4927_vm14, %v7296_v47, %v6941_v39 }
 0x84f   : > { %v6943_v40 = vpop.permute.xlu0 %6942 }
 0x850   : > { %v6561_v4 = vpop.permute.xlu1 %6560  ;;  %v7329_v24 = vsel %vm4927_vm14, %v7297_v33, %v6943_v40 }
 0x851   : > { %v8149_v53 = vpop.f32.mrb[28].mxu0  ;;  %v7234_v29 = vsel %vm1038_vm10, %v7202_v34, %v6561_v4 }
 0x852   : > { %v7588_v6 = vadd.f32 %v8149_v53, %v15151_v21  ;;  %v7582_v25 = vpop.f32.mrb[29].mxu0 }
 0x853   : > { %v7583_v28 = vadd.f32 %v15151_v21, %v7582_v25  ;;  %v6563_v56 = vpop.permute.xlu0 %6562 }
 0x854   : > { %v7710_v60 = vmax.f32 %v7588_v6, 0.0  ;;  %v7069_v14 = vpop.permute.xlu1 %7068  ;;  %v7235_v38 = vsel %vm1038_vm10, %v7203_v23, %v6563_v56 }
 0x855   : > { %v7709_v37 = vmax.f32 %v7583_v28, 0.0  ;;  %v7360_v5 = vsel %vm4960_vm15, %v7328_v54, %v7069_v14 }
 0x856   : > { %7742 = vst.msk [vmem:[%s15159_s4 + $0x48] sm:$0xff] %vm467_vm2, %v7710_v60  ;;  %8177 = vmatprep.mubr.msk.f32.mxu0 %vm4993_vm0, %v7360_v5 }
 0x857   : > { %7741 = vst.msk [vmem:[%s15159_s4 + $0x40] sm:$0xff] %vm467_vm2, %v7709_v37  ;;  %v7071_v41 = vpop.permute.xlu0 %7070 }
 0x858   : > { %v7361_v19 = vsel %vm4960_vm15, %v7329_v24, %v7071_v41  ;;  %v6689_v30 = vpop.permute.xlu1 %6688 }
 0x859   : > { %8178 = vmatmul.mubr.msk.f32.gmra.mrb[48].mxu0 %vm4993_vm0, %v7361_v19  ;;  %v7266_v42 = vsel %vm4861_vm12, %v7234_v29, %v6689_v30 }
 0x85b   : > { %v6817_v61 = vpop.permute.xlu0 %6816 }
 0x85c   : > { %v6691_v31 = vpop.permute.xlu1 %6690  ;;  %v7298_v51 = vsel %vm4894_vm13, %v7266_v42, %v6817_v61 }
 0x85d   : > { %v7267_v0 = vsel %vm4861_vm12, %v7235_v38, %v6691_v31 }
 0x85f   : > { %v6945_v45 = vpop.permute.xlu0 %6944 }
 0x860   : > { %v6819_v27 = vpop.permute.xlu1 %6818  ;;  %v7330_v20 = vsel %vm4927_vm14, %v7298_v51, %v6945_v45 }
 0x861   : > { %v7299_v36 = vsel %vm4894_vm13, %v7267_v0, %v6819_v27 }
 0x863   : > { %v7073_v13 = vpop.permute.xlu0 %7072 }
 0x864   : > { %v7362_v22 = vsel %vm4960_vm15, %v7330_v20, %v7073_v13  ;;  %v6947_v62 = vpop.permute.xlu1 %6946 }
 0x865   : > { %v8152_v7 = vpop.f32.mrb[30].mxu0  ;;  %8180 = vmatprep.mubr.msk.f32.mxu0 %vm4993_vm0, %v7362_v22  ;;  %v7331_v3 = vsel %vm4927_vm14, %v7299_v36, %v6947_v62 }
 0x866   : > { %v7598_v12 = vadd.f32 %v8152_v7, %v15151_v21  ;;  %v7592_v58 = vpop.f32.mrb[31].mxu0 }
 0x867   : > { %v7593_v52 = vadd.f32 %v15151_v21, %v7592_v58 }
 0x868   : > { %v7712_v59 = vmax.f32 %v7598_v12, 0.0  ;;  %v7075_v39 = vpop.permute.xlu1 %7074 }
 0x869   : > { %v7711_v8 = vmax.f32 %v7593_v52, 0.0  ;;  %v7363_v48 = vsel %vm4960_vm15, %v7331_v3, %v7075_v39 }
 0x86a   : > { %7744 = vst.msk [vmem:[%s15159_s4 + $0x58] sm:$0xff] %vm467_vm2, %v7712_v59  ;;  %8181 = vmatmul.mubr.msk.f32.gmra.mrb[50].mxu0 %vm4993_vm0, %v7363_v48 }
 0x86b   : > { %7743 = vst.msk [vmem:[%s15159_s4 + $0x50] sm:$0xff] %vm467_vm2, %v7711_v8 }
 0x879   : > { %v8155_v50 = vpop.f32.mrb[32].mxu0 }
 0x87a   : > { %v7608_v26 = vadd.f32 %v8155_v50, %v15151_v21  ;;  %v7602_v40 = vpop.f32.mrb[33].mxu0 }
 0x87b   : > { %v7603_v57 = vadd.f32 %v15151_v21, %v7602_v40 }
 0x87c   : > { %v7714_v4 = vmax.f32 %v7608_v26, 0.0 }
 0x87d   : > { %v7713_v16 = vmax.f32 %v7603_v57, 0.0 }
 0x87e   : > { %7746 = vst.msk [vmem:[%s15159_s4 + $0x68] sm:$0xff] %vm467_vm2, %v7714_v4 }
 0x87f   : > { %7745 = vst.msk [vmem:[%s15159_s4 + $0x60] sm:$0xff] %vm467_vm2, %v7713_v16 }
 0x88d   : > { %v8158_v17 = vpop.f32.mrb[34].mxu0 }
 0x88e   : > { %v7618_v1 = vadd.f32 %v8158_v17, %v15151_v21  ;;  %v7612_v53 = vpop.f32.mrb[35].mxu0 }
 0x88f   : > { %v7613_v11 = vadd.f32 %v15151_v21, %v7612_v53 }
 0x890   : > { %v7716_v10 = vmax.f32 %v7618_v1, 0.0 }
 0x891   : > { %v7715_v9 = vmax.f32 %v7613_v11, 0.0 }
 0x892   : > { %7748 = vst.msk [vmem:[%s15159_s4 + $0x78] sm:$0xff] %vm467_vm2, %v7716_v10 }
 0x893   : > { %7747 = vst.msk [vmem:[%s15159_s4 + $0x70] sm:$0xff] %vm467_vm2, %v7715_v9 }
 0x8a1   : > { %v8161_v6 = vpop.f32.mrb[36].mxu0 }
 0x8a2   : > { %v7628_v25 = vadd.f32 %v8161_v6, %v15151_v21  ;;  %v7622_v43 = vpop.f32.mrb[37].mxu0 }
 0x8a3   : > { %v7623_v47 = vadd.f32 %v15151_v21, %v7622_v43 }
 0x8a4   : > { %v7718_v28 = vmax.f32 %v7628_v25, 0.0 }
 0x8a5   : > { %v7717_v56 = vmax.f32 %v7623_v47, 0.0 }
 0x8a6   : > { %7750 = vst.msk [vmem:[%s15159_s4 + $0x88] sm:$0xff] %vm467_vm2, %v7718_v28 }
 0x8a7   : > { %7749 = vst.msk [vmem:[%s15159_s4 + $0x80] sm:$0xff] %vm467_vm2, %v7717_v56 }
 0x8b4   : > { %v8164_v44 = vpop.f32.mrb[38].mxu0 }
 0x8b5   : > { %v7638_v54 = vadd.f32 %v8164_v44, %v15151_v21  ;;  %v7632_v60 = vpop.f32.mrb[39].mxu0 }
 0x8b6   : > { %v7633_v14 = vadd.f32 %v15151_v21, %v7632_v60 }
 0x8b7   : > { %v7720_v63 = vmax.f32 %v7638_v54, 0.0 }
 0x8b8   : > { %v7719_v37 = vmax.f32 %v7633_v14, 0.0 }
 0x8b9   : > { %7752 = vst.msk [vmem:[%s15159_s4 + $0x98] sm:$0xff] %vm467_vm2, %v7720_v63 }
 0x8ba   : > { %7751 = vst.msk [vmem:[%s15159_s4 + $0x90] sm:$0xff] %vm467_vm2, %v7719_v37 }
 0x8cc   : > { %v8167_v5 = vpop.f32.mrb[40].mxu0 }
 0x8cd   : > { %v7648_v33 = vadd.f32 %v8167_v5, %v15151_v21  ;;  %v7642_v24 = vpop.f32.mrb[41].mxu0 }
 0x8ce   : > { %v7643_v41 = vadd.f32 %v15151_v21, %v7642_v24 }
 0x8cf   : > { %v7722_v19 = vmax.f32 %v7648_v33, 0.0 }
 0x8d0   : > { %v7721_v30 = vmax.f32 %v7643_v41, 0.0 }
 0x8d1   : > { %7754 = vst.msk [vmem:[%s15159_s4 + $0xa8] sm:$0xff] %vm467_vm2, %v7722_v19 }
 0x8d2   : > { %7753 = vst.msk [vmem:[%s15159_s4 + $0xa0] sm:$0xff] %vm467_vm2, %v7721_v30 }
 0x8e4   : > { %v8170_v61 = vpop.f32.mrb[42].mxu0 }
 0x8e5   : > { %v7658_v31 = vadd.f32 %v8170_v61, %v15151_v21  ;;  %v7652_v18 = vpop.f32.mrb[43].mxu0 }
 0x8e6   : > { %v7653_v49 = vadd.f32 %v15151_v21, %v7652_v18 }
 0x8e7   : > { %v7724_v35 = vmax.f32 %v7658_v31, 0.0 }
 0x8e8   : > { %v7723_v15 = vmax.f32 %v7653_v49, 0.0 }
 0x8e9   : > { %7756 = vst.msk [vmem:[%s15159_s4 + $0xb8] sm:$0xff] %vm467_vm2, %v7724_v35 }
 0x8ea   : > { %7755 = vst.msk [vmem:[%s15159_s4 + $0xb0] sm:$0xff] %vm467_vm2, %v7723_v15 }
 0x8fc   : > { %v8173_v34 = vpop.f32.mrb[44].mxu0 }
 0x8fd   : > { %v7668_v45 = vadd.f32 %v8173_v34, %v15151_v21  ;;  %v7662_v29 = vpop.f32.mrb[45].mxu0 }
 0x8fe   : > { %v7663_v27 = vadd.f32 %v15151_v21, %v7662_v29 }
 0x8ff   : > { %v7726_v42 = vmax.f32 %v7668_v45, 0.0 }
 0x900   : > { %v7725_v32 = vmax.f32 %v7663_v27, 0.0 }
 0x901   : > { %7758 = vst.msk [vmem:[%s15159_s4 + $0xc8] sm:$0xff] %vm467_vm2, %v7726_v42 }
 0x902   : > { %7757 = vst.msk [vmem:[%s15159_s4 + $0xc0] sm:$0xff] %vm467_vm2, %v7725_v32 }
 0x914   : > { %v8176_v2 = vpop.f32.mrb[46].mxu0 }
 0x915   : > { %v7678_v51 = vadd.f32 %v8176_v2, %v15151_v21  ;;  %v7672_v46 = vpop.f32.mrb[47].mxu0 }
 0x916   : > { %v7673_v55 = vadd.f32 %v15151_v21, %v7672_v46 }
 0x917   : > { %v7728_v20 = vmax.f32 %v7678_v51, 0.0 }
 0x918   : > { %v7727_v13 = vmax.f32 %v7673_v55, 0.0 }
 0x919   : > { %7760 = vst.msk [vmem:[%s15159_s4 + $0xd8] sm:$0xff] %vm467_vm2, %v7728_v20 }
 0x91a   : > { %7759 = vst.msk [vmem:[%s15159_s4 + $0xd0] sm:$0xff] %vm467_vm2, %v7727_v13 }
 0x92c   : > { %v8179_v23 = vpop.f32.mrb[48].mxu0 }
 0x92d   : > { %v7688_v22 = vadd.f32 %v8179_v23, %v15151_v21  ;;  %v7682_v62 = vpop.f32.mrb[49].mxu0 }
 0x92e   : > { %v7683_v38 = vadd.f32 %v15151_v21, %v7682_v62 }
 0x92f   : > { %v7730_v7 = vmax.f32 %v7688_v22, 0.0 }
 0x930   : > { %v7729_v0 = vmax.f32 %v7683_v38, 0.0 }
 0x931   : > { %7762 = vst.msk [vmem:[%s15159_s4 + $0xe8] sm:$0xff] %vm467_vm2, %v7730_v7 }
 0x932   : > { %7761 = vst.msk [vmem:[%s15159_s4 + $0xe0] sm:$0xff] %vm467_vm2, %v7729_v0 }
 0x93d   : > { %v8182_v12 = vpop.f32.mrb[50].mxu0 }
 0x93e   : > { %v7698_v58 = vadd.f32 %v8182_v12, %v15151_v21  ;;  %v7692_v36 = vpop.f32.mrb[51].mxu0 }
 0x93f   : > { %v7693_v52 = vadd.f32 %v15151_v21, %v7692_v36 }
 0x940   : > { %v7732_v3 = vmax.f32 %v7698_v58, 0.0 }
 0x941   : > { %v7731_v59 = vmax.f32 %v7693_v52, 0.0 }
 0x942   : > { %7764 = vst.msk [vmem:[%s15159_s4 + $0xf8] sm:$0xff] %vm467_vm2, %v7732_v3 }
 0x943   : > { %7763 = vst.msk [vmem:[%s15159_s4 + $0xf0] sm:$0xff] %vm467_vm2, %v7731_v59 }
 0x944   : > { %9862 = shalt.err (!%p9859_p3)
}
 0x945   : > { %s9863_s23 = scalar_lea.hbm %s15374_s0, 4096  ;;  %s9867_s13 = scalar_lea.hbm %s15433_s8, 8192 }
 0x946   : > { %p9864_p12 = scmp.ne.s32.totalorder %s15374_s0, %s9863_s23  ;;  %p9868_p0 = scmp.lt.u32.totalorder %s15374_s0, %s15433_s8 }
 0x947   : > { %p9869_p6 = scmp.lt.u32.totalorder %s9867_s13, %s9863_s23  ;;  %p9871_p4 = scmp.lt.u32.totalorder %s9863_s23, %s15374_s0 }
 0x948   : > { %p9865_p1 = pnand %p9864_p12, %p16456_p10 }
 0x949   : > { %p9870_p2 = por %p9869_p6, %p9868_p0 }
 0x94a   : > { %p9866_p13 = pneg %p9865_p1 }
 0x94b   : > { %p9872_p5 = por %p9871_p4, %p9870_p2 }
 0x94d   : > { %p9873_p7 = pnand %p9872_p5, %p9866_p13 }
 0x94f   : > { %9876 = shalt.err (!%p9873_p7)
}
 0x950   : > { %s9971_s24 = smov 128  }
 0x951   : > { %8280 = dma.vmem_to_hbm [thread:$0]  (%p16456_p10), %s15376_s16, 4096, %s15374_s0, %s7766_s11, %s9971_s24, %s9971_s24, %s9949_s21  }
 0x952 PF: > { %s7794_s4 = sand.u32 1, %s9923_s27   ;;  %p16457_p9 = scmp.ne.s32.totalorder %s15695_s17, 0 }
 0x953   : > { %p16458_p8 = scmp.ge.s32.totalorder %s9935_s30, 2  ;;  %s7795_s12 = scalar_lea.sflag [#allocation8], %s7794_s4 }
 0x955   : > { %p8309_p11 = pnand %p16458_p8, %p16457_p9 }
 0x957   : > { %9918 = dma.done.wait (!%p8309_p11), %s7795_s12, 4096  }
 0x958   : > { %9920 = vsyncadd (!%p8309_p11), %s7795_s12, 4294963200  ;;  %p27_p3 = scmp.ge.s32.totalorder %s10204_s15, 4   ;;  %s16459_s27 = smov %s9927_s28 }
 0x959   : > { %s16460_s28 = smov %s9931_s29  ;;  %s16461_s29 = smov %s10215_s10 }
 0x95a   : > { %s16462_s30 = smov %s10204_s15  ;;  %29 = sbr.rel (!%p27_p3) target bundleno = 17 (0x11), region = 142 }
 0x961   :  { %7800 = vsyncpa [#allocation7], 1 }
 0x962   :  { %7802 = vsyncpa [#allocation7 + $0x1], 1 }
 0x963   :  { %7803 = vsyncpa [#allocation10], 1 }
 0x964   :  { %7805 = vsyncpa [#allocation10 + $0x1], 1 }
 0x965   :  { %7806 = vsyncpa [#allocation13], 1 }
 0x966   :  { %7807 = vsyncpa [#allocation16], 1 }
 0x967   :  { %7808 = vsyncpa [#allocation19], 1 }
 0x968   :  { %7809 = vsyncpa [#allocation8], 1 }
 0x969   :  { %7811 = vsyncpa [#allocation8 + $0x1], 1 }

</bundles_post_ra>
